<compile_context>
chip_gen: v7x
topology: tpu7x:2x2x1
jax: 0.10.0
libtpu: 0.0.40
codegen_flags: <defaults>
</compile_context>

<pallas_src>
import jax
import jax.numpy as jnp
from jax.experimental import pallas as pl
from jax.experimental.pallas import tpu as pltpu

HIDDEN_DIM = 128
MLP_DIM = 128
MLP_DIM_SPATIAL = 32
MLP_DIM_VEL = 32
MLP_DIM_HIDDEN = MLP_DIM - MLP_DIM_SPATIAL - MLP_DIM_VEL  # 64
OUT_DIM = HIDDEN_DIM
FILL_VALUE = -10.0


def _attention_mlp_pooling_kernel(
    obs1_ref, obs2_ref, hid_ref,
    ws_ref, bs_ref, wh_ref, bh_ref, wvl_ref, bvl_ref,
    wqs_ref, wqh_ref, wqv_ref, bmq_ref,
    wks_ref, wkh_ref, wkv_ref, bmk_ref,
    wvs_ref, wvh_ref, wvv_ref, bmv_ref,
    wo_ref, bo_ref,
    o_ref,
):
    f32 = jnp.float32
    bf16 = jnp.bfloat16
    bt, n, _ = obs2_ref.shape
    m = MLP_DIM

    obs1 = obs1_ref[...]                 # [Bt, N, 2]
    obs2 = obs2_ref[...]                 # [Bt, N, 2]

    # ---- per-agent NaN masks (O(N)); pairwise masks are broadcast ORs ----
    nan_o2 = jnp.isnan(obs2[..., 0:1]) | jnp.isnan(obs2[..., 1:2])      # [Bt,N,1]
    vel = obs2 - obs1
    nan_vel = jnp.isnan(vel[..., 0:1]) | jnp.isnan(vel[..., 1:2])       # [Bt,N,1]
    obs2c = jnp.where(nan_o2, 0.0, obs2)      # cleaned: no NaN reaches MXU/VPU math
    velc = jnp.where(nan_vel, 0.0, vel)
    pair_o2 = nan_o2[:, :, None, :] | nan_o2[:, None, :, :]             # [Bt,N,N,1]
    pair_vel = nan_vel[:, :, None, :] | nan_vel[:, None, :, :]          # [Bt,N,N,1]

    # ---- spatial / velocity pair embeddings (2-wide input -> VPU multiply-add) ----
    ws = ws_ref[...]                                                    # [2, S]
    bs = bs_ref[...]                                                    # [1, S]
    rel = obs2c[:, None, :, :] - obs2c[:, :, None, :]                   # [Bt,N,N,2]
    sp = rel[..., 0:1] * ws[0:1, :] + rel[..., 1:2] * ws[1:2, :] + bs
    sp = jnp.where(pair_o2, FILL_VALUE, jnp.maximum(sp, 0.0))           # [Bt,N,N,S]

    wvl = wvl_ref[...]                                                  # [2, V]
    bvl = bvl_ref[...]                                                  # [1, V]
    relv = (velc[:, None, :, :] - velc[:, :, None, :]) * 4.0            # [Bt,N,N,2]
    dv = relv[..., 0:1] * wvl[0:1, :] + relv[..., 1:2] * wvl[1:2, :] + bvl
    dv = jnp.where(pair_vel, FILL_VALUE, jnp.maximum(dv, 0.0))          # [Bt,N,N,V]

    # ---- hidden-state embedding: O(N) rows only, never broadcast to [N,N,.] ----
    h_dim = hid_ref.shape[-1]
    hid = hid_ref[...].reshape(bt * n, h_dim)                           # [Bt*N,H]
    nan_hid = jnp.isnan(hid).any(axis=-1, keepdims=True)                # [Bt*N,1]
    hidc = jnp.where(nan_hid, 0.0, hid).astype(bf16)
    he = jnp.dot(hidc, wh_ref[...], preferred_element_type=f32) + bh_ref[...]
    he = jnp.where(nan_hid, 0.0, jnp.maximum(he, 0.0))                  # [Bt*N,Dh]
    he_b = he.astype(bf16)

    # ---- query: diagonal of the pair embedding is analytic (rel/relv diag == 0) ----
    sp_diag = jnp.where(nan_o2, FILL_VALUE, jnp.maximum(bs, 0.0))       # [Bt,N,S]
    dv_diag = jnp.where(nan_vel, FILL_VALUE, jnp.maximum(bvl, 0.0))     # [Bt,N,V]
    sp_diag_b = sp_diag.reshape(bt * n, MLP_DIM_SPATIAL).astype(bf16)
    dv_diag_b = dv_diag.reshape(bt * n, MLP_DIM_VEL).astype(bf16)
    q = (jnp.dot(sp_diag_b, wqs_ref[...], preferred_element_type=f32)
         + jnp.dot(he_b, wqh_ref[...], preferred_element_type=f32)
         + jnp.dot(dv_diag_b, wqv_ref[...], preferred_element_type=f32)
         + bmq_ref[...])                                                # [Bt*N,M]

    # ---- keys / values via split fused weights (no concat, no [N,N,M] emb) ----
    sp_b = sp.reshape(bt * n * n, MLP_DIM_SPATIAL).astype(bf16)
    dv_b = dv.reshape(bt * n * n, MLP_DIM_VEL).astype(bf16)

    k_ij = (jnp.dot(sp_b, wks_ref[...], preferred_element_type=f32)
            + jnp.dot(dv_b, wkv_ref[...], preferred_element_type=f32))  # [Bt*N*N,M]
    k_j = jnp.dot(he_b, wkh_ref[...], preferred_element_type=f32) + bmk_ref[...]
    k = k_ij.reshape(bt, n, n, m) + k_j.reshape(bt, 1, n, m)            # [Bt,N,N,M]

    v_ij = (jnp.dot(sp_b, wvs_ref[...], preferred_element_type=f32)
            + jnp.dot(dv_b, wvv_ref[...], preferred_element_type=f32))  # [Bt*N*N,M]
    v_j = jnp.dot(he_b, wvh_ref[...], preferred_element_type=f32) + bmv_ref[...]
    v = v_ij.reshape(bt, n, n, m) + v_j.reshape(bt, 1, n, m)            # [Bt,N,N,M]

    # ---- single-head attention per focal agent i over neighbours j ----
    scale = 1.0 / jnp.sqrt(jnp.float32(m))
    q3 = q.reshape(bt, n, m)
    scores = jnp.sum(q3[:, :, None, :] * k, axis=-1) * scale            # [Bt,N,N]
    smax = jnp.max(scores, axis=-1, keepdims=True)
    p = jnp.exp(scores - smax)
    denom = jnp.sum(p, axis=-1, keepdims=True)
    p = p * pl.reciprocal(denom, approx=True)                           # EUP divide
    attn = jnp.sum(p[..., None] * v, axis=2)                            # [Bt,N,M]

    # ---- fused (MHA out_proj o out_projection) ----
    out = jnp.dot(attn.reshape(bt * n, m).astype(bf16), wo_ref[...],
                  preferred_element_type=f32) + bo_ref[...]             # [Bt*N,OUT]
    o_ref[...] = out.reshape(bt, n, OUT_DIM).astype(o_ref.dtype)


def _prepare_weights(params):
    """One-time wrapper-side prep: fuse wq@wmq / wk@wmk / wv@wmv and wmo@wout, split
    the fused Q/K/V weights by input chunk (spatial | hidden | vel), cast MXU operands
    to bf16 (biases and VPU-side weights stay f32)."""
    f32, bf16 = jnp.float32, jnp.bfloat16
    s, h = MLP_DIM_SPATIAL, MLP_DIM_HIDDEN

    def fuse_split(w_pre, w_in_proj):
        w = jnp.dot(w_pre.astype(f32), w_in_proj.astype(f32))           # [128,128]
        return (w[:s].astype(bf16), w[s:s + h].astype(bf16), w[s + h:].astype(bf16))

    wqs, wqh, wqv = fuse_split(params['wq'], params['wmq'])
    wks, wkh, wkv = fuse_split(params['wk'], params['wmk'])
    wvs, wvh, wvv = fuse_split(params['wv'], params['wmv'])
    wo = jnp.dot(params['wmo'].astype(f32), params['wout'].astype(f32)).astype(bf16)
    bo = (jnp.dot(params['bmo'].astype(f32), params['wout'].astype(f32))
          + params['bout']).astype(f32)

    return [
        params['ws'].astype(f32), params['bs'].astype(f32),
        params['wh'].astype(bf16), params['bh'].astype(f32),
        params['wvl'].astype(f32), params['bvl'].astype(f32),
        wqs, wqh, wqv, params['bmq'].astype(f32),
        wks, wkh, wkv, params['bmk'].astype(f32),
        wvs, wvh, wvv, params['bmv'].astype(f32),
        wo, bo,
    ]


def attention_mlp_pooling(hidden_states, obs1, obs2, params, block_scenes=8):
    """Returns [B*N, OUT_DIM] interaction vectors (same as the PyTorch module)."""
    B, N, H = hidden_states.shape
    bt = max(1, min(block_scenes, B))
    while B % bt:                       # block size must divide the scene count
        bt -= 1
    weights = _prepare_weights(params)

    data_specs = [
        pl.BlockSpec((bt, N, 2), lambda b: (b, 0, 0)),   # obs1
        pl.BlockSpec((bt, N, 2), lambda b: (b, 0, 0)),   # obs2
        pl.BlockSpec((bt, N, H), lambda b: (b, 0, 0)),   # hidden_states
    ]
    weight_specs = [pl.BlockSpec(w.shape, lambda b: (0, 0)) for w in weights]

    out = pl.pallas_call(
        _attention_mlp_pooling_kernel,
        out_shape=jax.ShapeDtypeStruct((B, N, OUT_DIM), jnp.float32),
        grid_spec=pltpu.PrefetchScalarGridSpec(
            num_scalar_prefetch=0,
            grid=(B // bt,),
            in_specs=data_specs + weight_specs,
            out_specs=pl.BlockSpec((bt, N, OUT_DIM), lambda b: (b, 0, 0)),
        ),
        compiler_params=pltpu.CompilerParams(dimension_semantics=("parallel",)),
    )(obs1, obs2, hidden_states, *weights)
    return out.reshape(B * N, OUT_DIM)


def reference_forward(hidden_states, obs1, obs2, p):
    """Pure-JAX mirror of the PyTorch forward (full MHA + eye-mask gather)."""
    B, N, _ = obs2.shape
    hp = jax.lax.Precision.HIGHEST

    def lin(x, w, b=None):
        y = jnp.matmul(x, w, precision=hp)
        return y + b if b is not None else y

    rel = obs2[:, None, :, :] - obs2[:, :, None, :]
    rel_nan = jnp.isnan(rel).any(-1, keepdims=True)
    sp = jnp.where(rel_nan, FILL_VALUE, jax.nn.relu(lin(rel, p['ws'], p['bs'])))
    hid_nan = jnp.isnan(hidden_states).any(-1, keepdims=True)
    he = jnp.where(hid_nan, 0.0, jax.nn.relu(lin(hidden_states, p['wh'], p['bh'])))
    he_b = jnp.broadcast_to(he[:, None, :, :], (B, N, N, he.shape[-1]))
    vel = obs2 - obs1
    relv = (vel[:, None, :, :] - vel[:, :, None, :]) * 4.0
    relv_nan = jnp.isnan(relv).any(-1, keepdims=True)
    dv = jnp.where(relv_nan, FILL_VALUE, jax.nn.relu(lin(relv, p['wvl'], p['bvl'])))
    emb = jnp.concatenate([sp, he_b, dv], -1)                      # [B, N, N, M]

    q = lin(lin(emb, p['wq']), p['wmq'], p['bmq'])
    k = lin(lin(emb, p['wk']), p['wmk'], p['bmk'])
    v = lin(lin(emb, p['wv']), p['wmv'], p['bmv'])
    scale = 1.0 / jnp.sqrt(jnp.float32(MLP_DIM))
    scores = jnp.einsum('biqm,bikm->biqk', q, k, precision=hp) * scale
    w_attn = jax.nn.softmax(scores, axis=-1)
    attn = jnp.einsum('biqk,bikm->biqm', w_attn, v, precision=hp)
    attn = lin(attn, p['wmo'], p['bmo'])
    diag = attn[:, jnp.arange(N), jnp.arange(N), :]                # [B, N, M]
    out = lin(diag, p['wout'], p['bout'])
    return out.reshape(B * N, OUT_DIM)


if __name__ == "__main__":
    B, N = 8, 8
    key = jax.random.PRNGKey(0)
    kin, kw = jax.random.split(key)
    k1, k2, k3 = jax.random.split(kin, 3)

    obs2 = jax.random.normal(k1, (B, N, 2), jnp.float32) * 2.0
    obs1 = obs2 - jax.random.normal(k2, (B, N, 2), jnp.float32) * 0.2
    hidden_states = jax.random.normal(k3, (B, N, HIDDEN_DIM), jnp.float32) * 0.5
    # one missing agent (NaN) to exercise embed_with_masking
    obs1 = obs1.at[1, 5].set(jnp.nan)
    obs2 = obs2.at[1, 5].set(jnp.nan)
    hidden_states = hidden_states.at[1, 5].set(jnp.nan)

    wkeys = jax.random.split(kw, 19)

    def init(k, shape, scale=0.03):
        return jax.random.normal(k, shape, jnp.float32) * scale

    params = {
        'ws':   init(wkeys[0], (2, MLP_DIM_SPATIAL), 0.3),
        'bs':   init(wkeys[1], (1, MLP_DIM_SPATIAL), 0.1),
        'wh':   init(wkeys[2], (HIDDEN_DIM, MLP_DIM_HIDDEN), 0.05),
        'bh':   init(wkeys[3], (1, MLP_DIM_HIDDEN), 0.1),
        'wvl':  init(wkeys[4], (2, MLP_DIM_VEL), 0.3),
        'bvl':  init(wkeys[5], (1, MLP_DIM_VEL), 0.1),
        'wq':   init(wkeys[6], (MLP_DIM, MLP_DIM)),
        'wk':   init(wkeys[7], (MLP_DIM, MLP_DIM)),
        'wv':   init(wkeys[8], (MLP_DIM, MLP_DIM)),
        'wmq':  init(wkeys[9], (MLP_DIM, MLP_DIM)),
        'bmq':  init(wkeys[10], (1, MLP_DIM), 0.05),
        'wmk':  init(wkeys[11], (MLP_DIM, MLP_DIM)),
        'bmk':  init(wkeys[12], (1, MLP_DIM), 0.05),
        'wmv':  init(wkeys[13], (MLP_DIM, MLP_DIM)),
        'bmv':  init(wkeys[14], (1, MLP_DIM), 0.05),
        'wmo':  init(wkeys[15], (MLP_DIM, MLP_DIM)),
        'bmo':  init(wkeys[16], (1, MLP_DIM), 0.05),
        'wout': init(wkeys[17], (MLP_DIM, OUT_DIM)),
        'bout': init(wkeys[18], (1, OUT_DIM), 0.05),
    }

    out = attention_mlp_pooling(hidden_states, obs1, obs2, params, block_scenes=4)
    out = jax.block_until_ready(out)

    ref = reference_forward(hidden_states, obs1, obs2, params)
    assert out.shape == (B * N, OUT_DIM)
    assert bool(jnp.all(jnp.isfinite(out)))
    assert bool(jnp.allclose(out, ref, rtol=1e-2, atol=1e-2)), float(
        jnp.max(jnp.abs(out - ref)))
    print("KERNEL_OK")
</pallas_src>

<mosaic_0001>
module attributes {stable_mosaic.version = 11 : i64} {
  func.func @_attention_mlp_pooling_kernel(%arg0: i32, %arg1: memref<4x8x2xf32, #tpu.memory_space<vmem>>, %arg2: memref<4x8x2xf32, #tpu.memory_space<vmem>>, %arg3: memref<4x8x128xf32, #tpu.memory_space<vmem>>, %arg4: memref<2x32xf32, #tpu.memory_space<vmem>>, %arg5: memref<1x32xf32, #tpu.memory_space<vmem>>, %arg6: memref<128x64xbf16, #tpu.memory_space<vmem>>, %arg7: memref<1x64xf32, #tpu.memory_space<vmem>>, %arg8: memref<2x32xf32, #tpu.memory_space<vmem>>, %arg9: memref<1x32xf32, #tpu.memory_space<vmem>>, %arg10: memref<32x128xbf16, #tpu.memory_space<vmem>>, %arg11: memref<64x128xbf16, #tpu.memory_space<vmem>>, %arg12: memref<32x128xbf16, #tpu.memory_space<vmem>>, %arg13: memref<1x128xf32, #tpu.memory_space<vmem>>, %arg14: memref<32x128xbf16, #tpu.memory_space<vmem>>, %arg15: memref<64x128xbf16, #tpu.memory_space<vmem>>, %arg16: memref<32x128xbf16, #tpu.memory_space<vmem>>, %arg17: memref<1x128xf32, #tpu.memory_space<vmem>>, %arg18: memref<32x128xbf16, #tpu.memory_space<vmem>>, %arg19: memref<64x128xbf16, #tpu.memory_space<vmem>>, %arg20: memref<32x128xbf16, #tpu.memory_space<vmem>>, %arg21: memref<1x128xf32, #tpu.memory_space<vmem>>, %arg22: memref<128x128xbf16, #tpu.memory_space<vmem>>, %arg23: memref<1x128xf32, #tpu.memory_space<vmem>>, %arg24: memref<4x8x128xf32, #tpu.memory_space<vmem>>) attributes {dimension_semantics = [#tpu.dimension_semantics<parallel>], iteration_bounds = array<i64: 2>, scalar_prefetch = 0 : i64, scratch_operands = 0 : i64, tpu.core_type = #tpu.core_type<tc>, window_params = [{transform_indices = @transform_0, window_bounds = array<i64: 4, 8, 2>}, {transform_indices = @transform_1, window_bounds = array<i64: 4, 8, 2>}, {transform_indices = @transform_2, window_bounds = array<i64: 4, 8, 128>}, {pipeline_mode = #tpu.pipeline_mode<synchronous>, transform_indices = @transform_3, window_bounds = array<i64: 2, 32>}, {pipeline_mode = #tpu.pipeline_mode<synchronous>, transform_indices = @transform_4, window_bounds = array<i64: 1, 32>}, {pipeline_mode = #tpu.pipeline_mode<synchronous>, transform_indices = @transform_5, window_bounds = array<i64: 128, 64>}, {pipeline_mode = #tpu.pipeline_mode<synchronous>, transform_indices = @transform_6, window_bounds = array<i64: 1, 64>}, {pipeline_mode = #tpu.pipeline_mode<synchronous>, transform_indices = @transform_7, window_bounds = array<i64: 2, 32>}, {pipeline_mode = #tpu.pipeline_mode<synchronous>, transform_indices = @transform_8, window_bounds = array<i64: 1, 32>}, {pipeline_mode = #tpu.pipeline_mode<synchronous>, transform_indices = @transform_9, window_bounds = array<i64: 32, 128>}, {pipeline_mode = #tpu.pipeline_mode<synchronous>, transform_indices = @transform_10, window_bounds = array<i64: 64, 128>}, {pipeline_mode = #tpu.pipeline_mode<synchronous>, transform_indices = @transform_11, window_bounds = array<i64: 32, 128>}, {pipeline_mode = #tpu.pipeline_mode<synchronous>, transform_indices = @transform_12, window_bounds = array<i64: 1, 128>}, {pipeline_mode = #tpu.pipeline_mode<synchronous>, transform_indices = @transform_13, window_bounds = array<i64: 32, 128>}, {pipeline_mode = #tpu.pipeline_mode<synchronous>, transform_indices = @transform_14, window_bounds = array<i64: 64, 128>}, {pipeline_mode = #tpu.pipeline_mode<synchronous>, transform_indices = @transform_15, window_bounds = array<i64: 32, 128>}, {pipeline_mode = #tpu.pipeline_mode<synchronous>, transform_indices = @transform_16, window_bounds = array<i64: 1, 128>}, {pipeline_mode = #tpu.pipeline_mode<synchronous>, transform_indices = @transform_17, window_bounds = array<i64: 32, 128>}, {pipeline_mode = #tpu.pipeline_mode<synchronous>, transform_indices = @transform_18, window_bounds = array<i64: 64, 128>}, {pipeline_mode = #tpu.pipeline_mode<synchronous>, transform_indices = @transform_19, window_bounds = array<i64: 32, 128>}, {pipeline_mode = #tpu.pipeline_mode<synchronous>, transform_indices = @transform_20, window_bounds = array<i64: 1, 128>}, {pipeline_mode = #tpu.pipeline_mode<synchronous>, transform_indices = @transform_21, window_bounds = array<i64: 128, 128>}, {pipeline_mode = #tpu.pipeline_mode<synchronous>, transform_indices = @transform_22, window_bounds = array<i64: 1, 128>}, {transform_indices = @transform_23, window_bounds = array<i64: 4, 8, 128>}]} {
    %c0 = arith.constant 0 : index
    %c0_0 = arith.constant 0 : index
    %c0_1 = arith.constant 0 : index
    %0 = vector.load %arg1[%c0, %c0_0, %c0_1] : memref<4x8x2xf32, #tpu.memory_space<vmem>>, vector<4x8x2xf32>
    %c0_2 = arith.constant 0 : index
    %c0_3 = arith.constant 0 : index
    %c0_4 = arith.constant 0 : index
    %1 = vector.load %arg2[%c0_2, %c0_3, %c0_4] : memref<4x8x2xf32, #tpu.memory_space<vmem>>, vector<4x8x2xf32>
    %2 = vector.extract_strided_slice %1 {offsets = [0, 0, 0], sizes = [4, 8, 1], strides = [1, 1, 1]} : vector<4x8x2xf32> to vector<4x8x1xf32>
    %3 = arith.cmpf one, %2, %2 : vector<4x8x1xf32>
    %4 = vector.extract_strided_slice %1 {offsets = [0, 0, 1], sizes = [4, 8, 1], strides = [1, 1, 1]} : vector<4x8x2xf32> to vector<4x8x1xf32>
    %5 = arith.cmpf one, %4, %4 : vector<4x8x1xf32>
    %6 = arith.ori %3, %5 : vector<4x8x1xi1>
    %7 = arith.subf %1, %0 : vector<4x8x2xf32>
    %8 = vector.extract_strided_slice %7 {offsets = [0, 0, 0], sizes = [4, 8, 1], strides = [1, 1, 1]} : vector<4x8x2xf32> to vector<4x8x1xf32>
    %9 = arith.cmpf one, %8, %8 : vector<4x8x1xf32>
    %10 = vector.extract_strided_slice %7 {offsets = [0, 0, 1], sizes = [4, 8, 1], strides = [1, 1, 1]} : vector<4x8x2xf32> to vector<4x8x1xf32>
    %11 = arith.cmpf one, %10, %10 : vector<4x8x1xf32>
    %12 = arith.ori %9, %11 : vector<4x8x1xi1>
    %cst = arith.constant 0.000000e+00 : f32
    %13 = vector.shape_cast %6 : vector<4x8x1xi1> to vector<4x8x1xi1>
    %14 = vector.broadcast %13 : vector<4x8x1xi1> to vector<4x8x2xi1>
    %15 = vector.broadcast %cst : f32 to vector<4x8x2xf32>
    %16 = arith.select %14, %15, %1 : vector<4x8x2xi1>, vector<4x8x2xf32>
    %cst_5 = arith.constant 0.000000e+00 : f32
    %17 = vector.shape_cast %12 : vector<4x8x1xi1> to vector<4x8x1xi1>
    %18 = vector.broadcast %17 : vector<4x8x1xi1> to vector<4x8x2xi1>
    %19 = vector.broadcast %cst_5 : f32 to vector<4x8x2xf32>
    %20 = arith.select %18, %19, %7 : vector<4x8x2xi1>, vector<4x8x2xf32>
    %21 = vector.shape_cast %6 : vector<4x8x1xi1> to vector<4x8x1x1xi1>
    %22 = vector.shape_cast %6 : vector<4x8x1xi1> to vector<4x1x8x1xi1>
    %23 = vector.broadcast %21 : vector<4x8x1x1xi1> to vector<4x8x8x1xi1>
    %24 = vector.broadcast %22 : vector<4x1x8x1xi1> to vector<4x8x8x1xi1>
    %25 = arith.ori %23, %24 : vector<4x8x8x1xi1>
    %26 = vector.shape_cast %12 : vector<4x8x1xi1> to vector<4x8x1x1xi1>
    %27 = vector.shape_cast %12 : vector<4x8x1xi1> to vector<4x1x8x1xi1>
    %28 = vector.broadcast %26 : vector<4x8x1x1xi1> to vector<4x8x8x1xi1>
    %29 = vector.broadcast %27 : vector<4x1x8x1xi1> to vector<4x8x8x1xi1>
    %30 = arith.ori %28, %29 : vector<4x8x8x1xi1>
    %c0_6 = arith.constant 0 : index
    %c0_7 = arith.constant 0 : index
    %31 = vector.load %arg4[%c0_6, %c0_7] : memref<2x32xf32, #tpu.memory_space<vmem>>, vector<2x32xf32>
    %c0_8 = arith.constant 0 : index
    %c0_9 = arith.constant 0 : index
    %32 = vector.load %arg5[%c0_8, %c0_9] : memref<1x32xf32, #tpu.memory_space<vmem>>, vector<1x32xf32>
    %33 = vector.shape_cast %16 : vector<4x8x2xf32> to vector<4x1x8x2xf32>
    %34 = vector.shape_cast %16 : vector<4x8x2xf32> to vector<4x8x1x2xf32>
    %35 = vector.broadcast %33 : vector<4x1x8x2xf32> to vector<4x8x8x2xf32>
    %36 = vector.broadcast %34 : vector<4x8x1x2xf32> to vector<4x8x8x2xf32>
    %37 = arith.subf %35, %36 : vector<4x8x8x2xf32>
    %38 = vector.extract_strided_slice %37 {offsets = [0, 0, 0, 0], sizes = [4, 8, 8, 1], strides = [1, 1, 1, 1]} : vector<4x8x8x2xf32> to vector<4x8x8x1xf32>
    %39 = vector.extract_strided_slice %31 {offsets = [0, 0], sizes = [1, 32], strides = [1, 1]} : vector<2x32xf32> to vector<1x32xf32>
    %40 = vector.shape_cast %39 : vector<1x32xf32> to vector<1x1x1x32xf32>
    %41 = vector.broadcast %38 : vector<4x8x8x1xf32> to vector<4x8x8x32xf32>
    %42 = vector.broadcast %40 : vector<1x1x1x32xf32> to vector<4x8x8x32xf32>
    %43 = arith.mulf %41, %42 : vector<4x8x8x32xf32>
    %44 = vector.extract_strided_slice %37 {offsets = [0, 0, 0, 1], sizes = [4, 8, 8, 1], strides = [1, 1, 1, 1]} : vector<4x8x8x2xf32> to vector<4x8x8x1xf32>
    %45 = vector.extract_strided_slice %31 {offsets = [1, 0], sizes = [1, 32], strides = [1, 1]} : vector<2x32xf32> to vector<1x32xf32>
    %46 = vector.shape_cast %45 : vector<1x32xf32> to vector<1x1x1x32xf32>
    %47 = vector.broadcast %44 : vector<4x8x8x1xf32> to vector<4x8x8x32xf32>
    %48 = vector.broadcast %46 : vector<1x1x1x32xf32> to vector<4x8x8x32xf32>
    %49 = arith.mulf %47, %48 : vector<4x8x8x32xf32>
    %50 = arith.addf %43, %49 : vector<4x8x8x32xf32>
    %51 = vector.shape_cast %32 : vector<1x32xf32> to vector<1x1x1x32xf32>
    %52 = vector.broadcast %51 : vector<1x1x1x32xf32> to vector<4x8x8x32xf32>
    %53 = arith.addf %50, %52 : vector<4x8x8x32xf32>
    %cst_10 = arith.constant 0.000000e+00 : f32
    %54 = vector.broadcast %cst_10 : f32 to vector<4x8x8x32xf32>
    %55 = arith.maximumf %53, %54 : vector<4x8x8x32xf32>
    %cst_11 = arith.constant -1.000000e+01 : f32
    %56 = vector.shape_cast %25 : vector<4x8x8x1xi1> to vector<4x8x8x1xi1>
    %57 = vector.broadcast %56 : vector<4x8x8x1xi1> to vector<4x8x8x32xi1>
    %58 = vector.broadcast %cst_11 : f32 to vector<4x8x8x32xf32>
    %59 = arith.select %57, %58, %55 : vector<4x8x8x32xi1>, vector<4x8x8x32xf32>
    %c0_12 = arith.constant 0 : index
    %c0_13 = arith.constant 0 : index
    %60 = vector.load %arg8[%c0_12, %c0_13] : memref<2x32xf32, #tpu.memory_space<vmem>>, vector<2x32xf32>
    %c0_14 = arith.constant 0 : index
    %c0_15 = arith.constant 0 : index
    %61 = vector.load %arg9[%c0_14, %c0_15] : memref<1x32xf32, #tpu.memory_space<vmem>>, vector<1x32xf32>
    %62 = vector.shape_cast %20 : vector<4x8x2xf32> to vector<4x1x8x2xf32>
    %63 = vector.shape_cast %20 : vector<4x8x2xf32> to vector<4x8x1x2xf32>
    %64 = vector.broadcast %62 : vector<4x1x8x2xf32> to vector<4x8x8x2xf32>
    %65 = vector.broadcast %63 : vector<4x8x1x2xf32> to vector<4x8x8x2xf32>
    %66 = arith.subf %64, %65 : vector<4x8x8x2xf32>
    %cst_16 = arith.constant 4.000000e+00 : f32
    %67 = vector.broadcast %cst_16 : f32 to vector<4x8x8x2xf32>
    %68 = arith.mulf %66, %67 : vector<4x8x8x2xf32>
    %69 = vector.extract_strided_slice %68 {offsets = [0, 0, 0, 0], sizes = [4, 8, 8, 1], strides = [1, 1, 1, 1]} : vector<4x8x8x2xf32> to vector<4x8x8x1xf32>
    %70 = vector.extract_strided_slice %60 {offsets = [0, 0], sizes = [1, 32], strides = [1, 1]} : vector<2x32xf32> to vector<1x32xf32>
    %71 = vector.shape_cast %70 : vector<1x32xf32> to vector<1x1x1x32xf32>
    %72 = vector.broadcast %69 : vector<4x8x8x1xf32> to vector<4x8x8x32xf32>
    %73 = vector.broadcast %71 : vector<1x1x1x32xf32> to vector<4x8x8x32xf32>
    %74 = arith.mulf %72, %73 : vector<4x8x8x32xf32>
    %75 = vector.extract_strided_slice %68 {offsets = [0, 0, 0, 1], sizes = [4, 8, 8, 1], strides = [1, 1, 1, 1]} : vector<4x8x8x2xf32> to vector<4x8x8x1xf32>
    %76 = vector.extract_strided_slice %60 {offsets = [1, 0], sizes = [1, 32], strides = [1, 1]} : vector<2x32xf32> to vector<1x32xf32>
    %77 = vector.shape_cast %76 : vector<1x32xf32> to vector<1x1x1x32xf32>
    %78 = vector.broadcast %75 : vector<4x8x8x1xf32> to vector<4x8x8x32xf32>
    %79 = vector.broadcast %77 : vector<1x1x1x32xf32> to vector<4x8x8x32xf32>
    %80 = arith.mulf %78, %79 : vector<4x8x8x32xf32>
    %81 = arith.addf %74, %80 : vector<4x8x8x32xf32>
    %82 = vector.shape_cast %61 : vector<1x32xf32> to vector<1x1x1x32xf32>
    %83 = vector.broadcast %82 : vector<1x1x1x32xf32> to vector<4x8x8x32xf32>
    %84 = arith.addf %81, %83 : vector<4x8x8x32xf32>
    %cst_17 = arith.constant 0.000000e+00 : f32
    %85 = vector.broadcast %cst_17 : f32 to vector<4x8x8x32xf32>
    %86 = arith.maximumf %84, %85 : vector<4x8x8x32xf32>
    %cst_18 = arith.constant -1.000000e+01 : f32
    %87 = vector.shape_cast %30 : vector<4x8x8x1xi1> to vector<4x8x8x1xi1>
    %88 = vector.broadcast %87 : vector<4x8x8x1xi1> to vector<4x8x8x32xi1>
    %89 = vector.broadcast %cst_18 : f32 to vector<4x8x8x32xf32>
    %90 = arith.select %88, %89, %86 : vector<4x8x8x32xi1>, vector<4x8x8x32xf32>
    %c0_19 = arith.constant 0 : index
    %c0_20 = arith.constant 0 : index
    %c0_21 = arith.constant 0 : index
    %91 = vector.load %arg3[%c0_19, %c0_20, %c0_21] : memref<4x8x128xf32, #tpu.memory_space<vmem>>, vector<4x8x128xf32>
    %92 = vector.shape_cast %91 : vector<4x8x128xf32> to vector<32x128xf32>
    %93 = arith.cmpf one, %92, %92 : vector<32x128xf32>
    %cst_22 = arith.constant 1.000000e+00 : f32
    %cst_23 = arith.constant 0.000000e+00 : f32
    %94 = vector.broadcast %cst_22 : f32 to vector<32x128xf32>
    %95 = vector.broadcast %cst_23 : f32 to vector<32x128xf32>
    %96 = arith.select %93, %94, %95 : vector<32x128xi1>, vector<32x128xf32>
    %cst_24 = arith.constant dense<0xFF800000> : vector<32xf32>
    %97 = vector.multi_reduction <maximumf>, %96, %cst_24 [1] : vector<32x128xf32> to vector<32xf32>
    %cst_25 = arith.constant 0.000000e+00 : f32
    %98 = vector.broadcast %cst_25 : f32 to vector<32xf32>
    %99 = arith.cmpf ogt, %97, %98 : vector<32xf32>
    %100 = vector.shape_cast %99 : vector<32xi1> to vector<32x1xi1>
    %cst_26 = arith.constant 0.000000e+00 : f32
    %101 = vector.shape_cast %100 : vector<32x1xi1> to vector<32x1xi1>
    %102 = vector.broadcast %101 : vector<32x1xi1> to vector<32x128xi1>
    %103 = vector.broadcast %cst_26 : f32 to vector<32x128xf32>
    %104 = arith.select %102, %103, %92 : vector<32x128xi1>, vector<32x128xf32>
    %105 = arith.truncf %104 : vector<32x128xf32> to vector<32x128xbf16>
    %c0_27 = arith.constant 0 : index
    %c0_28 = arith.constant 0 : index
    %106 = vector.load %arg6[%c0_27, %c0_28] : memref<128x64xbf16, #tpu.memory_space<vmem>>, vector<128x64xbf16>
    %cst_29 = arith.constant dense<0.000000e+00> : vector<32x64xf32>
    %107 = tpu.matmul %105, %106, %cst_29 {dimension_numbers = #tpu.dot_dimension_numbers<[1], [0], [0], [1], [0, 0, 1, 1], [], []>} : vector<32x128xbf16>, vector<128x64xbf16>, vector<32x64xf32> -> vector<32x64xf32>
    %c0_30 = arith.constant 0 : index
    %c0_31 = arith.constant 0 : index
    %108 = vector.load %arg7[%c0_30, %c0_31] : memref<1x64xf32, #tpu.memory_space<vmem>>, vector<1x64xf32>
    %109 = vector.broadcast %108 : vector<1x64xf32> to vector<32x64xf32>
    %110 = arith.addf %107, %109 : vector<32x64xf32>
    %cst_32 = arith.constant 0.000000e+00 : f32
    %111 = vector.broadcast %cst_32 : f32 to vector<32x64xf32>
    %112 = arith.maximumf %110, %111 : vector<32x64xf32>
    %cst_33 = arith.constant 0.000000e+00 : f32
    %113 = vector.shape_cast %100 : vector<32x1xi1> to vector<32x1xi1>
    %114 = vector.broadcast %113 : vector<32x1xi1> to vector<32x64xi1>
    %115 = vector.broadcast %cst_33 : f32 to vector<32x64xf32>
    %116 = arith.select %114, %115, %112 : vector<32x64xi1>, vector<32x64xf32>
    %117 = arith.truncf %116 : vector<32x64xf32> to vector<32x64xbf16>
    %cst_34 = arith.constant 0.000000e+00 : f32
    %118 = vector.broadcast %cst_34 : f32 to vector<1x32xf32>
    %119 = arith.maximumf %32, %118 : vector<1x32xf32>
    %cst_35 = arith.constant -1.000000e+01 : f32
    %120 = vector.shape_cast %6 : vector<4x8x1xi1> to vector<4x8x1xi1>
    %121 = vector.broadcast %120 : vector<4x8x1xi1> to vector<4x8x32xi1>
    %122 = vector.broadcast %cst_35 : f32 to vector<4x8x32xf32>
    %123 = vector.shape_cast %119 : vector<1x32xf32> to vector<1x1x32xf32>
    %124 = vector.broadcast %123 : vector<1x1x32xf32> to vector<4x8x32xf32>
    %125 = arith.select %121, %122, %124 : vector<4x8x32xi1>, vector<4x8x32xf32>
    %cst_36 = arith.constant 0.000000e+00 : f32
    %126 = vector.broadcast %cst_36 : f32 to vector<1x32xf32>
    %127 = arith.maximumf %61, %126 : vector<1x32xf32>
    %cst_37 = arith.constant -1.000000e+01 : f32
    %128 = vector.shape_cast %12 : vector<4x8x1xi1> to vector<4x8x1xi1>
    %129 = vector.broadcast %128 : vector<4x8x1xi1> to vector<4x8x32xi1>
    %130 = vector.broadcast %cst_37 : f32 to vector<4x8x32xf32>
    %131 = vector.shape_cast %127 : vector<1x32xf32> to vector<1x1x32xf32>
    %132 = vector.broadcast %131 : vector<1x1x32xf32> to vector<4x8x32xf32>
    %133 = arith.select %129, %130, %132 : vector<4x8x32xi1>, vector<4x8x32xf32>
    %134 = vector.shape_cast %125 : vector<4x8x32xf32> to vector<32x32xf32>
    %135 = arith.truncf %134 : vector<32x32xf32> to vector<32x32xbf16>
    %136 = vector.shape_cast %133 : vector<4x8x32xf32> to vector<32x32xf32>
    %137 = arith.truncf %136 : vector<32x32xf32> to vector<32x32xbf16>
    %c0_38 = arith.constant 0 : index
    %c0_39 = arith.constant 0 : index
    %138 = vector.load %arg10[%c0_38, %c0_39] : memref<32x128xbf16, #tpu.memory_space<vmem>>, vector<32x128xbf16>
    %cst_40 = arith.constant dense<0.000000e+00> : vector<32x128xf32>
    %139 = tpu.matmul %135, %138, %cst_40 {dimension_numbers = #tpu.dot_dimension_numbers<[1], [0], [0], [1], [0, 0, 1, 1], [], []>} : vector<32x32xbf16>, vector<32x128xbf16>, vector<32x128xf32> -> vector<32x128xf32>
    %c0_41 = arith.constant 0 : index
    %c0_42 = arith.constant 0 : index
    %140 = vector.load %arg11[%c0_41, %c0_42] : memref<64x128xbf16, #tpu.memory_space<vmem>>, vector<64x128xbf16>
    %cst_43 = arith.constant dense<0.000000e+00> : vector<32x128xf32>
    %141 = tpu.matmul %117, %140, %cst_43 {dimension_numbers = #tpu.dot_dimension_numbers<[1], [0], [0], [1], [0, 0, 1, 1], [], []>} : vector<32x64xbf16>, vector<64x128xbf16>, vector<32x128xf32> -> vector<32x128xf32>
    %142 = arith.addf %139, %141 : vector<32x128xf32>
    %c0_44 = arith.constant 0 : index
    %c0_45 = arith.constant 0 : index
    %143 = vector.load %arg12[%c0_44, %c0_45] : memref<32x128xbf16, #tpu.memory_space<vmem>>, vector<32x128xbf16>
    %cst_46 = arith.constant dense<0.000000e+00> : vector<32x128xf32>
    %144 = tpu.matmul %137, %143, %cst_46 {dimension_numbers = #tpu.dot_dimension_numbers<[1], [0], [0], [1], [0, 0, 1, 1], [], []>} : vector<32x32xbf16>, vector<32x128xbf16>, vector<32x128xf32> -> vector<32x128xf32>
    %145 = arith.addf %142, %144 : vector<32x128xf32>
    %c0_47 = arith.constant 0 : index
    %c0_48 = arith.constant 0 : index
    %146 = vector.load %arg13[%c0_47, %c0_48] : memref<1x128xf32, #tpu.memory_space<vmem>>, vector<1x128xf32>
    %147 = vector.broadcast %146 : vector<1x128xf32> to vector<32x128xf32>
    %148 = arith.addf %145, %147 : vector<32x128xf32>
    %149 = vector.shape_cast %59 : vector<4x8x8x32xf32> to vector<256x32xf32>
    %150 = arith.truncf %149 : vector<256x32xf32> to vector<256x32xbf16>
    %151 = vector.shape_cast %90 : vector<4x8x8x32xf32> to vector<256x32xf32>
    %152 = arith.truncf %151 : vector<256x32xf32> to vector<256x32xbf16>
    %c0_49 = arith.constant 0 : index
    %c0_50 = arith.constant 0 : index
    %153 = vector.load %arg14[%c0_49, %c0_50] : memref<32x128xbf16, #tpu.memory_space<vmem>>, vector<32x128xbf16>
    %cst_51 = arith.constant dense<0.000000e+00> : vector<256x128xf32>
    %154 = tpu.matmul %150, %153, %cst_51 {dimension_numbers = #tpu.dot_dimension_numbers<[1], [0], [0], [1], [0, 0, 1, 1], [], []>} : vector<256x32xbf16>, vector<32x128xbf16>, vector<256x128xf32> -> vector<256x128xf32>
    %c0_52 = arith.constant 0 : index
    %c0_53 = arith.constant 0 : index
    %155 = vector.load %arg16[%c0_52, %c0_53] : memref<32x128xbf16, #tpu.memory_space<vmem>>, vector<32x128xbf16>
    %cst_54 = arith.constant dense<0.000000e+00> : vector<256x128xf32>
    %156 = tpu.matmul %152, %155, %cst_54 {dimension_numbers = #tpu.dot_dimension_numbers<[1], [0], [0], [1], [0, 0, 1, 1], [], []>} : vector<256x32xbf16>, vector<32x128xbf16>, vector<256x128xf32> -> vector<256x128xf32>
    %157 = arith.addf %154, %156 : vector<256x128xf32>
    %c0_55 = arith.constant 0 : index
    %c0_56 = arith.constant 0 : index
    %158 = vector.load %arg15[%c0_55, %c0_56] : memref<64x128xbf16, #tpu.memory_space<vmem>>, vector<64x128xbf16>
    %cst_57 = arith.constant dense<0.000000e+00> : vector<32x128xf32>
    %159 = tpu.matmul %117, %158, %cst_57 {dimension_numbers = #tpu.dot_dimension_numbers<[1], [0], [0], [1], [0, 0, 1, 1], [], []>} : vector<32x64xbf16>, vector<64x128xbf16>, vector<32x128xf32> -> vector<32x128xf32>
    %c0_58 = arith.constant 0 : index
    %c0_59 = arith.constant 0 : index
    %160 = vector.load %arg17[%c0_58, %c0_59] : memref<1x128xf32, #tpu.memory_space<vmem>>, vector<1x128xf32>
    %161 = vector.broadcast %160 : vector<1x128xf32> to vector<32x128xf32>
    %162 = arith.addf %159, %161 : vector<32x128xf32>
    %163 = vector.shape_cast %157 : vector<256x128xf32> to vector<4x8x8x128xf32>
    %164 = vector.shape_cast %162 : vector<32x128xf32> to vector<4x1x8x128xf32>
    %165 = vector.broadcast %164 : vector<4x1x8x128xf32> to vector<4x8x8x128xf32>
    %166 = arith.addf %163, %165 : vector<4x8x8x128xf32>
    %c0_60 = arith.constant 0 : index
    %c0_61 = arith.constant 0 : index
    %167 = vector.load %arg18[%c0_60, %c0_61] : memref<32x128xbf16, #tpu.memory_space<vmem>>, vector<32x128xbf16>
    %cst_62 = arith.constant dense<0.000000e+00> : vector<256x128xf32>
    %168 = tpu.matmul %150, %167, %cst_62 {dimension_numbers = #tpu.dot_dimension_numbers<[1], [0], [0], [1], [0, 0, 1, 1], [], []>} : vector<256x32xbf16>, vector<32x128xbf16>, vector<256x128xf32> -> vector<256x128xf32>
    %c0_63 = arith.constant 0 : index
    %c0_64 = arith.constant 0 : index
    %169 = vector.load %arg20[%c0_63, %c0_64] : memref<32x128xbf16, #tpu.memory_space<vmem>>, vector<32x128xbf16>
    %cst_65 = arith.constant dense<0.000000e+00> : vector<256x128xf32>
    %170 = tpu.matmul %152, %169, %cst_65 {dimension_numbers = #tpu.dot_dimension_numbers<[1], [0], [0], [1], [0, 0, 1, 1], [], []>} : vector<256x32xbf16>, vector<32x128xbf16>, vector<256x128xf32> -> vector<256x128xf32>
    %171 = arith.addf %168, %170 : vector<256x128xf32>
    %c0_66 = arith.constant 0 : index
    %c0_67 = arith.constant 0 : index
    %172 = vector.load %arg19[%c0_66, %c0_67] : memref<64x128xbf16, #tpu.memory_space<vmem>>, vector<64x128xbf16>
    %cst_68 = arith.constant dense<0.000000e+00> : vector<32x128xf32>
    %173 = tpu.matmul %117, %172, %cst_68 {dimension_numbers = #tpu.dot_dimension_numbers<[1], [0], [0], [1], [0, 0, 1, 1], [], []>} : vector<32x64xbf16>, vector<64x128xbf16>, vector<32x128xf32> -> vector<32x128xf32>
    %c0_69 = arith.constant 0 : index
    %c0_70 = arith.constant 0 : index
    %174 = vector.load %arg21[%c0_69, %c0_70] : memref<1x128xf32, #tpu.memory_space<vmem>>, vector<1x128xf32>
    %175 = vector.broadcast %174 : vector<1x128xf32> to vector<32x128xf32>
    %176 = arith.addf %173, %175 : vector<32x128xf32>
    %177 = vector.shape_cast %171 : vector<256x128xf32> to vector<4x8x8x128xf32>
    %178 = vector.shape_cast %176 : vector<32x128xf32> to vector<4x1x8x128xf32>
    %179 = vector.broadcast %178 : vector<4x1x8x128xf32> to vector<4x8x8x128xf32>
    %180 = arith.addf %177, %179 : vector<4x8x8x128xf32>
    %cst_71 = arith.constant 1.280000e+02 : f32
    %181 = math.sqrt %cst_71 : f32
    %cst_72 = arith.constant 1.000000e+00 : f32
    %182 = arith.divf %cst_72, %181 : f32
    %183 = vector.shape_cast %148 : vector<32x128xf32> to vector<4x8x128xf32>
    %184 = vector.shape_cast %183 : vector<4x8x128xf32> to vector<4x8x1x128xf32>
    %185 = vector.broadcast %184 : vector<4x8x1x128xf32> to vector<4x8x8x128xf32>
    %186 = arith.mulf %185, %166 : vector<4x8x8x128xf32>
    %cst_73 = arith.constant dense<0.000000e+00> : vector<4x8x8xf32>
    %187 = vector.multi_reduction <add>, %186, %cst_73 [3] : vector<4x8x8x128xf32> to vector<4x8x8xf32>
    %188 = vector.broadcast %182 : f32 to vector<4x8x8xf32>
    %189 = arith.mulf %187, %188 : vector<4x8x8xf32>
    %cst_74 = arith.constant dense<0xFF800000> : vector<4x8xf32>
    %190 = vector.multi_reduction <maximumf>, %189, %cst_74 [2] : vector<4x8x8xf32> to vector<4x8xf32>
    %191 = vector.shape_cast %190 : vector<4x8xf32> to vector<4x8x1xf32>
    %192 = vector.broadcast %191 : vector<4x8x1xf32> to vector<4x8x8xf32>
    %193 = arith.subf %189, %192 : vector<4x8x8xf32>
    %194 = math.exp %193 : vector<4x8x8xf32>
    %cst_75 = arith.constant dense<0.000000e+00> : vector<4x8xf32>
    %195 = vector.multi_reduction <add>, %194, %cst_75 [2] : vector<4x8x8xf32> to vector<4x8xf32>
    %196 = vector.shape_cast %195 : vector<4x8xf32> to vector<4x8x1xf32>
    %197 = tpu.reciprocal %196 {approx = true} : vector<4x8x1xf32> -> vector<4x8x1xf32>
    %198 = vector.broadcast %197 : vector<4x8x1xf32> to vector<4x8x8xf32>
    %199 = arith.mulf %194, %198 : vector<4x8x8xf32>
    %200 = vector.shape_cast %199 : vector<4x8x8xf32> to vector<4x8x8x1xf32>
    %201 = vector.broadcast %200 : vector<4x8x8x1xf32> to vector<4x8x8x128xf32>
    %202 = arith.mulf %201, %180 : vector<4x8x8x128xf32>
    %cst_76 = arith.constant dense<0.000000e+00> : vector<4x8x128xf32>
    %203 = vector.multi_reduction <add>, %202, %cst_76 [2] : vector<4x8x8x128xf32> to vector<4x8x128xf32>
    %204 = vector.shape_cast %203 : vector<4x8x128xf32> to vector<32x128xf32>
    %205 = arith.truncf %204 : vector<32x128xf32> to vector<32x128xbf16>
    %c0_77 = arith.constant 0 : index
    %c0_78 = arith.constant 0 : index
    %206 = vector.load %arg22[%c0_77, %c0_78] : memref<128x128xbf16, #tpu.memory_space<vmem>>, vector<128x128xbf16>
    %cst_79 = arith.constant dense<0.000000e+00> : vector<32x128xf32>
    %207 = tpu.matmul %205, %206, %cst_79 {dimension_numbers = #tpu.dot_dimension_numbers<[1], [0], [0], [1], [0, 0, 1, 1], [], []>} : vector<32x128xbf16>, vector<128x128xbf16>, vector<32x128xf32> -> vector<32x128xf32>
    %c0_80 = arith.constant 0 : index
    %c0_81 = arith.constant 0 : index
    %208 = vector.load %arg23[%c0_80, %c0_81] : memref<1x128xf32, #tpu.memory_space<vmem>>, vector<1x128xf32>
    %209 = vector.broadcast %208 : vector<1x128xf32> to vector<32x128xf32>
    %210 = arith.addf %207, %209 : vector<32x128xf32>
    %211 = vector.shape_cast %210 : vector<32x128xf32> to vector<4x8x128xf32>
    %c0_82 = arith.constant 0 : index
    %c0_83 = arith.constant 0 : index
    %c0_84 = arith.constant 0 : index
    %212 = vector.load %arg24[%c0_82, %c0_83, %c0_84] : memref<4x8x128xf32, #tpu.memory_space<vmem>>, vector<4x8x128xf32>
    tpu.vector_store %arg24[%c0_82, %c0_83, %c0_84], %211 {strides = array<i32>} : memref<4x8x128xf32, #tpu.memory_space<vmem>>, vector<4x8x128xf32>,
    return
  }
  func.func @transform_0(%arg0: i32) -> (i32, i32, i32) {
    %c0_i32 = arith.constant 0 : i32
    %c0_i32_0 = arith.constant 0 : i32
    %c0_i32_1 = arith.constant 0 : i32
    return %arg0, %c0_i32, %c0_i32_0 : i32, i32, i32
  }
  func.func @transform_1(%arg0: i32) -> (i32, i32, i32) {
    %c0_i32 = arith.constant 0 : i32
    %c0_i32_0 = arith.constant 0 : i32
    %c0_i32_1 = arith.constant 0 : i32
    return %arg0, %c0_i32, %c0_i32_0 : i32, i32, i32
  }
  func.func @transform_2(%arg0: i32) -> (i32, i32, i32) {
    %c0_i32 = arith.constant 0 : i32
    %c0_i32_0 = arith.constant 0 : i32
    %c0_i32_1 = arith.constant 0 : i32
    return %arg0, %c0_i32, %c0_i32_0 : i32, i32, i32
  }
  func.func @transform_3(%arg0: i32) -> (i32, i32) {
    %c0_i32 = arith.constant 0 : i32
    %c0_i32_0 = arith.constant 0 : i32
    %c0_i32_1 = arith.constant 0 : i32
    return %c0_i32, %c0_i32_0 : i32, i32
  }
  func.func @transform_4(%arg0: i32) -> (i32, i32) {
    %c0_i32 = arith.constant 0 : i32
    %c0_i32_0 = arith.constant 0 : i32
    %c0_i32_1 = arith.constant 0 : i32
    return %c0_i32, %c0_i32_0 : i32, i32
  }
  func.func @transform_5(%arg0: i32) -> (i32, i32) {
    %c0_i32 = arith.constant 0 : i32
    %c0_i32_0 = arith.constant 0 : i32
    %c0_i32_1 = arith.constant 0 : i32
    return %c0_i32, %c0_i32_0 : i32, i32
  }
  func.func @transform_6(%arg0: i32) -> (i32, i32) {
    %c0_i32 = arith.constant 0 : i32
    %c0_i32_0 = arith.constant 0 : i32
    %c0_i32_1 = arith.constant 0 : i32
    return %c0_i32, %c0_i32_0 : i32, i32
  }
  func.func @transform_7(%arg0: i32) -> (i32, i32) {
    %c0_i32 = arith.constant 0 : i32
    %c0_i32_0 = arith.constant 0 : i32
    %c0_i32_1 = arith.constant 0 : i32
    return %c0_i32, %c0_i32_0 : i32, i32
  }
  func.func @transform_8(%arg0: i32) -> (i32, i32) {
    %c0_i32 = arith.constant 0 : i32
    %c0_i32_0 = arith.constant 0 : i32
    %c0_i32_1 = arith.constant 0 : i32
    return %c0_i32, %c0_i32_0 : i32, i32
  }
  func.func @transform_9(%arg0: i32) -> (i32, i32) {
    %c0_i32 = arith.constant 0 : i32
    %c0_i32_0 = arith.constant 0 : i32
    %c0_i32_1 = arith.constant 0 : i32
    return %c0_i32, %c0_i32_0 : i32, i32
  }
  func.func @transform_10(%arg0: i32) -> (i32, i32) {
    %c0_i32 = arith.constant 0 : i32
    %c0_i32_0 = arith.constant 0 : i32
    %c0_i32_1 = arith.constant 0 : i32
    return %c0_i32, %c0_i32_0 : i32, i32
  }
  func.func @transform_11(%arg0: i32) -> (i32, i32) {
    %c0_i32 = arith.constant 0 : i32
    %c0_i32_0 = arith.constant 0 : i32
    %c0_i32_1 = arith.constant 0 : i32
    return %c0_i32, %c0_i32_0 : i32, i32
  }
  func.func @transform_12(%arg0: i32) -> (i32, i32) {
    %c0_i32 = arith.constant 0 : i32
    %c0_i32_0 = arith.constant 0 : i32
    %c0_i32_1 = arith.constant 0 : i32
    return %c0_i32, %c0_i32_0 : i32, i32
  }
  func.func @transform_13(%arg0: i32) -> (i32, i32) {
    %c0_i32 = arith.constant 0 : i32
    %c0_i32_0 = arith.constant 0 : i32
    %c0_i32_1 = arith.constant 0 : i32
    return %c0_i32, %c0_i32_0 : i32, i32
  }
  func.func @transform_14(%arg0: i32) -> (i32, i32) {
    %c0_i32 = arith.constant 0 : i32
    %c0_i32_0 = arith.constant 0 : i32
    %c0_i32_1 = arith.constant 0 : i32
    return %c0_i32, %c0_i32_0 : i32, i32
  }
  func.func @transform_15(%arg0: i32) -> (i32, i32) {
    %c0_i32 = arith.constant 0 : i32
    %c0_i32_0 = arith.constant 0 : i32
    %c0_i32_1 = arith.constant 0 : i32
    return %c0_i32, %c0_i32_0 : i32, i32
  }
  func.func @transform_16(%arg0: i32) -> (i32, i32) {
    %c0_i32 = arith.constant 0 : i32
    %c0_i32_0 = arith.constant 0 : i32
    %c0_i32_1 = arith.constant 0 : i32
    return %c0_i32, %c0_i32_0 : i32, i32
  }
  func.func @transform_17(%arg0: i32) -> (i32, i32) {
    %c0_i32 = arith.constant 0 : i32
    %c0_i32_0 = arith.constant 0 : i32
    %c0_i32_1 = arith.constant 0 : i32
    return %c0_i32, %c0_i32_0 : i32, i32
  }
  func.func @transform_18(%arg0: i32) -> (i32, i32) {
    %c0_i32 = arith.constant 0 : i32
    %c0_i32_0 = arith.constant 0 : i32
    %c0_i32_1 = arith.constant 0 : i32
    return %c0_i32, %c0_i32_0 : i32, i32
  }
  func.func @transform_19(%arg0: i32) -> (i32, i32) {
    %c0_i32 = arith.constant 0 : i32
    %c0_i32_0 = arith.constant 0 : i32
    %c0_i32_1 = arith.constant 0 : i32
    return %c0_i32, %c0_i32_0 : i32, i32
  }
  func.func @transform_20(%arg0: i32) -> (i32, i32) {
    %c0_i32 = arith.constant 0 : i32
    %c0_i32_0 = arith.constant 0 : i32
    %c0_i32_1 = arith.constant 0 : i32
    return %c0_i32, %c0_i32_0 : i32, i32
  }
  func.func @transform_21(%arg0: i32) -> (i32, i32) {
    %c0_i32 = arith.constant 0 : i32
    %c0_i32_0 = arith.constant 0 : i32
    %c0_i32_1 = arith.constant 0 : i32
    return %c0_i32, %c0_i32_0 : i32, i32
  }
  func.func @transform_22(%arg0: i32) -> (i32, i32) {
    %c0_i32 = arith.constant 0 : i32
    %c0_i32_0 = arith.constant 0 : i32
    %c0_i32_1 = arith.constant 0 : i32
    return %c0_i32, %c0_i32_0 : i32, i32
  }
  func.func @transform_23(%arg0: i32) -> (i32, i32, i32) {
    %c0_i32 = arith.constant 0 : i32
    %c0_i32_0 = arith.constant 0 : i32
    %c0_i32_1 = arith.constant 0 : i32
    return %arg0, %c0_i32, %c0_i32_0 : i32, i32, i32
  }
}

</mosaic_0001>

<bundles_post_ra>
// kernel: tpu_custom_call.1
= control target key start
LH: loop header
LB: loop body
LE: loop exit
PB: predicated region body
PF: predicated region fallthrough
CT: control target
= control target key end

     0   :  { %s13033_s0 = inlined_call_operand.vmem [shape: f32[8,8,2], index: 0, kind: input, shape index: {}]   ;;  %s13034_s1 = inlined_call_operand.vmem [shape: f32[8,8,2], index: 1, kind: input, shape index: {}]   ;;  %s13035_s2 = inlined_call_operand.vmem [shape: f32[8,8,128], index: 2, kind: input, shape index: {}]   ;;  %s13036_s3 = inlined_call_operand.hbm [shape: f32[2,32], index: 3, kind: input, shape index: {}]   ;;  %s13037_s4 = inlined_call_operand.hbm [shape: f32[1,32], index: 4, kind: input, shape index: {}]   ;;  %s13038_s5 = inlined_call_operand.vmem [shape: bf16[128,64], index: 5, kind: input, shape index: {}]   ;;  %s13039_s6 = inlined_call_operand.hbm [shape: f32[1,64], index: 6, kind: input, shape index: {}]   ;;  %s13040_s7 = inlined_call_operand.hbm [shape: f32[2,32], index: 7, kind: input, shape index: {}]   ;;  %s13041_s8 = inlined_call_operand.hbm [shape: f32[1,32], index: 8, kind: input, shape index: {}]   ;;  %s13042_s9 = inlined_call_operand.vmem [shape: bf16[32,128], index: 9, kind: input, shape index: {}]   ;;  %s13043_s10 = inlined_call_operand.vmem [shape: bf16[64,128], index: 10, kind: input, shape index: {}]   ;;  %s13044_s11 = inlined_call_operand.vmem [shape: bf16[32,128], index: 11, kind: input, shape index: {}]   ;;  %s13045_s12 = inlined_call_operand.hbm [shape: f32[1,128], index: 12, kind: input, shape index: {}]   ;;  %s13046_s13 = inlined_call_operand.vmem [shape: bf16[32,128], index: 13, kind: input, shape index: {}]   ;;  %s13047_s14 = inlined_call_operand.vmem [shape: bf16[64,128], index: 14, kind: input, shape index: {}]   ;;  %s13048_s15 = inlined_call_operand.hbm [shape: bf16[32,128], index: 15, kind: input, shape index: {}]   ;;  %s13049_s16 = inlined_call_operand.hbm [shape: f32[1,128], index: 16, kind: input, shape index: {}]   ;;  %s13050_s17 = inlined_call_operand.vmem [shape: bf16[32,128], index: 17, kind: input, shape index: {}]   ;;  %s13051_s18 = inlined_call_operand.vmem [shape: bf16[64,128], index: 18, kind: input, shape index: {}]   ;;  %s13052_s19 = inlined_call_operand.hbm [shape: bf16[32,128], index: 19, kind: input, shape index: {}]   ;;  %s13053_s20 = inlined_call_operand.vmem [shape: f32[1,128], index: 20, kind: input, shape index: {}]   ;;  %s13054_s21 = inlined_call_operand.vmem [shape: bf16[128,128], index: 21, kind: input, shape index: {}]   ;;  %s13055_s22 = inlined_call_operand.vmem [shape: f32[1,128], index: 22, kind: input, shape index: {}]   ;;  %s13056_s23 = inlined_call_operand.hbm [shape: f32[8,8,128], index: 23, kind: output, shape index: {}]  }
   0x1   :  { %13176 = sst [smem:[#allocation120_spill]] %s13033_s0 }
   0x2   :  { %13177 = sst [smem:[#allocation121_spill]] %s13034_s1 }
   0x3   :  { %13178 = sst [smem:[#allocation122_spill]] %s13035_s2 }
   0x4   :  { %13179 = sst [smem:[#allocation123_spill]] %s13036_s3 }
   0x5   :  { %13180 = sst [smem:[#allocation124_spill]] %s13037_s4 }
   0x6   :  { %13181 = sst [smem:[#allocation125_spill]] %s13038_s5 }
   0x7   :  { %13182 = sst [smem:[#allocation126_spill]] %s13039_s6 }
   0x8   :  { %13183 = sst [smem:[#allocation127_spill]] %s13040_s7 }
   0x9   :  { %13184 = sst [smem:[#allocation128_spill]] %s13041_s8 }
   0xa   :  { %13185 = sst [smem:[#allocation129_spill]] %s13045_s12 }
   0xb   :  { %13186 = sst [smem:[#allocation130_spill]] %s13049_s16 }
   0xc   :  { %13187 = sst [smem:[#allocation131_spill]] %s13054_s21 }
   0xd   :  { %13188 = sst [smem:[#allocation132_spill]] %s13055_s22 }
   0xe   :  { %13189 = sst [smem:[#allocation133_spill]] %s13056_s23 }
   0xf   :  { %28 = vsyncpa [#allocation3], 0 }
  0x10   :  { %29 = vsyncpa [#allocation6], 0 }
  0x11   :  { %30 = vsyncpa [#allocation9], 0 }
  0x12   :  { %31 = vsyncpa [#allocation12], 0 }
  0x13   :  { %32 = vsyncpa [#allocation15], 0 }
  0x14   :  { %33 = vsyncpa [#allocation4], 0 }
  0x15   :  { %35 = vsyncpa [#allocation4 + $0x1], 0  ;;  %s9206_s4 = smov 0   ;;  %s9208_s30 = smov 0  }
  0x16   :  { %s9210_s24 = smov 0   ;;  %s9212_s25 = smov 0  }
  0x17 LB: > { %13190 = sst [smem:[#allocation24_spill]] %s9053_s4  ;;  %s9227_s5 = sadd.s32 4294967295, %s9065_s25   ;;  %s9065_s25 = sphi %s9212_s25, %s13721_s25   ;;  %s9061_s24 = sphi %s9210_s24, %s13724_s24   ;;  %s9057_s30 = sphi %s9208_s30, %s13723_s30   ;;  %s9053_s4 = sphi %s9206_s4, %s13722_s4  }
  0x18   : > { %13191 = sst [smem:[#allocation25_spill]] %s9057_s30  ;;  %s7824_s1 = sadd.s32 4294967294, %s9065_s25  }
  0x19   : > { %13192 = sst [smem:[#allocation26_spill]] %s9061_s24  ;;  %s9231_s26 = sadd.s32 1, %s9065_s25  }
  0x1a   : > { %13193 = sst [smem:[#allocation27_spill]] %s9065_s25  ;;  %s546_s2 = sadd.s32 1, %s9061_s24 }
  0x1b   : > { %13194 = sst [smem:[#allocation28_spill]] %s9231_s26  ;;  %s543_s6 = ssub.s32 %s9065_s25, %s9231_s26 }
  0x1c   : > { %p556_p0 = scmp.ne.s32.totalorder %s9061_s24, %s9057_s30  ;;  %p544_p1 = scmp.eq.s32.totalorder %s543_s6, 0 }
  0x1d   : > { %p557_p2 = scmp.eq.s32.totalorder %s9227_s5, 1  ;;  %p562_p3 = scmp.ne.s32.totalorder %s9057_s30, %s9053_s4 }
  0x1e   : > { %p563_p4 = scmp.eq.s32.totalorder %s7824_s1, 1  ;;  %p7825_p7 = scmp.ge.s32.totalorder %s9065_s25, 1 }
  0x1f   : > { %s9242_s27 = scalar_select %p544_p1, %s9061_s24, %s546_s2  }
  0x20   : > { %p9244_p5 = por %p557_p2, %p556_p0  ;;  %p9248_p6 = por %p563_p4, %p562_p3 }
  0x21   : > { %13195 = sst [smem:[#allocation29_spill]] %s9242_s27  ;;  %p570_p8 = scmp.lt.s32.totalorder %s9065_s25, 3 }
  0x22   : > { %s13196_s7 = scalar_select %p9244_p5, 1, 0 }
  0x23   : > { %s13198_s28 = scalar_select %p9248_p6, 1, 0 }
  0x24   : > { %13197 = sst [smem:[#allocation30_spill]] %s13196_s7  ;;  %p13071_p9 = scmp.eq.s32.totalorder %s9227_s5, 0 }
  0x25   : > { %13199 = sst [smem:[#allocation31_spill]] %s13198_s28  ;;  %p9255_p10 = pnand %p7825_p7, %p570_p8 }
  0x26   : > { %s9067_s3 = smov [#allocation5]   ;;  %s9068_s1 = smov [#allocation8]  }
  0x27   : > { %s13200_s29 = scalar_select %p9255_p10, 1, 0 }
  0x28   : > { %s594_s0 = sshll.u32 %s9067_s3, 4  ;;  %p8452_p11 = pneg %p9255_p10  ;;  %s595_s0 = int_to_ptr.vmem [resolvable:$true] %s594_s0 }
  0x29   : > { %s619_s2 = sshll.u32 %s9068_s1, 4  ;;  %s9069_s27 = smov [#allocation11]   ;;  %s9267_s2 = int_to_ptr.vmem [resolvable:$true] %s619_s2 }
  0x2a   : > { %p9263_p12 = pnand %p13071_p9, %p8452_p11  ;;  %s650_s24 = sshll.u32 %s9069_s27, 4  ;;  %s9269_s24 = int_to_ptr.vmem [resolvable:$true] %s650_s24 }
  0x2b   : > { %s13202_s3 = sld [smem:[#allocation124_spill]] }
  0x2c   : > { %p9279_p0 = pneg %p9263_p12 }
  0x31   : > { %s8731_s4 = scalar_lea.hbm %s13202_s3, 16 }
  0x32   : > { %p8732_p13 = scmp.ne.s32.totalorder %s13202_s3, %s8731_s4  ;;  %p8738_p3 = scmp.lt.u32.totalorder %s8731_s4, %s13202_s3 }
  0x34   : > { %p8734_p1 = pnand %p9279_p0, %p8732_p13 }
  0x36   : > { %p8735_p2 = pneg %p8734_p1 }
  0x38   : > { %p8740_p4 = pnand %p8738_p3, %p8735_p2 }
  0x3a   : > { %8743 = shalt.err (!%p8740_p4)
}
  0x3b   : > { %s8744_s26 = scalar_lea.vmem %s595_s0, 16  ;;  %s8751_s23 = scalar_lea.vmem %s595_s0, 32 }
  0x3c   : > { %p8745_p7 = scmp.ne.s32.totalorder %s595_s0, %s8744_s26  ;;  %p8752_p9 = scmp.lt.s32.totalorder %s595_s0, %s595_s0 }
  0x3d   : > { %p8753_p6 = scmp.lt.s32.totalorder %s8751_s23, %s8744_s26 }
  0x3e   : > { %p8747_p8 = pnand %p8745_p7, %p9279_p0 }
  0x3f   : > { %p8754_p5 = por %p8753_p6, %p8752_p9 }
  0x40   : > { %p8748_p11 = pneg %p8747_p8 }
  0x42   : > { %p8755_p10 = pnand %p8754_p5, %p8748_p11 }
  0x44   : > { %8758 = shalt.err (!%p8755_p10)
}
  0x45   : > { %8458 = dma.hbm_to_vmem [thread:$0]  (!%p9263_p12), %s13202_s3, 16, %s595_s0, [#allocation6]  }
  0x46   : > { %s13204_s27 = sld [smem:[#allocation127_spill]] }
  0x4c   : > { %s8759_s22 = scalar_lea.hbm %s13204_s27, 32 }
  0x4d   : > { %p8760_p13 = scmp.ne.s32.totalorder %s13204_s27, %s8759_s22  ;;  %p8766_p5 = scmp.lt.u32.totalorder %s8759_s22, %s13204_s27 }
  0x4f   : > { %p8762_p1 = pnand %p8760_p13, %p9279_p0 }
  0x51   : > { %p8763_p6 = pneg %p8762_p1 }
  0x53   : > { %p8768_p9 = pnand %p8766_p5, %p8763_p6 }
  0x55   : > { %8771 = shalt.err (!%p8768_p9)
}
  0x56   : > { %s8772_s0 = scalar_lea.vmem %s9267_s2, 32  ;;  %p8780_p4 = scmp.lt.s32.totalorder %s9267_s2, %s9267_s2 }
  0x57   : > { %p8773_p10 = scmp.ne.s32.totalorder %s9267_s2, %s8772_s0  ;;  %p8781_p7 = scmp.lt.s32.totalorder %s8772_s0, %s8772_s0 }
  0x59   : > { %p8775_p2 = pnand %p8773_p10, %p9279_p0  ;;  %p8782_p8 = por %p8781_p7, %p8780_p4 }
  0x5b   : > { %p8776_p3 = pneg %p8775_p2 }
  0x5d   : > { %p8783_p11 = pnand %p8782_p8, %p8776_p3 }
  0x5f   : > { %8786 = shalt.err (!%p8783_p11)
}
  0x60   : > { %8464 = dma.hbm_to_vmem [thread:$0]  (!%p9263_p12), %s13204_s27, 32, %s9267_s2, [#allocation9]  }
  0x61   : > { %s13205_s12 = sld [smem:[#allocation129_spill]] }
  0x67   : > { %s8787_s28 = scalar_lea.hbm %s13205_s12, 16 }
  0x68   : > { %p8788_p13 = scmp.ne.s32.totalorder %s13205_s12, %s8787_s28  ;;  %p8794_p5 = scmp.lt.u32.totalorder %s8787_s28, %s13205_s12 }
  0x6a   : > { %p8790_p1 = pnand %p8788_p13, %p9279_p0 }
  0x6c   : > { %p8791_p6 = pneg %p8790_p1 }
  0x6e   : > { %p8796_p9 = pnand %p8794_p5, %p8791_p6 }
  0x70   : > { %8799 = shalt.err (!%p8796_p9)
}
  0x71   : > { %s8800_s2 = scalar_lea.vmem %s9269_s24, 16  ;;  %s8807_s0 = scalar_lea.vmem %s9269_s24, 32 }
  0x72   : > { %p8801_p10 = scmp.ne.s32.totalorder %s9269_s24, %s8800_s2  ;;  %p8808_p4 = scmp.lt.s32.totalorder %s9269_s24, %s9269_s24 }
  0x73   : > { %p8809_p7 = scmp.lt.s32.totalorder %s8807_s0, %s8800_s2 }
  0x74   : > { %p8803_p2 = pnand %p8801_p10, %p9279_p0 }
  0x75   : > { %p8810_p8 = por %p8809_p7, %p8808_p4 }
  0x76   : > { %p8804_p3 = pneg %p8803_p2 }
  0x78   : > { %p8811_p11 = pnand %p8810_p8, %p8804_p3 }
  0x7a   : > { %8814 = shalt.err (!%p8811_p11)
}
  0x7b   : > { %8470 = dma.hbm_to_vmem [thread:$0]  (!%p9263_p12), %s13205_s12, 16, %s9269_s24, [#allocation12]  }
  0x7c   : > { %s9070_s30 = smov [#allocation14]   ;;  %s9071_s28 = smov [#allocation2]  }
  0x7d   : > { %s680_s25 = sshll.u32 %s9070_s30, 4  ;;  %s583_s4 = sshll.u32 %s9071_s28, 4  ;;  %s681_s25 = int_to_ptr.vmem [resolvable:$true] %s680_s25  ;;  %s584_s4 = int_to_ptr.vmem [resolvable:$true] %s583_s4 }
  0x7e   : > { %s13206_s16 = sld [smem:[#allocation130_spill]] }
  0x84   : > { %s8815_s23 = scalar_lea.hbm %s13206_s16, 16 }
  0x85   : > { %p8816_p13 = scmp.ne.s32.totalorder %s13206_s16, %s8815_s23  ;;  %p8822_p5 = scmp.lt.u32.totalorder %s8815_s23, %s13206_s16 }
  0x87   : > { %p8818_p1 = pnand %p8816_p13, %p9279_p0 }
  0x89   : > { %p8819_p6 = pneg %p8818_p1 }
  0x8b   : > { %p8824_p9 = pnand %p8822_p5, %p8819_p6 }
  0x8d   : > { %8827 = shalt.err (!%p8824_p9)
}
  0x8e   : > { %s8828_s24 = scalar_lea.vmem %s681_s25, 16  ;;  %s8835_s22 = scalar_lea.vmem %s681_s25, 32 }
  0x8f   : > { %p8829_p10 = scmp.ne.s32.totalorder %s681_s25, %s8828_s24  ;;  %p8836_p4 = scmp.lt.s32.totalorder %s681_s25, %s681_s25 }
  0x90   : > { %p8837_p7 = scmp.lt.s32.totalorder %s8835_s22, %s8828_s24 }
  0x91   : > { %p8831_p2 = pnand %p8829_p10, %p9279_p0 }
  0x92   : > { %p8838_p8 = por %p8837_p7, %p8836_p4 }
  0x93   : > { %p8832_p3 = pneg %p8831_p2 }
  0x95   : > { %p8839_p11 = pnand %p8838_p8, %p8832_p3 }
  0x97   : > { %8842 = shalt.err (!%p8839_p11)
}
  0x98   : > { %8476 = dma.hbm_to_vmem [thread:$0]  (!%p9263_p12), %s13206_s16, 16, %s681_s25, [#allocation15]  }
  0x99   : > { %s13207_s26 = sld [smem:[#allocation123_spill]] }
  0x9f   : > { %s8843_s23 = scalar_lea.hbm %s13207_s26, 32 }
  0xa0   : > { %p8844_p13 = scmp.ne.s32.totalorder %s13207_s26, %s8843_s23  ;;  %p8850_p5 = scmp.lt.u32.totalorder %s8843_s23, %s13207_s26 }
  0xa2   : > { %p8846_p1 = pnand %p8844_p13, %p9279_p0 }
  0xa4   : > { %p8847_p6 = pneg %p8846_p1 }
  0xa6   : > { %p8852_p9 = pnand %p8850_p5, %p8847_p6 }
  0xa8   : > { %8855 = shalt.err (!%p8852_p9)
}
  0xa9   : > { %s8856_s22 = scalar_lea.vmem %s584_s4, 32  ;;  %p8864_p4 = scmp.lt.s32.totalorder %s584_s4, %s584_s4 }
  0xaa   : > { %p8857_p10 = scmp.ne.s32.totalorder %s584_s4, %s8856_s22  ;;  %p8865_p7 = scmp.lt.s32.totalorder %s8856_s22, %s8856_s22 }
  0xac   : > { %p8859_p2 = pnand %p8857_p10, %p9279_p0  ;;  %p8866_p8 = por %p8865_p7, %p8864_p4 }
  0xae   : > { %p8860_p3 = pneg %p8859_p2 }
  0xb0   : > { %p8867_p11 = pnand %p8866_p8, %p8860_p3 }
  0xb2   : > { %8870 = shalt.err (!%p8867_p11)
}
  0xb3   : > { %8455 = dma.hbm_to_vmem [thread:$0]  (!%p9263_p12), %s13207_s26, 32, %s584_s4, [#allocation3]  }
  0xb4   : > { %s9072_s28 = smov [#allocation7]   ;;  %s9073_s7 = smov [#allocation10]  }
  0xb5   : > { %s608_s3 = sshll.u32 %s9072_s28, 4  ;;  %s630_s23 = sshll.u32 %s9073_s7, 4  ;;  %s609_s3 = int_to_ptr.vmem [resolvable:$true] %s608_s3  ;;  %s631_s23 = int_to_ptr.vmem [resolvable:$true] %s630_s23 }
  0xb6   : > { %s13208_s21 = sld [smem:[#allocation126_spill]] }
  0xbc   : > { %s8871_s24 = scalar_lea.hbm %s13208_s21, 16 }
  0xbd   : > { %p8872_p13 = scmp.ne.s32.totalorder %s13208_s21, %s8871_s24  ;;  %p8878_p5 = scmp.lt.u32.totalorder %s8871_s24, %s13208_s21 }
  0xbf   : > { %p8874_p1 = pnand %p8872_p13, %p9279_p0 }
  0xc1   : > { %p8875_p6 = pneg %p8874_p1 }
  0xc3   : > { %p8880_p9 = pnand %p8878_p5, %p8875_p6 }
  0xc5   : > { %8883 = shalt.err (!%p8880_p9)
}
  0xc6   : > { %s8884_s4 = scalar_lea.vmem %s609_s3, 16  ;;  %s8891_s30 = scalar_lea.vmem %s609_s3, 32 }
  0xc7   : > { %p8885_p10 = scmp.ne.s32.totalorder %s609_s3, %s8884_s4  ;;  %p8892_p4 = scmp.lt.s32.totalorder %s609_s3, %s609_s3 }
  0xc8   : > { %p8893_p7 = scmp.lt.s32.totalorder %s8891_s30, %s8884_s4 }
  0xc9   : > { %p8887_p2 = pnand %p8885_p10, %p9279_p0 }
  0xca   : > { %p8894_p8 = por %p8893_p7, %p8892_p4 }
  0xcb   : > { %p8888_p3 = pneg %p8887_p2 }
  0xcd   : > { %p8895_p11 = pnand %p8894_p8, %p8888_p3 }
  0xcf   : > { %8898 = shalt.err (!%p8895_p11)
}
  0xd0   : > { %8461 = dma.hbm_to_vmem [thread:$0]  (!%p9263_p12), %s13208_s21, 16, %s609_s3, [#allocation6]  }
  0xd1   : > { %s13209_s8 = sld [smem:[#allocation128_spill]] }
  0xd7   : > { %s8899_s2 = scalar_lea.hbm %s13209_s8, 16 }
  0xd8   : > { %p8900_p13 = scmp.ne.s32.totalorder %s13209_s8, %s8899_s2  ;;  %p8906_p5 = scmp.lt.u32.totalorder %s8899_s2, %s13209_s8 }
  0xda   : > { %p8902_p1 = pnand %p8900_p13, %p9279_p0 }
  0xdc   : > { %p8903_p6 = pneg %p8902_p1 }
  0xde   : > { %p8908_p9 = pnand %p8906_p5, %p8903_p6 }
  0xe0   : > { %8911 = shalt.err (!%p8908_p9)
}
  0xe1   : > { %s8912_s4 = scalar_lea.vmem %s631_s23, 16  ;;  %s8919_s3 = scalar_lea.vmem %s631_s23, 32 }
  0xe2   : > { %p8913_p10 = scmp.ne.s32.totalorder %s631_s23, %s8912_s4  ;;  %p8920_p4 = scmp.lt.s32.totalorder %s631_s23, %s631_s23 }
  0xe3   : > { %p8921_p7 = scmp.lt.s32.totalorder %s8919_s3, %s8912_s4 }
  0xe4   : > { %p8915_p2 = pnand %p8913_p10, %p9279_p0 }
  0xe5   : > { %p8922_p8 = por %p8921_p7, %p8920_p4 }
  0xe6   : > { %p8916_p3 = pneg %p8915_p2 }
  0xe8   : > { %p8923_p11 = pnand %p8922_p8, %p8916_p3 }
  0xea   : > { %8926 = shalt.err (!%p8923_p11)
}
  0xeb   : > { %8467 = dma.hbm_to_vmem [thread:$0]  (!%p9263_p12), %s13209_s8, 16, %s631_s23, [#allocation9]  }
  0xec   : > { %s9074_s28 = smov [#allocation13]   ;;  %s8927_s0 = scalar_lea.hbm %s13048_s15, 256 }
  0xed   : > { %s666_s16 = sshll.u32 %s9074_s28, 4  ;;  %p8928_p13 = scmp.ne.s32.totalorder %s13048_s15, %s8927_s0  ;;  %s667_s16 = int_to_ptr.vmem [resolvable:$true] %s666_s16 }
  0xee   : > { %p8934_p5 = scmp.lt.u32.totalorder %s8927_s0, %s13048_s15 }
  0xef   : > { %p8930_p1 = pnand %p8928_p13, %p9279_p0 }
  0xf1   : > { %p8931_p6 = pneg %p8930_p1 }
  0xf3   : > { %p8936_p9 = pnand %p8934_p5, %p8931_p6 }
  0xf5   : > { %8939 = shalt.err (!%p8936_p9)
}
  0xf6   : > { %s8940_s23 = scalar_lea.vmem %s667_s16, 256  ;;  %p8948_p4 = scmp.lt.s32.totalorder %s667_s16, %s667_s16 }
  0xf7   : > { %p8941_p10 = scmp.ne.s32.totalorder %s667_s16, %s8940_s23  ;;  %p8949_p7 = scmp.lt.s32.totalorder %s8940_s23, %s8940_s23 }
  0xf9   : > { %p8943_p2 = pnand %p8941_p10, %p9279_p0  ;;  %p8950_p8 = por %p8949_p7, %p8948_p4 }
  0xfb   : > { %p8944_p3 = pneg %p8943_p2 }
  0xfd   : > { %p8951_p11 = pnand %p8950_p8, %p8944_p3 }
  0xff   : > { %8954 = shalt.err (!%p8951_p11)
}
 0x100   : > { %s9075_s3 = smov 64   ;;  %s9076_s30 = smov 4  }
 0x101   : > { %8473 = dma.hbm_to_vmem [thread:$0]  (!%p9263_p12), %s13048_s15, 256, %s667_s16, [#allocation12], %s9075_s3, %s9075_s3, %s9076_s30  }
 0x102   : > { %s9077_s7 = smov [#allocation16]   ;;  %s8955_s22 = scalar_lea.hbm %s13052_s19, 256 }
 0x103   : > { %s696_s2 = sshll.u32 %s9077_s7, 4  ;;  %p8956_p13 = scmp.ne.s32.totalorder %s13052_s19, %s8955_s22  ;;  %s697_s2 = int_to_ptr.vmem [resolvable:$true] %s696_s2 }
 0x104   : > { %p8962_p5 = scmp.lt.u32.totalorder %s8955_s22, %s13052_s19 }
 0x105   : > { %p8958_p1 = pnand %p8956_p13, %p9279_p0 }
 0x107   : > { %p8959_p6 = pneg %p8958_p1 }
 0x109   : > { %p8964_p9 = pnand %p8962_p5, %p8959_p6 }
 0x10b   : > { %8967 = shalt.err (!%p8964_p9)
}
 0x10c   : > { %s8968_s16 = scalar_lea.vmem %s697_s2, 256  ;;  %p8976_p4 = scmp.lt.s32.totalorder %s697_s2, %s697_s2 }
 0x10d   : > { %p8969_p10 = scmp.ne.s32.totalorder %s697_s2, %s8968_s16  ;;  %p8977_p7 = scmp.lt.s32.totalorder %s8968_s16, %s8968_s16 }
 0x10f   : > { %p8971_p2 = pnand %p8969_p10, %p9279_p0  ;;  %p8978_p8 = por %p8977_p7, %p8976_p4 }
 0x111   : > { %p8972_p3 = pneg %p8971_p2 }
 0x113   : > { %p8979_p11 = pnand %p8978_p8, %p8972_p3 }
 0x115   : > { %8982 = shalt.err (!%p8979_p11)
}
 0x116   : > { %8479 = dma.hbm_to_vmem [thread:$0]  (!%p9263_p12), %s13052_s19, 256, %s697_s2, [#allocation15], %s9075_s3, %s9075_s3, %s9076_s30  }
 0x117   : > { %p13210_p13 = scmp.ne.s32.totalorder %s13200_s29, 0 }
 0x119   : > { %748 = sbr.rel (%p13210_p13) target bundleno = 2430 (0x97e), region = 112 }
 0x120   : > { %p13211_p1 = scmp.eq.s32.totalorder %s9227_s5, 0 }
 0x122   : > { %9028 = dma.done.wait (%p13211_p1), [#allocation3], 32   ;;  %p13212_p0 = pmov %p13211_p1 }
 0x124   : > { %9030 = vsyncadd (%p13212_p0), [#allocation3], 4294967264  ;;  %p13213_p6 = pmov %p13212_p0 }
 0x125   : > { %p13214_p5 = pmov %p13212_p0 }
 0x126   : > { %9032 = dma.done.wait (%p13213_p6), [#allocation6], 32  }
 0x127   : > { %9034 = vsyncadd (%p13214_p5), [#allocation6], 4294967264  ;;  %p13215_p9 = pmov %p13212_p0 }
 0x128   : > { %p13216_p12 = pmov %p13212_p0 }
 0x129   : > { %9036 = dma.done.wait (%p13215_p9), [#allocation9], 48  }
 0x12a   : > { %9038 = vsyncadd (%p13216_p12), [#allocation9], 4294967248  ;;  %p13217_p10 = pmov %p13212_p0 }
 0x12b   : > { %p13218_p2 = pmov %p13212_p0 }
 0x12c   : > { %9040 = dma.done.wait (%p13217_p10), [#allocation12], 272  }
 0x12d   : > { %9042 = vsyncadd (%p13218_p2), [#allocation12], 4294967024  ;;  %p13219_p3 = pmov %p13212_p0 }
 0x12e   : > { %p13220_p4 = pmov %p13212_p0 }
 0x12f   : > { %9044 = dma.done.wait (%p13219_p3), [#allocation15], 272  }
 0x130   : > { %9046 = vsyncadd (%p13220_p4), [#allocation15], 4294967024  ;;  %s7847_s8 = sshll.u32 %s9227_s5, 2  ;;  %v13100_v0 = vmov 0   ;;  %s13221_s3 = sld [smem:[#allocation121_spill]]  ;;  %v9080_v27 = vmov 0.0   ;;  %v13099_v48 = vlaneseq }
 0x131   : > { %p855_p7 = scmp.lt.s32.totalorder %s7847_s8, 7  ;;  %8553 = vset.pattern.permute.xlu0 %v13100_v0  ;;  %8554 = vset.pattern.permute.xlu1 %v13100_v0  ;;  %s13222_s0 = sld [smem:[#allocation120_spill]]  ;;  %v13225_v41 = vmov 0  ;;  %v13227_v45 = vmov 0  ;;  %v9081_v46 = vmov 1966171168  }
 0x132   : > { %s9079_s22 = smov 127   ;;  %s13223_s23 = sld [smem:[#allocation122_spill]]  ;;  %v984_v47 = vunpack.c.l.s4 %v9081_v46  ;;  %v13230_v49 = vmov 0  ;;  %v13233_v53 = vmov 0  ;;  %v9651_v55 = vshrl.u32 %v13099_v48, 7  ;;  %v9657_v57 = vld [vmem:[%s13042_s9] sm:$0xff]  }
 0x133   : > { %s13726_s8 = smov (!%p855_p7, %s7847_s8), 7  ;;  %v1895_v58 = vld [vmem:[#allocation5] sm:$0x1]  ;;  %s13711_s4 = sld [smem:[#allocation25_spill]] }
 0x134   : > { %s9475_s29 = sshll.u32 %s13726_s8, 3  ;;  %s13224_s8 = sld [smem:[#allocation125_spill]]  ;;  %v985_v54 = vunpack.c.0.s8 %v984_v47  ;;  %13236 = vst [vmem:[#allocation35_spill] sm:$0xff] %v9651_v55 }
 0x135   : > { %s7987_s7 = sshll.u32 %s9227_s5, 9 }
 0x136   : > { %s9481_s30 = scalar_lea.vmem %s13221_s3, %s9475_s29  ;;  %v9673_v61 = vsub.s32 %v985_v54, %v9651_v55  ;;  %s13713_s3 = sld [smem:[#allocation30_spill]] }
 0x137   : > { %s858_s24 = scalar_lea.vmem %s13222_s0, %s9475_s29  ;;  %v9488_v1 = vld [vmem:[%s9481_s30 + $0x10] sm:$0xff]  ;;  %v9491_v2 = vld [vmem:[%s9481_s30] sm:$0xff]  ;;  %v9494_v3 = vld [vmem:[%s9481_s30 + $0x18] sm:$0xff] }
 0x138   : > { %vm884_vm0 = vcmp.ne.f32.partialorder %v9488_v1, %v9488_v1  ;;  %vm882_vm1 = vcmp.ne.f32.partialorder %v9491_v2, %v9491_v2  ;;  %vm885_vm2 = vcmp.ne.f32.partialorder %v9494_v3, %v9494_v3  ;;  %v9503_v4 = vld [vmem:[%s9481_s30 + $0x8] sm:$0xff]  ;;  %v874_v5 = vld [vmem:[%s858_s24] sm:$0xff]  ;;  %v876_v9 = vld [vmem:[%s858_s24 + $0x10] sm:$0xff]  ;;  %s870_s16 = scalar_lea.vmem %s13223_s23, %s9475_s29  ;;  %s13677_s23 = sld [smem:[#allocation131_spill]] }
 0x139   : > { %v875_v6 = vld [vmem:[%s858_s24 + $0x8] sm:$0xff]  ;;  %v888_v7 = vsel %vm884_vm0, 1, %v13100_v0  ;;  %v886_v8 = vsel %vm882_vm1, 1, %v13100_v0  ;;  %vm883_vm3 = vcmp.ne.f32.partialorder %v9503_v4, %v9503_v4  ;;  %v877_v10 = vld [vmem:[%s858_s24 + $0x18] sm:$0xff]  ;;  %v9516_v11 = vsub.f32 %v9491_v2, %v874_v5  ;;  %v9547_v17 = vld [vmem:[%s870_s16 + $0x10] sm:$0xff]  ;;  %s13712_s29 = sld [smem:[#allocation132_spill]] }
 0x13a   : > { %894 = vrot.lane.b32.xlu1 %v888_v7, %s9079_s22  ;;  %890 = vrot.lane.b32.xlu0 %v886_v8, %s9079_s22  ;;  %v9519_v12 = vsub.f32 %v9503_v4, %v875_v6  ;;  %v9522_v13 = vsub.f32 %v9488_v1, %v876_v9  ;;  %v889_v14 = vsel %vm885_vm2, 1, %v13100_v0  ;;  %v887_v15 = vsel %vm883_vm3, 1, %v13100_v0  ;;  %v9557_v20 = vld [vmem:[%s870_s16 + $0x18] sm:$0xff]  ;;  %v9569_v24 = vld [vmem:[%s870_s16] sm:$0xff]  ;;  %s13714_s24 = sld [smem:[#allocation133_spill]] }
 0x13b   : > { %v9533_v16 = vsub.f32 %v9494_v3, %v877_v10  ;;  %vm910_vm4 = vcmp.ne.f32.partialorder %v9516_v11, %v9516_v11  ;;  %v7870_v23 = vpack.c.bf16 %v9557_v20, %v9547_v17  ;;  %vm4026_vm8 = vcmp.ne.f32.partialorder %v9569_v24, %v9569_v24  ;;  %v8613_v25 = vld [vmem:[%s13224_s8] sm:$0xff]   ;;  %v9576_v26 = vld [vmem:[%s870_s16 + $0x8] sm:$0xff]  ;;  %v8615_v32 = vld [vmem:[%s13224_s8 + $0x10] sm:$0xff]   ;;  %s851_s16 = sand.u32 1, %s13711_s4  }
 0x13c   : > { %vm911_vm5 = vcmp.ne.f32.partialorder %v9519_v12, %v9519_v12  ;;  %vm912_vm6 = vcmp.ne.f32.partialorder %v9522_v13, %v9522_v13  ;;  %v914_v18 = vsel %vm910_vm4, 1, %v13100_v0  ;;  %v4030_v28 = vsel %vm4026_vm8, 1.0, %v9080_v27  ;;  %8106 = vmatprep.subr.bf16.mxu0 %v8613_v25  ;;  %v8614_v29 = vld [vmem:[%s13224_s8 + $0x8] sm:$0xff]   ;;  %v8616_v34 = vld [vmem:[%s13224_s8 + $0x18] sm:$0xff]   ;;  %v8617_v35 = vld [vmem:[%s13224_s8 + $0x20] sm:$0xff]   ;;  %s12992_s5 = scalar_lea.sflag [#allocation4], %s851_s16 }
 0x13d   : > { %vm913_vm7 = vcmp.ne.f32.partialorder %v9533_v16, %v9533_v16  ;;  %v915_v19 = vsel %vm911_vm5, 1, %v13100_v0  ;;  %v916_v21 = vsel %vm912_vm6, 1, %v13100_v0  ;;  %vm4028_vm9 = vcmp.ne.f32.partialorder %v9547_v17, %v9547_v17  ;;  %8107 = vmatpush3.bf16.msra.mxu0 %v8613_v25  ;;  %v8618_v36 = vld [vmem:[%s13224_s8 + $0x28] sm:$0xff]   ;;  %v8619_v37 = vld [vmem:[%s13224_s8 + $0x30] sm:$0xff]   ;;  %v8620_v38 = vld [vmem:[%s13224_s8 + $0x38] sm:$0xff]   ;;  %p13716_p11 = scmp.ne.s32.totalorder %s13713_s3, 0 }
 0x13e   : > { %896 = vrot.lane.b32.xlu1 %v889_v14, %s9079_s22  ;;  %892 = vrot.lane.b32.xlu0 %v887_v15, %s9079_s22  ;;  %v917_v22 = vsel %vm913_vm7, 1, %v13100_v0  ;;  %vm4027_vm10 = vcmp.ne.f32.partialorder %v9576_v26, %v9576_v26  ;;  %v4032_v30 = vsel %vm4028_vm9, 1.0, %v9080_v27  ;;  %vm4029_vm11 = vcmp.ne.f32.partialorder %v9557_v20, %v9557_v20 }
 0x13f   : > { %8108 = vmatprep.subr.bf16.mxu0 %v8614_v29  ;;  %v4031_v31 = vsel %vm4027_vm10, 1.0, %v9080_v27  ;;  %v4033_v33 = vsel %vm4029_vm11, 1.0, %v9080_v27  ;;  %v9725_v27 = vsub.s32 0, %v9651_v55 }
 0x140   : > { %s12990_s25 = scalar_lea.hbm %s13714_s24, %s7987_s7 }
 0x141   : > { %8109 = vmatpush3.bf16.msra.mxu0 %v8614_v29 }
 0x142   : > { %918 = vrot.lane.b32.xlu0 %v914_v18, %s9079_s22  ;;  %920 = vrot.lane.b32.xlu1 %v915_v19, %s9079_s22 }
 0x143   : > { %8110 = vmatprep.subr.bf16.mxu0 %v8615_v32 }
 0x145   : > { %8111 = vmatpush3.bf16.msra.mxu0 %v8615_v32 }
 0x146   : > { %922 = vrot.lane.b32.xlu0 %v916_v21, %s9079_s22  ;;  %924 = vrot.lane.b32.xlu1 %v917_v22, %s9079_s22  ;;  %s13715_s22 = smov %s13714_s24 }
 0x147   : > { %8112 = vmatprep.subr.bf16.mxu0 %v8616_v34 }
 0x149   : > { %8113 = vmatpush3.bf16.msra.mxu0 %v8616_v34 }
 0x14a   : > { %8114 = vmatprep.subr.bf16.mxu0 %v8617_v35 }
 0x14d   : > { %8115 = vmatpush3.bf16.msra.mxu0 %v8617_v35 }
 0x14e   : > { %8116 = vmatprep.subr.bf16.mxu0 %v8618_v36 }
 0x151   : > { %8117 = vmatpush3.bf16.msra.mxu0 %v8618_v36 }
 0x152   : > { %8118 = vmatprep.subr.bf16.mxu0 %v8619_v37 }
 0x155   : > { %8119 = vmatpush3.bf16.msra.mxu0 %v8619_v37 }
 0x156   : > { %8120 = vmatprep.subr.bf16.mxu0 %v8620_v38 }
 0x159   : > { %8121 = vmatpush3.bf16.msra.mxu0 %v8620_v38 }
 0x15a   : > { %8138 = vmatprep.subr.bf16.mxu0 %v9657_v57 }
 0x165   : > { %4034 = vmax.xlane.f32.xlu0 %v4030_v28 }
 0x169   : > { %4038 = vmax.xlane.f32.xlu0 %v4032_v30 }
 0x16a   : > { %4036 = vmax.xlane.f32.xlu1 %v4031_v31 }
 0x16d   : > { %4040 = vmax.xlane.f32.xlu0 %v4033_v33 }
 0x1ac   : > { %v895_v39 = vpop.permute.xlu1 %894  ;;  %v891_v40 = vpop.permute.xlu0 %890 }
 0x1ad   : > { %vm898_vm12 = vcmp.ne.s32.totalorder %v891_v40, 0  ;;  %vm900_vm8 = vcmp.ne.s32.totalorder %v895_v39, 0 }
 0x1ae   : > { %vm9608_vm13 = vmor %vm882_vm1, %vm898_vm12 }
 0x1af   : > { %v13226_v41 = vsel %vm9608_vm13, 4294967295, %v13225_v41  ;;  %v9615_v44 = vsel %vm9608_vm13, 1, %v13100_v0 }
 0x1b0   : > { %v897_v42 = vpop.permute.xlu1 %896  ;;  %v893_v43 = vpop.permute.xlu0 %892  ;;  %939 = vperm.xlu0 %8553, %v9615_v44  }
 0x1b1   : > { %vm901_vm14 = vcmp.ne.s32.totalorder %v897_v42, 0  ;;  %vm899_vm15 = vcmp.ne.s32.totalorder %v893_v43, 0 }
 0x1b2   : > { %vm9621_vm9 = vmor %vm885_vm2, %vm901_vm14 }
 0x1b3   : > { %v13228_v45 = vsel %vm9621_vm9, 4294967295, %v13227_v45  ;;  %vm9628_vm1 = vmor %vm883_vm3, %vm899_vm15  ;;  %v9635_v50 = vsel %vm9621_vm9, 1, %v13100_v0 }
 0x1b4   : > { %13229 = vst [vmem:[#allocation32_spill] sm:$0xff] %v13228_v45  ;;  %v13231_v49 = vsel %vm9628_vm1, 4294967295, %v13230_v49  ;;  %13232 = vst [vmem:[#allocation33_spill] sm:$0xff] %v9635_v50  ;;  %v9640_v51 = vsel %vm9628_vm1, 1, %v13100_v0  ;;  %v919_v52 = vpop.permute.xlu0 %918  ;;  %948 = vperm.xlu0 %8553, %v9635_v50   ;;  %v921_v56 = vpop.permute.xlu1 %920 }
 0x1b5   : > { %vm9645_vm2 = vmor %vm884_vm0, %vm900_vm8  ;;  %942 = vperm.xlu1 %8554, %v9640_v51   ;;  %vm926_vm3 = vcmp.ne.s32.totalorder %v919_v52, 0  ;;  %vm927_vm11 = vcmp.ne.s32.totalorder %v921_v56, 0 }
 0x1b6   : > { %v13234_v53 = vsel %vm9645_vm2, 4294967295, %v13233_v53  ;;  %vm9662_vm0 = vmor %vm910_vm4, %vm926_vm3  ;;  %v9669_v59 = vsel %vm9645_vm2, 1, %v13100_v0 }
 0x1b7   : > { %13235 = vst [vmem:[#allocation34_spill] sm:$0xff] %v13234_v53  ;;  %13239 = vst [vmem:[#allocation36_spill] sm:$0xff] %v9669_v59  ;;  %v958_v3 = vsel %vm9662_vm0, 1, %v13100_v0 }
 0x1b8   : > { %v923_v60 = vpop.permute.xlu0 %922  ;;  %v925_v62 = vpop.permute.xlu1 %924  ;;  %vm9689_vm12 = vmor %vm911_vm5, %vm927_vm11  ;;  %v1445_v6 = vrot.slane %v958_v3, %v9673_v61  ;;  %v1438_v22 = vcombine.high %v958_v3, %v958_v3 }
 0x1b9   : > { %945 = vperm.xlu1 %8554, %v9669_v59   ;;  %vm928_vm10 = vcmp.ne.s32.totalorder %v923_v60, 0  ;;  %v959_v9 = vsel %vm9689_vm12, 1, %v13100_v0 }
 0x1ba   : > { %vm9679_vm4 = vmor %vm912_vm6, %vm928_vm10  ;;  %vm929_vm6 = vcmp.ne.s32.totalorder %v925_v62, 0  ;;  %v1453_v10 = vcombine.high %v1445_v6, %v1445_v6  ;;  %v1461_v14 = vrot.slane %v1445_v6, %v9673_v61  ;;  %v1494_v18 = vrot.slane %v959_v9, %v9673_v61 }
 0x1bb   : > { %v9697_v7 = vsel %vm9679_vm4, 1, %v13100_v0  ;;  %vm9719_vm5 = vmor %vm913_vm7, %vm929_vm6  ;;  %v1452_v34 = vrot.slane %v1438_v22, %v9673_v61  ;;  %v1487_v52 = vcombine.high %v959_v9, %v959_v9 }
 0x1bc   : > { %969 = vperm.xlu0 %8553, %v9697_v7   ;;  %v9702_v8 = vrot.slane %v9697_v7, %v9673_v61  ;;  %v9714_v19 = vrot.slane %v1453_v10, %v9673_v61  ;;  %v1510_v25 = vrot.slane %v1494_v18, %v9673_v61  ;;  %vm1634_vm14 = vcmp.ne.s32.totalorder %v1461_v14, 0 }
 0x1bd   : > { %963 = vperm.xlu1 %8554, %v958_v3   ;;  %v9730_v28 = vsel %vm9719_vm5, 1, %v13100_v0  ;;  %v1502_v29 = vcombine.high %v1494_v18, %v1494_v18  ;;  %v1666_v30 = vsel %vm1634_vm14, 1, %v13100_v0  ;;  %v1468_v39 = vrot.slane %v1452_v34, %v9673_v61 }
 0x1be   : > { %v9710_v15 = vrot.slane %v9702_v8, %v9673_v61  ;;  %vm1635_vm7 = vcmp.ne.s32.totalorder %v9714_v19, 0  ;;  %v1701_v31 = vrot.slane %v1666_v30, %v9725_v27  ;;  %vm1642_vm8 = vcmp.ne.s32.totalorder %v1510_v25, 0 }
 0x1bf   : > { %v1667_v33 = vsel %vm1635_vm7, 1, %v13100_v0  ;;  %v1674_v35 = vsel %vm1642_vm8, 1, %v13100_v0  ;;  %v9748_v40 = vrot.slane %v1502_v29, %v9673_v61  ;;  %v1483_v43 = vcombine.high %v1461_v14, %v1461_v14 }
 0x1c0   : > { %vm1650_vm15 = vcmp.ne.s32.totalorder %v9710_v15, 0  ;;  %vm1826_vm3 = vcmp.eq.s32.totalorder %v1701_v31, 1  ;;  %v1733_v36 = vrot.slane %v1674_v35, %v9725_v27  ;;  %v1705_v38 = vrot.slane %v1667_v33, %v9725_v27 }
 0x1c1   : > { %966 = vperm.xlu1 %8554, %v959_v9   ;;  %v1682_v32 = vsel %vm1650_vm15, 1, %v13100_v0  ;;  %vm1862_vm10 = vmor %vm1826_vm3, %vm9662_vm0  ;;  %vm1638_vm15 = vcmp.ne.s32.totalorder %v1468_v39, 0  ;;  %vm1636_vm3 = vcmp.ne.s32.totalorder %v1483_v43, 0  ;;  %v1532_v62 = vcombine.high %v1510_v25, %v1510_v25 }
 0x1c2   : > { %v1765_v37 = vrot.slane %v1682_v32, %v9725_v27  ;;  %v3830_v42 = vsel %vm1862_vm10, 1, %v13100_v0  ;;  %vm1834_vm11 = vcmp.eq.s32.totalorder %v1733_v36, 1  ;;  %vm9756_vm8 = vcmp.eq.s32.totalorder %v1705_v38, 1 }
 0x1c3   : > { %3863 = vperm.xlu0 %8553, %v3830_v42   ;;  %vm1870_vm14 = vmor %vm1834_vm11, %vm9689_vm12  ;;  %v1670_v54 = vsel %vm1638_vm15, 1, %v13100_v0  ;;  %v1668_v60 = vsel %vm1636_vm3, 1, %v13100_v0  ;;  %vm1643_vm10 = vcmp.ne.s32.totalorder %v9748_v40, 0  ;;  %v9771_v9 = vrot.slane %v1487_v52, %v9673_v61 }
 0x1c4   : > { %vm1842_vm6 = vcmp.eq.s32.totalorder %v1765_v37, 1  ;;  %v3838_v46 = vsel %vm1870_vm14, 1, %v13100_v0  ;;  %vm1863_vm11 = vmor %vm9756_vm8, %vm9662_vm0  ;;  %v1709_v3 = vrot.slane %v1668_v60, %v9725_v27  ;;  %v1717_v6 = vrot.slane %v1670_v54, %v9725_v27 }
 0x1c5   : > { %972 = vperm.xlu1 %8554, %v9730_v28   ;;  %vm1878_vm7 = vmor %vm1842_vm6, %vm9679_vm4  ;;  %v1675_v14 = vsel %vm1643_vm10, 1, %v13100_v0  ;;  %v3831_v18 = vsel %vm1863_vm11, 1, %v13100_v0  ;;  %vm1644_vm14 = vcmp.ne.s32.totalorder %v1532_v62, 0  ;;  %v9781_v22 = vrot.slane %v9771_v9, %v9673_v61 }
 0x1c6   : > { %v3846_v56 = vsel %vm1878_vm7, 1, %v13100_v0  ;;  %vm9773_vm6 = vcmp.eq.s32.totalorder %v1709_v3, 1  ;;  %v1585_v25 = vcombine.high %v9730_v28, %v9730_v28  ;;  %v1536_v29 = vcombine.high %v9697_v7, %v9697_v7 }
 0x1c7   : > { %vm1864_vm15 = vmor %vm9773_vm6, %vm9662_vm0  ;;  %vm9791_vm7 = vcmp.eq.s32.totalorder %v1717_v6, 1  ;;  %v1737_v31 = vrot.slane %v1675_v14, %v9725_v27  ;;  %v1454_v32 = vcombine.high %v1452_v34, %v1452_v34  ;;  %v1676_v33 = vsel %vm1644_vm14, 1, %v13100_v0 }
 0x1c8   : > { %vm1646_vm8 = vcmp.ne.s32.totalorder %v9781_v22, 0  ;;  %v1485_v35 = vcombine.high %v9714_v19, %v9714_v19  ;;  %v3832_v36 = vsel %vm1864_vm15, 1, %v13100_v0  ;;  %v9802_v37 = vrot.slane %v1585_v25, %v9673_v61  ;;  %vm1866_vm3 = vmor %vm9791_vm7, %vm9662_vm0 }
 0x1c9   : > { %3887 = vperm.xlu1 %8554, %v3838_v46   ;;  %vm9808_vm10 = vcmp.eq.s32.totalorder %v1737_v31, 1  ;;  %v1741_v34 = vrot.slane %v1676_v33, %v9725_v27  ;;  %v1678_v38 = vsel %vm1646_vm8, 1, %v13100_v0  ;;  %v1484_v42 = vcombine.high %v1468_v39, %v1468_v39 }
 0x1ca   : > { %v9815_v19 = vrot.slane %v1536_v29, %v9673_v61  ;;  %v9819_v43 = vrot.slane %v9802_v37, %v9673_v61  ;;  %vm1637_vm11 = vcmp.ne.s32.totalorder %v1485_v35, 0  ;;  %v9822_v46 = vrot.slane %v1454_v32, %v9673_v61  ;;  %vm1871_vm6 = vmor %vm9808_vm10, %vm9689_vm12 }
 0x1cb   : > { %v3834_v47 = vsel %vm1866_vm3, 1, %v13100_v0  ;;  %v1551_v52 = vcombine.high %v9702_v8, %v9702_v8  ;;  %v1749_v39 = vrot.slane %v1678_v38, %v9725_v27  ;;  %v1592_v54 = vrot.slane %v9730_v28, %v9673_v61 }
 0x1cc   : > { %vm1639_vm14 = vcmp.ne.s32.totalorder %v9822_v46, 0  ;;  %vm9835_vm15 = vcmp.eq.s32.totalorder %v1741_v34, 1  ;;  %v1669_v60 = vsel %vm1637_vm11, 1, %v13100_v0  ;;  %vm1640_vm7 = vcmp.ne.s32.totalorder %v1484_v42, 0 }
 0x1cd   : > { %3911 = vperm.xlu1 %8554, %v3846_v56   ;;  %v1552_v8 = vcombine.high %v9815_v19, %v9815_v19  ;;  %v1534_v62 = vcombine.high %v9748_v40, %v9748_v40  ;;  %v1631_v3 = vcombine.high %v9819_v43, %v9819_v43  ;;  %v1581_v28 = vcombine.high %v9710_v15, %v9710_v15  ;;  %vm1872_vm8 = vmor %vm9835_vm15, %vm9689_vm12 }
 0x1ce   : > { %v1503_v6 = vcombine.high %v9771_v9, %v9771_v9  ;;  %v3839_v10 = vsel %vm1871_vm6, 1, %v13100_v0  ;;  %v1671_v14 = vsel %vm1639_vm14, 1, %v13100_v0  ;;  %vm9856_vm3 = vcmp.eq.s32.totalorder %v1749_v39, 1 }
 0x1cf   : > { %v1672_v15 = vsel %vm1640_vm7, 1, %v13100_v0  ;;  %vm1664_vm10 = vcmp.ne.s32.totalorder %v1631_v3, 0  ;;  %v9863_v9 = vrot.slane %v1551_v52, %v9673_v61  ;;  %v1600_v25 = vcombine.high %v1592_v54, %v1592_v54  ;;  %vm1874_vm6 = vmor %vm9856_vm3, %vm9689_vm12 }
 0x1d0   : > { %v9866_v29 = vrot.slane %v1592_v54, %v9673_v61  ;;  %v1696_v30 = vsel %vm1664_vm10, 1, %v13100_v0  ;;  %v1721_v31 = vrot.slane %v1671_v14, %v9725_v27  ;;  %vm1645_vm11 = vcmp.ne.s32.totalorder %v1534_v62, 0 }
 0x1d1   : > { %3866 = vperm.xlu1 %8554, %v3831_v18   ;;  %v1713_v18 = vrot.slane %v1669_v60, %v9725_v27  ;;  %v1533_v32 = vcombine.high %v9781_v22, %v9781_v22  ;;  %v1821_v33 = vrot.slane %v1696_v30, %v9725_v27  ;;  %v3840_v35 = vsel %vm1872_vm8, 1, %v13100_v0 }
 0x1d2   : > { %v9880_v7 = vrot.slane %v1503_v6, %v9673_v61  ;;  %vm1652_vm14 = vcmp.ne.s32.totalorder %v1581_v28, 0  ;;  %v1566_v34 = vrot.slane %v9815_v19, %v9673_v61  ;;  %v13260_v38 = vmov 0 }
 0x1d3   : > { %vm9884_vm15 = vcmp.eq.s32.totalorder %v1713_v18, 1  ;;  %vm9888_vm7 = vcmp.eq.s32.totalorder %v1821_v33, 1  ;;  %v1684_v42 = vsel %vm1652_vm14, 1, %v13100_v0  ;;  %v9896_v52 = vrot.slane %v1600_v25, %v9673_v61 }
 0x1d4   : > { %v13261_v38 = vsel %vm9888_vm7, 4294967295, %v13260_v38  ;;  %v1677_v39 = vsel %vm1645_vm11, 1, %v13100_v0  ;;  %vm1647_vm8 = vcmp.ne.s32.totalorder %v9880_v7, 0  ;;  %v1630_v19 = vcombine.high %v9866_v29, %v9866_v29  ;;  %vm1865_vm11 = vmor %vm9884_vm15, %vm9662_vm0 }
 0x1d5   : > { %3869 = vperm.xlu1 %8554, %v3832_v36   ;;  %v1725_v36 = vrot.slane %v1672_v15, %v9725_v27  ;;  %v3842_v54 = vsel %vm1874_vm6, 1, %v13100_v0  ;;  %vm9907_vm10 = vcmp.eq.s32.totalorder %v1721_v31, 1  ;;  %vm1648_vm14 = vcmp.ne.s32.totalorder %v1533_v32, 0 }
 0x1d6   : > { %v1773_v62 = vrot.slane %v1684_v42, %v9725_v27  ;;  %v1583_v3 = vcombine.high %v9863_v9, %v9863_v9  ;;  %vm1654_vm6 = vcmp.ne.s32.totalorder %v1566_v34, 0  ;;  %v1745_v28 = vrot.slane %v1677_v39, %v9725_v27 }
 0x1d7   : > { %vm9915_vm2 = vcmp.eq.s32.totalorder %v1725_v36, 1  ;;  %v1679_v6 = vsel %vm1647_vm8, 1, %v13100_v0  ;;  %v1580_v14 = vrot.slane %v1552_v8, %v9673_v61  ;;  %v1680_v40 = vsel %vm1648_vm14, 1, %v13100_v0  ;;  %vm1867_vm8 = vmor %vm9907_vm10, %vm9662_vm0 }
 0x1d8   : > { %vm9927_vm15 = vcmp.eq.s32.totalorder %v1773_v62, 1  ;;  %v13266_v18 = vmov 0  ;;  %vm1653_vm3 = vcmp.ne.s32.totalorder %v1583_v3, 0  ;;  %v3833_v25 = vsel %vm1865_vm11, 1, %v13100_v0  ;;  %v8622_v62 = vld [vmem:[%s13042_s9 + $0x8] sm:$0xff]  }
 0x1d9   : > { %3875 = vperm.xlu1 %8554, %v3834_v47   ;;  %v1601_v47 = vcombine.high %v9802_v37, %v9802_v37  ;;  %v13267_v18 = vsel %vm9927_vm15, 4294967295, %v13266_v18  ;;  %v1486_v8 = vcombine.high %v9822_v46, %v9822_v46  ;;  %v1685_v30 = vsel %vm1653_vm3, 1, %v13100_v0 }
 0x1da   : > { %vm1655_vm14 = vcmp.ne.s32.totalorder %v1580_v14, 0  ;;  %v1753_v31 = vrot.slane %v1679_v6, %v9725_v27  ;;  %v1777_v32 = vrot.slane %v1685_v30, %v9725_v27  ;;  %v13268_v33 = vmov 0 }
 0x1db   : > { %v1757_v36 = vrot.slane %v1680_v40, %v9725_v27  ;;  %v1582_v22 = vcombine.high %v1566_v34, %v1566_v34  ;;  %v1584_v42 = vcombine.high %v1580_v14, %v1580_v14  ;;  %v3835_v39 = vsel %vm1867_vm8, 1, %v13100_v0 }
 0x1dc   : > { %vm9954_vm3 = vcmp.eq.s32.totalorder %v1745_v28, 1  ;;  %vm9958_vm11 = vcmp.eq.s32.totalorder %v1777_v32, 1  ;;  %v13272_v56 = vmov 0  ;;  %vm1658_vm10 = vcmp.ne.s32.totalorder %v9866_v29, 0 }
 0x1dd   : > { %3890 = vperm.xlu1 %8554, %v3839_v10   ;;  %v1686_v10 = vsel %vm1654_vm6, 1, %v13100_v0  ;;  %v13273_v56 = vsel %vm9958_vm11, 4294967295, %v13272_v56  ;;  %v13274_v34 = vmov 0  ;;  %vm1656_vm15 = vcmp.ne.s32.totalorder %v1582_v22, 0 }
 0x1de   : > { %v1781_v15 = vrot.slane %v1686_v10, %v9725_v27  ;;  %vm1657_vm1 = vcmp.ne.s32.totalorder %v1584_v42, 0  ;;  %vm1659_vm13 = vcmp.ne.s32.totalorder %v9896_v52, 0  ;;  %vm9976_vm7 = vcmp.eq.s32.totalorder %v1753_v31, 1 }
 0x1df   : > { %v1688_v29 = vsel %vm1656_vm15, 1, %v13100_v0  ;;  %v1689_v3 = vsel %vm1657_vm1, 1, %v13100_v0  ;;  %v1690_v28 = vsel %vm1658_vm10, 1, %v13100_v0  ;;  %vm1660_vm15 = vcmp.ne.s32.totalorder %v1630_v19, 0 }
 0x1e0   : > { %vm9942_vm6 = vcmp.eq.s32.totalorder %v1781_v15, 1  ;;  %v1789_v10 = vrot.slane %v1688_v29, %v9725_v27  ;;  %v1793_v14 = vrot.slane %v1689_v3, %v9725_v27  ;;  %v1797_v40 = vrot.slane %v1690_v28, %v9725_v27 }
 0x1e1   : > { %3893 = vperm.xlu1 %8554, %v3840_v35   ;;  %v13269_v33 = vsel %vm9942_vm6, 4294967295, %v13268_v33  ;;  %v1687_v35 = vsel %vm1655_vm14, 1, %v13100_v0  ;;  %vm9991_vm6 = vcmp.eq.s32.totalorder %v1757_v36, 1  ;;  %v1691_v15 = vsel %vm1659_vm13, 1, %v13100_v0 }
 0x1e2   : > { %v1785_v46 = vrot.slane %v1687_v35, %v9725_v27  ;;  %vm1662_vm10 = vcmp.ne.s32.totalorder %v9819_v43, 0  ;;  %vm10010_vm8 = vcmp.eq.s32.totalorder %v1789_v10, 1  ;;  %v13280_v30 = vmov 0 }
 0x1e3   : > { %v13281_v30 = vsel %vm10010_vm8, 4294967295, %v13280_v30  ;;  %v13283_v31 = vmov 0  ;;  %vm10018_vm13 = vcmp.eq.s32.totalorder %v1797_v40, 1  ;;  %v13286_v19 = vmov 0 }
 0x1e4   : > { %vm9971_vm9 = vcmp.eq.s32.totalorder %v1785_v46, 1  ;;  %13282 = vst [vmem:[#allocation37_spill] sm:$0xff] %v13281_v30  ;;  %v13287_v19 = vsel %vm10018_vm13, 4294967295, %v13286_v19  ;;  %v1801_v43 = vrot.slane %v1691_v15, %v9725_v27  ;;  %v1694_v32 = vsel %vm1662_vm10, 1, %v13100_v0 }
 0x1e5   : > { %3899 = vperm.xlu1 %8554, %v3842_v54   ;;  %v13275_v34 = vsel %vm9971_vm9, 4294967295, %v13274_v34  ;;  %vm10014_vm9 = vcmp.eq.s32.totalorder %v1793_v14, 1  ;;  %13288 = vst [vmem:[#allocation39_spill] sm:$0xff] %v13287_v19  ;;  %v1629_v35 = vrot.slane %v1601_v47, %v9673_v61  ;;  %v1535_v46 = vcombine.high %v9880_v7, %v9880_v7 }
 0x1e6   : > { %v13284_v31 = vsel %vm10014_vm9, 4294967295, %v13283_v31  ;;  %vm10041_vm8 = vcmp.eq.s32.totalorder %v1801_v43, 1  ;;  %v13289_v22 = vmov 0  ;;  %vm10054_vm11 = vcmp.ne.s32.totalorder %v1486_v8, 0 }
 0x1e7   : > { %13285 = vst [vmem:[#allocation38_spill] sm:$0xff] %v13284_v31  ;;  %v13290_v22 = vsel %vm10041_vm8, 4294967295, %v13289_v22  ;;  %v13297_v8 = vmov 0  ;;  %v1813_v29 = vrot.slane %v1694_v32, %v9725_v27  ;;  %vm1663_vm1 = vcmp.ne.s32.totalorder %v1629_v35, 0 }
 0x1e8   : > { %13291 = vst [vmem:[#allocation40_spill] sm:$0xff] %v13290_v22  ;;  %v1633_v3 = vcombine.high %v1629_v35, %v1629_v35  ;;  %v13300_v28 = vmov 0  ;;  %v1695_v10 = vsel %vm1663_vm1, 1, %v13100_v0  ;;  %v7865_v15 = vpack.c.bf16 %v9576_v26, %v9569_v24 }
 0x1e9   : > { %3872 = vperm.xlu1 %8554, %v3833_v25   ;;  %v1632_v25 = vcombine.high %v9896_v52, %v9896_v52  ;;  %v1692_v52 = vsel %vm1660_vm15, 1, %v13100_v0  ;;  %vm13292_vm15 = vmor %vm9915_vm2, %vm9662_vm0  ;;  %v1817_v24 = vrot.slane %v1695_v10, %v9725_v27  ;;  %v13313_v7 = vmov 0 }
 0x1ea   : > { %v1805_v42 = vrot.slane %v1692_v52, %v9725_v27  ;;  %v3836_v37 = vsel %vm13292_vm15, 1, %v13100_v0  ;;  %vm1665_vm13 = vcmp.ne.s32.totalorder %v1633_v3, 0  ;;  %v13306_v52 = vmov 0 }
 0x1eb   : > { %vm1661_vm14 = vcmp.ne.s32.totalorder %v1632_v25, 0  ;;  %v1673_v25 = vsel %vm10054_vm11, 1, %v13100_v0  ;;  %v1697_v26 = vsel %vm1665_vm13, 1, %v13100_v0  ;;  %v4190_v6 = vmax.f32 %v1895_v58, 0.0 }
 0x1ec   : > { %vm10073_vm15 = vcmp.eq.s32.totalorder %v1805_v42, 1  ;;  %v1825_v32 = vrot.slane %v1697_v26, %v9725_v27  ;;  %v1729_v35 = vrot.slane %v1673_v25, %v9725_v27 }
 0x1ed   : > { %3878 = vperm.xlu1 %8554, %v3835_v39   ;;  %v1693_v39 = vsel %vm1661_vm14, 1, %v13100_v0  ;;  %v13298_v8 = vsel %vm10073_vm15, 4294967295, %v13297_v8  ;;  %vm10120_vm15 = vcmp.eq.s32.totalorder %v1813_v29, 1  ;;  %v4195_v3 = vrot.slane %v4190_v6, %v9725_v27 }
 0x1ee   : > { %v1809_v47 = vrot.slane %v1693_v39, %v9725_v27  ;;  %13299 = vst [vmem:[#allocation41_spill] sm:$0xff] %v13298_v8  ;;  %v13307_v52 = vsel %vm10120_vm15, 4294967295, %v13306_v52  ;;  %vm1890_vm9 = vmor %vm10120_vm15, %vm9719_vm5 }
 0x1ef   : > { %13308 = vst [vmem:[#allocation43_spill] sm:$0xff] %v13307_v52 }
 0x1f0   : > { %vm10082_vm2 = vcmp.eq.s32.totalorder %v1809_v47, 1 }
 0x1f1   : > { %3881 = vperm.xlu1 %8554, %v3836_v37   ;;  %v13301_v28 = vsel %vm10082_vm2, 4294967295, %v13300_v28  ;;  %v13310_v37 = vmov 0 }
 0x1f2   : > { %v10033_v36 = vpop.xlane.xlu0 %4034  ;;  %13302 = vst [vmem:[#allocation42_spill] sm:$0xff] %v13301_v28 }
 0x1f3   : > { %vm13092_vm10 = vcmp.gt.f32.partialorder %v10033_v36, 0.0 }
 0x1f4   : > { %vm10069_vm14 = vmneg %vm13092_vm10 }
 0x1f5   : > { %vm13303_vm10 = vmor %vm9954_vm3, %vm9689_vm12  ;;  %vm1649_vm3 = vcmp.ne.s32.totalorder %v1535_v46, 0 }
 0x1f6   : > { %v3841_v14 = vsel %vm13303_vm10, 1, %v13100_v0  ;;  %v10093_v40 = vpop.xlane.xlu0 %4038  ;;  %v1681_v42 = vsel %vm1649_vm3, 1, %v13100_v0 }
 0x1f7   : > { %vm13095_vm8 = vcmp.gt.f32.partialorder %v10093_v40, 0.0  ;;  %v10105_v54 = vpop.xlane.xlu1 %4036  ;;  %3896 = vperm.xlu1 %8554, %v3841_v14  }
 0x1f8   : > { %vm10115_vm11 = vmneg %vm13095_vm8  ;;  %vm13097_vm1 = vcmp.gt.f32.partialorder %v10105_v54, 0.0 }
 0x1f9   : > { %vm7862_vm10 = vmneg %vm13097_vm1  ;;  %vm1651_vm1 = vcmp.ne.s32.totalorder %v9863_v9, 0  ;;  %v1761_v9 = vrot.slane %v1681_v42, %v9725_v27 }
 0x1fa   : > { %v10128_v46 = vpop.xlane.xlu0 %4040  ;;  %vm7864_vm13 = vmpackc.low %vm7862_vm10, %vm10069_vm14  ;;  %vm10145_vm14 = vcmp.eq.s32.totalorder %v1817_v24, 1  ;;  %vm1833_vm10 = vcmp.eq.s32.totalorder %v1729_v35, 1  ;;  %v1683_v47 = vsel %vm1651_vm1, 1, %v13100_v0 }
 0x1fb   : > { %vm13309_vm8 = vmor %vm9976_vm7, %vm9689_vm12  ;;  %vm4045_vm2 = vcmp.gt.f32.partialorder %v10128_v46, 0.0  ;;  %8122 = vmatprep.mubr.msk.bf16.mxu0 %vm7864_vm13, %v7865_v15  ;;  %v13311_v37 = vsel %vm10145_vm14, 4294967295, %v13310_v37  ;;  %vm10154_vm7 = vcmp.eq.s32.totalorder %v1825_v32, 1  ;;  %v1769_v17 = vrot.slane %v1683_v47, %v9725_v27  ;;  %v8633_v46 = vld [vmem:[#allocation13] sm:$0xff]  }
 0x1fc   : > { %v3843_v39 = vsel %vm13309_vm8, 1, %v13100_v0  ;;  %13312 = vst [vmem:[#allocation44_spill] sm:$0xff] %v13311_v37  ;;  %vm7867_vm3 = vmneg %vm4045_vm2  ;;  %v13314_v7 = vsel %vm10154_vm7, 4294967295, %v13313_v7 }
 0x1fd   : > { %3902 = vperm.xlu1 %8554, %v3843_v39   ;;  %13315 = vst [vmem:[#allocation45_spill] sm:$0xff] %v13314_v7  ;;  %vm7869_vm8 = vmpackc.low %vm7867_vm3, %vm10115_vm11 }
 0x1fe   : > { %8123 = vmatmul.mubr.msk.bf16.vlgmr.msra.gmra.mrb[0].mxu0 %vm7869_vm8, %v7870_v23  ;;  %vm13316_vm11 = vmor %vm9991_vm6, %vm9689_vm12  ;;  %vm1841_vm8 = vcmp.eq.s32.totalorder %v1761_v9, 1 }
 0x1ff   : > { %v3844_v60 = vsel %vm13316_vm11, 1, %v13100_v0  ;;  %8139 = vmatpush3.bf16.msra.mxu0 %v9657_v57  ;;  %vm1869_vm1 = vmor %vm1833_vm10, %vm9662_vm0  ;;  %vm1843_vm11 = vcmp.eq.s32.totalorder %v1769_v17, 1  ;;  %vm4320_vm10 = vcmask 261120  }
 0x200   : > { %8140 = vmatprep.subr.bf16.mxu0 %v8622_v62  ;;  %v3837_v20 = vsel %vm1869_vm1, 1, %v13100_v0  ;;  %vm1877_vm6 = vmor %vm1841_vm8, %vm9689_vm12 }
 0x201   : > { %3905 = vperm.xlu1 %8554, %v3844_v60   ;;  %v3845_v23 = vsel %vm1877_vm6, 1, %v13100_v0  ;;  %vm1879_vm3 = vmor %vm1843_vm11, %vm9679_vm4 }
 0x202   : > { %v3847_v57 = vsel %vm1879_vm3, 1, %v13100_v0  ;;  %vm13464_vm15 = vmor %vm10145_vm14, %vm9719_vm5 }
 0x203   : > { %8141 = vmatpush3.bf16.msra.mxu0 %v8622_v62 }
 0x204   : > { %8154 = vmatprep.subr.bf16.mxu0 %v8633_v46 }
 0x205   : > { %3884 = vperm.xlu1 %8554, %v3837_v20  }
 0x209   : > { %3908 = vperm.xlu1 %8554, %v3845_v23  }
 0x20d   : > { %3914 = vperm.xlu1 %8554, %v3847_v57  }
 0x22f   : > { %v940_v29 = vpop.permute.xlu0 %939 }
 0x230   : > { %vm950_vm0 = vcmp.eq.s32.totalorder %v940_v29, 1 }
 0x231   : > { %v10192_v10 = vsel %vm950_vm0, 0.0, %v9491_v2  ;;  %v4197_v26 = vsel %vm950_vm0, -10.0, %v4195_v3  ;;  %v2943_v2 = vld [vmem:[#allocation10] sm:$0x1] }
 0x232   : > { %v1907_v5 = vrot.slane %v10192_v10, %v9673_v61  ;;  %v1900_v47 = vcombine.high %v10192_v10, %v10192_v10  ;;  %v4201_v17 = vmax.f32 %v2943_v2, 0.0 }
 0x233   : > { %v10196_v15 = vpop.permute.xlu0 %948 }
 0x234   : > { %v943_v14 = vpop.permute.xlu1 %942  ;;  %v1923_v25 = vrot.slane %v1907_v5, %v9673_v61  ;;  %v1915_v24 = vcombine.high %v1907_v5, %v1907_v5  ;;  %vm953_vm3 = vcmp.eq.s32.totalorder %v10196_v15, 1  ;;  %v4206_v2 = vrot.slane %v4201_v17, %v9725_v27 }
 0x235   : > { %vm951_vm12 = vcmp.eq.s32.totalorder %v943_v14, 1 }
 0x236   : > { %v10200_v43 = vsel %vm951_vm12, 0.0, %v9503_v4  ;;  %v4198_v32 = vsel %vm951_vm12, -10.0, %v4195_v3  ;;  %v2099_v42 = vrot.slane %v1923_v25, %v9725_v27  ;;  %v1937_v62 = vrot.slane %v1915_v24, %v9673_v61 }
 0x237   : > { %v4212_v35 = vpack.c.bf16 %v4198_v32, %v4197_v26  ;;  %v1956_v9 = vrot.slane %v10200_v43, %v9673_v61  ;;  %v4200_v4 = vsel %vm953_vm3, -10.0, %v4195_v3  ;;  %v1949_v17 = vcombine.high %v10200_v43, %v10200_v43 }
 0x238   : > { %v946_v39 = vpop.permute.xlu1 %945  ;;  %v10213_v60 = vsub.f32 %v10192_v10, %v2099_v42  ;;  %v2103_v57 = vrot.slane %v1937_v62, %v9725_v27 }
 0x239   : > { %vm952_vm1 = vcmp.eq.s32.totalorder %v946_v39, 1  ;;  %8142 = vmatprep.mubr.msk.bf16.mxu0 %vm4320_vm10, %v4212_v35  ;;  %v1972_v58 = vrot.slane %v1956_v9, %v9673_v61  ;;  %v1964_v29 = vcombine.high %v1956_v9, %v1956_v9  ;;  %v1945_v35 = vcombine.high %v1923_v25, %v1923_v25 }
 0x23a   : > { %13317 = vst [vmem:[#allocation46_spill] sm:$0xff] %v10213_v60  ;;  %v10216_v20 = vsel %vm952_vm1, 0.0, %v9488_v1  ;;  %v4199_v23 = vsel %vm952_vm1, -10.0, %v4195_v3  ;;  %2290 = vperm.xlu1 %8554, %v10213_v60   ;;  %v10226_v24 = vsub.f32 %v10192_v10, %v2103_v57  ;;  %v1914_v3 = vrot.slane %v1900_v47, %v9673_v61 }
 0x23b   : > { %v4213_v6 = vpack.c.bf16 %v4200_v4, %v4199_v23  ;;  %v2005_v5 = vrot.slane %v10216_v20, %v9673_v61  ;;  %v2131_v1 = vrot.slane %v1972_v58, %v9725_v27  ;;  %v1986_v26 = vrot.slane %v1964_v29, %v9673_v61  ;;  %v970_v4 = vpop.permute.xlu0 %969 }
 0x23c   : > { %v10223_v14 = vpop.permute.xlu1 %963  ;;  %13318 = vst [vmem:[#allocation47_spill] sm:$0xff] %v10226_v24  ;;  %2295 = vperm.xlu0 %8553, %v10226_v24   ;;  %v1947_v57 = vcombine.high %v1937_v62, %v1937_v62  ;;  %v10262_v48 = vrot.slane %v1914_v3, %v9673_v61  ;;  %vm976_vm11 = vcmp.eq.s32.totalorder %v970_v4, 1  ;;  %v1994_v45 = vcombine.high %v1972_v58, %v1972_v58 }
 0x23d   : > { %8143 = vmatmul.mubr.msk.bf16.vlgmr.msra.gmra.mrb[4].mxu0 %vm4320_vm10, %v4213_v6  ;;  %v10233_v32 = vrot.slane %v2005_v5, %v9673_v61  ;;  %vm974_vm8 = vcmp.eq.s32.totalorder %v10223_v14, 1  ;;  %v10239_v42 = vsub.f32 %v10200_v43, %v2131_v1  ;;  %v2135_v39 = vrot.slane %v1986_v26, %v9725_v27 }
 0x23e   : > { %v2013_v47 = vcombine.high %v2005_v5, %v2005_v5  ;;  %v1916_v6 = vcombine.high %v1914_v3, %v1914_v3  ;;  %v10256_v5 = vsel %vm974_vm8, -10.0, %v4206_v2  ;;  %v2111_v53 = vrot.slane %v1947_v57, %v9725_v27  ;;  %8155 = vmatpush3.bf16.msra.mxu0 %v8633_v46  ;;  %v13423_v46 = vld [vmem:[#allocation38_spill] sm:$0xff] }
 0x23f   : > { %13319 = vst [vmem:[#allocation48_spill] sm:$0xff] %v10239_v42  ;;  %v2163_v9 = vrot.slane %v10233_v32, %v9725_v27  ;;  %2330 = vperm.xlu1 %8554, %v10239_v42   ;;  %v10248_v25 = vsub.f32 %v10200_v43, %v2135_v39  ;;  %v1963_v39 = vrot.slane %v1949_v17, %v9673_v61  ;;  %v10341_v4 = vsel %vm974_vm8, 0.0, %v9516_v11 }
 0x240   : > { %v967_v23 = vpop.permute.xlu1 %966  ;;  %v2035_v1 = vrot.slane %v2013_v47, %v9673_v61  ;;  %v2107_v47 = vrot.slane %v1945_v35, %v9725_v27  ;;  %v10278_v59 = vrot.slane %v1916_v6, %v9673_v61  ;;  %v2115_v6 = vrot.slane %v10262_v48, %v9725_v27 }
 0x241   : > { %vm975_vm6 = vcmp.eq.s32.totalorder %v967_v23, 1  ;;  %13320 = vst [vmem:[#allocation49_spill] sm:$0xff] %v10248_v25  ;;  %v10251_v29 = vsub.f32 %v10216_v20, %v2163_v9  ;;  %2335 = vperm.xlu0 %8553, %v10248_v25   ;;  %v10282_v25 = vsel %vm976_vm11, -10.0, %v4206_v2  ;;  %v1996_v17 = vcombine.high %v1986_v26, %v1986_v26 }
 0x242   : > { %v10259_v62 = vsel %vm975_vm6, -10.0, %v4206_v2  ;;  %v2167_v9 = vrot.slane %v2035_v1, %v9725_v27  ;;  %13323 = vst [vmem:[#allocation52_spill] sm:$0xff] %v10282_v25  ;;  %v10298_v55 = vsub.f32 %v10192_v10, %v2111_v53  ;;  %v1965_v7 = vcombine.high %v1963_v39, %v1963_v39 }
 0x243   : > { %13321 = vst [vmem:[#allocation50_spill] sm:$0xff] %v10251_v29  ;;  %2370 = vperm.xlu1 %8554, %v10251_v29   ;;  %v10304_v57 = vsel %vm975_vm6, 0.0, %v9519_v12  ;;  %v2139_v58 = vrot.slane %v1994_v45, %v9725_v27  ;;  %v1979_v26 = vrot.slane %v1963_v39, %v9673_v61  ;;  %v2143_v53 = vrot.slane %v1996_v17, %v9725_v27 }
 0x244   : > { %v10269_v0 = vpop.permute.xlu1 %972  ;;  %v10275_v3 = vsub.f32 %v10216_v20, %v2167_v9  ;;  %v10292_v9 = vsub.f32 %v10192_v10, %v2107_v47  ;;  %13326 = vst [vmem:[#allocation55_spill] sm:$0xff] %v10298_v55  ;;  %v10308_v47 = vsub.f32 %v10192_v10, %v2115_v6  ;;  %v10318_v23 = vrot.slane %v1965_v7, %v9673_v61  ;;  %v8623_v7 = vld [vmem:[%s13043_s10] sm:$0xff]  }
 0x245   : > { %vm977_vm0 = vcmp.eq.s32.totalorder %v10269_v0, 1  ;;  %v10322_v12 = vrot.slane %v10304_v57, %v9673_v61  ;;  %v10326_v6 = vsel %vm976_vm11, 0.0, %v9522_v13  ;;  %v10330_v45 = vsub.f32 %v10200_v43, %v2139_v58  ;;  %8126 = vmatprep.subr.bf16.mxu1 %v8623_v7 }
 0x246   : > { %13322 = vst [vmem:[#allocation51_spill] sm:$0xff] %v10275_v3  ;;  %v10286_v35 = vsel %vm977_vm0, -10.0, %v4206_v2  ;;  %2375 = vperm.xlu0 %8553, %v10275_v3   ;;  %13325 = vst [vmem:[#allocation54_spill] sm:$0xff] %v10292_v9  ;;  %v2119_v2 = vrot.slane %v10278_v59, %v9725_v27  ;;  %v2147_v39 = vrot.slane %v1979_v26, %v9725_v27  ;;  %8127 = vmatpush3.bf16.msra.mxu1 %v8623_v7 }
 0x247   : > { %13324 = vst [vmem:[#allocation53_spill] sm:$0xff] %v10286_v35  ;;  %2300 = vperm.xlu1 %8554, %v10292_v9   ;;  %13327 = vst [vmem:[#allocation56_spill] sm:$0xff] %v10308_v47  ;;  %v2043_v17 = vcombine.high %v10233_v32, %v10233_v32  ;;  %v10344_v13 = vsub.f32 %v10200_v43, %v2143_v53  ;;  %v2151_v58 = vrot.slane %v10318_v23, %v9725_v27 }
 0x248   : > { %v10315_v3 = vsub.f32 %v10192_v10, %v2119_v2  ;;  %13329 = vst [vmem:[#allocation58_spill] sm:$0xff] %v10330_v45  ;;  %v2045_v2 = vcombine.high %v2035_v1, %v2035_v1  ;;  %v10351_v32 = vrot.slane %v10322_v12, %v9673_v61  ;;  %v10359_v11 = vsub.f32 %v10200_v43, %v2147_v39 }
 0x249   : > { %13330 = vst [vmem:[#allocation59_spill] sm:$0xff] %v10344_v13  ;;  %v2171_v14 = vrot.slane %v2043_v17, %v9725_v27  ;;  %v1946_v1 = vcombine.high %v10262_v48, %v10262_v48  ;;  %v2955_v53 = vrot.slane %v10341_v4, %v9673_v61  ;;  %v10372_v7 = vsub.f32 %v10200_v43, %v2151_v58  ;;  %v10380_v17 = vpop.permute.xlu1 %3887 }
 0x24a   : > { %2305 = vperm.xlu0 %8553, %v10298_v55   ;;  %13328 = vst [vmem:[#allocation57_spill] sm:$0xff] %v10315_v3  ;;  %13331 = vst [vmem:[#allocation60_spill] sm:$0xff] %v10359_v11  ;;  %v2175_v9 = vrot.slane %v2045_v2, %v9725_v27  ;;  %v3179_v39 = vrot.slane %v10351_v32, %v9725_v27  ;;  %v1995_v58 = vcombine.high %v1979_v26, %v1979_v26  ;;  %v13345_v55 = vmov 0  }
 0x24b   : > { %2310 = vperm.xlu1 %8554, %v10308_v47   ;;  %13332 = vst [vmem:[#allocation61_spill] sm:$0xff] %v10372_v7  ;;  %13333 = vst [vmem:[#allocation62_spill] sm:$0xff] %v10380_v17  ;;  %v10384_v2 = vsub.f32 %v10216_v20, %v2171_v14  ;;  %v2123_v24 = vrot.slane %v1946_v1, %v9725_v27  ;;  %v10388_v50 = vrot.slane %v2955_v53, %v9673_v61  ;;  %v8625_v14 = vld [vmem:[%s13043_s10 + $0x10] sm:$0xff]  }
 0x24c   : > { %v10392_v29 = vsub.f32 %v10216_v20, %v2175_v9  ;;  %v3312_v37 = vsub.f32 %v10304_v57, %v3179_v39  ;;  %v2155_v1 = vrot.slane %v1995_v58, %v9725_v27  ;;  %v8626_v39 = vld [vmem:[%s13043_s10 + $0x18] sm:$0xff]   ;;  %v2963_v58 = vcombine.high %v2955_v53, %v2955_v53 }
 0x24d   : > { %13334 = vst [vmem:[#allocation63_spill] sm:$0xff] %v10384_v2  ;;  %v10402_v26 = vsub.f32 %v10192_v10, %v2123_v24  ;;  %v3147_v9 = vrot.slane %v10388_v50, %v9725_v27  ;;  %v1997_v53 = vcombine.high %v10318_v23, %v10318_v23  ;;  %v2948_v23 = vcombine.high %v10341_v4, %v10341_v4 }
 0x24e   : > { %2315 = vperm.xlu0 %8553, %v10315_v3   ;;  %v10355_v3 = vrot.slane %v10326_v6, %v9673_v61  ;;  %13335 = vst [vmem:[#allocation64_spill] sm:$0xff] %v10392_v29  ;;  %v3344_v24 = vmul.f32 4.0, %v3312_v37  ;;  %v2993_v0 = vcombine.high %v10388_v50, %v10388_v50  ;;  %vm13366_vm6 = vnez %v13261_v38 }
 0x24f   : > { %2340 = vperm.xlu1 %8554, %v10330_v45   ;;  %v8624_v45 = vld [vmem:[%s13043_s10 + $0x8] sm:$0xff]   ;;  %13336 = vst [vmem:[#allocation65_spill] sm:$0xff] %v10402_v26  ;;  %v3304_v52 = vsub.f32 %v10341_v4, %v3147_v9  ;;  %vm13367_vm11 = vmor %vm13366_vm6, %vm9719_vm5 }
 0x250   : > { %v10378_v48 = vrot.slane %v10355_v3, %v9673_v61  ;;  %8128 = vmatprep.subr.bf16.mxu1 %v8624_v45 }
 0x251   : > { %8129 = vmatpush3.bf16.msra.mxu1 %v8624_v45  ;;  %v3336_v9 = vmul.f32 4.0, %v3304_v52 }
 0x252   : > { %2345 = vperm.xlu0 %8553, %v10344_v13   ;;  %v3211_v45 = vrot.slane %v10378_v48, %v9725_v27  ;;  %8130 = vmatprep.subr.bf16.mxu1 %v8625_v14 }
 0x253   : > { %2350 = vperm.xlu1 %8554, %v10359_v11  }
 0x254   : > { %v3320_v17 = vsub.f32 %v10326_v6, %v3211_v45  ;;  %v10430_v45 = vrot.slane %v2963_v58, %v9673_v61  ;;  %v2159_v58 = vrot.slane %v1997_v53, %v9725_v27  ;;  %v13127_v53 = vmov 1  }
 0x255   : > { %8131 = vmatpush3.bf16.msra.mxu1 %v8625_v14  ;;  %v2997_v14 = vcombine.high %v10304_v57, %v10304_v57 }
 0x256   : > { %2355 = vperm.xlu0 %8553, %v10372_v7   ;;  %v1948_v7 = vcombine.high %v10278_v59, %v10278_v59  ;;  %8132 = vmatprep.subr.bf16.mxu1 %v8626_v39  ;;  %v3352_v37 = vmul.f32 4.0, %v3320_v17  ;;  %v3042_v17 = vcombine.high %v10351_v32, %v10351_v32  ;;  %v10457_v32 = vsel %vm977_vm0, 0.0, %v9533_v16 }
 0x257   : > { %2380 = vperm.xlu1 %8554, %v10384_v2   ;;  %v10410_v2 = vpop.permute.xlu1 %3911  ;;  %v10450_v52 = vrot.slane %v2997_v14, %v9673_v61  ;;  %v10465_v14 = vsub.f32 %v10200_v43, %v2159_v58  ;;  %v3155_v58 = vrot.slane %v2993_v0, %v9725_v27 }
 0x258   : > { %13337 = vst [vmem:[#allocation66_spill] sm:$0xff] %v10410_v2  ;;  %v10423_v2 = vld [vmem:[%s13044_s11] sm:$0xff]   ;;  %v2127_v59 = vrot.slane %v1948_v7, %v9725_v27  ;;  %v3046_v7 = vcombine.high %v10326_v6, %v10326_v6 }
 0x259   : > { %8133 = vmatpush3.bf16.msra.mxu1 %v8626_v39  ;;  %13342 = vst [vmem:[#allocation71_spill] sm:$0xff] %v10465_v14  ;;  %v10472_v16 = vrot.slane %v10450_v52, %v9673_v61 }
 0x25a   : > { %2385 = vperm.xlu0 %8553, %v10392_v29   ;;  %v10417_v29 = vsub.f32 %v10200_v43, %v2155_v1  ;;  %8146 = vmatprep.subr.bf16.mxu1 %v10423_v2  ;;  %v10444_v39 = vsub.f32 %v10192_v10, %v2127_v59  ;;  %v3187_v10 = vrot.slane %v3042_v17, %v9725_v27 }
 0x25b   : > { %2320 = vperm.xlu1 %8554, %v10402_v26   ;;  %v10435_v1 = vpop.permute.xlu1 %3866  ;;  %v2962_v59 = vrot.slane %v2948_v23, %v9673_v61  ;;  %v3095_v23 = vcombine.high %v10457_v32, %v10457_v32  ;;  %v3091_v43 = vcombine.high %v10378_v48, %v10378_v48  ;;  %v3043_v35 = vcombine.high %v10472_v16, %v10472_v16 }
 0x25c   : > { %13338 = vst [vmem:[#allocation67_spill] sm:$0xff] %v10417_v29  ;;  %13339 = vst [vmem:[#allocation68_spill] sm:$0xff] %v10435_v1  ;;  %v3060_v1 = vrot.slane %v3046_v7, %v9673_v61  ;;  %v3314_v50 = vsub.f32 %v10304_v57, %v3187_v10 }
 0x25d   : > { %13340 = vst [vmem:[#allocation69_spill] sm:$0xff] %v10444_v39  ;;  %v2964_v48 = vcombine.high %v2962_v59, %v2962_v59  ;;  %v10501_v10 = vrot.slane %v3095_v23, %v9673_v61 }
 0x25e   : > { %3410 = vperm.xlu0 %8553, %v3344_v24   ;;  %v3062_v17 = vcombine.high %v3060_v1, %v3060_v1 }
 0x25f   : > { %2360 = vperm.xlu1 %8554, %v10417_v29   ;;  %v3151_v29 = vrot.slane %v10430_v45, %v9725_v27  ;;  %v10459_v26 = vpop.permute.xlu1 %3869 }
 0x260   : > { %13341 = vst [vmem:[#allocation70_spill] sm:$0xff] %v10459_v26  ;;  %v8725_v26 = vld [vmem:[%s9481_s30 + $0x18] sm:$0xff]  ;;  %v3090_v0 = vrot.slane %v3062_v17, %v9673_v61  ;;  %v3012_v17 = vcombine.high %v10322_v12, %v10322_v12  ;;  %s7846_s30 = sshll.u32 %s851_s16, 5 }
 0x261   : > { %v3305_v7 = vsub.f32 %v10341_v4, %v3151_v29  ;;  %s853_s6 = scalar_lea.vmem [#allocation17], %s7846_s30  ;;  %s9083_s30 = smov [#allocation17]  }
 0x262   : > { %3450 = vperm.xlu0 %8553, %v3352_v37   ;;  %v3231_v42 = vrot.slane %v3090_v0, %v9725_v27  ;;  %s7650_s1 = sshll.u32 %s853_s6, 4  ;;  %s8987_s12 = sshll.u32 %s9083_s30, 4  ;;  %s12985_s1 = int_to_ptr.vmem [resolvable:$true] %s7650_s1  ;;  %s8988_s12 = int_to_ptr.vmem [resolvable:$false] %s8987_s12 }
 0x263   : > { %3370 = vperm.xlu1 %8554, %v3336_v9   ;;  %v10482_v29 = vmul.f32 4.0, %v3305_v7  ;;  %v10493_v11 = vpop.permute.xlu1 %3875  ;;  %v10498_v7 = vrot.slane %v10457_v32, %v9673_v61  ;;  %s8983_s4 = scalar_lea.vmem %s12985_s1, 512  ;;  %s8989_s28 = scalar_lea.vmem %s8988_s12, 1024 }
 0x264   : > { %13343 = vst [vmem:[#allocation72_spill] sm:$0xff] %v10493_v11  ;;  %v10508_v11 = vrot.slane %v3060_v1, %v9673_v61  ;;  %v10532_v12 = vsub.f32 %v10326_v6, %v3231_v42  ;;  %v10549_v42 = vrot.slane %v3012_v17, %v9673_v61  ;;  %p8984_p8 = scmp.ne.s32.totalorder %s12985_s1, %s8983_s4  ;;  %p8990_p0 = scmp.lt.s32.totalorder %s12985_s1, %s8988_s12 }
 0x265   : > { %p8991_p6 = scmp.lt.s32.totalorder %s8989_s28, %s8983_s4 }
 0x266   : > { %2325 = vperm.xlu0 %8553, %v10444_v39   ;;  %v3227_v28 = vrot.slane %v10508_v11, %v9725_v27  ;;  %p8985_p13 = pnand %p8984_p8, %p13716_p11 }
 0x267   : > { %8555 = vset.pattern.permute.xlu1 %v13127_v53  ;;  %v10478_v53 = vrot.slane %v2962_v59, %v9673_v61  ;;  %v3306_v59 = vsub.f32 %v10341_v4, %v3155_v58  ;;  %v3110_v58 = vcombine.high %v10498_v7, %v10498_v7  ;;  %p8992_p5 = por %p8991_p6, %p8990_p0 }
 0x268   : > { %3565 = vperm.xlu1 %8555, %v3336_v9   ;;  %v3195_v9 = vrot.slane %v10472_v16, %v9725_v27  ;;  %p8986_p1 = pneg %p8985_p13 }
 0x269   : > { %v3163_v15 = vrot.slane %v10478_v53, %v9725_v27  ;;  %v10543_v47 = vmul.f32 4.0, %v3306_v59  ;;  %v3132_v59 = vrot.slane %v3110_v58, %v9673_v61 }
 0x26a   : > { %2365 = vperm.xlu0 %8553, %v10465_v14   ;;  %v10491_v14 = vsel %vm953_vm3, 0.0, %v8725_v26  ;;  %v3219_v26 = vrot.slane %v3091_v43, %v9725_v27  ;;  %v3316_v13 = vsub.f32 %v10304_v57, %v3195_v9  ;;  %v3094_v43 = vcombine.high %v3090_v0, %v3090_v0  ;;  %v10534_v9 = vpop.permute.xlu1 %3890  ;;  %p8993_p9 = pnand %p8992_p5, %p8986_p1 }
 0x26b   : > { %v10519_v23 = vrot.slane %v10491_v14, %v9673_v61  ;;  %v2047_v1 = vcombine.high %v10491_v14, %v10491_v14  ;;  %13344 = vst [vmem:[#allocation73_spill] sm:$0xff] %v10534_v9  ;;  %v3308_v39 = vsub.f32 %v10341_v4, %v3163_v15  ;;  %v3247_v9 = vrot.slane %v3132_v59, %v9725_v27 }
 0x26c   : > { %3597 = vperm.xlu1 %8555, %v3344_v24   ;;  %v10510_v24 = vmul.f32 4.0, %v3314_v50  ;;  %v10525_v50 = vrot.slane %v2964_v48, %v9673_v61  ;;  %v3322_v0 = vsub.f32 %v10326_v6, %v3219_v26  ;;  %v10541_v48 = vrot.slane %v3094_v43, %v9725_v27 }
 0x26d   : > { %v10545_v8 = vmul.f32 4.0, %v3316_v13  ;;  %v2062_v15 = vcombine.high %v10519_v23, %v10519_v23  ;;  %v10554_v26 = vrot.slane %v2047_v1, %v9673_v61  ;;  %v2994_v13 = vcombine.high %v10478_v53, %v10478_v53 }
 0x26e   : > { %3375 = vperm.xlu0 %8553, %v10482_v29   ;;  %v3340_v43 = vmul.f32 4.0, %v3308_v39  ;;  %v10564_v60 = vmul.f32 4.0, %v3322_v0  ;;  %v3324_v1 = vsub.f32 %v10326_v6, %v3227_v28  ;;  %v3167_v22 = vrot.slane %v10525_v50, %v9725_v27  ;;  %v10571_v25 = vpop.permute.xlu1 %3893 }
 0x26f   : > { %v3142_v19 = vcombine.high %v3132_v59, %v3132_v59  ;;  %13346 = vst [vmem:[#allocation74_spill] sm:$0xff] %v10571_v25  ;;  %v3183_v53 = vrot.slane %v10549_v42, %v9725_v27  ;;  %v2063_v39 = vcombine.high %v10554_v26, %v10554_v26  ;;  %v2084_v58 = vrot.slane %v2062_v15, %v9673_v61 }
 0x270   : > { %3629 = vperm.xlu1 %8555, %v3352_v37   ;;  %v3111_v37 = vcombine.high %v10501_v10, %v10501_v10  ;;  %v10580_v28 = vsub.f32 %v10457_v32, %v3247_v9  ;;  %v3309_v59 = vsub.f32 %v10341_v4, %v3167_v22  ;;  %v10592_v25 = vmul.f32 4.0, %v3324_v1 }
 0x271   : > { %v3171_v15 = vrot.slane %v2994_v13, %v9725_v27  ;;  %v13350_v22 = vmov 1   ;;  %v3092_v13 = vcombine.high %v10508_v11, %v10508_v11  ;;  %v2091_v16 = vrot.slane %v2063_v39, %v9673_v61 }
 0x272   : > { %3420 = vperm.xlu0 %8553, %v10510_v24   ;;  %v3139_v17 = vrot.slane %v3111_v37, %v9673_v61  ;;  %v10583_v37 = vrot.slane %v3142_v19, %v9725_v27  ;;  %v10608_v1 = vpop.permute.xlu1 %3899  ;;  %v10610_v9 = vmul.f32 4.0, %v3309_v59  ;;  %v3061_v19 = vcombine.high %v10355_v3, %v10355_v3 }
 0x273   : > { %13351 = vst [vmem:[#allocation78_spill] sm:$0xff] %v10608_v1  ;;  %v2215_v11 = vrot.slane %v2091_v16, %v9725_v27  ;;  %v2095_v39 = vcombine.high %v2091_v16, %v2091_v16 }
 0x274   : > { %8556 = vset.pattern.permute.xlu1 %v13345_v55  ;;  %v3263_v31 = vrot.slane %v3139_v17, %v9725_v27  ;;  %v3143_v30 = vcombine.high %v3139_v17, %v3139_v17  ;;  %13347 = vst [vmem:[#allocation75_spill] sm:$0xff] %v10583_v37  ;;  %v3203_v37 = vrot.slane %v3043_v35, %v9725_v27 }
 0x275   : > { %3380 = vperm.xlu1 %8556, %v10543_v47   ;;  %v10628_v3 = vsub.f32 %v10491_v14, %v2215_v11  ;;  %v2223_v59 = vrot.slane %v2095_v39, %v9725_v27  ;;  %v10634_v35 = vrot.slane %v3061_v19, %v9673_v61  ;;  %v10659_v39 = vrot.slane %v9615_v44, %v9673_v61 }
 0x276   : > { %3430 = vperm.xlu0 %8553, %v10545_v8   ;;  %v10586_v0 = vsub.f32 %v10457_v32, %v3263_v31  ;;  %v10590_v17 = vrot.slane %v3143_v30, %v9725_v27  ;;  %v2199_v31 = vrot.slane %v2084_v58, %v9725_v27  ;;  %v3313_v30 = vsub.f32 %v10304_v57, %v3183_v53  ;;  %v10645_v16 = vpop.permute.xlu1 %3872 }
 0x277   : > { %v3310_v53 = vsub.f32 %v10341_v4, %v3171_v15  ;;  %13354 = vst [vmem:[#allocation81_spill] sm:$0xff] %v10628_v3  ;;  %v3318_v15 = vsub.f32 %v10304_v57, %v3203_v37  ;;  %13356 = vst [vmem:[#allocation83_spill] sm:$0xff] %v10645_v16  ;;  %v3215_v19 = vrot.slane %v10634_v35, %v9725_v27 }
 0x278   : > { %13348 = vst [vmem:[#allocation76_spill] sm:$0xff] %v10586_v0  ;;  %13349 = vst [vmem:[#allocation77_spill] sm:$0xff] %v10590_v17  ;;  %v2094_v0 = vcombine.high %v2084_v58, %v2084_v58  ;;  %v10615_v58 = vsub.f32 %v10491_v14, %v2199_v31  ;;  %v3118_v31 = vrot.slane %v10498_v7, %v9673_v61 }
 0x279   : > { %3390 = vperm.xlu1 %8556, %v3340_v43   ;;  %v982_v7 = vcombine.high %v9615_v44, %v9615_v44 }
 0x27a   : > { %3460 = vperm.xlu0 %8553, %v10564_v60   ;;  %13352 = vst [vmem:[#allocation79_spill] sm:$0xff] %v10615_v58  ;;  %v2207_v17 = vrot.slane %v2094_v0, %v9725_v27  ;;  %v3235_v0 = vrot.slane %v3092_v13, %v9725_v27  ;;  %v10651_v13 = vmul.f32 4.0, %v3318_v15  ;;  %v3243_v37 = vrot.slane %v3118_v31, %v9725_v27 }
 0x27b   : > { %v3140_v11 = vcombine.high %v3118_v31, %v3118_v31  ;;  %v3321_v15 = vsub.f32 %v10326_v6, %v3215_v19  ;;  %v10673_v44 = vrot.slane %v982_v7, %v9673_v61  ;;  %v2995_v19 = vcombine.high %v10430_v45, %v10430_v45 }
 0x27c   : > { %v10622_v1 = vsub.f32 %v10491_v14, %v2207_v17  ;;  %v10637_v17 = vmul.f32 4.0, %v3310_v53  ;;  %v3326_v53 = vsub.f32 %v10326_v6, %v3235_v0  ;;  %v3328_v0 = vsub.f32 %v10457_v32, %v3243_v37 }
 0x27d   : > { %8557 = vset.pattern.permute.xlu1 %v13350_v22  ;;  %v3251_v31 = vrot.slane %v3140_v11, %v9725_v27  ;;  %v10697_v45 = vrot.slane %v9640_v51, %v9673_v61 }
 0x27e   : > { %3470 = vperm.xlu0 %8553, %v10592_v25   ;;  %3581 = vperm.xlu1 %8557, %v3340_v43   ;;  %13353 = vst [vmem:[#allocation80_spill] sm:$0xff] %v10622_v1  ;;  %v10625_v43 = vmul.f32 4.0, %v3313_v30  ;;  %v10643_v30 = vsub.f32 %v10491_v14, %v2223_v59  ;;  %v10663_v59 = vpop.permute.xlu1 %3878  ;;  %v10666_v16 = vmul.f32 4.0, %v3326_v53  ;;  %v10683_v53 = vmul.f32 4.0, %v3321_v15 }
 0x27f   : > { %13357 = vst [vmem:[#allocation84_spill] sm:$0xff] %v10663_v59  ;;  %v10685_v37 = vmul.f32 4.0, %v3328_v0  ;;  %v10691_v59 = vrot.slane %v10673_v44, %v9673_v61  ;;  %13358 = vst [vmem:[#allocation85_spill] sm:$0xff] %v10697_v45 }
 0x280   : > { %13355 = vst [vmem:[#allocation82_spill] sm:$0xff] %v10643_v30  ;;  %v3125_v30 = vrot.slane %v10501_v10, %v9673_v61  ;;  %v3330_v10 = vsub.f32 %v10457_v32, %v3251_v31 }
 0x281   : > { %v1028_v58 = vcombine.high %v10691_v59, %v10691_v59 }
 0x282   : > { %3395 = vperm.xlu0 %8553, %v10610_v9   ;;  %8558 = vset.pattern.permute.xlu1 %v13345_v55  ;;  %v3259_v11 = vrot.slane %v3125_v30, %v9725_v27  ;;  %v3141_v7 = vcombine.high %v3125_v30, %v3125_v30  ;;  %v10699_v15 = vpop.permute.xlu1 %3881  ;;  %v3159_v30 = vrot.slane %v2995_v19, %v9725_v27  ;;  %v10707_v31 = vmul.f32 4.0, %v3330_v10 }
 0x283   : > { %3415 = vperm.xlu1 %8558, %v10625_v43   ;;  %13359 = vst [vmem:[#allocation86_spill] sm:$0xff] %v10699_v15  ;;  %v10716_v15 = vrot.slane %v10697_v45, %v9673_v61  ;;  %vm1184_vm3 = vcmp.ne.s32.totalorder %v1028_v58, 0 }
 0x284   : > { %v3332_v3 = vsub.f32 %v10457_v32, %v3259_v11  ;;  %v3307_v19 = vsub.f32 %v10341_v4, %v3159_v30  ;;  %v1216_v58 = vsel %vm1184_vm3, 1, %v13345_v55 }
 0x285   : > { %v1076_v45 = vcombine.high %v10716_v15, %v10716_v15 }
 0x286   : > { %3400 = vperm.xlu0 %8553, %v10637_v17   ;;  %v10723_v10 = vpop.permute.xlu1 %3896  ;;  %v10726_v11 = vmul.f32 4.0, %v3332_v3  ;;  %v3339_v30 = vmul.f32 4.0, %v3307_v19  ;;  %v3013_v3 = vcombine.high %v10450_v52, %v10450_v52  ;;  %v1269_v52 = vrot.slane %v1216_v58, %v9725_v27 }
 0x287   : > { %8559 = vset.pattern.permute.xlu1 %v13350_v22  ;;  %13361 = vst [vmem:[#allocation88_spill] sm:$0xff] %v10723_v10  ;;  %vm1188_vm1 = vcmp.ne.s32.totalorder %v1076_v45, 0  ;;  %v3860_v45 = vsel %vm13367_vm11, 1, %v13345_v55 }
 0x288   : > { %3605 = vperm.xlu1 %8559, %v10510_v24   ;;  %v10677_v24 = vrot.slane %v10659_v39, %v9673_v61  ;;  %vm10772_vm13 = vcmp.eq.s32.totalorder %v1269_v52, 1 }
 0x28a   : > { %3440 = vperm.xlu0 %8553, %v10651_v13   ;;  %v1027_v0 = vcombine.high %v10677_v24, %v10677_v24 }
 0x28c   : > { %3613 = vperm.xlu1 %8559, %v10545_v8   ;;  %v1031_v8 = vcombine.high %v9640_v51, %v9640_v51  ;;  %v3267_v51 = vrot.slane %v3141_v7, %v9725_v27  ;;  %vm1180_vm12 = vcmp.ne.s32.totalorder %v1027_v0, 0 }
 0x28e   : > { %3480 = vperm.xlu0 %8553, %v10666_v16   ;;  %v10712_v1 = vrot.slane %v1031_v8, %v9673_v61  ;;  %v3334_v7 = vsub.f32 %v10457_v32, %v3267_v51  ;;  %v1212_v8 = vsel %vm1180_vm12, 1, %v13345_v55  ;;  %v3044_v51 = vcombine.high %v10549_v42, %v10549_v42 }
 0x28f   : > { %vm13368_vm12 = vnez %v13226_v41 }
 0x290   : > { %8560 = vset.pattern.permute.xlu1 %v13345_v55  ;;  %13360 = vst [vmem:[#allocation87_spill] sm:$0xff] %v10712_v1  ;;  %v10732_v0 = vrot.slane %v10712_v1, %v9673_v61  ;;  %v10743_v10 = vmul.f32 4.0, %v3334_v7  ;;  %v10746_v1 = vpop.permute.xlu1 %3902  ;;  %v3191_v42 = vrot.slane %v3044_v51, %v9725_v27  ;;  %v3041_v7 = vrot.slane %v3013_v3, %v9673_v61 }
 0x291   : > { %3455 = vperm.xlu1 %8560, %v10683_v53   ;;  %13363 = vst [vmem:[#allocation90_spill] sm:$0xff] %v10746_v1  ;;  %v1220_v1 = vsel %vm1188_vm1, 1, %v13345_v55  ;;  %vm1412_vm1 = vmor %vm10772_vm13, %vm13368_vm12  ;;  %vm13374_vm13 = vnez %v13231_v49 }
 0x292   : > { %3490 = vperm.xlu0 %8553, %v10685_v37   ;;  %13362 = vst [vmem:[#allocation89_spill] sm:$0xff] %v10732_v0  ;;  %v1077_v19 = vcombine.high %v10732_v0, %v10732_v0  ;;  %v3315_v38 = vsub.f32 %v10304_v57, %v3191_v42  ;;  %v3199_v51 = vrot.slane %v3041_v7, %v9725_v27  ;;  %v2756_v3 = vsel %vm1412_vm1, 1, %v13345_v55 }
 0x294   : > { %vm1192_vm0 = vcmp.ne.s32.totalorder %v1077_v19, 0  ;;  %v1998_v19 = vcombine.high %v10216_v20, %v10216_v20  ;;  %v10793_v42 = vmul.f32 4.0, %v3315_v38 }
 0x295   : > { %8561 = vset.pattern.permute.xlu1 %v13350_v22  ;;  %v1224_v58 = vsel %vm1192_vm0, 1, %v13345_v55 }
 0x296   : > { %3500 = vperm.xlu0 %8553, %v10707_v31   ;;  %3637 = vperm.xlu1 %8561, %v10564_v60   ;;  %v1253_v60 = vrot.slane %v1212_v8, %v9725_v27  ;;  %v1301_v52 = vrot.slane %v1224_v58, %v9725_v27 }
 0x298   : > { %vm10751_vm8 = vcmp.eq.s32.totalorder %v1253_v60, 1  ;;  %v10770_v60 = vpop.permute.xlu1 %3905  ;;  %vm1384_vm11 = vcmp.eq.s32.totalorder %v1301_v52, 1 }
 0x299   : > { %vm1408_vm3 = vmor %vm10751_vm8, %vm13368_vm12  ;;  %13369 = vst [vmem:[#allocation91_spill] sm:$0xff] %v10770_v60 }
 0x29a   : > { %3510 = vperm.xlu0 %8553, %v10726_v11   ;;  %8562 = vset.pattern.permute.xlu1 %v13345_v55  ;;  %v2752_v8 = vsel %vm1408_vm3, 1, %v13345_v55  ;;  %vm1420_vm0 = vmor %vm1384_vm11, %vm13374_vm13  ;;  %vm13392_vm3 = vnez %v13267_v18  ;;  %vm13401_vm11 = vcmp.gt.f32.partialorder %v10093_v40, 0.0 }
 0x29b   : > { %3385 = vperm.xlu1 %8562, %v3339_v30   ;;  %vm13393_vm1 = vmor %vm13392_vm3, %vm9679_vm4  ;;  %vm13405_vm3 = vcmp.gt.f32.partialorder %v10105_v54, 0.0 }
 0x29c   : > { %v10799_v60 = vpop.permute.xlu1 %3884 }
 0x29e   : > { %3520 = vperm.xlu0 %8553, %v10743_v10  }
 0x29f   : > { %8563 = vset.pattern.permute.xlu1 %v13350_v22 }
 0x2a0   : > { %3577 = vperm.xlu1 %8563, %v3339_v30   ;;  %v1285_v30 = vrot.slane %v1220_v1, %v9725_v27 }
 0x2a2   : > { %3953 = vperm.xlu0 %8553, %v3860_v45   ;;  %vm10788_vm8 = vcmp.eq.s32.totalorder %v1285_v30, 1  ;;  %v3317_v45 = vsub.f32 %v10304_v57, %v3199_v51  ;;  %v3093_v30 = vcombine.high %v10634_v35, %v10634_v35 }
 0x2a3   : > { %vm1416_vm6 = vmor %vm10788_vm8, %vm13374_vm13  ;;  %vm13396_vm8 = vnez %v13273_v56  ;;  %v13399_v56 = vsub.f32 %v10326_v6, %v10541_v48 }
 0x2a4   : > { %3589 = vperm.xlu1 %8563, %v10637_v17   ;;  %v10797_v17 = vrot.slane %v1998_v19, %v9673_v61  ;;  %v10810_v38 = vmul.f32 4.0, %v3317_v45  ;;  %v2760_v58 = vsel %vm1416_vm6, 1, %v13345_v55  ;;  %v2996_v19 = vcombine.high %v10525_v50, %v10525_v50  ;;  %vm13397_vm6 = vmor %vm13396_vm8, %vm9679_vm4 }
 0x2a5   : > { %v3223_v35 = vrot.slane %v3093_v30, %v9725_v27  ;;  %v2764_v45 = vsel %vm1420_vm0, 1, %v13345_v55  ;;  %v3849_v18 = vsel %vm13397_vm6, 1, %v13345_v55  ;;  %vm13403_vm0 = vcmp.gt.f32.partialorder %v10033_v36, 0.0  ;;  %v8628_v36 = vld [vmem:[%s13044_s11 + $0x8] sm:$0xff]  }
 0x2a6   : > { %2789 = vperm.xlu0 %8553, %v2752_v8   ;;  %v2028_v51 = vrot.slane %v10797_v17, %v9673_v61  ;;  %v10821_v8 = vpop.permute.xlu1 %3908  ;;  %vm13413_vm6 = vnez %v13275_v34  ;;  %v3361_v34 = vmul.f32 4.0, %v10580_v28  ;;  %v8632_v28 = vld [vmem:[%s13047_s14 + $0x18] sm:$0xff]  }
 0x2a7   : > { %13375 = vst [vmem:[#allocation92_spill] sm:$0xff] %v10821_v8  ;;  %v3323_v50 = vsub.f32 %v10326_v6, %v3223_v35 }
 0x2a8   : > { %8564 = vset.pattern.permute.xlu1 %v13345_v55  ;;  %v2179_v1 = vrot.slane %v2028_v51, %v9725_v27  ;;  %v2044_v52 = vcombine.high %v2028_v51, %v2028_v51  ;;  %v2070_v51 = vrot.slane %v10519_v23, %v9673_v61 }
 0x2a9   : > { %3425 = vperm.xlu1 %8564, %v10793_v42  }
 0x2aa   : > { %2801 = vperm.xlu0 %8553, %v2756_v3   ;;  %v3175_v3 = vrot.slane %v2996_v19, %v9725_v27  ;;  %v10830_v0 = vsub.f32 %v10216_v20, %v2179_v1  ;;  %v2187_v30 = vrot.slane %v2044_v52, %v9725_v27  ;;  %v10835_v8 = vpop.permute.xlu1 %3914  ;;  %v2195_v23 = vrot.slane %v2070_v51, %v9725_v27 }
 0x2ab   : > { %v2092_v1 = vcombine.high %v2070_v51, %v2070_v51  ;;  %v2077_v51 = vrot.slane %v10554_v26, %v9673_v61  ;;  %v10879_v26 = vmul.f32 4.0, %v10532_v12 }
 0x2ac   : > { %13376 = vst [vmem:[#allocation93_spill] sm:$0xff] %v10830_v0  ;;  %v3311_v35 = vsub.f32 %v10341_v4, %v3175_v3  ;;  %v10847_v19 = vsub.f32 %v10216_v20, %v2187_v30 }
 0x2ad   : > { %3435 = vperm.xlu1 %8564, %v10810_v38   ;;  %v2203_v30 = vrot.slane %v2092_v1, %v9725_v27 }
 0x2ae   : > { %2813 = vperm.xlu0 %8553, %v2760_v58   ;;  %v3045_v58 = vcombine.high %v3041_v7, %v3041_v7  ;;  %13377 = vst [vmem:[#allocation94_spill] sm:$0xff] %v10847_v19 }
 0x2b0   : > { %v3207_v7 = vrot.slane %v3045_v58, %v9725_v27  ;;  %v10860_v58 = vsub.f32 %v10491_v14, %v2195_v23  ;;  %v2093_v23 = vcombine.high %v2077_v51, %v2077_v51 }
 0x2b1   : > { %8565 = vset.pattern.permute.xlu1 %v13350_v22 }
 0x2b2   : > { %2825 = vperm.xlu0 %8553, %v2764_v45   ;;  %3621 = vperm.xlu1 %8565, %v10651_v13   ;;  %v10838_v45 = vmul.f32 4.0, %v3323_v50  ;;  %v10843_v13 = vpop.permute.xlu0 %3863  ;;  %v10853_v50 = vmul.f32 4.0, %v3311_v35  ;;  %v3319_v4 = vsub.f32 %v10304_v57, %v3207_v7  ;;  %13380 = vst [vmem:[#allocation97_spill] sm:$0xff] %v10860_v58  ;;  %v10872_v57 = vsub.f32 %v10491_v14, %v2203_v30 }
 0x2b3   : > { %v2211_v7 = vrot.slane %v2077_v51, %v9725_v27  ;;  %v2219_v30 = vrot.slane %v2093_v23, %v9725_v27 }
 0x2b4   : > { %13382 = vst [vmem:[#allocation99_spill] sm:$0xff] %v10872_v57 }
 0x2b5   : > { %v10895_v12 = vsub.f32 %v10491_v14, %v2219_v30 }
 0x2b6   : > { %2390 = vperm.xlu0 %8553, %v10830_v0   ;;  %8566 = vset.pattern.permute.xlu1 %v13345_v55  ;;  %v13492_v0 = vld [vmem:[#allocation81_spill] sm:$0xff] }
 0x2b7   : > { %3465 = vperm.xlu1 %8566, %v10838_v45   ;;  %13388 = vst [vmem:[#allocation105_spill] sm:$0xff] %v10895_v12 }
 0x2b9   : > { %v10850_v52 = vpop.permute.xlu1 %2290 }
 0x2ba   : > { %13378 = vst [vmem:[#allocation95_spill] sm:$0xff] %v10850_v52  ;;  %2400 = vperm.xlu0 %8553, %v10847_v19   ;;  %v10866_v52 = vmul.f32 4.0, %v3319_v4  ;;  %v10885_v4 = vsub.f32 %v10491_v14, %v2211_v7  ;;  %v3848_v14 = vsel %vm13393_vm1, 1, %v13345_v55  ;;  %vm4252_vm1 = vcmask 523264  }
 0x2bb   : > { %3405 = vperm.xlu1 %8566, %v10853_v50   ;;  %v10857_v3 = vpop.permute.xlu0 %2295 }
 0x2bc   : > { %13379 = vst [vmem:[#allocation96_spill] sm:$0xff] %v10857_v3  ;;  %13385 = vst [vmem:[#allocation102_spill] sm:$0xff] %v10885_v4 }
 0x2be   : > { %2410 = vperm.xlu0 %8553, %v10860_v58   ;;  %v10868_v35 = vpop.permute.xlu1 %2330 }
 0x2bf   : > { %13381 = vst [vmem:[#allocation98_spill] sm:$0xff] %v10868_v35  ;;  %3445 = vperm.xlu1 %8566, %v10866_v52  }
 0x2c0   : > { %v10875_v19 = vpop.permute.xlu0 %2335 }
 0x2c1   : > { %13383 = vst [vmem:[#allocation100_spill] sm:$0xff] %v10875_v19 }
 0x2c2   : > { %2420 = vperm.xlu0 %8553, %v10872_v57   ;;  %v10881_v1 = vpop.permute.xlu1 %2370 }
 0x2c3   : > { %13384 = vst [vmem:[#allocation101_spill] sm:$0xff] %v10881_v1  ;;  %3475 = vperm.xlu1 %8566, %v10879_v26  }
 0x2c5   : > { %v10888_v35 = vpop.permute.xlu0 %2375 }
 0x2c6   : > { %13386 = vst [vmem:[#allocation103_spill] sm:$0xff] %v10888_v35  ;;  %2430 = vperm.xlu0 %8553, %v10885_v4   ;;  %v10891_v51 = vpop.permute.xlu1 %2300 }
 0x2c7   : > { %13387 = vst [vmem:[#allocation104_spill] sm:$0xff] %v10891_v51  ;;  %8567 = vset.pattern.permute.xlu1 %v13350_v22 }
 0x2c8   : > { %3645 = vperm.xlu1 %8567, %v10592_v25   ;;  %v7853_v25 = vld [vmem:[#allocation7] ss:$0 sm:$0xff] }
 0x2c9   : > { %v10898_v1 = vpop.permute.xlu0 %2305 }
 0x2ca   : > { %13389 = vst [vmem:[#allocation106_spill] sm:$0xff] %v10898_v1  ;;  %2440 = vperm.xlu0 %8553, %v10895_v12   ;;  %v10901_v7 = vpop.permute.xlu1 %2310  ;;  %v10930_v1 = vmul.f32 4.0, %v13399_v56 }
 0x2cb   : > { %13390 = vst [vmem:[#allocation107_spill] sm:$0xff] %v10901_v7 }
 0x2cc   : > { %8568 = vset.pattern.permute.xlu1 %v13345_v55 }
 0x2cd   : > { %v10904_v23 = vpop.permute.xlu0 %2315  ;;  %3917 = vperm.xlu1 %8568, %v3848_v14  }
 0x2ce   : > { %13391 = vst [vmem:[#allocation108_spill] sm:$0xff] %v10904_v23  ;;  %8609 = vset.pattern.permute.xlu0 %v13350_v22  ;;  %v10913_v30 = vpop.permute.xlu1 %2340 }
 0x2cf   : > { %13394 = vst [vmem:[#allocation109_spill] sm:$0xff] %v10913_v30  ;;  %3569 = vperm.xlu0 %8609, %v10482_v29  }
 0x2d1   : > { %v8124_v35 = vpop.f32.mrb[0].mxu0  ;;  %v10916_v12 = vpop.permute.xlu0 %2345  ;;  %3920 = vperm.xlu1 %8568, %v3849_v18  }
 0x2d2   : > { %13395 = vst [vmem:[#allocation110_spill] sm:$0xff] %v10916_v12  ;;  %v4174_v4 = vadd.f32 %v8124_v35, %v7853_v25  ;;  %v4165_v19 = vpop.f32.mrb[1].mxu0  ;;  %v10924_v23 = vpop.permute.xlu1 %2350 }
 0x2d3   : > { %v4166_v57 = vadd.f32 %v7853_v25, %v4165_v19  ;;  %v8125_v14 = vpop.f32.mrb[2].mxu0  ;;  %13398 = vst [vmem:[#allocation111_spill] sm:$0xff] %v10924_v23  ;;  %3573 = vperm.xlu0 %8609, %v10543_v47   ;;  %v997_v23 = vcombine.high %v10659_v39, %v10659_v39  ;;  %v13467_v39 = vld [vmem:[#allocation33_spill] sm:$0xff] }
 0x2d4   : > { %v4182_v58 = vmax.f32 %v4174_v4, 0.0  ;;  %v4177_v29 = vadd.f32 %v8125_v14, %v7853_v25  ;;  %v4168_v30 = vpop.f32.mrb[3].mxu0 }
 0x2d5   : > { %v4180_v12 = vmax.f32 %v4166_v57, 0.0  ;;  %v4169_v7 = vadd.f32 %v7853_v25, %v4168_v30  ;;  %v10932_v35 = vpop.permute.xlu0 %2355  ;;  %3485 = vperm.xlu1 %8568, %v10930_v1   ;;  %v13417_v30 = vld [vmem:[#allocation52_spill] sm:$0xff] }
 0x2d6   : > { %v4183_v51 = vmax.f32 %v4177_v29, 0.0  ;;  %13400 = vst [vmem:[#allocation112_spill] sm:$0xff] %v10932_v35  ;;  %v4186_v19 = vsel %vm13401_vm11, 0.0, %v4182_v58  ;;  %v10939_v4 = vpop.permute.xlu1 %2380  ;;  %vm13414_vm11 = vmor %vm13413_vm6, %vm9679_vm4  ;;  %v8630_v58 = vld [vmem:[%s13047_s14 + $0x8] sm:$0xff]  }
 0x2d7   : > { %v4181_v18 = vmax.f32 %v4169_v7, 0.0  ;;  %13402 = vst [vmem:[#allocation113_spill] sm:$0xff] %v10939_v4  ;;  %3585 = vperm.xlu0 %8609, %v10610_v9   ;;  %v4184_v6 = vsel %vm13403_vm0, 0.0, %v4180_v12  ;;  %v13409_v9 = vpack.c.bf16 %v10259_v62, %v10256_v5  ;;  %v8635_v5 = vld [vmem:[#allocation13 + $0x8] sm:$0xff]  }
 0x2d8   : > { %v4187_v47 = vsel %vm4045_vm2, 0.0, %v4183_v51  ;;  %vm13411_vm2 = vnez %v13269_v33  ;;  %v3851_v33 = vsel %vm13414_vm11, 1, %v13345_v55  ;;  %8156 = vmatprep.subr.bf16.mxu0 %v8635_v5  ;;  %v13416_v12 = vld [vmem:[#allocation53_spill] sm:$0xff] }
 0x2d9   : > { %v10944_v48 = vpack.c.bf16 %v4187_v47, %v4186_v19  ;;  %v4185_v57 = vsel %vm13405_vm3, 0.0, %v4181_v18  ;;  %v10948_v7 = vpop.permute.xlu0 %2385  ;;  %8569 = vset.pattern.permute.xlu1 %v13350_v22  ;;  %vm13412_vm8 = vmor %vm13411_vm2, %vm9679_vm4  ;;  %v13418_v14 = vpack.c.bf16 %v13416_v12, %v13417_v30  ;;  %8157 = vmatpush3.bf16.msra.mxu0 %v8635_v5  ;;  %v8634_v19 = vld [vmem:[#allocation16] sm:$0xff]   ;;  %vm13424_vm2 = vnez %v13423_v46  ;;  %v13428_v30 = vld [vmem:[#allocation39_spill] sm:$0xff] }
 0x2da   : > { %13406 = vst [vmem:[#allocation115_spill] sm:$0xff] %v10948_v7  ;;  %v10950_v25 = vpack.c.bf16 %v4185_v57, %v4184_v6  ;;  %v10953_v40 = vpop.permute.xlu1 %2320  ;;  %3653 = vperm.xlu1 %8569, %v10666_v16   ;;  %v13420_v6 = vld [vmem:[#allocation37_spill] sm:$0xff] }
 0x2db   : > { %13404 = vst [vmem:[#allocation114_spill] sm:$0xff] %v10944_v48  ;;  %13408 = vst [vmem:[#allocation117_spill] sm:$0xff] %v10953_v40  ;;  %3593 = vperm.xlu0 %8609, %v10853_v50   ;;  %v3850_v50 = vsel %vm13412_vm8, 1, %v13345_v55  ;;  %vm13421_vm0 = vnez %v13420_v6  ;;  %v13453_v7 = vld [vmem:[#allocation69_spill] sm:$0xff] }
 0x2dc   : > { %13407 = vst [vmem:[#allocation116_spill] sm:$0xff] %v10950_v25  ;;  %8134 = vmatprep.mubr.msk.bf16.mxu1 %vm4252_vm1, %v10950_v25  ;;  %vm13422_vm3 = vmor %vm13421_vm0, %vm9679_vm4 }
 0x2dd   : > { %v10962_v54 = vpop.permute.xlu0 %3410  ;;  %8135 = vmatmul.mubr.msk.bf16.vlgmr.msra.gmra.mrb[0].mxu1 %vm4252_vm1, %v10944_v48  ;;  %vm13425_vm8 = vmor %vm13424_vm2, %vm9679_vm4  ;;  %vm13429_vm4 = vnez %v13428_v30 }
 0x2de   : > { %8147 = vmatpush3.bf16.msra.mxu1 %v10423_v2  ;;  %8150 = vmatprep.mubr.msk.bf16.mxu1 %vm4320_vm10, %v13409_v9  ;;  %v10971_v16 = vpop.permute.xlu1 %2360  ;;  %v8629_v2 = vld [vmem:[%s13047_s14] sm:$0xff]   ;;  %v3853_v9 = vsel %vm13425_vm8, 1, %v13345_v55  ;;  %vm13430_vm6 = vmor %vm13429_vm4, %vm9719_vm5 }
 0x2df   : > { %13410 = vst [vmem:[#allocation118_spill] sm:$0xff] %v10971_v16  ;;  %3601 = vperm.xlu0 %8609, %v10625_v43   ;;  %8570 = vset.pattern.permute.xlu1 %v13345_v55 }
 0x2e0   : > { %3923 = vperm.xlu1 %8570, %v3850_v50   ;;  %8148 = vmatprep.subr.bf16.mxu1 %v8628_v36 }
 0x2e1   : > { %v10984_v62 = vpop.permute.xlu0 %3450 }
 0x2e2   : > { %8149 = vmatpush3.bf16.msra.mxu1 %v8628_v36  ;;  %v10986_v43 = vpop.permute.xlu1 %3370 }
 0x2e3   : > { %3609 = vperm.xlu0 %8609, %v10793_v42   ;;  %8226 = vmatprep.subr.bf16.mxu1 %v8629_v2  ;;  %v8631_v42 = vld [vmem:[%s13047_s14 + $0x10] sm:$0xff]  }
 0x2e4   : > { %3926 = vperm.xlu1 %8570, %v3851_v33  }
 0x2e5   : > { %v10998_v51 = vpop.permute.xlu0 %2325  ;;  %8151 = vmatmul.mubr.msk.bf16.vlgmr.msra.gmra.mrb[4].mxu1 %vm4320_vm10, %v13418_v14 }
 0x2e6   : > { %13415 = vst [vmem:[#allocation119_spill] sm:$0xff] %v10998_v51  ;;  %8227 = vmatpush3.bf16.msra.mxu1 %v8629_v2  ;;  %8234 = vmatprep.mubr.msk.bf16.mxu1 %vm4252_vm1, %v10950_v25  ;;  %v13462_v51 = vld [vmem:[#allocation71_spill] sm:$0xff] }
 0x2e7   : > { %3617 = vperm.xlu0 %8609, %v10810_v38   ;;  %8228 = vmatprep.subr.bf16.mxu1 %v8630_v58  ;;  %v11011_v29 = vpop.permute.xlu1 %3565 }
 0x2e8   : > { %3495 = vperm.xlu1 %8570, %v3361_v34  }
 0x2e9   : > { %v11013_v56 = vpop.permute.xlu0 %2365 }
 0x2ea   : > { %13419 = vst [vmem:[#allocation53_spill] sm:$0xff] %v11013_v56  ;;  %8229 = vmatpush3.bf16.msra.mxu1 %v8630_v58 }
 0x2eb   : > { %3625 = vperm.xlu0 %8609, %v10866_v52   ;;  %8230 = vmatprep.subr.bf16.mxu1 %v8631_v42  ;;  %v11019_v38 = vpop.permute.xlu1 %3597 }
 0x2ec   : > { %8571 = vset.pattern.permute.xlu1 %v13350_v22 }
 0x2ed   : > { %3661 = vperm.xlu1 %8571, %v10685_v37   ;;  %v11023_v18 = vpop.permute.xlu0 %3375  ;;  %v3852_v37 = vsel %vm13422_vm3, 1, %v13345_v55 }
 0x2ee   : > { %8231 = vmatpush3.bf16.msra.mxu1 %v8631_v42  ;;  %v13431_v42 = vld [vmem:[#allocation76_spill] sm:$0xff] }
 0x2ef   : > { %3633 = vperm.xlu0 %8609, %v10683_v53   ;;  %8232 = vmatprep.subr.bf16.mxu1 %v8632_v28  ;;  %v11026_v47 = vpop.permute.xlu1 %3629  ;;  %v8636_v53 = vld [vmem:[#allocation16 + $0x8] sm:$0xff]  }
 0x2f1   : > { %8572 = vset.pattern.permute.xlu1 %v13345_v55  ;;  %v11029_v52 = vpop.permute.xlu0 %3420 }
 0x2f2   : > { %3929 = vperm.xlu1 %8572, %v3852_v37   ;;  %8233 = vmatpush3.bf16.msra.mxu1 %v8632_v28  ;;  %v13435_v37 = vld [vmem:[#allocation77_spill] sm:$0xff] }
 0x2f3   : > { %3641 = vperm.xlu0 %8609, %v10838_v45   ;;  %8238 = vmatprep.subr.bf16.mxu1 %v8634_v19  ;;  %v13426_v45 = vld [vmem:[#allocation75_spill] sm:$0xff] }
 0x2f4   : > { %v11038_v57 = vpop.permute.xlu1 %3380  ;;  %v13427_v50 = vsub.f32 %v10457_v32, %v13426_v45 }
 0x2f5   : > { %v11040_v36 = vpop.permute.xlu0 %3430  ;;  %8235 = vmatmul.mubr.msk.bf16.vlgmr.msra.gmra.mrb[8].mxu1 %vm4252_vm1, %v10944_v48 }
 0x2f6   : > { %3932 = vperm.xlu1 %8572, %v3853_v9   ;;  %8239 = vmatpush3.bf16.msra.mxu1 %v8634_v19  ;;  %v3363_v2 = vmul.f32 4.0, %v13427_v50  ;;  %v13437_v50 = vld [vmem:[#allocation46_spill] sm:$0xff] }
 0x2f7   : > { %3649 = vperm.xlu0 %8609, %v10879_v26   ;;  %8240 = vmatprep.subr.bf16.mxu1 %v8636_v53 }
 0x2f8   : > { %v11054_v5 = vpop.permute.xlu1 %3390 }
 0x2f9   : > { %v11056_v33 = vpop.permute.xlu0 %3460 }
 0x2fa   : > { %3505 = vperm.xlu1 %8572, %v3363_v2   ;;  %8241 = vmatpush3.bf16.msra.mxu1 %v8636_v53  ;;  %v13436_v53 = vsub.f32 %v10457_v32, %v13435_v37  ;;  %v13445_v37 = vld [vmem:[#allocation41_spill] sm:$0xff] }
 0x2fb   : > { %3657 = vperm.xlu0 %8609, %v10930_v1   ;;  %v3854_v1 = vsel %vm13430_vm6, 1, %v13345_v55  ;;  %vm13446_vm3 = vnez %v13445_v37  ;;  %vm13474_vm6 = vmor %vm10154_vm7, %vm9719_vm5 }
 0x2fc   : > { %v3367_v46 = vmul.f32 4.0, %v13436_v53  ;;  %vm13447_vm2 = vmor %vm13446_vm3, %vm9719_vm5 }
 0x2fd   : > { %v11059_v63 = vpop.permute.xlu0 %3470  ;;  %v11061_v58 = vpop.permute.xlu1 %3581  ;;  %v3856_v53 = vsel %vm13447_vm2, 1, %v13345_v55 }
 0x2fe   : > { %8573 = vset.pattern.permute.xlu1 %v13350_v22 }
 0x2ff   : > { %3669 = vperm.xlu1 %8573, %v10707_v31   ;;  %3665 = vperm.xlu0 %8609, %v3361_v34   ;;  %v3365_v31 = vmul.f32 4.0, %v13431_v42  ;;  %v13432_v34 = vld [vmem:[#allocation40_spill] sm:$0xff] }
 0x300   : > { %vm13433_vm11 = vnez %v13432_v34  ;;  %v13442_v34 = vld [vmem:[#allocation55_spill] sm:$0xff] }
 0x301   : > { %v11065_v26 = vpop.permute.xlu0 %3395  ;;  %vm13434_vm0 = vmor %vm13433_vm11, %vm9719_vm5 }
 0x302   : > { %v11067_v12 = vpop.permute.xlu1 %3415  ;;  %v3855_v28 = vsel %vm13434_vm0, 1, %v13345_v55 }
 0x303   : > { %8574 = vset.pattern.permute.xlu1 %v13345_v55  ;;  %3673 = vperm.xlu0 %8609, %v3363_v2  }
 0x304   : > { %3935 = vperm.xlu1 %8574, %v3854_v1  }
 0x305   : > { %v11076_v14 = vpop.permute.xlu0 %3400 }
 0x307   : > { %3681 = vperm.xlu0 %8609, %v3365_v31   ;;  %v11085_v19 = vpop.permute.xlu1 %3605 }
 0x308   : > { %3938 = vperm.xlu1 %8574, %v3855_v28  }
 0x309   : > { %v11087_v6 = vpop.permute.xlu0 %3440 }
 0x30b   : > { %3689 = vperm.xlu0 %8609, %v3367_v46   ;;  %v11092_v9 = vpop.permute.xlu1 %3613 }
 0x30c   : > { %3515 = vperm.xlu1 %8574, %v3365_v31  }
 0x30d   : > { %v11094_v45 = vpop.permute.xlu0 %3480 }
 0x30f   : > { %2485 = vperm.xlu0 %8609, %v13437_v50   ;;  %v13448_v50 = vld [vmem:[#allocation56_spill] sm:$0xff] }
 0x310   : > { %v11097_v2 = vpop.f32.mrb[4].mxu0  ;;  %8575 = vset.pattern.permute.xlu1 %v13350_v22  ;;  %v11102_v1 = vpop.permute.xlu1 %3455 }
 0x311   : > { %13438 = vst [vmem:[#allocation52_spill] sm:$0xff] %v11097_v2  ;;  %v11100_v30 = vpop.f32.mrb[5].mxu0  ;;  %3677 = vperm.xlu1 %8575, %v10726_v11   ;;  %v11105_v32 = vpop.permute.xlu0 %3490 }
 0x312   : > { %13439 = vst [vmem:[#allocation37_spill] sm:$0xff] %v11100_v30  ;;  %13440 = vst [vmem:[#allocation38_spill] sm:$0xff] %v11105_v32  ;;  %v11107_v42 = vpop.f32.mrb[6].mxu0  ;;  %v13510_v32 = vld [vmem:[#allocation65_spill] sm:$0xff] }
 0x313   : > { %13441 = vst [vmem:[#allocation75_spill] sm:$0xff] %v11107_v42  ;;  %2497 = vperm.xlu0 %8609, %v13442_v34   ;;  %v11110_v31 = vpop.f32.mrb[7].mxu0  ;;  %v13450_v34 = vld [vmem:[#allocation42_spill] sm:$0xff]  ;;  %v13490_v42 = vld [vmem:[#allocation85_spill] sm:$0xff] }
 0x314   : > { %13443 = vst [vmem:[#allocation39_spill] sm:$0xff] %v11110_v31  ;;  %vm13451_vm8 = vnez %v13450_v34  ;;  %v13457_v34 = vld [vmem:[#allocation59_spill] sm:$0xff] }
 0x315   : > { %8576 = vset.pattern.permute.xlu1 %v13345_v55  ;;  %v11113_v28 = vpop.permute.xlu0 %3500  ;;  %v11121_v11 = vpop.permute.xlu1 %3637  ;;  %vm13452_vm4 = vmor %vm13451_vm8, %vm9719_vm5  ;;  %vm1182_vm8 = vcmp.ne.s32.totalorder %v10691_v59, 0 }
 0x316   : > { %13444 = vst [vmem:[#allocation76_spill] sm:$0xff] %v11113_v28  ;;  %3941 = vperm.xlu1 %8576, %v3856_v53   ;;  %v3857_v25 = vsel %vm13452_vm4, 1, %v13345_v55  ;;  %v13455_v53 = vld [vmem:[#allocation48_spill] sm:$0xff] }
 0x317   : > { %2501 = vperm.xlu0 %8609, %v13448_v50  }
 0x319   : > { %v11124_v48 = vpop.permute.xlu0 %3510 }
 0x31a   : > { %13449 = vst [vmem:[#allocation40_spill] sm:$0xff] %v11124_v48  ;;  %3944 = vperm.xlu1 %8576, %v3857_v25   ;;  %v11132_v37 = vpop.permute.xlu1 %3385 }
 0x31b   : > { %2513 = vperm.xlu0 %8609, %v13453_v7   ;;  %v13459_v7 = vld [vmem:[#allocation60_spill] sm:$0xff] }
 0x31d   : > { %v11135_v4 = vpop.permute.xlu0 %3520 }
 0x31e   : > { %13454 = vst [vmem:[#allocation77_spill] sm:$0xff] %v11135_v4  ;;  %3525 = vperm.xlu1 %8576, %v3367_v46   ;;  %v3859_v46 = vsel %vm13464_vm15, 1, %v13345_v55 }
 0x31f   : > { %2517 = vperm.xlu0 %8609, %v13455_v53   ;;  %v11138_v50 = vpop.permute.xlu1 %3577  ;;  %v3858_v53 = vsel %vm1890_vm9, 1, %v13345_v55  ;;  %vm1178_vm9 = vcmp.ne.s32.totalorder %v10677_v24, 0 }
 0x321   : > { %v11140_v56 = vpop.permute.xlu0 %3953 }
 0x322   : > { %13456 = vst [vmem:[#allocation46_spill] sm:$0xff] %v11140_v56  ;;  %8577 = vset.pattern.permute.xlu1 %v13350_v22 }
 0x323   : > { %3685 = vperm.xlu1 %8577, %v10743_v10   ;;  %2529 = vperm.xlu0 %8609, %v13457_v34   ;;  %v11145_v25 = vpop.permute.xlu1 %3589  ;;  %v2014_v10 = vcombine.high %v10797_v17, %v10797_v17 }
 0x325   : > { %v11147_v16 = vpop.permute.xlu0 %2789  ;;  %v2042_v40 = vrot.slane %v2014_v10, %v9673_v61  ;;  %v13470_v10 = vld [vmem:[#allocation64_spill] sm:$0xff] }
 0x326   : > { %13458 = vst [vmem:[#allocation55_spill] sm:$0xff] %v11147_v16  ;;  %v13466_v16 = vld [vmem:[#allocation50_spill] sm:$0xff] }
 0x327   : > { %8578 = vset.pattern.permute.xlu1 %v13345_v55  ;;  %2533 = vperm.xlu0 %8609, %v13459_v7   ;;  %v13468_v7 = vld [vmem:[#allocation47_spill] sm:$0xff]  ;;  %v2183_v3 = vrot.slane %v2042_v40, %v9725_v27 }
 0x328   : > { %3947 = vperm.xlu1 %8578, %v3858_v53   ;;  %v11159_v34 = vpop.permute.xlu1 %3425 }
 0x329   : > { %v11161_v35 = vpop.permute.xlu0 %2801 }
 0x32a   : > { %13461 = vst [vmem:[#allocation41_spill] sm:$0xff] %v11161_v35  ;;  %v1019_v35 = vrot.slane %v997_v23, %v9673_v61  ;;  %v1210_v23 = vsel %vm1178_vm9, 1, %v13345_v55 }
 0x32b   : > { %2545 = vperm.xlu0 %8609, %v13462_v51   ;;  %v1129_v51 = vcombine.high %v13467_v39, %v13467_v39  ;;  %v1245_v39 = vrot.slane %v1210_v23, %v9725_v27 }
 0x32c   : > { %3950 = vperm.xlu1 %8578, %v3859_v46   ;;  %v11172_v53 = vpop.permute.xlu1 %3435  ;;  %vm1179_vm14 = vcmp.ne.s32.totalorder %v1019_v35, 0 }
 0x32d   : > { %v11174_v17 = vpop.permute.xlu0 %2813  ;;  %v11192_v24 = vrot.slane %v1129_v51, %v9673_v61  ;;  %v1211_v51 = vsel %vm1179_vm14, 1, %v13345_v55  ;;  %vm11221_vm5 = vcmp.eq.s32.totalorder %v1245_v39, 1  ;;  %v13485_v39 = vld [vmem:[#allocation35_spill] sm:$0xff] }
 0x32e   : > { %13465 = vst [vmem:[#allocation56_spill] sm:$0xff] %v11174_v17  ;;  %v2046_v17 = vcombine.high %v2042_v40, %v2042_v40  ;;  %v3861_v40 = vsel %vm13474_vm6, 1, %v13345_v55  ;;  %v1249_v23 = vrot.slane %v1211_v51, %v9725_v27  ;;  %vm1406_vm7 = vmor %vm11221_vm5, %vm13368_vm12  ;;  %vm1186_vm6 = vcmp.ne.s32.totalorder %v10716_v15, 0  ;;  %v13502_v15 = vld [vmem:[#allocation32_spill] sm:$0xff] }
 0x32f   : > { %2549 = vperm.xlu0 %8609, %v13466_v16   ;;  %13471 = vst [vmem:[#allocation69_spill] sm:$0xff] %v11192_v24 }
 0x330   : > { %8579 = vset.pattern.permute.xlu1 %v13350_v22  ;;  %vm11239_vm11 = vcmp.eq.s32.totalorder %v1249_v23, 1 }
 0x331   : > { %2489 = vperm.xlu1 %8579, %v13468_v7   ;;  %v11184_v46 = vpop.permute.xlu0 %2825  ;;  %v11187_v56 = vpop.permute.xlu1 %3621  ;;  %v1029_v7 = vcombine.high %v1019_v35, %v1019_v35  ;;  %vm1407_vm2 = vmor %vm11239_vm11, %vm13368_vm12 }
 0x332   : > { %13469 = vst [vmem:[#allocation42_spill] sm:$0xff] %v11184_v46  ;;  %v11204_v46 = vsub.f32 %v10216_v20, %v2183_v3 }
 0x333   : > { %2561 = vperm.xlu0 %8609, %v13470_v10   ;;  %v2191_v10 = vrot.slane %v2046_v17, %v9725_v27  ;;  %vm1181_vm0 = vcmp.ne.s32.totalorder %v1029_v7, 0  ;;  %v2750_v17 = vsel %vm1406_vm7, 1, %v13345_v55  ;;  %v2942_v7 = vld [vmem:[#allocation8] sm:$0x3]  ;;  %vm13503_vm7 = vnez %v13502_v15 }
 0x334   : > { %13475 = vst [vmem:[#allocation59_spill] sm:$0xff] %v11204_v46  ;;  %v1213_v23 = vsel %vm1181_vm0, 1, %v13345_v55  ;;  %v11277_v2 = vrot.slane %v2942_v7, %v9725_v27 }
 0x335   : > { %8580 = vset.pattern.permute.xlu1 %v13345_v55  ;;  %v11195_v16 = vpop.permute.xlu0 %2390  ;;  %v11219_v3 = vsub.f32 %v10216_v20, %v2191_v10  ;;  %v11244_v10 = vsub.s32 1, %v13485_v39 }
 0x336   : > { %13472 = vst [vmem:[#allocation48_spill] sm:$0xff] %v11195_v16  ;;  %3956 = vperm.xlu1 %8580, %v3861_v40   ;;  %v11211_v16 = vrot.slane %v11192_v24, %v9673_v61  ;;  %v11213_v31 = vpop.permute.xlu1 %3465  ;;  %v13481_v24 = vld [vmem:[#allocation54_spill] sm:$0xff] }
 0x337   : > { %2569 = vperm.xlu0 %8609, %v11204_v46   ;;  %13478 = vst [vmem:[#allocation71_spill] sm:$0xff] %v11219_v3  ;;  %13486 = vst [vmem:[#allocation50_spill] sm:$0xff] %v11244_v10 }
 0x338   : > { %13476 = vst [vmem:[#allocation60_spill] sm:$0xff] %v11211_v16 }
 0x339   : > { %v11216_v21 = vpop.permute.xlu0 %2400 }
 0x33a   : > { %13477 = vst [vmem:[#allocation43_spill] sm:$0xff] %v11216_v21  ;;  %8581 = vset.pattern.permute.xlu1 %v13350_v22  ;;  %v11227_v40 = vpop.permute.xlu1 %3405  ;;  %v1175_v21 = vcombine.high %v11211_v16, %v11211_v16  ;;  %v13487_v16 = vld [vmem:[#allocation79_spill] sm:$0xff] }
 0x33b   : > { %2493 = vperm.xlu1 %8581, %v13481_v24   ;;  %2577 = vperm.xlu0 %8609, %v11219_v3   ;;  %v998_v24 = vcombine.high %v10673_v44, %v10673_v44  ;;  %v11261_v44 = vrot.slane %v2942_v7, %v11244_v10  ;;  %v13489_v3 = vld [vmem:[#allocation80_spill] sm:$0xff] }
 0x33c   : > { %vm1208_vm3 = vcmp.ne.s32.totalorder %v1175_v21, 0  ;;  %v2751_v21 = vsel %vm1407_vm2, 1, %v13345_v55 }
 0x33d   : > { %v11237_v20 = vpop.permute.xlu0 %2410  ;;  %v1026_v35 = vrot.slane %v998_v24, %v9673_v61  ;;  %v3700_v4 = vmul.f32 %v11261_v44, %v11061_v58 }
 0x33e   : > { %13482 = vst [vmem:[#allocation44_spill] sm:$0xff] %v11237_v20  ;;  %v11248_v51 = vpop.permute.xlu1 %3445  ;;  %v1240_v20 = vsel %vm1208_vm3, 1, %v13345_v55 }
 0x33f   : > { %8582 = vset.pattern.permute.xlu1 %v13345_v55  ;;  %2585 = vperm.xlu0 %8609, %v13487_v16   ;;  %v1365_v30 = vrot.slane %v1240_v20, %v9725_v27  ;;  %vm1183_vm15 = vcmp.ne.s32.totalorder %v1026_v35, 0  ;;  %v3532_v20 = vmul.f32 %v11277_v2, %v10986_v43  ;;  %v3699_v43 = vmul.f32 %v11261_v44, %v11138_v50  ;;  %v11326_v50 = vld [vmem:[%s13050_s17] sm:$0xff]  }
 0x340   : > { %2783 = vperm.xlu1 %8582, %v2750_v17   ;;  %v1257_v17 = vrot.slane %v1213_v23, %v9725_v27  ;;  %v1214_v23 = vsel %vm1182_vm8, 1, %v13345_v55  ;;  %8274 = vmatprep.subr.bf16.mxu1 %v11326_v50 }
 0x341   : > { %v11258_v39 = vpop.permute.xlu0 %2420  ;;  %vm11300_vm9 = vcmp.eq.s32.totalorder %v1365_v30, 1  ;;  %v3536_v30 = vmul.f32 %v11277_v2, %v11054_v5 }
 0x342   : > { %13488 = vst [vmem:[#allocation47_spill] sm:$0xff] %v11258_v39  ;;  %v11264_v16 = vpop.permute.xlu1 %3475  ;;  %v1046_v39 = vcombine.high %v13490_v42, %v13490_v42  ;;  %vm11283_vm4 = vcmp.eq.s32.totalorder %v1257_v17, 1  ;;  %v1030_v42 = vcombine.high %v1026_v35, %v1026_v35  ;;  %vm1436_vm11 = vmor %vm11300_vm9, %vm13503_vm7 }
 0x343   : > { %2593 = vperm.xlu0 %8609, %v13489_v3   ;;  %v3696_v3 = vmul.f32 %v11261_v44, %v11011_v29  ;;  %v11295_v29 = vld [vmem:[#allocation10] ss:$0 sm:$0xff]  ;;  %vm1409_vm14 = vmor %vm11283_vm4, %vm13368_vm12  ;;  %v2780_v58 = vsel %vm1436_vm11, 1, %v13345_v55  ;;  %vm3958_vm4 = vcmp.eq.s32.totalorder %v10843_v13, 1 }
 0x344   : > { %2786 = vperm.xlu1 %8582, %v2751_v21   ;;  %v11288_v24 = vrot.slane %v1046_v39, %v9673_v61  ;;  %v13495_v21 = vld [vmem:[#allocation57_spill] sm:$0xff]  ;;  %v1261_v39 = vrot.slane %v1214_v23, %v9725_v27  ;;  %vm11314_vm5 = vcmp.ne.s32.totalorder %v1030_v42, 0  ;;  %v3535_v23 = vmul.f32 %v11277_v2, %v11132_v37 }
 0x345   : > { %v11273_v10 = vpop.permute.xlu0 %2430  ;;  %v3728_v35 = vadd.f32 %v3696_v3, %v3532_v20  ;;  %v11321_v3 = vld [vmem:[%s13046_s13] sm:$0xff]   ;;  %v2753_v42 = vsel %vm1409_vm14, 1, %v13345_v55  ;;  %v11345_v37 = vsel %vm1186_vm6, 1, %v13345_v55 }
 0x346   : > { %13491 = vst [vmem:[#allocation64_spill] sm:$0xff] %v11273_v10  ;;  %vm1187_vm0 = vcmp.ne.s32.totalorder %v11288_v24, 0  ;;  %vm11339_vm3 = vcmp.eq.s32.totalorder %v1261_v39, 1  ;;  %8190 = vmatprep.subr.bf16.mxu0 %v11321_v3  ;;  %v3731_v46 = vadd.f32 %v3699_v43, %v3535_v23  ;;  %v11354_v39 = vsel %vm11314_vm5, 1, %v13345_v55  ;;  %v13514_v10 = vld [vmem:[#allocation83_spill] sm:$0xff] }
 0x347   : > { %2601 = vperm.xlu0 %8609, %v13492_v0   ;;  %v11292_v7 = vpop.permute.xlu1 %3645  ;;  %v1215_v0 = vsel %vm1183_vm15, 1, %v13345_v55  ;;  %vm1410_vm2 = vmor %vm11339_vm3, %vm13368_vm12  ;;  %v11388_v5 = vsel %vm1187_vm0, 1, %v13345_v55  ;;  %v3702_v43 = vmul.f32 %v11261_v44, %v11145_v25  ;;  %v3538_v25 = vmul.f32 %v11277_v2, %v11076_v14 }
 0x348   : > { %8583 = vset.pattern.permute.xlu1 %v13350_v22  ;;  %vm3961_vm6 = vcmp.eq.s32.totalorder %v13514_v10, 1 }
 0x349   : > { %2505 = vperm.xlu1 %8583, %v13495_v21   ;;  %v11298_v17 = vpop.permute.xlu0 %2440  ;;  %v13499_v21 = vld [vmem:[#allocation82_spill] sm:$0xff] }
 0x34a   : > { %13496 = vst [vmem:[#allocation45_spill] sm:$0xff] %v11298_v17  ;;  %v1265_v17 = vrot.slane %v1215_v0, %v9725_v27  ;;  %v3533_v0 = vmul.f32 %v11277_v2, %v11023_v18  ;;  %v3534_v18 = vmul.f32 %v11277_v2, %v11038_v57  ;;  %v2754_v57 = vsel %vm1410_vm2, 1, %v13345_v55 }
 0x34b   : > { %2609 = vperm.xlu0 %8609, %v13499_v21   ;;  %v3766_v21 = vadd.f32 %v11295_v29, %v3728_v35  ;;  %v13506_v35 = vld [vmem:[#allocation87_spill] sm:$0xff] }
 0x34c   : > { %v11335_v59 = vpop.permute.xlu1 %3917  ;;  %vm11379_vm8 = vcmp.eq.s32.totalorder %v1265_v17, 1 }
 0x34d   : > { %8584 = vset.pattern.permute.xlu1 %v13345_v55  ;;  %vm1411_vm9 = vmor %vm11379_vm8, %vm13368_vm12 }
 0x34e   : > { %2792 = vperm.xlu1 %8584, %v2753_v42   ;;  %v3570_v48 = vpop.permute.xlu0 %3569  ;;  %v1273_v42 = vrot.slane %v11354_v39, %v9725_v27 }
 0x34f   : > { %v3697_v28 = vmul.f32 %v11261_v44, %v3570_v48  ;;  %8612 = vset.pattern.permute.xlu0 %v13345_v55 }
 0x350   : > { %2873 = vperm.xlu0 %8612, %v2780_v58   ;;  %v11373_v23 = vpop.permute.xlu1 %3920  ;;  %v3769_v58 = vadd.f32 %v11295_v29, %v3731_v46  ;;  %v13511_v46 = vld [vmem:[#allocation68_spill] sm:$0xff]  ;;  %vm11446_vm11 = vcmp.eq.s32.totalorder %v1273_v42, 1 }
 0x351   : > { %v3729_v48 = vadd.f32 %v3697_v28, %v3533_v0  ;;  %13507 = vst [vmem:[#allocation54_spill] sm:$0xff] %v11373_v23  ;;  %v3798_v28 = vmax.f32 %v3766_v21, 0.0  ;;  %v3732_v0 = vadd.f32 %v3700_v4, %v3536_v30  ;;  %vm3959_vm15 = vcmp.eq.s32.totalorder %v13511_v46, 1 }
 0x352   : > { %8585 = vset.pattern.permute.xlu1 %v13350_v22  ;;  %v3574_v17 = vpop.permute.xlu0 %3573  ;;  %v3704_v21 = vmul.f32 %v11261_v44, %v11019_v38  ;;  %v3734_v46 = vadd.f32 %v3702_v43, %v3538_v25  ;;  %v3542_v25 = vmul.f32 %v11277_v2, %v11029_v52 }
 0x353   : > { %v3767_v39 = vadd.f32 %v11295_v29, %v3729_v48  ;;  %v3698_v15 = vmul.f32 %v11261_v44, %v3574_v17  ;;  %2509 = vperm.xlu1 %8585, %v13510_v32   ;;  %v3540_v32 = vmul.f32 %v11277_v2, %v10962_v54  ;;  %v3990_v14 = vsel %vm3958_vm4, -10.0, %v3798_v28 }
 0x354   : > { %v11415_v48 = vpop.permute.xlu1 %3485  ;;  %v3770_v20 = vadd.f32 %v11295_v29, %v3732_v0  ;;  %v3801_v17 = vmax.f32 %v3769_v58, 0.0  ;;  %v3537_v54 = vmul.f32 %v11277_v2, %v11065_v26  ;;  %v2755_v0 = vsel %vm1411_vm9, 1, %v13345_v55 }
 0x355   : > { %v3799_v30 = vmax.f32 %v3767_v39, 0.0  ;;  %v3730_v13 = vadd.f32 %v3698_v15, %v3534_v18  ;;  %13512 = vst [vmem:[#allocation85_spill] sm:$0xff] %v11415_v48  ;;  %v13513_v18 = vld [vmem:[#allocation70_spill] sm:$0xff]  ;;  %v3736_v43 = vadd.f32 %v3704_v21, %v3540_v32  ;;  %v3706_v58 = vmul.f32 %v11261_v44, %v11085_v19  ;;  %v13515_v21 = vld [vmem:[#allocation72_spill] sm:$0xff] }
 0x356   : > { %v3586_v4 = vpop.permute.xlu0 %3585  ;;  %vm3960_vm14 = vcmp.eq.s32.totalorder %v13513_v18, 1  ;;  %vm3962_vm5 = vcmp.eq.s32.totalorder %v13515_v21, 1  ;;  %v8640_v18 = vld [vmem:[%s13050_s17 + $0x8] sm:$0xff]   ;;  %vm3965_vm4 = vcmp.eq.s32.totalorder %v10799_v60, 1  ;;  %v3710_v60 = vmul.f32 %v11261_v44, %v11187_v56 }
 0x357   : > { %v3991_v23 = vsel %vm3959_vm15, -10.0, %v3799_v30  ;;  %v3768_v38 = vadd.f32 %v11295_v29, %v3730_v13  ;;  %v3701_v15 = vmul.f32 %v11261_v44, %v3586_v4  ;;  %8586 = vset.pattern.permute.xlu1 %v13345_v55  ;;  %v3802_v4 = vmax.f32 %v3770_v20, 0.0  ;;  %vm1413_vm15 = vmor %vm11446_vm11, %vm13368_vm12 }
 0x358   : > { %2795 = vperm.xlu1 %8586, %v2754_v57   ;;  %v4478_v28 = vpack.c.bf16 %v3991_v23, %v3990_v14  ;;  %v3993_v30 = vsel %vm3961_vm6, -10.0, %v3801_v17  ;;  %v3772_v13 = vadd.f32 %v11295_v29, %v3734_v46  ;;  %v3539_v57 = vmul.f32 %v11277_v2, %v11227_v40  ;;  %v8639_v40 = vld [vmem:[%s13046_s13 + $0x8] sm:$0xff]  }
 0x359   : > { %v3800_v26 = vmax.f32 %v3768_v38, 0.0  ;;  %v3733_v39 = vadd.f32 %v3701_v15, %v3537_v54  ;;  %v11435_v48 = vpop.permute.xlu1 %3653  ;;  %v1281_v17 = vrot.slane %v11388_v5, %v9725_v27  ;;  %v13518_v46 = vld [vmem:[#allocation84_spill] sm:$0xff]  ;;  %v3738_v54 = vadd.f32 %v3706_v58, %v3542_v25 }
 0x35a   : > { %8158 = vmatprep.mubr.msk.bf16.mxu0 %vm4320_vm10, %v4478_v28  ;;  %8242 = vmatprep.mubr.msk.bf16.mxu1 %vm4320_vm10, %v4478_v28  ;;  %v3594_v23 = vpop.permute.xlu0 %3593  ;;  %vm3963_vm0 = vcmp.eq.s32.totalorder %v13518_v46, 1  ;;  %v3774_v42 = vadd.f32 %v11295_v29, %v3736_v43  ;;  %v3994_v10 = vsel %vm3962_vm5, -10.0, %v3802_v4  ;;  %v3541_v28 = vmul.f32 %v11277_v2, %v11067_v12 }
 0x35b   : > { %v3992_v19 = vsel %vm3960_vm14, -10.0, %v3800_v26  ;;  %v3771_v32 = vadd.f32 %v11295_v29, %v3733_v39  ;;  %v3703_v52 = vmul.f32 %v11261_v44, %v3594_v23  ;;  %v13519_v26 = vrot.slane %v11345_v37, %v9725_v27 }
 0x35c   : > { %v4479_v14 = vpack.c.bf16 %v3993_v30, %v3992_v19  ;;  %2798 = vperm.xlu1 %8586, %v2755_v0   ;;  %v3708_v0 = vmul.f32 %v11261_v44, %v11092_v9  ;;  %v3804_v43 = vmax.f32 %v3772_v13, 0.0  ;;  %v13522_v9 = vld [vmem:[#allocation86_spill] sm:$0xff]  ;;  %v3544_v37 = vmul.f32 %v11277_v2, %v11040_v36 }
 0x35d   : > { %v3803_v38 = vmax.f32 %v3771_v32, 0.0  ;;  %v3735_v15 = vadd.f32 %v3703_v52, %v3539_v57  ;;  %vm11469_vm3 = vcmp.eq.s32.totalorder %v13519_v26, 1  ;;  %vm3964_vm2 = vcmp.eq.s32.totalorder %v13522_v9, 1  ;;  %v13526_v32 = vld [vmem:[#allocation49_spill] sm:$0xff] }
 0x35e   : > { %8159 = vmatmul.mubr.msk.bf16.vlgmr.msra.gmra.mrb[8].mxu0 %vm4320_vm10, %v4479_v14  ;;  %8243 = vmatmul.mubr.msk.bf16.vlgmr.msra.gmra.mrb[12].mxu1 %vm4320_vm10, %v4479_v14  ;;  %v3602_v58 = vpop.permute.xlu0 %3601  ;;  %v13523_v13 = vcombine.high %v11288_v24, %v11288_v24  ;;  %v3806_v36 = vmax.f32 %v3774_v42, 0.0  ;;  %v3740_v24 = vadd.f32 %v3708_v0, %v3544_v37  ;;  %v3543_v52 = vmul.f32 %v11277_v2, %v11159_v34  ;;  %v13527_v34 = vld [vmem:[#allocation62_spill] sm:$0xff]  ;;  %vm1414_vm11 = vmor %vm11469_vm3, %vm13374_vm13 }
 0x35f   : > { %v3995_v25 = vsel %vm3963_vm0, -10.0, %v3803_v38  ;;  %v3773_v4 = vadd.f32 %v11295_v29, %v3735_v15  ;;  %v3705_v12 = vmul.f32 %v11261_v44, %v3602_v58  ;;  %v11475_v30 = vpop.permute.xlu1 %3923  ;;  %8191 = vmatpush3.bf16.msra.mxu0 %v11321_v3  ;;  %8275 = vmatpush3.bf16.msra.mxu1 %v11326_v50  ;;  %v3776_v3 = vadd.f32 %v11295_v29, %v3738_v54 }
 0x360   : > { %8587 = vset.pattern.permute.xlu1 %v13350_v22  ;;  %v4480_v23 = vpack.c.bf16 %v3995_v25, %v3994_v10  ;;  %vm11486_vm8 = vcmp.ne.s32.totalorder %v13523_v13, 0  ;;  %8192 = vmatprep.subr.bf16.mxu0 %v8639_v40  ;;  %v3996_v14 = vsel %vm3964_vm2, -10.0, %v3804_v43  ;;  %vm3966_vm9 = vcmp.eq.s32.totalorder %v13527_v34, 1  ;;  %v13531_v13 = vld [vmem:[#allocation74_spill] sm:$0xff] }
 0x361   : > { %v3805_v50 = vmax.f32 %v3773_v4, 0.0  ;;  %v3737_v19 = vadd.f32 %v3705_v12, %v3541_v28  ;;  %2521 = vperm.xlu1 %8587, %v13526_v32   ;;  %8276 = vmatprep.subr.bf16.mxu1 %v8640_v18  ;;  %v3546_v56 = vmul.f32 %v11277_v2, %v11087_v6  ;;  %v2757_v42 = vsel %vm1413_vm15, 1, %v13345_v55  ;;  %v13528_v28 = vld [vmem:[#allocation73_spill] sm:$0xff]  ;;  %v13534_v34 = vld [vmem:[#allocation78_spill] sm:$0xff] }
 0x362   : > { %8162 = vmatprep.mubr.msk.bf16.mxu0 %vm4320_vm10, %v4480_v23  ;;  %8246 = vmatprep.mubr.msk.bf16.mxu1 %vm4320_vm10, %v4480_v23  ;;  %v3610_v21 = vpop.permute.xlu0 %3609  ;;  %vm3967_vm14 = vcmp.eq.s32.totalorder %v13528_v28, 1  ;;  %v3712_v0 = vmul.f32 %v11261_v44, %v11026_v47  ;;  %v3998_v58 = vsel %vm3966_vm9, -10.0, %v3806_v36  ;;  %v3808_v26 = vmax.f32 %v3776_v3, 0.0  ;;  %v13532_v3 = vld [vmem:[#allocation88_spill] sm:$0xff] }
 0x363   : > { %v3997_v46 = vsel %vm3965_vm4, -10.0, %v3805_v50  ;;  %v3775_v54 = vadd.f32 %v11295_v29, %v3737_v19  ;;  %v3707_v38 = vmul.f32 %v11261_v44, %v3610_v21  ;;  %v11507_v15 = vpop.permute.xlu1 %3926  ;;  %8193 = vmatpush3.bf16.msra.mxu0 %v8639_v40  ;;  %8277 = vmatpush3.bf16.msra.mxu1 %v8640_v18  ;;  %v3778_v6 = vadd.f32 %v11295_v29, %v3740_v24  ;;  %v13533_v21 = vld [vmem:[#allocation58_spill] sm:$0xff] }
 0x364   : > { %v4481_v10 = vpack.c.bf16 %v3997_v46, %v3996_v14  ;;  %v3742_v43 = vadd.f32 %v3710_v60, %v3546_v56  ;;  %v3545_v20 = vmul.f32 %v11277_v2, %v11172_v53  ;;  %v3548_v9 = vmul.f32 %v11277_v2, %v10984_v62  ;;  %v13535_v56 = vld [vmem:[#allocation90_spill] sm:$0xff] }
 0x365   : > { %v3807_v40 = vmax.f32 %v3775_v54, 0.0  ;;  %v3739_v18 = vadd.f32 %v3707_v38, %v3543_v52  ;;  %8588 = vset.pattern.permute.xlu1 %v13345_v55  ;;  %vm11536_vm12 = vcmp.eq.s32.totalorder %v1281_v17, 1  ;;  %v11543_v53 = vsel %vm11486_vm8, 1, %v13345_v55 }
 0x366   : > { %2804 = vperm.xlu1 %8588, %v2757_v42   ;;  %8163 = vmatmul.mubr.msk.bf16.gmra.mrb[12].mxu0 %vm4320_vm10, %v4481_v10  ;;  %v3618_v41 = vpop.permute.xlu0 %3617  ;;  %vm3968_vm6 = vcmp.eq.s32.totalorder %v13531_v13, 1  ;;  %vm3969_vm5 = vcmp.eq.s32.totalorder %v13532_v3, 1  ;;  %v3744_v62 = vadd.f32 %v3712_v0, %v3548_v9  ;;  %v3810_v17 = vmax.f32 %v3778_v6, 0.0  ;;  %vm1415_vm3 = vmor %vm11536_vm12, %vm13374_vm13 }
 0x367   : > { %v3999_v25 = vsel %vm3967_vm14, -10.0, %v3807_v40  ;;  %v3777_v4 = vadd.f32 %v11295_v29, %v3739_v18  ;;  %8247 = vmatmul.mubr.msk.bf16.gmra.mrb[16].mxu1 %vm4320_vm10, %v4481_v10  ;;  %v3709_v47 = vmul.f32 %v11261_v44, %v3618_v41  ;;  %v11529_v12 = vpop.permute.xlu1 %3495  ;;  %v4000_v5 = vsel %vm3968_vm6, -10.0, %v3808_v26 }
 0x368   : > { %v4482_v37 = vpack.c.bf16 %v3999_v25, %v3998_v58  ;;  %v3780_v32 = vadd.f32 %v11295_v29, %v3742_v43  ;;  %v3547_v36 = vmul.f32 %v11277_v2, %v11248_v51  ;;  %v3714_v14 = vmul.f32 %v11261_v44, %v11121_v11  ;;  %v13536_v11 = vld [vmem:[#allocation89_spill] sm:$0xff] }
 0x369   : > { %v3809_v50 = vmax.f32 %v3777_v4, 0.0  ;;  %v3741_v19 = vadd.f32 %v3709_v47, %v3545_v20  ;;  %v2758_v51 = vsel %vm1414_vm11, 1, %v13345_v55  ;;  %v1289_v38 = vrot.slane %v11543_v53, %v9725_v27  ;;  %v13538_v4 = vld [vmem:[#allocation91_spill] sm:$0xff]  ;;  %v13539_v53 = vld [vmem:[#allocation92_spill] sm:$0xff] }
 0x36a   : > { %8589 = vset.pattern.permute.xlu1 %v13350_v22  ;;  %8166 = vmatprep.mubr.msk.bf16.mxu0 %vm4320_vm10, %v4482_v37  ;;  %v3626_v57 = vpop.permute.xlu0 %3625  ;;  %vm3970_vm0 = vcmp.eq.s32.totalorder %v13534_v34, 1  ;;  %vm3971_vm2 = vcmp.eq.s32.totalorder %v13535_v56, 1  ;;  %vm1190_vm8 = vcmp.ne.s32.totalorder %v13536_v11, 0  ;;  %v3782_v28 = vadd.f32 %v11295_v29, %v3744_v62  ;;  %v13545_v11 = vld [vmem:[#allocation85_spill] sm:$0xff] }
 0x36b   : > { %v4001_v24 = vsel %vm3969_vm5, -10.0, %v3809_v50  ;;  %v3779_v52 = vadd.f32 %v11295_v29, %v3741_v19  ;;  %8250 = vmatprep.mubr.msk.bf16.mxu1 %vm4320_vm10, %v4482_v37  ;;  %v3711_v60 = vmul.f32 %v11261_v44, %v3626_v57  ;;  %2525 = vperm.xlu1 %8589, %v13533_v21   ;;  %v3550_v39 = vmul.f32 %v11277_v2, %v11056_v33 }
 0x36c   : > { %v11562_v46 = vpop.permute.xlu1 %3661  ;;  %v4483_v54 = vpack.c.bf16 %v4001_v24, %v4000_v5  ;;  %v4002_v0 = vsel %vm3970_vm0, -10.0, %v3810_v17  ;;  %v3549_v40 = vmul.f32 %v11277_v2, %v11102_v1  ;;  %v3812_v58 = vmax.f32 %v3780_v32, 0.0 }
 0x36d   : > { %v3811_v42 = vmax.f32 %v3779_v52, 0.0  ;;  %v3743_v10 = vadd.f32 %v3711_v60, %v3547_v36  ;;  %v3746_v43 = vadd.f32 %v3714_v14, %v3550_v39  ;;  %v3716_v1 = vmul.f32 %v11261_v44, %v11292_v7  ;;  %v13543_v39 = vld [vmem:[#allocation61_spill] sm:$0xff] }
 0x36e   : > { %8167 = vmatmul.mubr.msk.bf16.gmra.mrb[16].mxu0 %vm4320_vm10, %v4483_v54  ;;  %v3634_v18 = vpop.permute.xlu0 %3633  ;;  %v13537_v20 = vcombine.high %v13506_v35, %v13506_v35  ;;  %vm3972_vm4 = vcmp.eq.s32.totalorder %v13538_v4, 1  ;;  %v2759_v7 = vsel %vm1415_vm3, 1, %v13345_v55  ;;  %vm3973_vm15 = vcmp.eq.s32.totalorder %v13539_v53, 1 }
 0x36f   : > { %v4003_v26 = vsel %vm3971_vm2, -10.0, %v3811_v42  ;;  %v3781_v6 = vadd.f32 %v11295_v29, %v3743_v10  ;;  %8251 = vmatmul.mubr.msk.bf16.gmra.mrb[20].mxu1 %vm4320_vm10, %v4483_v54  ;;  %v3713_v33 = vmul.f32 %v11261_v44, %v3634_v18  ;;  %8590 = vset.pattern.permute.xlu1 %v13345_v55  ;;  %v3814_v13 = vmax.f32 %v3782_v28, 0.0  ;;  %v13544_v18 = vld [vmem:[#allocation54_spill] sm:$0xff] }
 0x370   : > { %2807 = vperm.xlu1 %8590, %v2758_v51   ;;  %v4484_v41 = vpack.c.bf16 %v4003_v26, %v4002_v0  ;;  %v11595_v25 = vrot.slane %v13537_v20, %v9673_v61  ;;  %v3552_v35 = vmul.f32 %v11277_v2, %v11059_v63  ;;  %v3551_v3 = vmul.f32 %v11277_v2, %v11213_v31  ;;  %v13542_v31 = vld [vmem:[#allocation66_spill] sm:$0xff] }
 0x371   : > { %v3813_v47 = vmax.f32 %v3781_v6, 0.0  ;;  %v3745_v9 = vadd.f32 %v3713_v33, %v3549_v40  ;;  %v11598_v37 = vpop.permute.xlu1 %3929  ;;  %v4004_v19 = vsel %vm3972_vm4, -10.0, %v3812_v58  ;;  %v3784_v32 = vadd.f32 %v11295_v29, %v3746_v43 }
 0x372   : > { %8170 = vmatprep.mubr.msk.bf16.mxu0 %vm4320_vm10, %v4484_v41  ;;  %8254 = vmatprep.mubr.msk.bf16.mxu1 %vm4320_vm10, %v4484_v41  ;;  %v3642_v50 = vpop.permute.xlu0 %3641  ;;  %v3748_v17 = vadd.f32 %v3716_v1, %v3552_v35  ;;  %vm11616_vm9 = vcmp.eq.s32.totalorder %v1289_v38, 1  ;;  %vm3974_vm14 = vcmp.eq.s32.totalorder %v13542_v31, 1  ;;  %v3718_v36 = vmul.f32 %v11261_v44, %v11435_v48 }
 0x373   : > { %v4005_v23 = vsel %vm3973_vm15, -10.0, %v3813_v47  ;;  %v3783_v62 = vadd.f32 %v11295_v29, %v3745_v9  ;;  %v3715_v5 = vmul.f32 %v11261_v44, %v3642_v50  ;;  %vm3975_vm12 = vcmp.eq.s32.totalorder %v10835_v8, 1  ;;  %vm1417_vm5 = vmor %vm11616_vm9, %vm13374_vm13  ;;  %v13546_v47 = vld [vmem:[#allocation38_spill] sm:$0xff] }
 0x374   : > { %2810 = vperm.xlu1 %8590, %v2759_v7   ;;  %v4485_v57 = vpack.c.bf16 %v4005_v23, %v4004_v19  ;;  %v4006_v21 = vsel %vm3974_vm14, -10.0, %v3814_v13  ;;  %v3554_v14 = vmul.f32 %v11277_v2, %v11094_v45  ;;  %v3553_v54 = vmul.f32 %v11277_v2, %v11264_v16 }
 0x375   : > { %v3815_v24 = vmax.f32 %v3783_v62, 0.0  ;;  %v3747_v52 = vadd.f32 %v3715_v5, %v3551_v3  ;;  %v11623_v60 = vpop.permute.xlu1 %3932  ;;  %vm3976_vm6 = vcmp.eq.s32.totalorder %v11335_v59, 1  ;;  %v3816_v8 = vmax.f32 %v3784_v32, 0.0 }
 0x376   : > { %8171 = vmatmul.mubr.msk.bf16.gmra.mrb[20].mxu0 %vm4320_vm10, %v4485_v57  ;;  %v3650_v51 = vpop.permute.xlu0 %3649  ;;  %v3786_v56 = vadd.f32 %v11295_v29, %v3748_v17  ;;  %v1222_v16 = vsel %vm1190_vm8, 1, %v13345_v55  ;;  %v3750_v42 = vadd.f32 %v3718_v36, %v3554_v14  ;;  %vm1191_vm11 = vcmp.ne.s32.totalorder %v11595_v25, 0 }
 0x377   : > { %v4007_v38 = vsel %vm3975_vm12, -10.0, %v3815_v24  ;;  %v3785_v48 = vadd.f32 %v11295_v29, %v3747_v52  ;;  %8255 = vmatmul.mubr.msk.bf16.gmra.mrb[24].mxu1 %vm4320_vm10, %v4485_v57  ;;  %v3717_v34 = vmul.f32 %v11261_v44, %v3650_v51  ;;  %v4008_v40 = vsel %vm3976_vm6, -10.0, %v3816_v8  ;;  %v13549_v24 = vld [vmem:[#allocation67_spill] sm:$0xff] }
 0x378   : > { %8591 = vset.pattern.permute.xlu1 %v13350_v22  ;;  %v4486_v45 = vpack.c.bf16 %v4007_v38, %v4006_v21  ;;  %vm3977_vm0 = vcmp.eq.s32.totalorder %v13544_v18, 1  ;;  %v3555_v58 = vmul.f32 %v11277_v2, %v13545_v11  ;;  %vm3978_vm2 = vcmp.eq.s32.totalorder %v11475_v30, 1 }
 0x379   : > { %v3817_v10 = vmax.f32 %v3785_v48, 0.0  ;;  %v3749_v28 = vadd.f32 %v3717_v34, %v3553_v54  ;;  %2537 = vperm.xlu1 %8591, %v13543_v39   ;;  %v11641_v0 = vpop.permute.xlu1 %3505  ;;  %v3720_v6 = vmul.f32 %v11261_v44, %v11562_v46  ;;  %v3818_v1 = vmax.f32 %v3786_v56, 0.0  ;;  %v13552_v54 = vld [vmem:[#allocation36_spill] sm:$0xff] }
 0x37a   : > { %8174 = vmatprep.mubr.msk.bf16.mxu0 %vm4320_vm10, %v4486_v45  ;;  %8258 = vmatprep.mubr.msk.bf16.mxu1 %vm4320_vm10, %v4486_v45  ;;  %v3658_v26 = vpop.permute.xlu0 %3657  ;;  %v2761_v41 = vsel %vm1417_vm5, 1, %v13345_v55  ;;  %v1293_v4 = vrot.slane %v1222_v16, %v9725_v27  ;;  %v3556_v9 = vmul.f32 %v11277_v2, %v13546_v47  ;;  %v3788_v7 = vadd.f32 %v11295_v29, %v3750_v42 }
 0x37b   : > { %v4009_v33 = vsel %vm3977_vm0, -10.0, %v3817_v10  ;;  %v3787_v43 = vadd.f32 %v11295_v29, %v3749_v28  ;;  %v3719_v59 = vmul.f32 %v11261_v44, %v3658_v26  ;;  %v4010_v46 = vsel %vm3978_vm2, -10.0, %v3818_v1 }
 0x37c   : > { %v4487_v20 = vpack.c.bf16 %v4009_v33, %v4008_v40  ;;  %vm3979_vm8 = vcmp.eq.s32.totalorder %v11507_v15, 1  ;;  %v3557_v35 = vmul.f32 %v11277_v2, %v11529_v12  ;;  %v1223_v19 = vsel %vm1191_vm11, 1, %v13345_v55  ;;  %v13553_v33 = vld [vmem:[#allocation76_spill] sm:$0xff]  ;;  %v13558_v12 = vld [vmem:[#allocation34_spill] sm:$0xff] }
 0x37d   : > { %v3819_v53 = vmax.f32 %v3787_v43, 0.0  ;;  %v3751_v13 = vadd.f32 %v3719_v59, %v3555_v58  ;;  %8592 = vset.pattern.permute.xlu1 %v13345_v55  ;;  %v3752_v23 = vadd.f32 %v3720_v6, %v3556_v9  ;;  %vm3980_vm3 = vcmp.eq.s32.totalorder %v11598_v37, 1 }
 0x37e   : > { %2816 = vperm.xlu1 %8592, %v2761_v41   ;;  %v3670_v3 = vpop.permute.xlu1 %3669  ;;  %8175 = vmatmul.mubr.msk.bf16.gmra.mrb[24].mxu0 %vm4320_vm10, %v4487_v20  ;;  %v3666_v50 = vpop.permute.xlu0 %3665  ;;  %vm11679_vm4 = vcmp.eq.s32.totalorder %v1293_v4, 1  ;;  %v1079_v17 = vcombine.high %v11595_v25, %v11595_v25  ;;  %v3820_v32 = vmax.f32 %v3788_v7, 0.0  ;;  %v1297_v31 = vrot.slane %v1223_v19, %v9725_v27  ;;  %v13554_v4 = vld [vmem:[#allocation51_spill] sm:$0xff] }
 0x37f   : > { %v4011_v62 = vsel %vm3979_vm8, -10.0, %v3819_v53  ;;  %v3789_v5 = vadd.f32 %v11295_v29, %v3751_v13  ;;  %8259 = vmatmul.mubr.msk.bf16.gmra.mrb[28].mxu1 %vm4320_vm10, %v4487_v20  ;;  %v3721_v30 = vmul.f32 %v11261_v44, %v3666_v50  ;;  %vm3981_vm15 = vcmp.eq.s32.totalorder %v11623_v60, 1  ;;  %vm1418_vm9 = vmor %vm11679_vm4, %vm13374_vm13  ;;  %v1894_v50 = vld [vmem:[#allocation2] sm:$0x3] }
 0x380   : > { %v4488_v15 = vpack.c.bf16 %v4011_v62, %v4010_v46  ;;  %v4012_v37 = vsel %vm3980_vm3, -10.0, %v3820_v32  ;;  %v3790_v25 = vadd.f32 %v11295_v29, %v3752_v23  ;;  %vm11697_vm14 = vcmp.eq.s32.totalorder %v1297_v31, 1 }
 0x381   : > { %v3821_v57 = vmax.f32 %v3789_v5, 0.0  ;;  %v3753_v63 = vadd.f32 %v3721_v30, %v3557_v35  ;;  %vm1193_vm12 = vcmp.ne.s32.totalorder %v1079_v17, 0  ;;  %v1087_v51 = vrot.slane %v13552_v54, %v9673_v61  ;;  %vm1419_vm11 = vmor %vm11697_vm14, %vm13374_vm13  ;;  %v13557_v5 = vld [vmem:[#allocation63_spill] sm:$0xff] }
 0x382   : > { %8593 = vset.pattern.permute.xlu1 %v13350_v22  ;;  %8178 = vmatprep.mubr.msk.bf16.mxu0 %vm4320_vm10, %v4488_v15  ;;  %v3822_v38 = vmax.f32 %v3790_v25, 0.0  ;;  %v2762_v8 = vsel %vm1418_vm9, 1, %v13345_v55  ;;  %v1225_v56 = vsel %vm1193_vm12, 1, %v13345_v55  ;;  %v3674_v10 = vpop.permute.xlu0 %3673  ;;  %v2763_v18 = vsel %vm1419_vm11, 1, %v13345_v55 }
 0x383   : > { %v4013_v36 = vsel %vm3981_vm15, -10.0, %v3821_v57  ;;  %8262 = vmatprep.mubr.msk.bf16.mxu1 %vm4320_vm10, %v4488_v15  ;;  %2541 = vperm.xlu1 %8593, %v13549_v24   ;;  %v3936_v52 = vpop.permute.xlu1 %3935  ;;  %v3791_v21 = vadd.f32 %v11295_v29, %v3753_v63  ;;  %v1095_v42 = vcombine.high %v1087_v51, %v1087_v51  ;;  %v1103_v39 = vrot.slane %v1087_v51, %v9673_v61  ;;  %v13562_v24 = vld [vmem:[#allocation40_spill] sm:$0xff] }
 0x384   : > { %v4489_v14 = vpack.c.bf16 %v4013_v36, %v4012_v37  ;;  %vm3982_vm6 = vcmp.eq.s32.totalorder %v3936_v52, 1  ;;  %v1305_v11 = vrot.slane %v1225_v56, %v9725_v27  ;;  %v3722_v58 = vmul.f32 %v11261_v44, %v3670_v3 }
 0x385   : > { %v3823_v34 = vmax.f32 %v3791_v21, 0.0  ;;  %v4014_v45 = vsel %vm3982_vm6, -10.0, %v3822_v38  ;;  %v3723_v26 = vmul.f32 %v11261_v44, %v3674_v10  ;;  %v1117_v6 = vrot.slane %v1095_v42, %v9673_v61 }
 0x386   : > { %8179 = vmatmul.mubr.msk.bf16.gmra.mrb[28].mxu0 %vm4320_vm10, %v4489_v14  ;;  %v3558_v43 = vmul.f32 %v11277_v2, %v13553_v33  ;;  %v3559_v59 = vmul.f32 %v11277_v2, %v11641_v0  ;;  %vm1385_vm0 = vcmp.eq.s32.totalorder %v1305_v11, 1  ;;  %vm1194_vm2 = vcmp.ne.s32.totalorder %v1103_v39, 0  ;;  %v3682_v57 = vpop.permute.xlu0 %3681 }
 0x387   : > { %8263 = vmatmul.mubr.msk.bf16.gmra.mrb[32].mxu1 %vm4320_vm10, %v4489_v14  ;;  %8594 = vset.pattern.permute.xlu1 %v13345_v55  ;;  %v3939_v48 = vpop.permute.xlu1 %3938  ;;  %vm1421_vm8 = vmor %vm1385_vm0, %vm13374_vm13  ;;  %v1226_v47 = vsel %vm1194_vm2, 1, %v13345_v55  ;;  %vm1195_vm3 = vcmp.ne.s32.totalorder %v1117_v6, 0  ;;  %v1125_v30 = vcombine.high %v1103_v39, %v1103_v39  ;;  %vm13559_vm9 = vnez %v13558_v12  ;;  %v13564_v39 = vld [vmem:[#allocation77_spill] sm:$0xff] }
 0x388   : > { %vm3983_vm5 = vcmp.eq.s32.totalorder %v3939_v48, 1  ;;  %2819 = vperm.xlu1 %8594, %v2762_v8   ;;  %v3754_v41 = vadd.f32 %v3722_v58, %v3558_v43  ;;  %v3755_v20 = vadd.f32 %v3723_v26, %v3559_v59  ;;  %v2765_v7 = vsel %vm1421_vm8, 1, %v13345_v55 }
 0x389   : > { %v4015_v16 = vsel %vm3983_vm5, -10.0, %v3823_v34  ;;  %v1309_v13 = vrot.slane %v1226_v47, %v9725_v27  ;;  %v1227_v46 = vsel %vm1195_vm3, 1, %v13345_v55  ;;  %vm1196_vm5 = vcmp.ne.s32.totalorder %v1125_v30, 0  ;;  %v13572_v30 = vld [vmem:[#allocation50_spill] sm:$0xff] }
 0x38a   : > { %v4490_v28 = vpack.c.bf16 %v4015_v16, %v4014_v45  ;;  %v3792_v0 = vadd.f32 %v11295_v29, %v3754_v41  ;;  %v3793_v53 = vadd.f32 %v11295_v29, %v3755_v20  ;;  %v1313_v19 = vrot.slane %v1227_v46, %v9725_v27  ;;  %v3690_v10 = vpop.permute.xlu0 %3689  ;;  %v13567_v20 = vld [vmem:[#allocation93_spill] sm:$0xff] }
 0x38b   : > { %v3516_v40 = vpop.permute.xlu1 %3515  ;;  %vm11735_vm13 = vcmp.eq.s32.totalorder %v1309_v13, 1  ;;  %v1127_v36 = vcombine.high %v1117_v6, %v1117_v6  ;;  %v3560_v52 = vmul.f32 %v11277_v2, %v13562_v24  ;;  %v3725_v25 = vmul.f32 %v11261_v44, %v3682_v57  ;;  %v13570_v13 = vld [vmem:[#allocation52_spill] sm:$0xff] }
 0x38c   : > { %2822 = vperm.xlu1 %8594, %v2763_v18   ;;  %8182 = vmatprep.mubr.msk.bf16.mxu0 %vm4320_vm10, %v4490_v28  ;;  %v3824_v49 = vmax.f32 %v3792_v0, 0.0  ;;  %v3825_v3 = vmax.f32 %v3793_v53, 0.0  ;;  %vm1422_vm14 = vmor %vm11735_vm13, %vm13559_vm9  ;;  %vm11746_vm12 = vcmp.eq.s32.totalorder %v1313_v19, 1  ;;  %v3561_v63 = vmul.f32 %v11277_v2, %v3516_v40  ;;  %v13571_v19 = vld [vmem:[#allocation37_spill] sm:$0xff] }
 0x38d   : > { %8266 = vmatprep.mubr.msk.bf16.mxu1 %vm4320_vm10, %v4490_v28  ;;  %v2766_v37 = vsel %vm1422_vm14, 1, %v13345_v55  ;;  %vm1423_vm6 = vmor %vm11746_vm12, %vm13559_vm9  ;;  %v1228_v38 = vsel %vm1196_vm5, 1, %v13345_v55  ;;  %vm1197_vm11 = vcmp.ne.s32.totalorder %v1127_v36, 0  ;;  %v1080_v48 = vcombine.high %v13552_v54, %v13552_v54  ;;  %v13563_v28 = vld [vmem:[#allocation59_spill] sm:$0xff] }
 0x38e   : > { %v3757_v14 = vadd.f32 %v3725_v25, %v3561_v63  ;;  %v2767_v51 = vsel %vm1423_vm6, 1, %v13345_v55  ;;  %v1317_v34 = vrot.slane %v1228_v38, %v9725_v27  ;;  %v1229_v42 = vsel %vm1197_vm11, 1, %v13345_v55  ;;  %v2486_v63 = vpop.permute.xlu0 %2485 }
 0x38f   : > { %v3562_v40 = vmul.f32 %v11277_v2, %v13564_v39  ;;  %v1094_v54 = vrot.slane %v1080_v48, %v9673_v61  ;;  %v1321_v58 = vrot.slane %v1229_v42, %v9725_v27  ;;  %v3727_v26 = vmul.f32 %v11261_v44, %v3690_v10  ;;  %v13577_v10 = vld [vmem:[#allocation96_spill] sm:$0xff] }
 0x390   : > { %8595 = vset.pattern.permute.xlu1 %v13350_v22  ;;  %v3678_v1 = vpop.permute.xlu1 %3677  ;;  %v3795_v16 = vadd.f32 %v11295_v29, %v3757_v14  ;;  %vm11777_vm2 = vcmp.eq.s32.totalorder %v1317_v34, 1  ;;  %v11818_v36 = vrot.slane %v1894_v50, %v9725_v27  ;;  %v13575_v14 = vld [vmem:[#allocation46_spill] sm:$0xff] }
 0x391   : > { %2553 = vperm.xlu1 %8595, %v13554_v4   ;;  %v3724_v31 = vmul.f32 %v11261_v44, %v3678_v1  ;;  %v1096_v4 = vcombine.high %v1094_v54, %v1094_v54  ;;  %v11786_v47 = vrot.slane %v1094_v54, %v9673_v61  ;;  %vm1424_vm3 = vmor %vm11777_vm2, %vm13559_vm9  ;;  %vm3988_vm14 = vcmp.eq.s32.totalorder %v13575_v14, 1 }
 0x392   : > { %v3827_v59 = vmax.f32 %v3795_v16, 0.0  ;;  %v13576_v16 = vld [vmem:[#allocation95_spill] sm:$0xff] }
 0x393   : > { %v3756_v60 = vadd.f32 %v3724_v31, %v3560_v52  ;;  %v13574_v31 = vld [vmem:[#allocation39_spill] sm:$0xff]  ;;  %v2452_v42 = vmul.f32 %v11818_v36, %v13576_v16 }
 0x395   : > { %8596 = vset.pattern.permute.xlu1 %v13345_v55  ;;  %v3942_v9 = vpop.permute.xlu1 %3941  ;;  %v3794_v45 = vadd.f32 %v11295_v29, %v3756_v60 }
 0x396   : > { %2828 = vperm.xlu1 %8596, %v2765_v7   ;;  %vm3984_vm4 = vcmp.eq.s32.totalorder %v3942_v9, 1 }
 0x397   : > { %v4016_v23 = vsel %vm3984_vm4, -10.0, %v3824_v49  ;;  %v3826_v33 = vmax.f32 %v3794_v45, 0.0  ;;  %vm11793_vm4 = vcmp.eq.s32.totalorder %v1321_v58, 1  ;;  %v2768_v49 = vsel %vm1424_vm3, 1, %v13345_v55 }
 0x398   : > { %vm1425_vm13 = vmor %vm11793_vm4, %vm13559_vm9 }
 0x399   : > { %v3945_v35 = vpop.permute.xlu1 %3944  ;;  %v2769_v25 = vsel %vm1425_vm13, 1, %v13345_v55 }
 0x39a   : > { %vm3985_vm15 = vcmp.eq.s32.totalorder %v3945_v35, 1  ;;  %8597 = vset.pattern.permute.xlu1 %v13350_v22 }
 0x39b   : > { %v4017_v62 = vsel %vm3985_vm15, -10.0, %v3825_v3  ;;  %2557 = vperm.xlu1 %8597, %v13557_v5   ;;  %vm1198_vm15 = vcmp.ne.s32.totalorder %v11786_v47, 0  ;;  %v11810_v5 = vrot.slane %v1096_v4, %v9673_v61 }
 0x39c   : > { %v4491_v15 = vpack.c.bf16 %v4017_v62, %v4016_v23 }
 0x39d   : > { %v3526_v17 = vpop.permute.xlu1 %3525  ;;  %vm1199_vm6 = vcmp.ne.s32.totalorder %v11810_v5, 0 }
 0x39e   : > { %8183 = vmatmul.mubr.msk.bf16.gmra.mrb[32].mxu0 %vm4320_vm10, %v4491_v15  ;;  %8267 = vmatmul.mubr.msk.bf16.gmra.mrb[36].mxu1 %vm4320_vm10, %v4491_v15  ;;  %v3563_v18 = vmul.f32 %v11277_v2, %v3526_v17  ;;  %v11813_v15 = vrot.slane %v1894_v50, %v13572_v30  ;;  %v1231_v58 = vsel %vm1199_vm6, 1, %v13345_v55 }
 0x39f   : > { %8598 = vset.pattern.permute.xlu1 %v13345_v55  ;;  %v1329_v4 = vrot.slane %v1231_v58, %v9725_v27  ;;  %v13587_v58 = vld [vmem:[#allocation55_spill] sm:$0xff] }
 0x3a0   : > { %2831 = vperm.xlu1 %8598, %v2766_v37   ;;  %v3759_v1 = vadd.f32 %v3727_v26, %v3563_v18  ;;  %v2616_v60 = vmul.f32 %v11813_v15, %v2486_v63  ;;  %v13578_v18 = vld [vmem:[#allocation71_spill] sm:$0xff]  ;;  %v11840_v26 = vld [vmem:[#allocation5] ss:$0 sm:$0xff]  ;;  %v1128_v63 = vcombine.high %v11810_v5, %v11810_v5 }
 0x3a2   : > { %v3686_v21 = vpop.permute.xlu1 %3685  ;;  %v3797_v3 = vadd.f32 %v11295_v29, %v3759_v1  ;;  %vm1201_vm13 = vcmp.ne.s32.totalorder %v1128_v63, 0 }
 0x3a3   : > { %v3726_v8 = vmul.f32 %v11261_v44, %v3686_v21  ;;  %v1230_v21 = vsel %vm1198_vm15, 1, %v13345_v55  ;;  %vm2880_vm15 = vcmp.eq.s32.totalorder %v13587_v58, 1 }
 0x3a4   : > { %2834 = vperm.xlu1 %8598, %v2767_v51   ;;  %v3829_v52 = vmax.f32 %v3797_v3, 0.0  ;;  %v1325_v45 = vrot.slane %v1230_v21, %v9725_v27 }
 0x3a5   : > { %v3758_v6 = vadd.f32 %v3726_v8, %v3562_v40 }
 0x3a6   : > { %vm11846_vm5 = vcmp.eq.s32.totalorder %v1325_v45, 1 }
 0x3a7   : > { %v3948_v56 = vpop.permute.xlu1 %3947  ;;  %v3796_v44 = vadd.f32 %v11295_v29, %v3758_v6  ;;  %v13573_v29 = vld [vmem:[#allocation75_spill] sm:$0xff]  ;;  %v2648_v6 = vadd.f32 %v2616_v60, %v2452_v42  ;;  %vm1426_vm11 = vmor %vm11846_vm5, %vm13559_vm9 }
 0x3a8   : > { %2395 = vperm.xlu1 %8598, %v13563_v28   ;;  %vm3986_vm0 = vcmp.eq.s32.totalorder %v3948_v56, 1  ;;  %v11826_v56 = vld [vmem:[#allocation11] ss:$0 sm:$0xff]  ;;  %v2453_v28 = vmul.f32 %v11818_v36, %v13577_v10 }
 0x3a9   : > { %v4018_v2 = vsel %vm3986_vm0, -10.0, %v3826_v33  ;;  %v3828_v17 = vmax.f32 %v3796_v44, 0.0  ;;  %vm11870_vm0 = vcmp.eq.s32.totalorder %v1329_v4, 1  ;;  %v13590_v4 = vld [vmem:[#allocation33_spill] sm:$0xff] }
 0x3aa   : > { %vm1427_vm3 = vmor %vm11870_vm0, %vm13559_vm9 }
 0x3ab   : > { %v3951_v43 = vpop.permute.xlu1 %3950  ;;  %v4020_v38 = vsel %vm3988_vm14, -10.0, %v3828_v17  ;;  %v2771_v14 = vsel %vm1427_vm3, 1, %v13345_v55 }
 0x3ac   : > { %vm3987_vm8 = vcmp.eq.s32.totalorder %v3951_v43, 1  ;;  %8599 = vset.pattern.permute.xlu1 %v13350_v22 }
 0x3ad   : > { %v4019_v41 = vsel %vm3987_vm8, -10.0, %v3827_v59  ;;  %2565 = vperm.xlu1 %8599, %v13567_v20  }
 0x3ae   : > { %v4492_v9 = vpack.c.bf16 %v4019_v41, %v4018_v2 }
 0x3b0   : > { %v2490_v7 = vpop.permute.xlu1 %2489  ;;  %8186 = vmatprep.mubr.msk.bf16.mxu0 %vm4320_vm10, %v4492_v9  ;;  %8270 = vmatprep.mubr.msk.bf16.mxu1 %vm4320_vm10, %v4492_v9  ;;  %v8136_v53 = vpop.f32.mrb[0].mxu1 }
 0x3b1   : > { %8600 = vset.pattern.permute.xlu1 %v13345_v55  ;;  %v4370_v46 = vadd.f32 %v13570_v13, %v8136_v53  ;;  %v4293_v35 = vpop.f32.mrb[1].mxu1  ;;  %v2617_v51 = vmul.f32 %v11813_v15, %v2490_v7  ;;  %v2498_v9 = vpop.permute.xlu0 %2497  ;;  %v13581_v7 = vld [vmem:[#allocation94_spill] sm:$0xff]  ;;  %v2686_v13 = vadd.f32 %v11840_v26, %v2648_v6 }
 0x3b2   : > { %2837 = vperm.xlu1 %8600, %v2768_v49   ;;  %v4362_v23 = vadd.f32 %v13571_v19, %v4293_v35  ;;  %v8137_v62 = vpop.f32.mrb[2].mxu1  ;;  %v1126_v49 = vcombine.high %v11786_v47, %v11786_v47  ;;  %v13582_v35 = vld [vmem:[#allocation104_spill] sm:$0xff]  ;;  %v2619_v50 = vmul.f32 %v11813_v15, %v2498_v9  ;;  %v1136_v9 = vrot.slane %v13590_v4, %v9673_v61 }
 0x3b3   : > { %v4373_v32 = vadd.f32 %v13573_v29, %v8137_v62  ;;  %v4296_v57 = vpop.f32.mrb[3].mxu1  ;;  %v2649_v33 = vadd.f32 %v2617_v51, %v2453_v28  ;;  %v2454_v3 = vmul.f32 %v11818_v36, %v13582_v35  ;;  %v13585_v62 = vld [vmem:[#allocation106_spill] sm:$0xff]  ;;  %v1233_v28 = vsel %vm1201_vm13, 1, %v13345_v55 }
 0x3b4   : > { %v4365_v37 = vadd.f32 %v13574_v31, %v4296_v57  ;;  %v2455_v17 = vmul.f32 %v11818_v36, %v13585_v62  ;;  %vm1200_vm4 = vcmp.ne.s32.totalorder %v1126_v49, 0  ;;  %v13593_v49 = vld [vmem:[#allocation97_spill] sm:$0xff]  ;;  %v1152_v62 = vrot.slane %v1136_v9, %v9673_v61 }
 0x3b5   : > { %v3957_v24 = vpop.permute.xlu1 %3956  ;;  %v1232_v60 = vsel %vm1200_vm4, 1, %v13345_v55 }
 0x3b6   : > { %vm3989_vm12 = vcmp.eq.s32.totalorder %v3957_v24, 1  ;;  %2840 = vperm.xlu1 %8600, %v2769_v25   ;;  %v2651_v31 = vadd.f32 %v2619_v50, %v2455_v17  ;;  %v11884_v25 = vld [vmem:[#allocation14] ss:$0 sm:$0xff]  ;;  %v1333_v45 = vrot.slane %v1232_v60, %v9725_v27  ;;  %vm1202_vm0 = vcmp.ne.s32.totalorder %v1152_v62, 0 }
 0x3b7   : > { %v4021_v48 = vsel %vm3989_vm12, -10.0, %v3829_v52  ;;  %v1174_v4 = vcombine.high %v1152_v62, %v1152_v62  ;;  %v13604_v62 = vld [vmem:[#allocation98_spill] sm:$0xff] }
 0x3b8   : > { %v4493_v34 = vpack.c.bf16 %v4021_v48, %v4020_v38  ;;  %v8152_v8 = vpop.f32.mrb[4].mxu1  ;;  %vm11906_vm12 = vcmp.eq.s32.totalorder %v1333_v45, 1 }
 0x3b9   : > { %v4449_v39 = vadd.f32 %v8152_v8, %v4370_v46  ;;  %v4432_v40 = vpop.f32.mrb[5].mxu1  ;;  %v2687_v46 = vadd.f32 %v11840_v26, %v2649_v33  ;;  %v1337_v33 = vrot.slane %v1233_v28, %v9725_v27  ;;  %vm1428_vm6 = vmor %vm11906_vm12, %vm13559_vm9 }
 0x3ba   : > { %2405 = vperm.xlu1 %8600, %v13578_v18   ;;  %v2494_v54 = vpop.permute.xlu1 %2493  ;;  %8187 = vmatmul.mubr.msk.bf16.gmra.mrb[36].mxu0 %vm4320_vm10, %v4493_v34  ;;  %v11835_v11 = vadd.f32 %v4432_v40, %v4362_v23  ;;  %v8153_v59 = vpop.f32.mrb[6].mxu1  ;;  %v2770_v23 = vsel %vm1426_vm11, 1, %v13345_v55  ;;  %v13586_v40 = vld [vmem:[#allocation79_spill] sm:$0xff]  ;;  %v2772_v17 = vsel %vm1428_vm6, 1, %v13345_v55  ;;  %vm1204_vm6 = vcmp.ne.s32.totalorder %v1174_v4, 0  ;;  %v13612_v4 = vld [vmem:[#allocation69_spill] sm:$0xff] }
 0x3bb   : > { %v11843_v43 = vadd.f32 %v11826_v56, %v4449_v39  ;;  %8271 = vmatmul.mubr.msk.bf16.gmra.mrb[40].mxu1 %vm4320_vm10, %v4493_v34  ;;  %v4450_v1 = vadd.f32 %v8153_v59, %v4373_v32  ;;  %v4435_v2 = vpop.f32.mrb[7].mxu1  ;;  %v2618_v0 = vmul.f32 %v11813_v15, %v2494_v54  ;;  %v2718_v32 = vmax.f32 %v2686_v13, 0.0  ;;  %v2502_v39 = vpop.permute.xlu0 %2501  ;;  %v13592_v13 = vld [vmem:[#allocation108_spill] sm:$0xff] }
 0x3bc   : > { %v11850_v20 = vadd.f32 %v4435_v2, %v4365_v37  ;;  %v2719_v57 = vmax.f32 %v2687_v46, 0.0  ;;  %v2689_v34 = vadd.f32 %v11840_v26, %v2651_v31  ;;  %v2620_v59 = vmul.f32 %v11813_v15, %v2502_v39 }
 0x3bd   : > { %v11854_v44 = vadd.f32 %v11826_v56, %v4450_v1  ;;  %v2650_v29 = vadd.f32 %v2618_v0, %v2454_v3  ;;  %v2457_v46 = vmul.f32 %v11818_v36, %v13592_v13  ;;  %vm11927_vm5 = vcmp.eq.s32.totalorder %v1337_v33, 1  ;;  %v13603_v13 = vld [vmem:[#allocation41_spill] sm:$0xff] }
 0x3be   : > { %8601 = vset.pattern.permute.xlu1 %v13350_v22  ;;  %v2721_v54 = vmax.f32 %v2689_v34, 0.0  ;;  %vm1429_vm11 = vmor %vm11927_vm5, %vm13559_vm9 }
 0x3bf   : > { %2573 = vperm.xlu1 %8601, %v13581_v7   ;;  %v2784_v53 = vpop.permute.xlu1 %2783  ;;  %v2688_v21 = vadd.f32 %v11840_v26, %v2650_v29  ;;  %v13591_v7 = vld [vmem:[#allocation107_spill] sm:$0xff]  ;;  %v2514_v29 = vpop.permute.xlu0 %2513  ;;  %v2773_v12 = vsel %vm1429_vm11, 1, %v13345_v55 }
 0x3c0   : > { %vm2878_vm2 = vcmp.eq.s32.totalorder %v2784_v53, 1  ;;  %v2456_v53 = vmul.f32 %v11818_v36, %v13591_v7 }
 0x3c1   : > { %v2910_v37 = vsel %vm2878_vm2, -10.0, %v2718_v32  ;;  %v2720_v16 = vmax.f32 %v2688_v21, 0.0  ;;  %v1234_v21 = vsel %vm1202_vm0, 1, %v13345_v55 }
 0x3c2   : > { %v2652_v3 = vadd.f32 %v2620_v59, %v2456_v53  ;;  %v1341_v45 = vrot.slane %v1234_v21, %v9725_v27 }
 0x3c3   : > { %8602 = vset.pattern.permute.xlu1 %v13345_v55  ;;  %v2787_v47 = vpop.permute.xlu1 %2786  ;;  %v2912_v2 = vsel %vm2880_vm15, -10.0, %v2720_v16  ;;  %vm2884_vm15 = vcmp.eq.s32.totalorder %v13603_v13, 1 }
 0x3c4   : > { %vm2879_vm8 = vcmp.eq.s32.totalorder %v2787_v47, 1  ;;  %2843 = vperm.xlu1 %8602, %v2770_v23   ;;  %v1144_v23 = vcombine.high %v1136_v9, %v1136_v9  ;;  %vm1394_vm3 = vcmp.eq.s32.totalorder %v1341_v45, 1  ;;  %v2518_v9 = vpop.permute.xlu0 %2517 }
 0x3c5   : > { %v2911_v24 = vsel %vm2879_vm8, -10.0, %v2719_v57  ;;  %v2690_v57 = vadd.f32 %v11840_v26, %v2652_v3  ;;  %vm1430_vm4 = vmor %vm1394_vm3, %vm13503_vm7 }
 0x3c6   : > { %v4462_v52 = vpack.c.bf16 %v2911_v24, %v2910_v37  ;;  %v1166_v31 = vrot.slane %v1144_v23, %v9673_v61  ;;  %v13596_v37 = vld [vmem:[#allocation117_spill] sm:$0xff] }
 0x3c7   : > { %v2458_v24 = vmul.f32 %v11818_v36, %v13596_v37 }
 0x3c8   : > { %2846 = vperm.xlu1 %8602, %v2771_v14   ;;  %v2506_v51 = vpop.permute.xlu1 %2505  ;;  %8194 = vmatprep.mubr.msk.bf16.mxu0 %vm4320_vm10, %v4462_v52  ;;  %v8236_v38 = vpop.f32.mrb[8].mxu1  ;;  %vm1203_vm2 = vcmp.ne.s32.totalorder %v1166_v31, 0  ;;  %v13597_v14 = vld [vmem:[#allocation119_spill] sm:$0xff]  ;;  %v1176_v23 = vcombine.high %v1166_v31, %v1166_v31 }
 0x3c9   : > { %8278 = vmatprep.mubr.msk.bf16.mxu1 %vm4320_vm10, %v4462_v52  ;;  %v11892_v5 = vadd.f32 %v8236_v38, %v11884_v25  ;;  %v11894_v48 = vpop.f32.mrb[9].mxu1  ;;  %v2621_v1 = vmul.f32 %v11813_v15, %v2506_v51  ;;  %v2623_v52 = vmul.f32 %v11813_v15, %v2514_v29  ;;  %v2459_v60 = vmul.f32 %v11818_v36, %v13597_v14  ;;  %v13605_v29 = vld [vmem:[#allocation100_spill] sm:$0xff]  ;;  %v2530_v31 = vpop.permute.xlu0 %2529 }
 0x3ca   : > { %v8237_v8 = vpop.f32.mrb[10].mxu1  ;;  %v2722_v38 = vmax.f32 %v2690_v57, 0.0  ;;  %vm1205_vm5 = vcmp.ne.s32.totalorder %v1176_v23, 0  ;;  %v2627_v45 = vmul.f32 %v11813_v15, %v2530_v31 }
 0x3cb   : > { %v11899_v42 = vadd.f32 %v8237_v8, %v11884_v25  ;;  %v11901_v10 = vpop.f32.mrb[11].mxu1  ;;  %v2653_v50 = vadd.f32 %v2621_v1, %v2457_v46  ;;  %v2655_v16 = vadd.f32 %v2623_v52, %v2459_v60  ;;  %v2774_v46 = vsel %vm1430_vm4, 1, %v13345_v55 }
 0x3cc   : > { %2415 = vperm.xlu1 %8602, %v13586_v40  }
 0x3cd   : > { %v2793_v18 = vpop.permute.xlu1 %2792  ;;  %v2691_v63 = vadd.f32 %v11840_v26, %v2653_v50  ;;  %v2693_v33 = vadd.f32 %v11840_v26, %v2655_v16  ;;  %v8644_v16 = vld [vmem:[%s13051_s18 + $0x18] sm:$0xff]  }
 0x3ce   : > { %vm2881_vm14 = vcmp.eq.s32.totalorder %v2793_v18, 1  ;;  %v13598_v18 = vld [vmem:[#allocation80_spill] sm:$0xff] }
 0x3cf   : > { %v2913_v41 = vsel %vm2881_vm14, -10.0, %v2721_v54  ;;  %v2723_v8 = vmax.f32 %v2691_v63, 0.0  ;;  %v1235_v54 = vsel %vm1203_vm2, 1, %v13345_v55  ;;  %v2725_v7 = vmax.f32 %v2693_v33, 0.0 }
 0x3d0   : > { %v4463_v0 = vpack.c.bf16 %v2913_v41, %v2912_v2  ;;  %8603 = vset.pattern.permute.xlu1 %v13350_v22  ;;  %v1345_v59 = vrot.slane %v1235_v54, %v9725_v27  ;;  %v13599_v2 = vld [vmem:[#allocation99_spill] sm:$0xff] }
 0x3d1   : > { %2581 = vperm.xlu1 %8603, %v13593_v49   ;;  %v2624_v49 = vmul.f32 %v11813_v15, %v2518_v9  ;;  %v1145_v9 = vcombine.high %v13612_v4, %v13612_v4  ;;  %v8642_v41 = vld [vmem:[%s13051_s18 + $0x8] sm:$0xff]  }
 0x3d2   : > { %v2510_v35 = vpop.permute.xlu1 %2509  ;;  %8195 = vmatmul.mubr.msk.bf16.vlgmr.msra.gmra.mrb[8].mxu0 %vm4320_vm10, %v4463_v0  ;;  %8279 = vmatmul.mubr.msk.bf16.vlgmr.msra.gmra.mrb[12].mxu1 %vm4320_vm10, %v4463_v0  ;;  %vm11961_vm13 = vcmp.eq.s32.totalorder %v1345_v59, 1 }
 0x3d3   : > { %v2622_v32 = vmul.f32 %v11813_v15, %v2510_v35  ;;  %vm1431_vm12 = vmor %vm11961_vm13, %vm13503_vm7 }
 0x3d4   : > { %v2775_v37 = vsel %vm1431_vm12, 1, %v13345_v55 }
 0x3d5   : > { %8604 = vset.pattern.permute.xlu1 %v13345_v55  ;;  %v2654_v51 = vadd.f32 %v2622_v32, %v2458_v24  ;;  %v2461_v32 = vmul.f32 %v11818_v36, %v13605_v29  ;;  %v1236_v24 = vsel %vm1204_vm6, 1, %v13345_v55 }
 0x3d6   : > { %2849 = vperm.xlu1 %8604, %v2772_v17   ;;  %v2460_v17 = vmul.f32 %v11818_v36, %v13604_v62  ;;  %v1349_v52 = vrot.slane %v1236_v24, %v9725_v27 }
 0x3d7   : > { %v2796_v47 = vpop.permute.xlu1 %2795  ;;  %v2692_v58 = vadd.f32 %v11840_v26, %v2654_v51  ;;  %v1237_v51 = vsel %vm1205_vm5, 1, %v13345_v55 }
 0x3d8   : > { %vm2882_vm9 = vcmp.eq.s32.totalorder %v2796_v47, 1  ;;  %v2656_v57 = vadd.f32 %v2624_v49, %v2460_v17  ;;  %vm11991_vm0 = vcmp.eq.s32.totalorder %v1349_v52, 1 }
 0x3d9   : > { %v2914_v28 = vsel %vm2882_vm9, -10.0, %v2722_v38  ;;  %v2724_v1 = vmax.f32 %v2692_v58, 0.0  ;;  %v13606_v38 = vld [vmem:[#allocation81_spill] sm:$0xff]  ;;  %vm1432_vm2 = vmor %vm11991_vm0, %vm13503_vm7 }
 0x3da   : > { %2852 = vperm.xlu1 %8604, %v2773_v12   ;;  %v2694_v14 = vadd.f32 %v11840_v26, %v2656_v57 }
 0x3db   : > { %v2799_v34 = vpop.permute.xlu1 %2798  ;;  %v2916_v3 = vsel %vm2884_vm15, -10.0, %v2724_v1 }
 0x3dc   : > { %vm2883_vm8 = vcmp.eq.s32.totalorder %v2799_v34, 1  ;;  %v13607_v34 = vld [vmem:[#allocation109_spill] sm:$0xff]  ;;  %v2726_v54 = vmax.f32 %v2694_v14, 0.0  ;;  %v13618_v14 = vld [vmem:[#allocation112_spill] sm:$0xff] }
 0x3dd   : > { %v2915_v39 = vsel %vm2883_vm8, -10.0, %v2723_v8  ;;  %v2462_v8 = vmul.f32 %v11818_v36, %v13607_v34 }
 0x3de   : > { %v4464_v40 = vpack.c.bf16 %v2915_v39, %v2914_v28  ;;  %2425 = vperm.xlu1 %8604, %v13598_v18   ;;  %v1353_v28 = vrot.slane %v1237_v51, %v9725_v27  ;;  %v13610_v39 = vld [vmem:[#allocation110_spill] sm:$0xff] }
 0x3df   : > { %v13619_v51 = vld [vmem:[#allocation82_spill] sm:$0xff] }
 0x3e0   : > { %v2522_v6 = vpop.permute.xlu1 %2521  ;;  %8198 = vmatprep.mubr.msk.bf16.mxu0 %vm4320_vm10, %v4464_v40  ;;  %8282 = vmatprep.mubr.msk.bf16.mxu1 %vm4320_vm10, %v4464_v40  ;;  %v2463_v40 = vmul.f32 %v11818_v36, %v13610_v39  ;;  %vm12007_vm8 = vcmp.eq.s32.totalorder %v1353_v28, 1 }
 0x3e1   : > { %v2625_v35 = vmul.f32 %v11813_v15, %v2522_v6  ;;  %vm1433_vm3 = vmor %vm12007_vm8, %vm13503_vm7 }
 0x3e2   : > { %8605 = vset.pattern.permute.xlu1 %v13350_v22  ;;  %v2659_v33 = vadd.f32 %v2627_v45, %v2463_v40  ;;  %v2777_v17 = vsel %vm1433_vm3, 1, %v13345_v55 }
 0x3e3   : > { %2589 = vperm.xlu1 %8605, %v13599_v2   ;;  %v2657_v63 = vadd.f32 %v2625_v35, %v2461_v32  ;;  %v13611_v2 = vld [vmem:[#allocation102_spill] sm:$0xff]  ;;  %v13615_v35 = vld [vmem:[#allocation60_spill] sm:$0xff] }
 0x3e4   : > { %v2697_v49 = vadd.f32 %v11840_v26, %v2659_v33  ;;  %vm1206_vm4 = vcmp.ne.s32.totalorder %v13615_v35, 0  ;;  %v13616_v32 = vld [vmem:[#allocation56_spill] sm:$0xff] }
 0x3e5   : > { %v2805_v0 = vpop.permute.xlu1 %2804  ;;  %v2695_v60 = vadd.f32 %v11840_v26, %v2657_v63  ;;  %v1238_v29 = vsel %vm1206_vm4, 1, %v13345_v55  ;;  %vm2888_vm13 = vcmp.eq.s32.totalorder %v13616_v32, 1  ;;  %v8641_v32 = vld [vmem:[%s13051_s18] sm:$0xff]  }
 0x3e6   : > { %vm2885_vm14 = vcmp.eq.s32.totalorder %v2805_v0, 1  ;;  %v2729_v62 = vmax.f32 %v2697_v49, 0.0  ;;  %v1357_v52 = vrot.slane %v1238_v29, %v9725_v27  ;;  %8310 = vmatprep.subr.bf16.mxu0 %v8641_v32 }
 0x3e7   : > { %v2917_v50 = vsel %vm2885_vm14, -10.0, %v2725_v7  ;;  %8606 = vset.pattern.permute.xlu1 %v13345_v55  ;;  %v2727_v6 = vmax.f32 %v2695_v60, 0.0  ;;  %v2465_v60 = vmul.f32 %v11818_v36, %v13618_v14  ;;  %8311 = vmatpush3.bf16.msra.mxu0 %v8641_v32 }
 0x3e8   : > { %v4465_v19 = vpack.c.bf16 %v2917_v50, %v2916_v3  ;;  %2855 = vperm.xlu1 %8606, %v2774_v46   ;;  %v2776_v46 = vsel %vm1432_vm2, 1, %v13345_v55  ;;  %v1173_v3 = vrot.slane %v1145_v9, %v9673_v61  ;;  %vm12036_vm6 = vcmp.eq.s32.totalorder %v1357_v52, 1  ;;  %8312 = vmatprep.subr.bf16.mxu0 %v8642_v41 }
 0x3e9   : > { %vm1434_vm5 = vmor %vm12036_vm6, %vm13503_vm7 }
 0x3ea   : > { %v2526_v47 = vpop.permute.xlu1 %2525  ;;  %8199 = vmatmul.mubr.msk.bf16.gmra.mrb[12].mxu0 %vm4320_vm10, %v4465_v19  ;;  %8283 = vmatmul.mubr.msk.bf16.gmra.mrb[16].mxu1 %vm4320_vm10, %v4465_v19  ;;  %v2534_v19 = vpop.permute.xlu0 %2533  ;;  %vm1207_vm14 = vcmp.ne.s32.totalorder %v1173_v3, 0  ;;  %v2778_v9 = vsel %vm1434_vm5, 1, %v13345_v55 }
 0x3eb   : > { %v2626_v12 = vmul.f32 %v11813_v15, %v2526_v47  ;;  %v1177_v47 = vcombine.high %v1173_v3, %v1173_v3  ;;  %v2628_v57 = vmul.f32 %v11813_v15, %v2534_v19  ;;  %v1239_v34 = vsel %vm1207_vm14, 1, %v13345_v55  ;;  %8313 = vmatpush3.bf16.msra.mxu0 %v8642_v41  ;;  %v13632_v41 = vld [vmem:[#allocation48_spill] sm:$0xff] }
 0x3ec   : > { %2858 = vperm.xlu1 %8606, %v2775_v37   ;;  %v1361_v28 = vrot.slane %v1239_v34, %v9725_v27  ;;  %v13629_v34 = vld [vmem:[#allocation103_spill] sm:$0xff] }
 0x3ed   : > { %v2658_v18 = vadd.f32 %v2626_v12, %v2462_v8  ;;  %v13617_v12 = vld [vmem:[#allocation111_spill] sm:$0xff]  ;;  %vm1209_vm12 = vcmp.ne.s32.totalorder %v1177_v47, 0 }
 0x3ee   : > { %v2546_v39 = vpop.permute.xlu0 %2545  ;;  %v1241_v40 = vsel %vm1209_vm12, 1, %v13345_v55 }
 0x3ef   : > { %v2808_v21 = vpop.permute.xlu1 %2807  ;;  %v2696_v7 = vadd.f32 %v11840_v26, %v2658_v18  ;;  %v1369_v4 = vrot.slane %v1241_v40, %v9725_v27 }
 0x3f0   : > { %2435 = vperm.xlu1 %8606, %v13606_v38   ;;  %vm2886_vm11 = vcmp.eq.s32.totalorder %v2808_v21, 1  ;;  %v2464_v21 = vmul.f32 %v11818_v36, %v13617_v12 }
 0x3f1   : > { %v2918_v59 = vsel %vm2886_vm11, -10.0, %v2726_v54  ;;  %v2728_v50 = vmax.f32 %v2696_v7, 0.0  ;;  %v13622_v54 = vld [vmem:[#allocation105_spill] sm:$0xff]  ;;  %vm12054_vm11 = vcmp.eq.s32.totalorder %v1361_v28, 1  ;;  %vm1401_vm8 = vcmp.eq.s32.totalorder %v1369_v4, 1 }
 0x3f2   : > { %v2660_v8 = vadd.f32 %v2628_v57, %v2464_v21  ;;  %vm1435_vm2 = vmor %vm12054_vm11, %vm13503_vm7 }
 0x3f3   : > { %v2811_v58 = vpop.permute.xlu1 %2810  ;;  %v2920_v37 = vsel %vm2888_vm13, -10.0, %v2728_v50  ;;  %vm1437_vm3 = vmor %vm1401_vm8, %vm13503_vm7 }
 0x3f4   : > { %vm2887_vm9 = vcmp.eq.s32.totalorder %v2811_v58, 1  ;;  %8607 = vset.pattern.permute.xlu1 %v13350_v22  ;;  %v2781_v57 = vsel %vm1437_vm3, 1, %v13345_v55 }
 0x3f5   : > { %v2919_v1 = vsel %vm2887_vm9, -10.0, %v2727_v6  ;;  %2597 = vperm.xlu1 %8607, %v13611_v2   ;;  %v2698_v6 = vadd.f32 %v11840_v26, %v2660_v8  ;;  %v2469_v8 = vmul.f32 %v11818_v36, %v13629_v34 }
 0x3f6   : > { %v4466_v0 = vpack.c.bf16 %v2919_v1, %v2918_v59  ;;  %v13623_v59 = vld [vmem:[#allocation118_spill] sm:$0xff] }
 0x3f7   : > { %v2466_v1 = vmul.f32 %v11818_v36, %v13623_v59 }
 0x3f8   : > { %v2538_v13 = vpop.permute.xlu1 %2537  ;;  %8202 = vmatprep.mubr.msk.bf16.mxu0 %vm4320_vm10, %v4466_v0  ;;  %8286 = vmatprep.mubr.msk.bf16.mxu1 %vm4320_vm10, %v4466_v0  ;;  %v13626_v0 = vld [vmem:[#allocation53_spill] sm:$0xff] }
 0x3f9   : > { %8608 = vset.pattern.permute.xlu1 %v13345_v55  ;;  %v2629_v63 = vmul.f32 %v11813_v15, %v2538_v13  ;;  %v2467_v7 = vmul.f32 %v11818_v36, %v13626_v0  ;;  %v2730_v13 = vmax.f32 %v2698_v6, 0.0 }
 0x3fa   : > { %2861 = vperm.xlu1 %8608, %v2776_v46  }
 0x3fb   : > { %v2661_v45 = vadd.f32 %v2629_v63, %v2465_v60  ;;  %v2550_v63 = vpop.permute.xlu0 %2549  ;;  %v8643_v60 = vld [vmem:[%s13051_s18 + $0x10] sm:$0xff]  }
 0x3fc   : > { %v2632_v52 = vmul.f32 %v11813_v15, %v2550_v63  ;;  %8314 = vmatprep.subr.bf16.mxu0 %v8643_v60 }
 0x3fd   : > { %v2817_v23 = vpop.permute.xlu1 %2816  ;;  %v2699_v33 = vadd.f32 %v11840_v26, %v2661_v45  ;;  %8315 = vmatpush3.bf16.msra.mxu0 %v8643_v60 }
 0x3fe   : > { %vm2889_vm15 = vcmp.eq.s32.totalorder %v2817_v23, 1  ;;  %2864 = vperm.xlu1 %8608, %v2777_v17   ;;  %8316 = vmatprep.subr.bf16.mxu0 %v8644_v16 }
 0x3ff   : > { %v2921_v24 = vsel %vm2889_vm15, -10.0, %v2729_v62  ;;  %v2731_v49 = vmax.f32 %v2699_v33, 0.0  ;;  %v2779_v62 = vsel %vm1435_vm2, 1, %v13345_v55 }
 0x400   : > { %v4467_v31 = vpack.c.bf16 %v2921_v24, %v2920_v37 }
 0x401   : > { %8317 = vmatpush3.bf16.msra.mxu0 %v8644_v16 }
 0x402   : > { %2445 = vperm.xlu1 %8608, %v13619_v51   ;;  %v2542_v38 = vpop.permute.xlu1 %2541  ;;  %8203 = vmatmul.mubr.msk.bf16.gmra.mrb[16].mxu0 %vm4320_vm10, %v4467_v31  ;;  %v13628_v51 = vld [vmem:[#allocation101_spill] sm:$0xff] }
 0x403   : > { %8287 = vmatmul.mubr.msk.bf16.gmra.mrb[20].mxu1 %vm4320_vm10, %v4467_v31  ;;  %v2630_v18 = vmul.f32 %v11813_v15, %v2542_v38  ;;  %v13627_v31 = vld [vmem:[#allocation42_spill] sm:$0xff]  ;;  %v2468_v38 = vmul.f32 %v11818_v36, %v13628_v51 }
 0x404   : > { %vm2892_vm4 = vcmp.eq.s32.totalorder %v13627_v31, 1 }
 0x405   : > { %v2662_v53 = vadd.f32 %v2630_v18, %v2466_v1  ;;  %v2664_v28 = vadd.f32 %v2632_v52, %v2468_v38  ;;  %v2472_v52 = vmul.f32 %v11818_v36, %v13632_v41 }
 0x406   : > { %8610 = vset.pattern.permute.xlu1 %v13350_v22  ;;  %v2631_v22 = vmul.f32 %v11813_v15, %v2546_v39 }
 0x407   : > { %2605 = vperm.xlu1 %8610, %v13622_v54   ;;  %v2820_v58 = vpop.permute.xlu1 %2819  ;;  %v2700_v23 = vadd.f32 %v11840_v26, %v2662_v53  ;;  %v2702_v18 = vadd.f32 %v11840_v26, %v2664_v28 }
 0x408   : > { %vm2890_vm0 = vcmp.eq.s32.totalorder %v2820_v58, 1  ;;  %v2663_v35 = vadd.f32 %v2631_v22, %v2467_v7  ;;  %v2562_v22 = vpop.permute.xlu0 %2561  ;;  %v13630_v7 = vld [vmem:[#allocation113_spill] sm:$0xff] }
 0x409   : > { %v2922_v3 = vsel %vm2890_vm0, -10.0, %v2730_v13  ;;  %v2732_v47 = vmax.f32 %v2700_v23, 0.0  ;;  %v2734_v58 = vmax.f32 %v2702_v18, 0.0  ;;  %v2470_v53 = vmul.f32 %v11818_v36, %v13630_v7  ;;  %v13631_v13 = vld [vmem:[#allocation115_spill] sm:$0xff] }
 0x40a   : > { %v2701_v29 = vadd.f32 %v11840_v26, %v2663_v35 }
 0x40b   : > { %8611 = vset.pattern.permute.xlu1 %v13345_v55  ;;  %v2823_v46 = vpop.permute.xlu1 %2822  ;;  %v2924_v21 = vsel %vm2892_vm4, -10.0, %v2732_v47 }
 0x40c   : > { %vm2891_vm9 = vcmp.eq.s32.totalorder %v2823_v46, 1  ;;  %2867 = vperm.xlu1 %8611, %v2778_v9   ;;  %v2733_v24 = vmax.f32 %v2701_v29, 0.0  ;;  %v2635_v9 = vmul.f32 %v11813_v15, %v2562_v22  ;;  %v2471_v46 = vmul.f32 %v11818_v36, %v13631_v13 }
 0x40d   : > { %v2923_v50 = vsel %vm2891_vm9, -10.0, %v2731_v49 }
 0x40e   : > { %v4468_v19 = vpack.c.bf16 %v2923_v50, %v2922_v3  ;;  %v2667_v35 = vadd.f32 %v2635_v9, %v2471_v46 }
 0x410   : > { %2870 = vperm.xlu1 %8611, %v2779_v62   ;;  %v2554_v17 = vpop.permute.xlu1 %2553  ;;  %8206 = vmatprep.mubr.msk.bf16.mxu0 %vm4320_vm10, %v4468_v19  ;;  %v2705_v23 = vadd.f32 %v11840_v26, %v2667_v35 }
 0x411   : > { %8290 = vmatprep.mubr.msk.bf16.mxu1 %vm4320_vm10, %v4468_v19  ;;  %v2633_v12 = vmul.f32 %v11813_v15, %v2554_v17 }
 0x412   : > { %v2737_v29 = vmax.f32 %v2705_v23, 0.0 }
 0x413   : > { %v2665_v39 = vadd.f32 %v2633_v12, %v2469_v8 }
 0x414   : > { %2876 = vperm.xlu1 %8611, %v2781_v57  }
 0x415   : > { %v2829_v37 = vpop.permute.xlu1 %2828  ;;  %v2703_v54 = vadd.f32 %v11840_v26, %v2665_v39 }
 0x416   : > { %vm2893_vm7 = vcmp.eq.s32.totalorder %v2829_v37, 1  ;;  %v2570_v37 = vpop.permute.xlu0 %2569 }
 0x417   : > { %v2925_v14 = vsel %vm2893_vm7, -10.0, %v2733_v24  ;;  %v2735_v33 = vmax.f32 %v2703_v54, 0.0  ;;  %v2637_v12 = vmul.f32 %v11813_v15, %v2570_v37 }
 0x418   : > { %v4469_v55 = vpack.c.bf16 %v2925_v14, %v2924_v21 }
 0x41a   : > { %v2558_v45 = vpop.permute.xlu1 %2557  ;;  %8207 = vmatmul.mubr.msk.bf16.gmra.mrb[20].mxu0 %vm4320_vm10, %v4469_v55  ;;  %8291 = vmatmul.mubr.msk.bf16.gmra.mrb[24].mxu1 %vm4320_vm10, %v4469_v55  ;;  %v2578_v18 = vpop.permute.xlu0 %2577 }
 0x41b   : > { %v2634_v0 = vmul.f32 %v11813_v15, %v2558_v45 }
 0x41d   : > { %v2666_v3 = vadd.f32 %v2634_v0, %v2470_v53 }
 0x41f   : > { %v2832_v40 = vpop.permute.xlu1 %2831  ;;  %v2704_v50 = vadd.f32 %v11840_v26, %v2666_v3 }
 0x420   : > { %vm2894_vm13 = vcmp.eq.s32.totalorder %v2832_v40, 1 }
 0x421   : > { %v2926_v59 = vsel %vm2894_vm13, -10.0, %v2734_v58  ;;  %v2736_v62 = vmax.f32 %v2704_v50, 0.0  ;;  %v2586_v50 = vpop.permute.xlu0 %2585 }
 0x423   : > { %v2835_v6 = vpop.permute.xlu1 %2834 }
 0x424   : > { %vm2895_vm15 = vcmp.eq.s32.totalorder %v2835_v6, 1  ;;  %v13633_v6 = vld [vmem:[#allocation43_spill] sm:$0xff] }
 0x425   : > { %v2927_v1 = vsel %vm2895_vm15, -10.0, %v2735_v33  ;;  %v2474_v33 = vmul.f32 %v11818_v36, %v13633_v6 }
 0x426   : > { %v4470_v2 = vpack.c.bf16 %v2927_v1, %v2926_v59  ;;  %v2639_v59 = vmul.f32 %v11813_v15, %v2578_v18 }
 0x427   : > { %v2396_v4 = vpop.permute.xlu1 %2395 }
 0x428   : > { %8210 = vmatprep.mubr.msk.bf16.mxu0 %vm4320_vm10, %v4470_v2  ;;  %8294 = vmatprep.mubr.msk.bf16.mxu1 %vm4320_vm10, %v4470_v2  ;;  %v2473_v24 = vmul.f32 %v11818_v36, %v2396_v4 }
 0x42a   : > { %v2669_v14 = vadd.f32 %v2637_v12, %v2473_v24 }
 0x42c   : > { %v2566_v49 = vpop.permute.xlu1 %2565  ;;  %v2707_v38 = vadd.f32 %v11840_v26, %v2669_v14 }
 0x42d   : > { %v2636_v31 = vmul.f32 %v11813_v15, %v2566_v49 }
 0x42e   : > { %v2739_v45 = vmax.f32 %v2707_v38, 0.0 }
 0x42f   : > { %v2668_v55 = vadd.f32 %v2636_v31, %v2472_v52 }
 0x431   : > { %v2838_v19 = vpop.permute.xlu1 %2837  ;;  %v2706_v51 = vadd.f32 %v11840_v26, %v2668_v55 }
 0x432   : > { %vm2896_vm14 = vcmp.eq.s32.totalorder %v2838_v19, 1 }
 0x433   : > { %v2928_v32 = vsel %vm2896_vm14, -10.0, %v2736_v62  ;;  %v2738_v34 = vmax.f32 %v2706_v51, 0.0  ;;  %v13634_v62 = vld [vmem:[#allocation44_spill] sm:$0xff]  ;;  %vm6192_vm14 = vcmask 1043459  }
 0x435   : > { %v2841_v17 = vpop.permute.xlu1 %2840 }
 0x436   : > { %vm2897_vm12 = vcmp.eq.s32.totalorder %v2841_v17, 1  ;;  %v2476_v17 = vmul.f32 %v11818_v36, %v13634_v62 }
 0x437   : > { %v2929_v47 = vsel %vm2897_vm12, -10.0, %v2737_v29  ;;  %v2641_v29 = vmul.f32 %v11813_v15, %v2586_v50  ;;  %vm6194_vm12 = vcmask 1044484  }
 0x438   : > { %v4471_v57 = vpack.c.bf16 %v2929_v47, %v2928_v32 }
 0x439   : > { %v2406_v63 = vpop.permute.xlu1 %2405 }
 0x43a   : > { %8211 = vmatmul.mubr.msk.bf16.gmra.mrb[24].mxu0 %vm4320_vm10, %v4471_v57  ;;  %8295 = vmatmul.mubr.msk.bf16.gmra.mrb[28].mxu1 %vm4320_vm10, %v4471_v57  ;;  %v2475_v54 = vmul.f32 %v11818_v36, %v2406_v63 }
 0x43c   : > { %v2671_v22 = vadd.f32 %v2639_v59, %v2475_v54 }
 0x43e   : > { %v2574_v21 = vpop.permute.xlu1 %2573  ;;  %v2709_v0 = vadd.f32 %v11840_v26, %v2671_v22 }
 0x43f   : > { %v2638_v58 = vmul.f32 %v11813_v15, %v2574_v21 }
 0x440   : > { %v2741_v13 = vmax.f32 %v2709_v0, 0.0 }
 0x441   : > { %v2670_v2 = vadd.f32 %v2638_v58, %v2474_v33 }
 0x443   : > { %v2844_v60 = vpop.permute.xlu1 %2843  ;;  %v2708_v9 = vadd.f32 %v11840_v26, %v2670_v2 }
 0x444   : > { %vm2898_vm6 = vcmp.eq.s32.totalorder %v2844_v60, 1  ;;  %v2594_v60 = vpop.permute.xlu0 %2593 }
 0x445   : > { %v2930_v16 = vsel %vm2898_vm6, -10.0, %v2738_v34  ;;  %v2740_v7 = vmax.f32 %v2708_v9, 0.0  ;;  %v13635_v34 = vld [vmem:[#allocation47_spill] sm:$0xff]  ;;  %vm6196_vm6 = vcmask 1045509  }
 0x447   : > { %v2847_v8 = vpop.permute.xlu1 %2846 }
 0x448   : > { %vm2899_vm5 = vcmp.eq.s32.totalorder %v2847_v8, 1  ;;  %v2478_v8 = vmul.f32 %v11818_v36, %v13635_v34  ;;  %v2602_v22 = vpop.permute.xlu0 %2601 }
 0x449   : > { %v2931_v28 = vsel %vm2899_vm5, -10.0, %v2739_v45  ;;  %v2643_v45 = vmul.f32 %v11813_v15, %v2594_v60  ;;  %vm6198_vm5 = vcmask 1046534  }
 0x44a   : > { %v4472_v39 = vpack.c.bf16 %v2931_v28, %v2930_v16 }
 0x44b   : > { %v2416_v40 = vpop.permute.xlu1 %2415 }
 0x44c   : > { %8214 = vmatprep.mubr.msk.bf16.mxu0 %vm4320_vm10, %v4472_v39  ;;  %8298 = vmatprep.mubr.msk.bf16.mxu1 %vm4320_vm10, %v4472_v39  ;;  %v2477_v19 = vmul.f32 %v11818_v36, %v2416_v40 }
 0x44e   : > { %v2673_v47 = vadd.f32 %v2641_v29, %v2477_v19 }
 0x450   : > { %v2582_v1 = vpop.permute.xlu1 %2581  ;;  %v2711_v24 = vadd.f32 %v11840_v26, %v2673_v47 }
 0x451   : > { %v2640_v23 = vmul.f32 %v11813_v15, %v2582_v1 }
 0x452   : > { %v2743_v52 = vmax.f32 %v2711_v24, 0.0 }
 0x453   : > { %v2672_v57 = vadd.f32 %v2640_v23, %v2476_v17 }
 0x455   : > { %v2850_v4 = vpop.permute.xlu1 %2849  ;;  %v2710_v37 = vadd.f32 %v11840_v26, %v2672_v57 }
 0x456   : > { %vm2900_vm11 = vcmp.eq.s32.totalorder %v2850_v4, 1 }
 0x457   : > { %v2932_v46 = vsel %vm2900_vm11, -10.0, %v2740_v7  ;;  %v2742_v31 = vmax.f32 %v2710_v37, 0.0  ;;  %v13636_v7 = vld [vmem:[#allocation64_spill] sm:$0xff]  ;;  %vm6200_vm11 = vcmask 1047559  }
 0x459   : > { %v2853_v53 = vpop.permute.xlu1 %2852 }
 0x45a   : > { %vm2901_vm0 = vcmp.eq.s32.totalorder %v2853_v53, 1  ;;  %v2480_v53 = vmul.f32 %v11818_v36, %v13636_v7 }
 0x45b   : > { %v2933_v49 = vsel %vm2901_vm0, -10.0, %v2741_v13  ;;  %v2645_v13 = vmul.f32 %v11813_v15, %v2602_v22  ;;  %vm6227_vm0 = vcmask 64512  }
 0x45c   : > { %v4473_v35 = vpack.c.bf16 %v2933_v49, %v2932_v46  ;;  %v13637_v46 = vld [vmem:[#allocation45_spill] sm:$0xff] }
 0x45d   : > { %v2426_v3 = vpop.permute.xlu1 %2425  ;;  %v2482_v49 = vmul.f32 %v11818_v36, %v13637_v46 }
 0x45e   : > { %8215 = vmatmul.mubr.msk.bf16.gmra.mrb[28].mxu0 %vm4320_vm10, %v4473_v35  ;;  %8299 = vmatmul.mubr.msk.bf16.gmra.mrb[32].mxu1 %vm4320_vm10, %v4473_v35  ;;  %v2479_v51 = vmul.f32 %v11818_v36, %v2426_v3  ;;  %v2610_v35 = vpop.permute.xlu0 %2609 }
 0x45f   : > { %v2647_v17 = vmul.f32 %v11813_v15, %v2610_v35 }
 0x460   : > { %v2675_v28 = vadd.f32 %v2643_v45, %v2479_v51  ;;  %v4458_v51 = vadd.f32 %v11826_v56, %v11835_v11  ;;  %v13638_v45 = vld [vmem:[#allocation116_spill] sm:$0xff]  ;;  %v13639_v11 = vld [vmem:[#allocation114_spill] sm:$0xff] }
 0x462   : > { %v2590_v32 = vpop.permute.xlu1 %2589  ;;  %v2713_v54 = vadd.f32 %v11840_v26, %v2675_v28 }
 0x463   : > { %v2642_v38 = vmul.f32 %v11813_v15, %v2590_v32 }
 0x464   : > { %v2745_v33 = vmax.f32 %v2713_v54, 0.0 }
 0x465   : > { %v2674_v39 = vadd.f32 %v2642_v38, %v2478_v8  ;;  %v5549_v8 = vrot.slane %v4458_v51, %v9673_v61 }
 0x467   : > { %v2856_v63 = vpop.permute.xlu1 %2855  ;;  %v2712_v18 = vadd.f32 %v11840_v26, %v2674_v39  ;;  %v5565_v56 = vrot.slane %v5549_v8, %v9673_v61 }
 0x468   : > { %vm2902_vm9 = vcmp.eq.s32.totalorder %v2856_v63, 1 }
 0x469   : > { %v2934_v12 = vsel %vm2902_vm9, -10.0, %v2742_v31  ;;  %v2744_v58 = vmax.f32 %v2712_v18, 0.0  ;;  %v5587_v39 = vcombine.high %v5565_v56, %v5565_v56 }
 0x46b   : > { %v2859_v41 = vpop.permute.xlu1 %2858 }
 0x46c   : > { %vm2903_vm2 = vcmp.eq.s32.totalorder %v2859_v41, 1 }
 0x46d   : > { %v2935_v21 = vsel %vm2903_vm2, -10.0, %v2743_v52 }
 0x46e   : > { %v4474_v14 = vpack.c.bf16 %v2935_v21, %v2934_v12 }
 0x46f   : > { %v2436_v55 = vpop.permute.xlu1 %2435 }
 0x470   : > { %8218 = vmatprep.mubr.msk.bf16.mxu0 %vm4320_vm10, %v4474_v14  ;;  %8302 = vmatprep.mubr.msk.bf16.mxu1 %vm4320_vm10, %v4474_v14  ;;  %v2481_v9 = vmul.f32 %v11818_v36, %v2436_v55 }
 0x472   : > { %v2677_v50 = vadd.f32 %v2645_v13, %v2481_v9 }
 0x474   : > { %v2598_v16 = vpop.permute.xlu1 %2597  ;;  %v2715_v63 = vadd.f32 %v11840_v26, %v2677_v50 }
 0x475   : > { %v2644_v0 = vmul.f32 %v11813_v15, %v2598_v16  ;;  %v5557_v16 = vcombine.high %v5549_v8, %v5549_v8 }
 0x476   : > { %v2747_v41 = vmax.f32 %v2715_v63, 0.0 }
 0x477   : > { %v2676_v19 = vadd.f32 %v2644_v0, %v2480_v53  ;;  %v5579_v28 = vrot.slane %v5557_v16, %v9673_v61  ;;  %v8728_v16 = vld [vmem:[#allocation11] ss:$0 sm:$0xff] }
 0x479   : > { %v2862_v40 = vpop.permute.xlu1 %2861  ;;  %v2714_v57 = vadd.f32 %v11840_v26, %v2676_v19  ;;  %v5589_v18 = vcombine.high %v5579_v28, %v5579_v28  ;;  %v5745_v35 = vrot.slane %v5579_v28, %v9725_v27  ;;  %v5542_v19 = vcombine.high %v4458_v51, %v4458_v51 }
 0x47a   : > { %vm2904_vm8 = vcmp.eq.s32.totalorder %v2862_v40, 1  ;;  %v5018_v40 = vadd.f32 %v11884_v25, %v11894_v48 }
 0x47b   : > { %v2936_v59 = vsel %vm2904_vm8, -10.0, %v2744_v58  ;;  %v2746_v24 = vmax.f32 %v2714_v57, 0.0  ;;  %v5753_v48 = vrot.slane %v5589_v18, %v9725_v27 }
 0x47d   : > { %v2865_v6 = vpop.permute.xlu1 %2864 }
 0x47e   : > { %vm2905_vm3 = vcmp.eq.s32.totalorder %v2865_v6, 1 }
 0x47f   : > { %v2937_v1 = vsel %vm2905_vm3, -10.0, %v2745_v33  ;;  %v5749_v33 = vrot.slane %v5587_v39, %v9725_v27 }
 0x480   : > { %v4475_v2 = vpack.c.bf16 %v2937_v1, %v2936_v59 }
 0x481   : > { %v2446_v4 = vpop.permute.xlu1 %2445 }
 0x482   : > { %8219 = vmatmul.mubr.msk.bf16.gmra.mrb[32].mxu0 %vm4320_vm10, %v4475_v2  ;;  %8303 = vmatmul.mubr.msk.bf16.gmra.mrb[36].mxu1 %vm4320_vm10, %v4475_v2  ;;  %v2483_v23 = vmul.f32 %v11818_v36, %v2446_v4  ;;  %v2874_v36 = vpop.permute.xlu0 %2873  ;;  %v5741_v2 = vrot.slane %v5565_v56, %v9725_v27  ;;  %v4459_v56 = vadd.f32 %v8728_v16, %v11850_v20 }
 0x483   : > { %vm2908_vm13 = vcmp.eq.s32.totalorder %v2874_v36, 1 }
 0x484   : > { %v2679_v32 = vadd.f32 %v2647_v17, %v2483_v23  ;;  %v5556_v23 = vrot.slane %v5542_v19, %v9673_v61 }
 0x486   : > { %v2606_v3 = vpop.permute.xlu1 %2605  ;;  %v2717_v52 = vadd.f32 %v11840_v26, %v2679_v32  ;;  %v5572_v17 = vrot.slane %v5556_v23, %v9673_v61 }
 0x487   : > { %v2646_v62 = vmul.f32 %v11813_v15, %v2606_v3 }
 0x488   : > { %v2749_v60 = vmax.f32 %v2717_v52, 0.0  ;;  %v5588_v32 = vcombine.high %v5572_v17, %v5572_v17  ;;  %v5757_v36 = vrot.slane %v5572_v17, %v9725_v27  ;;  %v5591_v17 = vcombine.high %v4459_v56, %v4459_v56 }
 0x489   : > { %v2678_v29 = vadd.f32 %v2646_v62, %v2482_v49  ;;  %v5558_v62 = vcombine.high %v5556_v23, %v5556_v23 }
 0x48b   : > { %v2868_v47 = vpop.permute.xlu1 %2867  ;;  %v2716_v37 = vadd.f32 %v11840_v26, %v2678_v29  ;;  %v5586_v29 = vrot.slane %v5558_v62, %v9673_v61 }
 0x48c   : > { %vm2906_vm4 = vcmp.eq.s32.totalorder %v2868_v47, 1 }
 0x48d   : > { %v2748_v12 = vmax.f32 %v2716_v37, 0.0  ;;  %v2938_v21 = vsel %vm2906_vm4, -10.0, %v2746_v24  ;;  %v5590_v47 = vcombine.high %v5586_v29, %v5586_v29  ;;  %v5765_v24 = vrot.slane %v5588_v32, %v9725_v27 }
 0x48f   : > { %v2871_v31 = vpop.permute.xlu1 %2870  ;;  %v2940_v38 = vsel %vm2908_vm13, -10.0, %v2748_v12 }
 0x490   : > { %vm2907_vm7 = vcmp.eq.s32.totalorder %v2871_v31, 1 }
 0x491   : > { %v2939_v15 = vsel %vm2907_vm7, -10.0, %v2747_v41 }
 0x492   : > { %v4476_v14 = vpack.c.bf16 %v2939_v15, %v2938_v21 }
 0x493   : > { %v2877_v55 = vpop.permute.xlu1 %2876 }
 0x494   : > { %vm2909_vm15 = vcmp.eq.s32.totalorder %v2877_v55, 1  ;;  %8222 = vmatprep.mubr.msk.bf16.mxu0 %vm4320_vm10, %v4476_v14  ;;  %8306 = vmatprep.mubr.msk.bf16.mxu1 %vm4320_vm10, %v4476_v14  ;;  %v5769_v55 = vrot.slane %v5590_v47, %v9725_v27 }
 0x495   : > { %v2941_v34 = vsel %vm2909_vm15, -10.0, %v2749_v60 }
 0x496   : > { %v4477_v26 = vpack.c.bf16 %v2941_v34, %v2940_v38 }
 0x498   : > { %8223 = vmatmul.mubr.msk.bf16.gmra.mrb[36].mxu0 %vm4320_vm10, %v4477_v26  ;;  %8307 = vmatmul.mubr.msk.bf16.gmra.mrb[40].mxu1 %vm4320_vm10, %v4477_v26  ;;  %v5761_v26 = vrot.slane %v5586_v29, %v9725_v27  ;;  %v5605_v29 = vrot.slane %v5591_v17, %v9673_v61  ;;  %vm6188_vm10 = vcmask 1041409  }
 0x499   : > { %8318 = vmatprep.mubr.msk.bf16.mxu0 %vm4252_vm1, %v13638_v45 }
 0x49a   : > { %v5607_v32 = vcombine.high %v5605_v29, %v5605_v29  ;;  %v5621_v47 = vrot.slane %v5605_v29, %v9673_v61 }
 0x4a0   : > { %8319 = vmatmul.mubr.msk.bf16.vlgmr.msra.gmra.mrb[40].mxu0 %vm4252_vm1, %v13639_v11  ;;  %v5598_v11 = vrot.slane %v4459_v56, %v9673_v61  ;;  %vm6190_vm1 = vcmask 1042434  }
 0x4a2   : > { %v5606_v28 = vcombine.high %v5598_v11, %v5598_v11  ;;  %v5614_v39 = vrot.slane %v5598_v11, %v9673_v61 }
 0x4a4   : > { %v5628_v18 = vrot.slane %v5606_v28, %v9673_v61 }
 0x4a5   : > { %v8196_v54 = vpop.f32.mrb[8].mxu0  ;;  %v12175_v58 = vpop.f32.mrb[12].mxu1 }
 0x4a6   : > { %v5034_v6 = vadd.f32 %v8196_v54, %v5018_v40  ;;  %v4817_v59 = vpop.f32.mrb[9].mxu0  ;;  %v12178_v1 = vpop.f32.mrb[13].mxu1  ;;  %v5636_v54 = vcombine.high %v5614_v39, %v5614_v39 }
 0x4a7   : > { %v5032_v22 = vadd.f32 %v5018_v40, %v4817_v59  ;;  %v8197_v4 = vpop.f32.mrb[10].mxu0  ;;  %v12181_v9 = vpop.f32.mrb[14].mxu1 }
 0x4a8   : > { %v5900_v0 = vmul.f32 %v5749_v33, %v5034_v6  ;;  %v5035_v7 = vadd.f32 %v8197_v4, %v5018_v40  ;;  %v4820_v53 = vpop.f32.mrb[11].mxu0  ;;  %v12184_v13 = vpop.f32.mrb[15].mxu1  ;;  %v5638_v6 = vcombine.high %v5628_v18, %v5628_v18 }
 0x4a9   : > { %v5898_v46 = vmul.f32 %v5741_v2, %v5032_v22  ;;  %v5033_v49 = vadd.f32 %v5018_v40, %v4820_v53  ;;  %v5781_v22 = vrot.slane %v5636_v54, %v9725_v27 }
 0x4aa   : > { %v5901_v3 = vmul.f32 %v5753_v48, %v5035_v7  ;;  %5934 = vadd.xlane.f32.xlu0 %v5900_v0  ;;  %v5773_v0 = vrot.slane %v5614_v39, %v9725_v27 }
 0x4ab   : > { %v5899_v50 = vmul.f32 %v5745_v35, %v5033_v49  ;;  %5930 = vadd.xlane.f32.xlu1 %v5898_v46  ;;  %v5785_v49 = vrot.slane %v5638_v6, %v9725_v27  ;;  %v5647_v6 = vrot.slane %v11843_v43, %v9673_v61 }
 0x4ae   : > { %5936 = vadd.xlane.f32.xlu0 %v5901_v3 }
 0x4b2   : > { %5932 = vadd.xlane.f32.xlu0 %v5899_v50  ;;  %v5777_v50 = vrot.slane %v5628_v18, %v9725_v27 }
 0x4bd   : > { %v8200_v57 = vpop.f32.mrb[12].mxu0  ;;  %v12190_v63 = vpop.f32.mrb[16].mxu1 }
 0x4be   : > { %v5038_v37 = vadd.f32 %v8200_v57, %v5018_v40  ;;  %v4833_v31 = vpop.f32.mrb[13].mxu0  ;;  %v12193_v41 = vpop.f32.mrb[17].mxu1  ;;  %v5635_v57 = vrot.slane %v5607_v32, %v9673_v61 }
 0x4bf   : > { %v5036_v52 = vadd.f32 %v5018_v40, %v4833_v31  ;;  %v8201_v12 = vpop.f32.mrb[14].mxu0  ;;  %v12196_v21 = vpop.f32.mrb[18].mxu1 }
 0x4c0   : > { %v5904_v15 = vmul.f32 %v5765_v24, %v5038_v37  ;;  %v5039_v14 = vadd.f32 %v8201_v12, %v5018_v40  ;;  %v4836_v60 = vpop.f32.mrb[15].mxu0  ;;  %v12199_v51 = vpop.f32.mrb[19].mxu1  ;;  %v5637_v37 = vcombine.high %v5621_v47, %v5621_v47  ;;  %v5639_v24 = vcombine.high %v5635_v57, %v5635_v57 }
 0x4c1   : > { %v5902_v38 = vmul.f32 %v5757_v36, %v5036_v52  ;;  %v5037_v34 = vadd.f32 %v5018_v40, %v4836_v60  ;;  %v5021_v40 = vadd.f32 %v11884_v25, %v11901_v10  ;;  %v5789_v60 = vrot.slane %v5621_v47, %v9725_v27 }
 0x4c2   : > { %v5905_v8 = vmul.f32 %v5769_v55, %v5039_v14  ;;  %5942 = vadd.xlane.f32.xlu0 %v5904_v15  ;;  %v5797_v12 = vrot.slane %v5637_v37, %v9725_v27  ;;  %v5793_v39 = vrot.slane %v5635_v57, %v9725_v27 }
 0x4c3   : > { %v5903_v45 = vmul.f32 %v5761_v26, %v5037_v34 }
 0x4c6   : > { %5938 = vadd.xlane.f32.xlu0 %v5902_v38 }
 0x4ca   : > { %5944 = vadd.xlane.f32.xlu0 %v5905_v8 }
 0x4ce   : > { %5940 = vadd.xlane.f32.xlu0 %v5903_v45  ;;  %v5801_v45 = vrot.slane %v5639_v24, %v9725_v27 }
 0x4d5   : > { %v8204_v33 = vpop.f32.mrb[16].mxu0 }
 0x4d6   : > { %v5042_v59 = vadd.f32 %v8204_v33, %v5021_v40  ;;  %v12209_v20 = vpop.f32.mrb[20].mxu1  ;;  %v4849_v2 = vpop.f32.mrb[17].mxu0  ;;  %v5655_v33 = vcombine.high %v5647_v6, %v5647_v6 }
 0x4d7   : > { %v5040_v4 = vadd.f32 %v5021_v40, %v4849_v2  ;;  %v12212_v7 = vpop.f32.mrb[21].mxu1  ;;  %v8205_v48 = vpop.f32.mrb[18].mxu0 }
 0x4d8   : > { %v5908_v53 = vmul.f32 %v5781_v22, %v5042_v59  ;;  %v5043_v46 = vadd.f32 %v8205_v48, %v5021_v40  ;;  %v12215_v35 = vpop.f32.mrb[22].mxu1  ;;  %v4852_v25 = vpop.f32.mrb[19].mxu0  ;;  %v5663_v59 = vrot.slane %v5647_v6, %v9673_v61  ;;  %v5677_v22 = vrot.slane %v5655_v33, %v9673_v61 }
 0x4d9   : > { %v5906_v10 = vmul.f32 %v5773_v0, %v5040_v4  ;;  %v5041_v3 = vadd.f32 %v5021_v40, %v4852_v25  ;;  %v12218_v19 = vpop.f32.mrb[23].mxu1 }
 0x4da   : > { %v5909_v23 = vmul.f32 %v5785_v49, %v5043_v46  ;;  %5950 = vadd.xlane.f32.xlu1 %v5908_v53  ;;  %v5685_v2 = vcombine.high %v5663_v59, %v5663_v59  ;;  %v5687_v4 = vcombine.high %v5677_v22, %v5677_v22  ;;  %v5809_v37 = vrot.slane %v5677_v22, %v9725_v27 }
 0x4db   : > { %v5907_v62 = vmul.f32 %v5777_v50, %v5041_v3  ;;  %5946 = vadd.xlane.f32.xlu0 %v5906_v10  ;;  %v5805_v10 = vrot.slane %v5663_v59, %v9725_v27 }
 0x4dc   : > { %v5813_v53 = vrot.slane %v5685_v2, %v9725_v27  ;;  %v5817_v17 = vrot.slane %v5687_v4, %v9725_v27 }
 0x4de   : > { %5952 = vadd.xlane.f32.xlu1 %v5909_v23 }
 0x4e2   : > { %5948 = vadd.xlane.f32.xlu1 %v5907_v62 }
 0x4ed   : > { %v8208_v31 = vpop.f32.mrb[20].mxu0  ;;  %v12223_v52 = vpop.f32.mrb[24].mxu1 }
 0x4ee   : > { %v5046_v36 = vadd.f32 %v8208_v31, %v5021_v40  ;;  %v4865_v15 = vpop.f32.mrb[21].mxu0  ;;  %v12226_v14 = vpop.f32.mrb[25].mxu1 }
 0x4ef   : > { %v5044_v55 = vadd.f32 %v5021_v40, %v4865_v15  ;;  %v8209_v38 = vpop.f32.mrb[22].mxu0  ;;  %v12229_v34 = vpop.f32.mrb[26].mxu1 }
 0x4f0   : > { %v5912_v26 = vmul.f32 %v5797_v12, %v5046_v36  ;;  %v5047_v8 = vadd.f32 %v8209_v38, %v5021_v40  ;;  %v4868_v16 = vpop.f32.mrb[23].mxu0  ;;  %v12232_v56 = vpop.f32.mrb[27].mxu1  ;;  %v5640_v36 = vcombine.high %v11843_v43, %v11843_v43 }
 0x4f1   : > { %v5910_v11 = vmul.f32 %v5789_v60, %v5044_v55  ;;  %v5045_v28 = vadd.f32 %v5021_v40, %v4868_v16 }
 0x4f2   : > { %v5913_v18 = vmul.f32 %v5801_v45, %v5047_v8  ;;  %5958 = vadd.xlane.f32.xlu1 %v5912_v26  ;;  %v5654_v12 = vrot.slane %v5640_v36, %v9673_v61 }
 0x4f3   : > { %v5911_v54 = vmul.f32 %v5793_v39, %v5045_v28 }
 0x4f4   : > { %v5656_v15 = vcombine.high %v5654_v12, %v5654_v12  ;;  %v5670_v55 = vrot.slane %v5654_v12, %v9673_v61  ;;  %v13641_v12 = vld [vmem:[#allocation35_spill] sm:$0xff] }
 0x4f6   : > { %5954 = vadd.xlane.f32.xlu1 %v5910_v11  ;;  %v5684_v60 = vrot.slane %v5656_v15, %v9673_v61  ;;  %v5686_v38 = vcombine.high %v5670_v55, %v5670_v55 }
 0x4f8   : > { %v5688_v26 = vcombine.high %v5684_v60, %v5684_v60  ;;  %v5829_v11 = vrot.slane %v5686_v38, %v9725_v27 }
 0x4fa   : > { %5960 = vadd.xlane.f32.xlu1 %v5913_v18  ;;  %v5821_v18 = vrot.slane %v5670_v55, %v9725_v27  ;;  %v5833_v22 = vrot.slane %v5688_v26, %v9725_v27 }
 0x4fe   : > { %5956 = vadd.xlane.f32.xlu1 %v5911_v54 }
 0x50d   : > { %v8212_v0 = vpop.f32.mrb[24].mxu0  ;;  %v12239_v40 = vpop.f32.mrb[28].mxu1 }
 0x50e   : > { %v5050_v48 = vadd.f32 %v8212_v0, %v11892_v5  ;;  %v4881_v46 = vpop.f32.mrb[25].mxu0  ;;  %v12243_v49 = vpop.f32.mrb[29].mxu1 }
 0x50f   : > { %v5048_v25 = vadd.f32 %v11892_v5, %v4881_v46  ;;  %v8213_v3 = vpop.f32.mrb[26].mxu0  ;;  %v12247_v50 = vpop.f32.mrb[30].mxu1 }
 0x510   : > { %v5916_v23 = vmul.f32 %v5813_v53, %v5050_v48  ;;  %v5051_v62 = vadd.f32 %v8213_v3, %v11892_v5  ;;  %v4884_v29 = vpop.f32.mrb[27].mxu0  ;;  %v12251_v32 = vpop.f32.mrb[31].mxu1  ;;  %v5825_v53 = vrot.slane %v5684_v60, %v9725_v27 }
 0x511   : > { %v5914_v47 = vmul.f32 %v5805_v10, %v5048_v25  ;;  %v5049_v57 = vadd.f32 %v11892_v5, %v4884_v29 }
 0x512   : > { %v5917_v24 = vmul.f32 %v5817_v17, %v5051_v62  ;;  %5966 = vadd.xlane.f32.xlu0 %v5916_v23  ;;  %v5696_v23 = vrot.slane %v11854_v44, %v9673_v61 }
 0x513   : > { %v5915_v31 = vmul.f32 %v5809_v37, %v5049_v57 }
 0x514   : > { %v5704_v62 = vcombine.high %v5696_v23, %v5696_v23  ;;  %v5712_v29 = vrot.slane %v5696_v23, %v9673_v61 }
 0x515   : > { %5964 = vadd.xlane.f32.xlu1 %v5915_v31 }
 0x516   : > { %5962 = vadd.xlane.f32.xlu0 %v5914_v47  ;;  %v13640_v47 = vlaneseq  ;;  %v5734_v36 = vcombine.high %v5712_v29, %v5712_v29 }
 0x518   : > { %v6059_v57 = vand.u32 127, %v13640_v47 }
 0x51a   : > { %5968 = vadd.xlane.f32.xlu0 %v5917_v24  ;;  %v12288_v15 = vsub.s32 %v6059_v57, %v13641_v12 }
 0x531   : > { %v8216_v8 = vpop.f32.mrb[28].mxu0  ;;  %v12260_v45 = vpop.f32.mrb[32].mxu1 }
 0x532   : > { %v5054_v16 = vadd.f32 %v8216_v8, %v11892_v5  ;;  %v4897_v28 = vpop.f32.mrb[29].mxu0  ;;  %v12264_v39 = vpop.f32.mrb[33].mxu1 }
 0x533   : > { %v5052_v43 = vadd.f32 %v11892_v5, %v4897_v28  ;;  %v8217_v54 = vpop.f32.mrb[30].mxu0  ;;  %v12268_v6 = vpop.f32.mrb[34].mxu1 }
 0x534   : > { %v12270_v33 = vmul.f32 %v5829_v11, %v5054_v16  ;;  %v5055_v59 = vadd.f32 %v8217_v54, %v11892_v5  ;;  %v4900_v2 = vpop.f32.mrb[31].mxu0  ;;  %v12274_v4 = vpop.f32.mrb[35].mxu1  ;;  %v5837_v11 = vrot.slane %v5712_v29, %v9725_v27 }
 0x535   : > { %v5918_v0 = vmul.f32 %v5821_v18, %v5052_v43  ;;  %v5053_v48 = vadd.f32 %v11892_v5, %v4900_v2  ;;  %v5726_v5 = vrot.slane %v5704_v62, %v9673_v61  ;;  %v5845_v18 = vrot.slane %v5734_v36, %v9725_v27 }
 0x536   : > { %v12278_v46 = vmul.f32 %v5833_v22, %v5055_v59 }
 0x537   : > { %v5919_v25 = vmul.f32 %v5825_v53, %v5053_v48  ;;  %5970 = vadd.xlane.f32.xlu0 %v5918_v0  ;;  %v5935_v10 = vpop.xlane.xlu0 %5934  ;;  %v5736_v38 = vcombine.high %v5726_v5, %v5726_v5 }
 0x538   : > { %v5931_v24 = vpop.xlane.xlu1 %5930  ;;  %v12297_v28 = vmul.f32 0.088388346, %v5935_v10 }
 0x539   : > { %v12290_v55 = vmul.f32 0.088388346, %v5931_v24  ;;  %v5849_v48 = vrot.slane %v5736_v38, %v9725_v27 }
 0x53b   : > { %5972 = vadd.xlane.f32.xlu0 %v5919_v25  ;;  %v5937_v3 = vpop.xlane.xlu0 %5936  ;;  %v6063_v22 = vrot.slane %v12290_v55, %v12288_v15  ;;  %v5841_v25 = vrot.slane %v5726_v5, %v9725_v27  ;;  %v5689_v5 = vcombine.high %v11854_v44, %v11854_v44 }
 0x53c   : > { %v12313_v47 = vmul.f32 0.088388346, %v5937_v3 }
 0x53f   : > { %v5933_v17 = vpop.xlane.xlu0 %5932 }
 0x540   : > { %v12285_v31 = vmul.f32 0.088388346, %v5933_v17 }
 0x542   : > { %v6067_v26 = vrot.slane %v12285_v31, %v12288_v15 }
 0x544   : > { %v6189_v57 = vsel %vm6188_vm10, %v6067_v26, %v6063_v22 }
 0x54f   : > { %v5943_v37 = vpop.xlane.xlu0 %5942 }
 0x553   : > { %v5939_v60 = vpop.xlane.xlu0 %5938 }
 0x554   : > { %v12310_v10 = vmul.f32 0.088388346, %v5939_v60  ;;  %v6071_v60 = vrot.slane %v12297_v28, %v12288_v15 }
 0x555   : > { %v8220_v8 = vpop.f32.mrb[32].mxu0  ;;  %v12294_v16 = vpop.f32.mrb[36].mxu1 }
 0x556   : > { %v5058_v43 = vadd.f32 %v8220_v8, %v11899_v42  ;;  %v4913_v54 = vpop.f32.mrb[33].mxu0  ;;  %v12301_v59 = vpop.f32.mrb[37].mxu1  ;;  %v6191_v3 = vsel %vm6190_vm1, %v6071_v60, %v6189_v57  ;;  %v6079_v26 = vrot.slane %v12310_v10, %v12288_v15 }
 0x557   : > { %v5056_v2 = vadd.f32 %v11899_v42, %v4913_v54  ;;  %v8221_v0 = vpop.f32.mrb[34].mxu0  ;;  %v12307_v53 = vpop.f32.mrb[38].mxu1  ;;  %v6075_v54 = vrot.slane %v12313_v47, %v12288_v15 }
 0x558   : > { %v5924_v23 = vmul.f32 %v5845_v18, %v5058_v43  ;;  %v5059_v62 = vadd.f32 %v8221_v0, %v11899_v42  ;;  %v5945_v17 = vpop.xlane.xlu0 %5944  ;;  %v4916_v29 = vpop.f32.mrb[35].mxu0  ;;  %v12324_v18 = vmul.f32 0.088388346, %v5943_v37 }
 0x559   : > { %v5922_v24 = vmul.f32 %v5837_v11, %v5056_v2  ;;  %v5057_v36 = vadd.f32 %v11899_v42, %v4916_v29  ;;  %v12317_v38 = vpop.f32.mrb[39].mxu1  ;;  %v12330_v44 = vmul.f32 0.088388346, %v5945_v17  ;;  %v5703_v2 = vrot.slane %v5689_v5, %v9673_v61 }
 0x55a   : > { %v5925_v8 = vmul.f32 %v5849_v48, %v5059_v62  ;;  %5982 = vadd.xlane.f32.xlu1 %v5924_v23  ;;  %v6193_v37 = vsel %vm6192_vm14, %v6075_v54, %v6191_v3  ;;  %v6087_v48 = vrot.slane %v12324_v18, %v12288_v15 }
 0x55b   : > { %v5923_v43 = vmul.f32 %v5841_v25, %v5057_v36  ;;  %5978 = vadd.xlane.f32.xlu0 %v5922_v24  ;;  %13642 = vst [vmem:[#allocation57_spill] sm:$0xff] %v12330_v44  ;;  %v6195_v25 = vsel %vm6194_vm12, %v6079_v26, %v6193_v37  ;;  %v6091_v23 = vrot.slane %v12330_v44, %v12288_v15 }
 0x55c   : > { %v5941_v11 = vpop.xlane.xlu0 %5940  ;;  %v5705_v17 = vcombine.high %v5703_v2, %v5703_v2  ;;  %v5719_v57 = vrot.slane %v5703_v2, %v9673_v61 }
 0x55d   : > { %v12332_v22 = vmul.f32 0.088388346, %v5941_v11 }
 0x55e   : > { %5984 = vadd.xlane.f32.xlu1 %v5925_v8  ;;  %v5733_v36 = vrot.slane %v5705_v17, %v9673_v61  ;;  %v5735_v5 = vcombine.high %v5719_v57, %v5719_v57  ;;  %v5853_v54 = vrot.slane %v5719_v57, %v9725_v27  ;;  %v7966_v57 = vld [vmem:[%s13053_s20] ss:$0 sm:$0xff] }
 0x55f   : > { %v6083_v0 = vrot.slane %v12332_v22, %v12288_v15  ;;  %5974 = vadd.xlane.f32.xlu0 %v12270_v33 }
 0x560   : > { %v5737_v60 = vcombine.high %v5733_v36, %v5733_v36 }
 0x561   : > { %v6197_v62 = vsel %vm6196_vm6, %v6083_v0, %v6195_v25 }
 0x562   : > { %5980 = vadd.xlane.f32.xlu1 %v5923_v43  ;;  %v6199_v29 = vsel %vm6198_vm5, %v6087_v48, %v6197_v62  ;;  %v5861_v43 = vrot.slane %v5735_v5, %v9725_v27  ;;  %v5865_v48 = vrot.slane %v5737_v60, %v9725_v27 }
 0x563   : > { %5976 = vadd.xlane.f32.xlu0 %v12278_v46  ;;  %v6201_v33 = vsel %vm6200_vm11, %v6091_v23, %v6199_v29 }
 0x564   : > { %v6228_v24 = vsel %vm6227_vm0, %v6201_v33, -inf  ;;  %v5857_v33 = vrot.slane %v5733_v36, %v9725_v27 }
 0x567   : > { %6229 = vmax.xlane.f32.xlu0 %v6228_v24  ;;  %v5951_v62 = vpop.xlane.xlu1 %5950 }
 0x56b   : > { %v8224_v8 = vpop.f32.mrb[36].mxu0  ;;  %v12353_v26 = vpop.f32.mrb[40].mxu1 }
 0x56c   : > { %v5062_v3 = vadd.f32 %v8224_v8, %v11899_v42  ;;  %v4929_v46 = vpop.f32.mrb[37].mxu0  ;;  %v5403_v2 = vpop.f32.mrb[41].mxu1 }
 0x56d   : > { %v5060_v11 = vadd.f32 %v11899_v42, %v4929_v46  ;;  %v8225_v37 = vpop.f32.mrb[38].mxu0  ;;  %v8309_v25 = vpop.f32.mrb[42].mxu1 }
 0x56e   : > { %v5928_v0 = vmul.f32 %v5861_v43, %v5062_v3  ;;  %v5063_v61 = vadd.f32 %v8225_v37, %v11899_v42  ;;  %v4932_v23 = vpop.f32.mrb[39].mxu0  ;;  %v5406_v24 = vpop.f32.mrb[43].mxu1 }
 0x56f   : > { %v5926_v17 = vmul.f32 %v5853_v54, %v5060_v11  ;;  %v5061_v29 = vadd.f32 %v11899_v42, %v4932_v23  ;;  %v5953_v46 = vpop.xlane.xlu1 %5952 }
 0x570   : > { %v5929_v5 = vmul.f32 %v5865_v48, %v5063_v61  ;;  %5990 = vadd.xlane.f32.xlu1 %v5928_v0 }
 0x571   : > { %v5927_v8 = vmul.f32 %v5857_v33, %v5061_v29  ;;  %v5947_v33 = vpop.xlane.xlu0 %5946 }
 0x573   : > { %v8320_v3 = vpop.f32.mrb[40].mxu0 }
 0x574   : > { %v5500_v43 = vadd.f32 %v8320_v3, %v7966_v57  ;;  %5986 = vadd.xlane.f32.xlu1 %v5926_v17  ;;  %v5491_v60 = vpop.f32.mrb[41].mxu0 }
 0x575   : > { %v5492_v37 = vadd.f32 %v7966_v57, %v5491_v60  ;;  %v8321_v44 = vpop.f32.mrb[42].mxu0 }
 0x576   : > { %v5503_v11 = vadd.f32 %v8321_v44, %v7966_v57  ;;  %v5494_v54 = vpop.f32.mrb[43].mxu0 }
 0x577   : > { %v5495_v42 = vadd.f32 %v7966_v57, %v5494_v54  ;;  %v12365_v36 = vadd.f32 %v5492_v37, %v12184_v13  ;;  %v12368_v0 = vadd.f32 %v5492_v37, %v12178_v1  ;;  %v12371_v61 = vadd.f32 %v12175_v58, %v5492_v37 }
 0x578   : > { %5988 = vadd.xlane.f32.xlu1 %v5927_v8  ;;  %v12374_v48 = vadd.f32 %v12181_v9, %v5492_v37  ;;  %v12377_v23 = vadd.f32 %v5492_v37, %v12193_v41  ;;  %v12386_v13 = vadd.f32 %v5492_v37, %v12199_v51  ;;  %v12392_v58 = vadd.f32 %v12190_v63, %v5492_v37 }
 0x579   : > { %13643 = vst [vmem:[#allocation87_spill] sm:$0xff] %v12368_v0  ;;  %13644 = vst [vmem:[#allocation65_spill] sm:$0xff] %v12371_v61  ;;  %v12380_v44 = vadd.f32 %v5495_v42, %v12218_v19  ;;  %v12383_v17 = vadd.f32 %v12209_v20, %v5495_v42  ;;  %v12389_v1 = vadd.f32 %v12215_v35, %v5495_v42  ;;  %v5949_v20 = vpop.xlane.xlu1 %5948  ;;  %v12463_v57 = vmul.f32 0.088388346, %v5951_v62 }
 0x57a   : > { %13645 = vst [vmem:[#allocation68_spill] sm:$0xff] %v12374_v48  ;;  %13646 = vst [vmem:[#allocation70_spill] sm:$0xff] %v12377_v23  ;;  %v12395_v9 = vadd.f32 %v5495_v42, %v12226_v14  ;;  %v12398_v41 = vadd.f32 %v12196_v21, %v5492_v37  ;;  %v12401_v19 = vadd.f32 %v5495_v42, %v12232_v56  ;;  %v12457_v8 = vmul.f32 0.088388346, %v5949_v20 }
 0x57b   : > { %13647 = vst [vmem:[#allocation83_spill] sm:$0xff] %v12380_v44  ;;  %13648 = vst [vmem:[#allocation72_spill] sm:$0xff] %v12383_v17  ;;  %v12404_v29 = vadd.f32 %v5495_v42, %v12212_v7  ;;  %v12407_v51 = vadd.f32 %v12223_v52, %v5495_v42  ;;  %v12410_v35 = vadd.f32 %v12229_v34, %v5495_v42 }
 0x57c   : > { %13649 = vst [vmem:[#allocation84_spill] sm:$0xff] %v12386_v13  ;;  %13650 = vst [vmem:[#allocation86_spill] sm:$0xff] %v12389_v1  ;;  %v12413_v63 = vadd.f32 %v5500_v43, %v12243_v49  ;;  %5992 = vadd.xlane.f32.xlu1 %v5929_v5  ;;  %v12416_v21 = vadd.f32 %v5500_v43, %v12251_v32  ;;  %v12419_v14 = vadd.f32 %v12239_v40, %v5500_v43 }
 0x57d   : > { %13651 = vst [vmem:[#allocation49_spill] sm:$0xff] %v12392_v58  ;;  %13652 = vst [vmem:[#allocation62_spill] sm:$0xff] %v12395_v9  ;;  %v12422_v56 = vadd.f32 %v12247_v50, %v5500_v43  ;;  %v12425_v7 = vadd.f32 %v5500_v43, %v12264_v39  ;;  %v12428_v52 = vadd.f32 %v5500_v43, %v12274_v4 }
 0x57e   : > { %13653 = vst [vmem:[#allocation73_spill] sm:$0xff] %v12398_v41  ;;  %13654 = vst [vmem:[#allocation74_spill] sm:$0xff] %v12401_v19  ;;  %v12431_v34 = vadd.f32 %v5503_v11, %v12317_v38  ;;  %v12434_v49 = vadd.f32 %v5503_v11, %v12301_v59  ;;  %v12437_v32 = vadd.f32 %v12294_v16, %v5503_v11 }
 0x57f   : > { %13655 = vst [vmem:[#allocation88_spill] sm:$0xff] %v12404_v29  ;;  %13656 = vst [vmem:[#allocation58_spill] sm:$0xff] %v12407_v51  ;;  %v12440_v40 = vadd.f32 %v12260_v45, %v5500_v43  ;;  %v12443_v50 = vadd.f32 %v12307_v53, %v5503_v11  ;;  %v12446_v39 = vadd.f32 %v12268_v6, %v5500_v43  ;;  %v5959_v38 = vpop.xlane.xlu1 %5958  ;;  %v12459_v45 = vmul.f32 0.088388346, %v5947_v33 }
 0x580   : > { %13657 = vst [vmem:[#allocation78_spill] sm:$0xff] %v12410_v35  ;;  %13658 = vst [vmem:[#allocation90_spill] sm:$0xff] %v12413_v63  ;;  %v12448_v4 = vadd.f32 %v5503_v11, %v5403_v2  ;;  %v12450_v5 = vadd.f32 %v5503_v11, %v5406_v24  ;;  %v12453_v59 = vadd.f32 %v12353_v26, %v5503_v11  ;;  %v12469_v26 = vmul.f32 0.088388346, %v5953_v46 }
 0x581   : > { %13659 = vst [vmem:[#allocation89_spill] sm:$0xff] %v12416_v21  ;;  %13660 = vst [vmem:[#allocation91_spill] sm:$0xff] %v12419_v14  ;;  %v12455_v16 = vadd.f32 %v8309_v25, %v5503_v11  ;;  %v6099_v6 = vrot.slane %v12457_v8, %v12288_v15  ;;  %v6095_v2 = vrot.slane %v12459_v45, %v12288_v15  ;;  %v12475_v37 = vmul.f32 0.088388346, %v5959_v38 }
 0x582   : > { %13661 = vst [vmem:[#allocation92_spill] sm:$0xff] %v12422_v56  ;;  %13662 = vst [vmem:[#allocation66_spill] sm:$0xff] %v12425_v7  ;;  %v6103_v43 = vrot.slane %v12463_v57, %v12288_v15  ;;  %v6107_v54 = vrot.slane %v12469_v26, %v12288_v15  ;;  %v12596_v63 = vsub.s32 4, %v13641_v12 }
 0x583   : > { %13663 = vst [vmem:[#allocation61_spill] sm:$0xff] %v12428_v52  ;;  %13664 = vst [vmem:[#allocation54_spill] sm:$0xff] %v12431_v34  ;;  %v5955_v53 = vpop.xlane.xlu1 %5954  ;;  %v6202_v25 = vsel %vm6188_vm10, %v6099_v6, %v6095_v2  ;;  %v6119_v38 = vrot.slane %v12475_v37, %v12288_v15 }
 0x584   : > { %13665 = vst [vmem:[#allocation85_spill] sm:$0xff] %v12434_v49  ;;  %13666 = vst [vmem:[#allocation38_spill] sm:$0xff] %v12437_v32  ;;  %v12467_v24 = vmul.f32 0.088388346, %v5955_v53  ;;  %v6203_v60 = vsel %vm6190_vm1, %v6103_v43, %v6202_v25 }
 0x585   : > { %13667 = vst [vmem:[#allocation67_spill] sm:$0xff] %v12440_v40  ;;  %13668 = vst [vmem:[#allocation36_spill] sm:$0xff] %v12443_v50  ;;  %v6204_v20 = vsel %vm6192_vm14, %v6107_v54, %v6203_v60 }
 0x586   : > { %13669 = vst [vmem:[#allocation76_spill] sm:$0xff] %v12446_v39  ;;  %13670 = vst [vmem:[#allocation51_spill] sm:$0xff] %v12448_v4  ;;  %v6111_v62 = vrot.slane %v12467_v24, %v12288_v15 }
 0x587   : > { %13671 = vst [vmem:[#allocation63_spill] sm:$0xff] %v12450_v5  ;;  %13672 = vst [vmem:[#allocation34_spill] sm:$0xff] %v12453_v59  ;;  %v5961_v3 = vpop.xlane.xlu1 %5960 }
 0x588   : > { %13673 = vst [vmem:[#allocation40_spill] sm:$0xff] %v12455_v16  ;;  %v12481_v42 = vmul.f32 0.088388346, %v5961_v3  ;;  %v6205_v53 = vsel %vm6194_vm12, %v6111_v62, %v6204_v20 }
 0x58a   : > { %v6123_v6 = vrot.slane %v12481_v42, %v12288_v15 }
 0x58b   : > { %v5957_v11 = vpop.xlane.xlu1 %5956 }
 0x58c   : > { %v12483_v46 = vmul.f32 0.088388346, %v5957_v11 }
 0x58e   : > { %v6115_v33 = vrot.slane %v12483_v46, %v12288_v15 }
 0x590   : > { %v6206_v2 = vsel %vm6196_vm6, %v6115_v33, %v6205_v53 }
 0x591   : > { %v6207_v3 = vsel %vm6198_vm5, %v6119_v38, %v6206_v2 }
 0x592   : > { %v6208_v25 = vsel %vm6200_vm11, %v6123_v6, %v6207_v3 }
 0x593   : > { %v6231_v43 = vsel %vm6227_vm0, %v6208_v25, -inf }
 0x594   : > { %6232 = vmax.xlane.f32.xlu1 %v6231_v43 }
 0x59f   : > { %v5967_v60 = vpop.xlane.xlu0 %5966 }
 0x5a0   : > { %v12507_v2 = vmul.f32 0.088388346, %v5967_v60 }
 0x5a2   : > { %v5965_v5 = vpop.xlane.xlu1 %5964 }
 0x5a3   : > { %v5963_v11 = vpop.xlane.xlu0 %5962  ;;  %v12497_v62 = vmul.f32 0.088388346, %v5965_v5 }
 0x5a4   : > { %v12499_v20 = vmul.f32 0.088388346, %v5963_v11 }
 0x5a5   : > { %v6131_v38 = vrot.slane %v12497_v62, %v12288_v15 }
 0x5a6   : > { %v6127_v53 = vrot.slane %v12499_v20, %v12288_v15 }
 0x5a7   : > { %v5969_v54 = vpop.xlane.xlu0 %5968 }
 0x5a8   : > { %v12505_v6 = vmul.f32 0.088388346, %v5969_v54  ;;  %v6209_v50 = vsel %vm6188_vm10, %v6131_v38, %v6127_v53  ;;  %v6135_v54 = vrot.slane %v12507_v2, %v12288_v15 }
 0x5aa   : > { %v6139_v40 = vrot.slane %v12505_v6, %v12288_v15  ;;  %v6210_v60 = vsel %vm6190_vm1, %v6135_v54, %v6209_v50 }
 0x5ac   : > { %v6211_v38 = vsel %vm6192_vm14, %v6139_v40, %v6210_v60 }
 0x5c4   : > { %v5971_v16 = vpop.xlane.xlu0 %5970 }
 0x5c5   : > { %v12509_v3 = vmul.f32 0.088388346, %v5971_v16 }
 0x5c7   : > { %v6143_v16 = vrot.slane %v12509_v3, %v12288_v15 }
 0x5c8   : > { %v5973_v59 = vpop.xlane.xlu0 %5972 }
 0x5c9   : > { %v12511_v25 = vmul.f32 0.088388346, %v5973_v59 }
 0x5cb   : > { %v6147_v59 = vrot.slane %v12511_v25, %v12288_v15 }
 0x5e7   : > { %v5983_v39 = vpop.xlane.xlu1 %5982 }
 0x5e8   : > { %v5979_v4 = vpop.xlane.xlu0 %5978 }
 0x5e9   : > { %v12543_v60 = vmul.f32 0.088388346, %v5979_v4 }
 0x5eb   : > { %v5985_v43 = vpop.xlane.xlu1 %5984 }
 0x5ec   : > { %v5975_v33 = vpop.xlane.xlu0 %5974 }
 0x5ed   : > { %v12513_v11 = vmul.f32 0.088388346, %v5975_v33 }
 0x5ef   : > { %v6151_v33 = vrot.slane %v12513_v11, %v12288_v15  ;;  %v5981_v49 = vpop.xlane.xlu1 %5980 }
 0x5f0   : > { %v5977_v5 = vpop.xlane.xlu0 %5976  ;;  %v12537_v56 = vmul.f32 0.088388346, %v5981_v49  ;;  %v6159_v49 = vrot.slane %v12543_v60, %v12288_v15 }
 0x5f1   : > { %v12518_v32 = vmul.f32 0.088388346, %v5977_v5  ;;  %v6212_v5 = vsel %vm6194_vm12, %v6143_v16, %v6211_v38  ;;  %v12547_v38 = vmul.f32 0.088388346, %v5983_v39 }
 0x5f2   : > { %v6213_v34 = vsel %vm6196_vm6, %v6147_v59, %v6212_v5  ;;  %v6163_v59 = vrot.slane %v12537_v56, %v12288_v15 }
 0x5f3   : > { %v6155_v53 = vrot.slane %v12518_v32, %v12288_v15  ;;  %v6214_v7 = vsel %vm6198_vm5, %v6151_v33, %v6213_v34  ;;  %v12552_v33 = vmul.f32 0.088388346, %v5985_v43  ;;  %v6167_v4 = vrot.slane %v12547_v38, %v12288_v15 }
 0x5f4   : > { %v12534_v52 = vpop.xlane.xlu0 %6229 }
 0x5f5   : > { %v6215_v50 = vsel %vm6200_vm11, %v6155_v53, %v6214_v7  ;;  %v6247_v54 = vrot.slane %v12534_v52, %v9725_v27  ;;  %v6216_v53 = vsel %vm6188_vm10, %v6163_v59, %v6159_v49 }
 0x5f6   : > { %v6234_v40 = vsel %vm6227_vm0, %v6215_v50, -inf }
 0x5f7   : > { %6235 = vmax.xlane.f32.xlu0 %v6234_v40  ;;  %v6404_v34 = vsub.f32 %v12290_v55, %v6247_v54  ;;  %v6217_v40 = vsel %vm6190_vm1, %v6167_v4, %v6216_v53  ;;  %v6171_v54 = vrot.slane %v12552_v33, %v12288_v15  ;;  %v12573_v53 = vsub.s32 2, %v13641_v12 }
 0x5f8   : > { %v6251_v4 = vrot.slane %v12534_v52, %v13572_v30 }
 0x5f9   : > { %v6436_v50 = vmul.f32 1.442695, %v6404_v34  ;;  %v6218_v59 = vsel %vm6192_vm14, %v6171_v54, %v6217_v40  ;;  %v6255_v54 = vrot.slane %v12534_v52, %v12573_v53 }
 0x5fb   : > { %8653 = vpow2.f32 %v6436_v50 }
 0x5fd   : > { %v5991_v16 = vpop.xlane.xlu1 %5990 }
 0x5fe   : > { %v12566_v43 = vmul.f32 0.088388346, %v5991_v16 }
 0x600   : > { %v6183_v16 = vrot.slane %v12566_v43, %v12288_v15 }
 0x601   : > { %v5987_v7 = vpop.xlane.xlu1 %5986 }
 0x602   : > { %v12555_v5 = vmul.f32 0.088388346, %v5987_v7 }
 0x604   : > { %v6175_v39 = vrot.slane %v12555_v5, %v12288_v15 }
 0x605   : > { %v5989_v55 = vpop.xlane.xlu1 %5988 }
 0x606   : > { %v12564_v14 = vmul.f32 0.088388346, %v5989_v55  ;;  %v6219_v34 = vsel %vm6194_vm12, %v6175_v39, %v6218_v59  ;;  %v12586_v39 = vsub.s32 3, %v13641_v12  ;;  %v6405_v59 = vsub.f32 %v12285_v31, %v6251_v4 }
 0x607   : > { %v12603_v31 = vsub.s32 5, %v13641_v12  ;;  %v6263_v4 = vrot.slane %v12534_v52, %v12596_v63 }
 0x608   : > { %v6179_v49 = vrot.slane %v12564_v14, %v12288_v15  ;;  %v6438_v35 = vmul.f32 1.442695, %v6405_v59  ;;  %v12615_v59 = vsub.s32 7, %v13641_v12 }
 0x609   : > { %v5993_v7 = vpop.xlane.xlu1 %5992 }
 0x60a   : > { %v6220_v55 = vsel %vm6196_vm6, %v6179_v49, %v6219_v34  ;;  %v12578_v21 = vmul.f32 0.088388346, %v5993_v7  ;;  %v12593_v7 = vpop.eup %8653  ;;  %8655 = vpow2.f32 %v6438_v35 }
 0x60b   : > { %v6221_v40 = vsel %vm6198_vm5, %v6183_v16, %v6220_v55  ;;  %v6259_v55 = vrot.slane %v12534_v52, %v12586_v39  ;;  %v6406_v16 = vsub.f32 %v12297_v28, %v6255_v54  ;;  %v6408_v28 = vsub.f32 %v12310_v10, %v6263_v4 }
 0x60c   : > { %v6187_v50 = vrot.slane %v12578_v21, %v12288_v15 }
 0x60d   : > { %6533 = vperm.xlu0 %8612, %v12593_v7   ;;  %v6444_v35 = vmul.f32 1.442695, %v6408_v28 }
 0x60e   : > { %v6222_v49 = vsel %vm6200_vm11, %v6187_v50, %v6221_v40  ;;  %v6407_v50 = vsub.f32 %v12313_v47, %v6259_v55  ;;  %v6440_v40 = vmul.f32 1.442695, %v6406_v16  ;;  %v6275_v16 = vrot.slane %v12534_v52, %v12615_v59 }
 0x60f   : > { %v6237_v34 = vsel %vm6227_vm0, %v6222_v49, -inf  ;;  %v12609_v49 = vsub.s32 6, %v13641_v12 }
 0x610   : > { %6238 = vmax.xlane.f32.xlu1 %v6237_v34  ;;  %v6267_v34 = vrot.slane %v12534_v52, %v12603_v31  ;;  %8657 = vpow2.f32 %v6440_v40  ;;  %v6442_v54 = vmul.f32 1.442695, %v6407_v50 }
 0x611   : > { %v6271_v51 = vrot.slane %v12534_v52, %v12609_v49 }
 0x612   : > { %v6409_v47 = vsub.f32 %v12332_v22, %v6267_v34  ;;  %8659 = vpow2.f32 %v6442_v54  ;;  %v13674_v34 = vld [vmem:[#allocation57_spill] sm:$0xff] }
 0x613   : > { %v6410_v29 = vsub.f32 %v12324_v18, %v6271_v51  ;;  %8661 = vpow2.f32 %v6444_v35  ;;  %v6411_v28 = vsub.f32 %v13674_v34, %v6275_v16 }
 0x614   : > { %v12620_v55 = vpop.eup %8655  ;;  %v6446_v12 = vmul.f32 1.442695, %v6409_v47 }
 0x615   : > { %v6448_v18 = vmul.f32 1.442695, %v6410_v29  ;;  %v6450_v16 = vmul.f32 1.442695, %v6411_v28 }
 0x616   : > { %8663 = vpow2.f32 %v6446_v12 }
 0x61a   : > { %v12628_v40 = vpop.eup %8657 }
 0x61c   : > { %v12636_v35 = vpop.eup %8659 }
 0x621   : > { %v6233_v10 = vpop.xlane.xlu1 %6232  ;;  %6536 = vperm.xlu1 %8611, %v12620_v55  }
 0x622   : > { %v6283_v4 = vrot.slane %v6233_v10, %v13572_v30  ;;  %v6287_v50 = vrot.slane %v6233_v10, %v12573_v53  ;;  %v6291_v54 = vrot.slane %v6233_v10, %v12586_v39  ;;  %v6279_v51 = vrot.slane %v6233_v10, %v9725_v27 }
 0x623   : > { %v6295_v19 = vrot.slane %v6233_v10, %v12596_v63  ;;  %v6299_v29 = vrot.slane %v6233_v10, %v12603_v31  ;;  %v6303_v34 = vrot.slane %v6233_v10, %v12609_v49 }
 0x624   : > { %v6413_v22 = vsub.f32 %v12457_v8, %v6283_v4  ;;  %v6414_v52 = vsub.f32 %v12463_v57, %v6287_v50  ;;  %v6415_v41 = vsub.f32 %v12469_v26, %v6291_v54  ;;  %v6412_v57 = vsub.f32 %v12459_v45, %v6279_v51  ;;  %v12642_v4 = vpop.eup %8661 }
 0x625   : > { %6539 = vperm.xlu1 %8611, %v12628_v40   ;;  %v6416_v12 = vsub.f32 %v12467_v24, %v6295_v19  ;;  %v6417_v28 = vsub.f32 %v12483_v46, %v6299_v29  ;;  %v6418_v24 = vsub.f32 %v12475_v37, %v6303_v34 }
 0x626   : > { %v6454_v47 = vmul.f32 1.442695, %v6413_v22  ;;  %v6456_v8 = vmul.f32 1.442695, %v6414_v52  ;;  %v6458_v50 = vmul.f32 1.442695, %v6415_v41  ;;  %v12647_v22 = vpop.eup %8663  ;;  %v6307_v41 = vrot.slane %v6233_v10, %v12615_v59 }
 0x627   : > { %v6452_v26 = vmul.f32 1.442695, %v6412_v57  ;;  %v6460_v45 = vmul.f32 1.442695, %v6416_v12  ;;  %v6462_v52 = vmul.f32 1.442695, %v6417_v28 }
 0x628   : > { %8665 = vpow2.f32 %v6454_v47  ;;  %v6419_v51 = vsub.f32 %v12481_v42, %v6307_v41  ;;  %v6464_v47 = vmul.f32 1.442695, %v6418_v24 }
 0x629   : > { %6542 = vperm.xlu1 %8611, %v12636_v35   ;;  %8667 = vpow2.f32 %v6448_v18 }
 0x62a   : > { %8669 = vpow2.f32 %v6456_v8  ;;  %v6466_v37 = vmul.f32 1.442695, %v6419_v51 }
 0x62b   : > { %8671 = vpow2.f32 %v6450_v16 }
 0x62c   : > { %8673 = vpow2.f32 %v6458_v50 }
 0x62d   : > { %6545 = vperm.xlu1 %8611, %v12642_v4   ;;  %8675 = vpow2.f32 %v6452_v26 }
 0x62e   : > { %8677 = vpow2.f32 %v6460_v45 }
 0x62f   : > { %8679 = vpow2.f32 %v6462_v52 }
 0x630   : > { %8681 = vpow2.f32 %v6464_v47 }
 0x631   : > { %6548 = vperm.xlu1 %8611, %v12647_v22   ;;  %8683 = vpow2.f32 %v6466_v37 }
 0x632   : > { %v12652_v54 = vpop.eup %8665 }
 0x633   : > { %v12654_v19 = vpop.eup %8667  ;;  %6560 = vperm.xlu0 %8612, %v12652_v54  }
 0x634   : > { %v12660_v46 = vpop.eup %8669 }
 0x635   : > { %6551 = vperm.xlu1 %8611, %v12654_v19   ;;  %v12662_v18 = vpop.eup %8671 }
 0x636   : > { %v12667_v8 = vpop.eup %8673 }
 0x637   : > { %6563 = vperm.xlu0 %8612, %v12660_v46   ;;  %v12669_v10 = vpop.eup %8675 }
 0x638   : > { %v12673_v16 = vpop.eup %8677 }
 0x639   : > { %6554 = vperm.xlu1 %8611, %v12662_v18   ;;  %v12676_v42 = vpop.eup %8679 }
 0x63a   : > { %v12679_v57 = vpop.eup %8681 }
 0x63b   : > { %6566 = vperm.xlu0 %8612, %v12667_v8   ;;  %v12682_v29 = vpop.eup %8683 }
 0x63d   : > { %6557 = vperm.xlu1 %8611, %v12669_v10  }
 0x63f   : > { %6569 = vperm.xlu0 %8612, %v12673_v16  }
 0x643   : > { %6572 = vperm.xlu0 %8612, %v12676_v42  }
 0x647   : > { %6575 = vperm.xlu0 %8612, %v12679_v57  }
 0x64b   : > { %6578 = vperm.xlu0 %8612, %v12682_v29  }
 0x684   : > { %v6236_v12 = vpop.xlane.xlu0 %6235 }
 0x685   : > { %v6311_v50 = vrot.slane %v6236_v12, %v9725_v27  ;;  %v6315_v26 = vrot.slane %v6236_v12, %v13572_v30  ;;  %v6319_v34 = vrot.slane %v6236_v12, %v12573_v53  ;;  %v6323_v28 = vrot.slane %v6236_v12, %v12586_v39 }
 0x686   : > { %v6327_v47 = vrot.slane %v6236_v12, %v12596_v63  ;;  %v6331_v58 = vrot.slane %v6236_v12, %v12603_v31 }
 0x687   : > { %v6420_v45 = vsub.f32 %v12499_v20, %v6311_v50  ;;  %v6421_v41 = vsub.f32 %v12497_v62, %v6315_v26  ;;  %v6422_v24 = vsub.f32 %v12507_v2, %v6319_v34  ;;  %v6423_v37 = vsub.f32 %v12505_v6, %v6323_v28 }
 0x688   : > { %v6424_v1 = vsub.f32 %v12509_v3, %v6327_v47  ;;  %v6425_v20 = vsub.f32 %v12511_v25, %v6331_v58  ;;  %v6335_v6 = vrot.slane %v6236_v12, %v12609_v49  ;;  %v6339_v58 = vrot.slane %v6236_v12, %v12615_v59 }
 0x689   : > { %v6468_v52 = vmul.f32 1.442695, %v6420_v45  ;;  %v6470_v51 = vmul.f32 1.442695, %v6421_v41  ;;  %v6472_v9 = vmul.f32 1.442695, %v6422_v24 }
 0x68a   : > { %v6474_v13 = vmul.f32 1.442695, %v6423_v37  ;;  %v6476_v62 = vmul.f32 1.442695, %v6424_v1  ;;  %v6478_v26 = vmul.f32 1.442695, %v6425_v20  ;;  %v6426_v25 = vsub.f32 %v12513_v11, %v6335_v6 }
 0x68b   : > { %8685 = vpow2.f32 %v6468_v52  ;;  %v6427_v12 = vsub.f32 %v12518_v32, %v6339_v58 }
 0x68c   : > { %8687 = vpow2.f32 %v6470_v51  ;;  %v6480_v37 = vmul.f32 1.442695, %v6426_v25 }
 0x68d   : > { %8689 = vpow2.f32 %v6472_v9 }
 0x68e   : > { %8691 = vpow2.f32 %v6474_v13 }
 0x68f   : > { %8693 = vpow2.f32 %v6476_v62 }
 0x690   : > { %8695 = vpow2.f32 %v6478_v26 }
 0x695   : > { %v12697_v2 = vpop.eup %8685 }
 0x696   : > { %v12699_v50 = vpop.eup %8687  ;;  %6581 = vperm.xlu1 %8611, %v12697_v2  }
 0x697   : > { %6584 = vperm.xlu0 %8612, %v12699_v50   ;;  %v12704_v3 = vpop.eup %8689 }
 0x698   : > { %v12716_v52 = vpop.eup %8691 }
 0x699   : > { %v12724_v62 = vpop.eup %8693 }
 0x69a   : > { %6587 = vperm.xlu1 %8611, %v12704_v3  }
 0x69d   : > { %v6239_v34 = vpop.xlane.xlu1 %6238 }
 0x69e   : > { %v6343_v9 = vrot.slane %v6239_v34, %v9725_v27  ;;  %v6347_v13 = vrot.slane %v6239_v34, %v13572_v30  ;;  %v6351_v1 = vrot.slane %v6239_v34, %v12573_v53  ;;  %v6355_v41 = vrot.slane %v6239_v34, %v12586_v39  ;;  %6590 = vperm.xlu1 %8611, %v12716_v52  }
 0x69f   : > { %v6363_v6 = vrot.slane %v6239_v34, %v12603_v31 }
 0x6a0   : > { %v6428_v28 = vsub.f32 %v12543_v60, %v6343_v9  ;;  %v6429_v45 = vsub.f32 %v12537_v56, %v6347_v13  ;;  %v6430_v24 = vsub.f32 %v12547_v38, %v6351_v1  ;;  %v6359_v60 = vrot.slane %v6239_v34, %v12596_v63  ;;  %v12729_v9 = vpop.eup %8695 }
 0x6a1   : > { %v12720_v11 = vpop.permute.xlu1 %6536  ;;  %v6431_v56 = vsub.f32 %v12552_v33, %v6355_v41  ;;  %v6482_v38 = vmul.f32 1.442695, %v6427_v12  ;;  %v6367_v33 = vrot.slane %v6239_v34, %v12609_v49  ;;  %v6433_v1 = vsub.f32 %v12564_v14, %v6363_v6 }
 0x6a2   : > { %v6484_v51 = vmul.f32 1.442695, %v6428_v28  ;;  %v6486_v47 = vmul.f32 1.442695, %v6429_v45  ;;  %v6488_v20 = vmul.f32 1.442695, %v6430_v24  ;;  %6593 = vperm.xlu1 %8611, %v12724_v62   ;;  %v6432_v32 = vsub.f32 %v12555_v5, %v6359_v60 }
 0x6a3   : > { %v6490_v26 = vmul.f32 1.442695, %v6431_v56  ;;  %v6371_v45 = vrot.slane %v6239_v34, %v12615_v59  ;;  %v6434_v41 = vsub.f32 %v12566_v43, %v6367_v33  ;;  %v6494_v24 = vmul.f32 1.442695, %v6433_v1 }
 0x6a4   : > { %8697 = vpow2.f32 %v6484_v51  ;;  %v6492_v58 = vmul.f32 1.442695, %v6432_v32 }
 0x6a5   : > { %8699 = vpow2.f32 %v6486_v47  ;;  %v6540_v13 = vpop.permute.xlu1 %6539  ;;  %v6534_v47 = vpop.permute.xlu0 %6533  ;;  %v6435_v12 = vsub.f32 %v12578_v21, %v6371_v45 }
 0x6a6   : > { %8701 = vpow2.f32 %v6480_v37  ;;  %6596 = vperm.xlu1 %8611, %v12729_v9   ;;  %v6496_v37 = vmul.f32 1.442695, %v6434_v41 }
 0x6a7   : > { %8703 = vpow2.f32 %v6488_v20  ;;  %v6498_v20 = vmul.f32 1.442695, %v6435_v12  ;;  %v6639_v12 = vrot.slane %v6540_v13, %v12288_v15 }
 0x6a8   : > { %8705 = vpow2.f32 %v6482_v38 }
 0x6a9   : > { %8707 = vpow2.f32 %v6490_v26  ;;  %v6543_v5 = vpop.permute.xlu1 %6542 }
 0x6aa   : > { %8709 = vpow2.f32 %v6492_v58  ;;  %v6643_v17 = vrot.slane %v6543_v5, %v12288_v15 }
 0x6ab   : > { %8711 = vpow2.f32 %v6494_v24  ;;  %v6635_v24 = vrot.slane %v12720_v11, %v12288_v15 }
 0x6ac   : > { %8713 = vpow2.f32 %v6496_v37 }
 0x6ad   : > { %v6546_v34 = vpop.permute.xlu1 %6545  ;;  %8715 = vpow2.f32 %v6498_v20  ;;  %v6631_v20 = vrot.slane %v6534_v47, %v12288_v15 }
 0x6ae   : > { %v12734_v25 = vpop.eup %8697  ;;  %v6647_v23 = vrot.slane %v6546_v34, %v12288_v15 }
 0x6af   : > { %v12736_v28 = vpop.eup %8699  ;;  %6605 = vperm.xlu1 %8611, %v12734_v25   ;;  %v6756_v48 = vsel %vm6188_vm10, %v6635_v24, %v6631_v20 }
 0x6b0   : > { %6608 = vperm.xlu0 %8612, %v12736_v28   ;;  %v12742_v51 = vpop.eup %8701 }
 0x6b1   : > { %v12744_v14 = vpop.eup %8703  ;;  %v6549_v6 = vpop.permute.xlu1 %6548 }
 0x6b2   : > { %v12749_v60 = vpop.eup %8705  ;;  %v6561_v43 = vpop.permute.xlu0 %6560  ;;  %v6651_v61 = vrot.slane %v6549_v6, %v12288_v15 }
 0x6b3   : > { %6599 = vperm.xlu1 %8611, %v12742_v51   ;;  %v12751_v56 = vpop.eup %8707  ;;  %v6667_v0 = vrot.slane %v6561_v43, %v12288_v15 }
 0x6b4   : > { %6611 = vperm.xlu0 %8612, %v12744_v14   ;;  %v12755_v38 = vpop.eup %8709 }
 0x6b5   : > { %v12758_v32 = vpop.eup %8711  ;;  %v6552_v26 = vpop.permute.xlu1 %6551 }
 0x6b6   : > { %v6564_v21 = vpop.permute.xlu0 %6563  ;;  %v12761_v33 = vpop.eup %8713  ;;  %v6655_v11 = vrot.slane %v6552_v26, %v12288_v15 }
 0x6b7   : > { %6602 = vperm.xlu1 %8611, %v12749_v60   ;;  %13675 = vst [vmem:[#allocation59_spill] sm:$0xff] %v12761_v33  ;;  %v12764_v58 = vpop.eup %8715  ;;  %v6671_v6 = vrot.slane %v6564_v21, %v12288_v15 }
 0x6b8   : > { %6614 = vperm.xlu0 %8612, %v12751_v56   ;;  %13676 = vst [vmem:[#allocation77_spill] sm:$0xff] %v12764_v58 }
 0x6b9   : > { %v6555_v45 = vpop.permute.xlu1 %6554 }
 0x6ba   : > { %v6567_v1 = vpop.permute.xlu0 %6566  ;;  %v6659_v47 = vrot.slane %v6555_v45, %v12288_v15 }
 0x6bc   : > { %6617 = vperm.xlu0 %8612, %v12755_v38  }
 0x6bd   : > { %v6558_v37 = vpop.permute.xlu1 %6557 }
 0x6be   : > { %v6570_v41 = vpop.permute.xlu0 %6569 }
 0x6c0   : > { %6620 = vperm.xlu0 %8612, %v12758_v32  }
 0x6c2   : > { %v6573_v44 = vpop.permute.xlu0 %6572 }
 0x6c4   : > { %6623 = vperm.xlu0 %8612, %v12761_v33   ;;  %v6757_v33 = vsel %vm6190_vm1, %v6639_v12, %v6756_v48 }
 0x6c5   : > { %v6758_v13 = vsel %vm6192_vm14, %v6643_v17, %v6757_v33  ;;  %v6675_v17 = vrot.slane %v6567_v1, %v12288_v15 }
 0x6c6   : > { %v6759_v5 = vsel %vm6194_vm12, %v6647_v23, %v6758_v13  ;;  %v6576_v20 = vpop.permute.xlu0 %6575 }
 0x6c7   : > { %v6760_v34 = vsel %vm6196_vm6, %v6651_v61, %v6759_v5  ;;  %v6679_v61 = vrot.slane %v6570_v41, %v12288_v15 }
 0x6c8   : > { %6626 = vperm.xlu0 %8612, %v12764_v58   ;;  %v6663_v58 = vrot.slane %v6558_v37, %v12288_v15  ;;  %v6761_v37 = vsel %vm6198_vm5, %v6655_v11, %v6760_v34 }
 0x6c9   : > { %v6762_v48 = vsel %vm6200_vm11, %v6659_v47, %v6761_v37 }
 0x6ca   : > { %v6763_v24 = vsel %vm6188_vm10, %v6667_v0, %v6663_v58  ;;  %v6788_v43 = vsel %vm6227_vm0, %v6762_v48, 0.0  ;;  %v6579_v23 = vpop.permute.xlu0 %6578  ;;  %v6683_v0 = vrot.slane %v6573_v44, %v12288_v15  ;;  %v6687_v58 = vrot.slane %v6576_v20, %v12288_v15 }
 0x6cb   : > { %v6764_v26 = vsel %vm6190_vm1, %v6671_v6, %v6763_v24  ;;  %v6691_v45 = vrot.slane %v6579_v23, %v12288_v15 }
 0x6cc   : > { %v6765_v33 = vsel %vm6192_vm14, %v6675_v17, %v6764_v26 }
 0x6cd   : > { %v6766_v21 = vsel %vm6194_vm12, %v6679_v61, %v6765_v33 }
 0x6ce   : > { %v6767_v12 = vsel %vm6196_vm6, %v6683_v0, %v6766_v21 }
 0x6cf   : > { %v6768_v1 = vsel %vm6198_vm5, %v6687_v58, %v6767_v12 }
 0x6d0   : > { %v6769_v11 = vsel %vm6200_vm11, %v6691_v45, %v6768_v1 }
 0x6d1   : > { %v6791_v13 = vsel %vm6227_vm0, %v6769_v11, 0.0 }
 0x6db   : > { %6789 = vadd.xlane.f32.xlu1 %v6788_v43 }
 0x6e7   : > { %6792 = vadd.xlane.f32.xlu0 %v6791_v13 }
 0x715   : > { %v6582_v47 = vpop.permute.xlu1 %6581 }
 0x716   : > { %v6585_v24 = vpop.permute.xlu0 %6584  ;;  %v6695_v20 = vrot.slane %v6582_v47, %v12288_v15 }
 0x717   : > { %v6699_v37 = vrot.slane %v6585_v24, %v12288_v15 }
 0x719   : > { %v6588_v41 = vpop.permute.xlu1 %6587  ;;  %v6770_v61 = vsel %vm6188_vm10, %v6699_v37, %v6695_v20 }
 0x71a   : > { %v6703_v26 = vrot.slane %v6588_v41, %v12288_v15 }
 0x71c   : > { %v6771_v21 = vsel %vm6190_vm1, %v6703_v26, %v6770_v61 }
 0x71d   : > { %v6591_v5 = vpop.permute.xlu1 %6590 }
 0x71e   : > { %v6707_v17 = vrot.slane %v6591_v5, %v12288_v15 }
 0x720   : > { %v6772_v45 = vsel %vm6192_vm14, %v6707_v17, %v6771_v21 }
 0x721   : > { %v6594_v34 = vpop.permute.xlu1 %6593 }
 0x722   : > { %v6711_v43 = vrot.slane %v6594_v34, %v12288_v15 }
 0x724   : > { %v6773_v12 = vsel %vm6194_vm12, %v6711_v43, %v6772_v45 }
 0x725   : > { %v6597_v44 = vpop.permute.xlu1 %6596 }
 0x726   : > { %v6715_v23 = vrot.slane %v6597_v44, %v12288_v15 }
 0x728   : > { %v6774_v11 = vsel %vm6196_vm6, %v6715_v23, %v6773_v12 }
 0x72e   : > { %v6606_v6 = vpop.permute.xlu1 %6605 }
 0x72f   : > { %v6609_v48 = vpop.permute.xlu0 %6608  ;;  %v6727_v20 = vrot.slane %v6606_v6, %v12288_v15 }
 0x730   : > { %v6731_v37 = vrot.slane %v6609_v48, %v12288_v15 }
 0x732   : > { %v6600_v33 = vpop.permute.xlu1 %6599  ;;  %v6777_v61 = vsel %vm6188_vm10, %v6731_v37, %v6727_v20 }
 0x733   : > { %v6612_v0 = vpop.permute.xlu0 %6611  ;;  %v6719_v58 = vrot.slane %v6600_v33, %v12288_v15 }
 0x734   : > { %v6735_v26 = vrot.slane %v6612_v0, %v12288_v15 }
 0x735   : > { %v6775_v41 = vsel %vm6198_vm5, %v6719_v58, %v6774_v11 }
 0x736   : > { %v6603_v1 = vpop.permute.xlu1 %6602  ;;  %v6778_v21 = vsel %vm6190_vm1, %v6735_v26, %v6777_v61 }
 0x737   : > { %v6723_v13 = vrot.slane %v6603_v1, %v12288_v15  ;;  %v6615_v47 = vpop.permute.xlu0 %6614 }
 0x738   : > { %v6739_v17 = vrot.slane %v6615_v47, %v12288_v15 }
 0x739   : > { %v6776_v5 = vsel %vm6200_vm11, %v6723_v13, %v6775_v41 }
 0x73a   : > { %v6794_v34 = vsel %vm6227_vm0, %v6776_v5, 0.0  ;;  %v6779_v45 = vsel %vm6192_vm14, %v6739_v17, %v6778_v21 }
 0x73b   : > { %v6618_v44 = vpop.permute.xlu0 %6617  ;;  %6795 = vadd.xlane.f32.xlu0 %v6794_v34 }
 0x73c   : > { %v6743_v43 = vrot.slane %v6618_v44, %v12288_v15 }
 0x73e   : > { %v6780_v6 = vsel %vm6194_vm12, %v6743_v43, %v6779_v45 }
 0x73f   : > { %v6621_v24 = vpop.permute.xlu0 %6620 }
 0x740   : > { %v6747_v23 = vrot.slane %v6621_v24, %v12288_v15 }
 0x742   : > { %v6781_v0 = vsel %vm6196_vm6, %v6747_v23, %v6780_v6 }
 0x743   : > { %v6624_v33 = vpop.permute.xlu0 %6623 }
 0x744   : > { %v6751_v58 = vrot.slane %v6624_v33, %v12288_v15 }
 0x746   : > { %v6782_v1 = vsel %vm6198_vm5, %v6751_v58, %v6781_v0 }
 0x747   : > { %v6627_v48 = vpop.permute.xlu0 %6626 }
 0x748   : > { %v6755_v12 = vrot.slane %v6627_v48, %v12288_v15 }
 0x74a   : > { %v6783_v11 = vsel %vm6200_vm11, %v6755_v12, %v6782_v1 }
 0x74b   : > { %v6797_v13 = vsel %vm6227_vm0, %v6783_v11, 0.0 }
 0x74c   : > { %6798 = vadd.xlane.f32.xlu1 %v6797_v13  ;;  %v8645_v13 = vld [vmem:[%s13677_s23] sm:$0xff]  }
 0x74d   : > { %8322 = vmatprep.subr.bf16.mxu1 %v8645_v13 }
 0x74e   : > { %8323 = vmatpush3.bf16.msra.mxu1 %v8645_v13 }
 0x768   : > { %v6790_v47 = vpop.xlane.xlu1 %6789 }
 0x769   : > { %8717 = vrcp.f32 %v6790_v47 }
 0x773   : > { %v8718_v41 = vpop.eup %8717 }
 0x774   : > { %v6793_v5 = vpop.xlane.xlu0 %6792  ;;  %v6811_v34 = vrot.slane %v8718_v41, %v9725_v27  ;;  %v6815_v44 = vrot.slane %v8718_v41, %v13572_v30  ;;  %v6819_v20 = vrot.slane %v8718_v41, %v12573_v53  ;;  %v6823_v26 = vrot.slane %v8718_v41, %v12586_v39 }
 0x775   : > { %8719 = vrcp.f32 %v6793_v5  ;;  %v6827_v43 = vrot.slane %v8718_v41, %v12596_v63  ;;  %v6831_v21 = vrot.slane %v8718_v41, %v12603_v31  ;;  %v6835_v45 = vrot.slane %v8718_v41, %v12609_v49 }
 0x776   : > { %v6968_v24 = vmul.f32 %v12593_v7, %v6811_v34  ;;  %v6969_v15 = vmul.f32 %v12620_v55, %v6815_v44  ;;  %v6970_v37 = vmul.f32 %v12628_v40, %v6819_v20  ;;  %v6971_v17 = vmul.f32 %v12636_v35, %v6823_v26 }
 0x777   : > { %v6972_v55 = vmul.f32 %v12642_v4, %v6827_v43  ;;  %v6973_v35 = vmul.f32 %v12647_v22, %v6831_v21  ;;  %v6974_v4 = vmul.f32 %v12654_v19, %v6835_v45  ;;  %v6839_v48 = vrot.slane %v8718_v41, %v12615_v59 }
 0x778   : > { %7002 = vperm.xlu0 %8612, %v6968_v24   ;;  %7007 = vperm.xlu1 %8611, %v6969_v15  }
 0x779   : > { %v6975_v22 = vmul.f32 %v12662_v18, %v6839_v48 }
 0x77c   : > { %7012 = vperm.xlu1 %8611, %v6970_v37  }
 0x77f   : > { %v8720_v33 = vpop.eup %8719 }
 0x780   : > { %7017 = vperm.xlu1 %8611, %v6971_v17   ;;  %v6847_v61 = vrot.slane %v8720_v33, %v13572_v30  ;;  %v6851_v23 = vrot.slane %v8720_v33, %v12573_v53  ;;  %v6855_v58 = vrot.slane %v8720_v33, %v12586_v39  ;;  %v6859_v6 = vrot.slane %v8720_v33, %v12596_v63 }
 0x781   : > { %v6863_v0 = vrot.slane %v8720_v33, %v12603_v31  ;;  %v6843_v12 = vrot.slane %v8720_v33, %v9725_v27  ;;  %v6867_v1 = vrot.slane %v8720_v33, %v12609_v49 }
 0x782   : > { %v6977_v7 = vmul.f32 %v12652_v54, %v6847_v61  ;;  %v6978_v40 = vmul.f32 %v12660_v46, %v6851_v23  ;;  %v6979_v54 = vmul.f32 %v12667_v8, %v6855_v58  ;;  %v6980_v46 = vmul.f32 %v12673_v16, %v6859_v6  ;;  %v13679_v58 = vld [vmem:[#allocation59_spill] sm:$0xff] }
 0x783   : > { %v6981_v8 = vmul.f32 %v12676_v42, %v6863_v0  ;;  %v6976_v19 = vmul.f32 %v12669_v10, %v6843_v12  ;;  %v6982_v11 = vmul.f32 %v12679_v57, %v6867_v1  ;;  %v6871_v16 = vrot.slane %v8720_v33, %v12615_v59  ;;  %v13681_v0 = vld [vmem:[#allocation77_spill] sm:$0xff] }
 0x784   : > { %7047 = vperm.xlu0 %8612, %v6977_v7   ;;  %7022 = vperm.xlu1 %8611, %v6972_v55  }
 0x785   : > { %v6983_v18 = vmul.f32 %v12682_v29, %v6871_v16  ;;  %v13682_v16 = vld [vmem:[#allocation68_spill] sm:$0xff] }
 0x788   : > { %7052 = vperm.xlu0 %8612, %v6978_v40   ;;  %7027 = vperm.xlu1 %8611, %v6973_v35   ;;  %v13678_v40 = vld [vmem:[#allocation87_spill] sm:$0xff] }
 0x78c   : > { %7057 = vperm.xlu0 %8612, %v6979_v54   ;;  %7032 = vperm.xlu1 %8611, %v6974_v4   ;;  %v13680_v4 = vld [vmem:[#allocation65_spill] sm:$0xff] }
 0x790   : > { %7062 = vperm.xlu0 %8612, %v6980_v46   ;;  %7037 = vperm.xlu1 %8611, %v6975_v22  }
 0x794   : > { %7067 = vperm.xlu0 %8612, %v6981_v8   ;;  %7042 = vperm.xlu1 %8611, %v6976_v19   ;;  %v8648_v8 = vld [vmem:[%s13677_s23 + $0x18] sm:$0xff]  }
 0x798   : > { %7072 = vperm.xlu0 %8612, %v6982_v11  }
 0x79c   : > { %7077 = vperm.xlu0 %8612, %v6983_v18  }
 0x7c8   : > { %v6796_v42 = vpop.xlane.xlu0 %6795 }
 0x7c9   : > { %8721 = vrcp.f32 %v6796_v42 }
 0x7d3   : > { %v8722_v10 = vpop.eup %8721 }
 0x7d4   : > { %v6879_v47 = vrot.slane %v8722_v10, %v13572_v30  ;;  %v6875_v41 = vrot.slane %v8722_v10, %v9725_v27  ;;  %v6883_v29 = vrot.slane %v8722_v10, %v12573_v53  ;;  %v6887_v24 = vrot.slane %v8722_v10, %v12586_v39 }
 0x7d5   : > { %v6891_v20 = vrot.slane %v8722_v10, %v12596_v63 }
 0x7d6   : > { %v6985_v57 = vmul.f32 %v12699_v50, %v6879_v47  ;;  %v6984_v5 = vmul.f32 %v12697_v2, %v6875_v41  ;;  %v6986_v44 = vmul.f32 %v12704_v3, %v6883_v29  ;;  %v6987_v15 = vmul.f32 %v12716_v52, %v6887_v24 }
 0x7d7   : > { %v6988_v50 = vmul.f32 %v12724_v62, %v6891_v20  ;;  %v6895_v2 = vrot.slane %v8722_v10, %v12603_v31  ;;  %v6899_v62 = vrot.slane %v8722_v10, %v12609_v49 }
 0x7d8   : > { %7087 = vperm.xlu0 %8612, %v6985_v57   ;;  %7082 = vperm.xlu1 %8611, %v6984_v5  }
 0x7d9   : > { %v6799_v34 = vpop.xlane.xlu1 %6798  ;;  %v6989_v17 = vmul.f32 %v12729_v9, %v6895_v2 }
 0x7da   : > { %8723 = vrcp.f32 %v6799_v34 }
 0x7dc   : > { %7092 = vperm.xlu1 %8611, %v6986_v44   ;;  %v13683_v44 = vld [vmem:[#allocation83_spill] sm:$0xff] }
 0x7e0   : > { %7097 = vperm.xlu1 %8611, %v6987_v15   ;;  %v13684_v15 = vld [vmem:[#allocation70_spill] sm:$0xff] }
 0x7e4   : > { %v8724_v37 = vpop.eup %8723  ;;  %7102 = vperm.xlu1 %8611, %v6988_v50  }
 0x7e5   : > { %v6911_v26 = vrot.slane %v8724_v37, %v13572_v30  ;;  %v6907_v3 = vrot.slane %v8724_v37, %v9725_v27  ;;  %v6915_v33 = vrot.slane %v8724_v37, %v12573_v53  ;;  %v6919_v7 = vrot.slane %v8724_v37, %v12586_v39  ;;  %v8646_v53 = vld [vmem:[%s13677_s23 + $0x8] sm:$0xff]  }
 0x7e6   : > { %v6990_v30 = vmul.f32 %v12742_v51, %v6899_v62  ;;  %v6903_v27 = vrot.slane %v8722_v10, %v12615_v59  ;;  %8324 = vmatprep.subr.bf16.mxu1 %v8646_v53  ;;  %v6927_v51 = vrot.slane %v8724_v37, %v12603_v31 }
 0x7e7   : > { %v6993_v43 = vmul.f32 %v12736_v28, %v6911_v26  ;;  %v6992_v52 = vmul.f32 %v12734_v25, %v6907_v3  ;;  %v6994_v61 = vmul.f32 %v12744_v14, %v6915_v33  ;;  %v6995_v9 = vmul.f32 %v12751_v56, %v6919_v7  ;;  %8325 = vmatpush3.bf16.msra.mxu1 %v8646_v53 }
 0x7e8   : > { %7107 = vperm.xlu1 %8611, %v6989_v17   ;;  %v6923_v25 = vrot.slane %v8724_v37, %v12596_v63  ;;  %v6991_v39 = vmul.f32 %v12749_v60, %v6903_v27  ;;  %v6997_v23 = vmul.f32 %v12758_v32, %v6927_v51  ;;  %v6931_v56 = vrot.slane %v8724_v37, %v12609_v49  ;;  %v8647_v63 = vld [vmem:[%s13677_s23 + $0x10] sm:$0xff]  }
 0x7e9   : > { %7127 = vperm.xlu0 %8612, %v6993_v43   ;;  %8326 = vmatprep.subr.bf16.mxu1 %v8647_v63  ;;  %v6935_v32 = vrot.slane %v8724_v37, %v12615_v59  ;;  %v13685_v27 = vld [vmem:[#allocation72_spill] sm:$0xff] }
 0x7ea   : > { %v6996_v28 = vmul.f32 %v12755_v38, %v6923_v25  ;;  %v6998_v45 = vmul.f32 %v13679_v58, %v6931_v56 }
 0x7eb   : > { %8327 = vmatpush3.bf16.msra.mxu1 %v8647_v63  ;;  %v6999_v12 = vmul.f32 %v13681_v0, %v6935_v32 }
 0x7ec   : > { %7122 = vperm.xlu1 %8611, %v6992_v52   ;;  %8328 = vmatprep.subr.bf16.mxu1 %v8648_v8 }
 0x7ed   : > { %7132 = vperm.xlu0 %8612, %v6994_v61  }
 0x7ef   : > { %8329 = vmatpush3.bf16.msra.mxu1 %v8648_v8  ;;  %v8650_v8 = vld [vmem:[%s13677_s23 + $0x28] sm:$0xff]  }
 0x7f0   : > { %7112 = vperm.xlu1 %8611, %v6990_v30  }
 0x7f1   : > { %7137 = vperm.xlu0 %8612, %v6995_v9   ;;  %v13686_v9 = vld [vmem:[#allocation84_spill] sm:$0xff] }
 0x7f4   : > { %7117 = vperm.xlu1 %8611, %v6991_v39  }
 0x7f5   : > { %7142 = vperm.xlu0 %8612, %v6996_v28  }
 0x7f7   : > { %v7008_v14 = vpop.permute.xlu1 %7007  ;;  %v7003_v55 = vpop.permute.xlu0 %7002 }
 0x7f8   : > { %v7161_v21 = vmul.f32 %v7008_v14, %v12365_v36  ;;  %v7160_v60 = vmul.f32 %v7003_v55, %v13678_v40 }
 0x7f9   : > { %7147 = vperm.xlu0 %8612, %v6997_v23  }
 0x7fa   : > { %v7198_v38 = vrot.slane %v7161_v21, 4  ;;  %v7192_v31 = vrot.slane %v7160_v60, 4 }
 0x7fb   : > { %v7013_v35 = vpop.permute.xlu1 %7012 }
 0x7fc   : > { %v7199_v54 = vadd.f32 %v7198_v38, %v7161_v21  ;;  %v7193_v49 = vadd.f32 %v7192_v31, %v7160_v60  ;;  %v7162_v6 = vmul.f32 %v7013_v35, %v13680_v4  ;;  %v8649_v21 = vld [vmem:[%s13677_s23 + $0x20] sm:$0xff]   ;;  %v13688_v35 = vld [vmem:[#allocation49_spill] sm:$0xff] }
 0x7fd   : > { %7152 = vperm.xlu0 %8612, %v6998_v45   ;;  %v13687_v38 = vld [vmem:[#allocation86_spill] sm:$0xff]  ;;  %8330 = vmatprep.subr.bf16.mxu1 %v8649_v21 }
 0x7fe   : > { %v7200_v48 = vrot.slane %v7199_v54, 2  ;;  %v7194_v46 = vrot.slane %v7193_v49, 2  ;;  %v7204_v36 = vrot.slane %v7162_v6, 4  ;;  %8331 = vmatpush3.bf16.msra.mxu1 %v8649_v21 }
 0x7ff   : > { %v7018_v22 = vpop.permute.xlu1 %7017  ;;  %8332 = vmatprep.subr.bf16.mxu1 %v8650_v8 }
 0x800   : > { %v7201_v19 = vadd.f32 %v7200_v48, %v7199_v54  ;;  %v7195_v1 = vadd.f32 %v7194_v46, %v7193_v49  ;;  %v7205_v11 = vadd.f32 %v7204_v36, %v7162_v6  ;;  %v7163_v59 = vmul.f32 %v7018_v22, %v13682_v16  ;;  %v13689_v16 = vld [vmem:[#allocation62_spill] sm:$0xff] }
 0x801   : > { %7157 = vperm.xlu0 %8612, %v6999_v12  }
 0x802   : > { %v7202_v18 = vrot.slane %v7201_v19, 1  ;;  %v7196_v13 = vrot.slane %v7195_v1, 1  ;;  %v7206_v42 = vrot.slane %v7205_v11, 2  ;;  %v7210_v10 = vrot.slane %v7163_v59, 4  ;;  %8333 = vmatpush3.bf16.msra.mxu1 %v8650_v8 }
 0x803   : > { %v7048_v47 = vpop.permute.xlu0 %7047  ;;  %v7023_v41 = vpop.permute.xlu1 %7022 }
 0x804   : > { %v7203_v57 = vadd.f32 %v7202_v18, %v7201_v19  ;;  %v7197_v5 = vadd.f32 %v7196_v13, %v7195_v1  ;;  %v7207_v29 = vadd.f32 %v7206_v42, %v7205_v11  ;;  %v7211_v34 = vadd.f32 %v7210_v10, %v7163_v59 }
 0x805   : > { %v7169_v24 = vmul.f32 %v7048_v47, %v13683_v44  ;;  %v7164_v20 = vmul.f32 %v7023_v41, %v13684_v15  ;;  %v8651_v44 = vld [vmem:[%s13677_s23 + $0x30] sm:$0xff]  }
 0x806   : > { %v7385_v50 = vpack.c.bf16 %v7203_v57, %v7203_v57  ;;  %v7384_v2 = vpack.c.bf16 %v7197_v5, %v7197_v5  ;;  %v7208_v37 = vrot.slane %v7207_v29, 1  ;;  %v7212_v26 = vrot.slane %v7211_v34, 2  ;;  %8334 = vmatprep.subr.bf16.mxu1 %v8651_v44 }
 0x807   : > { %v7216_v17 = vrot.slane %v7164_v20, 4  ;;  %v7053_v3 = vpop.permute.xlu0 %7052  ;;  %v7028_v43 = vpop.permute.xlu1 %7027  ;;  %v7246_v7 = vrot.slane %v7169_v24, 4  ;;  %8335 = vmatpush3.bf16.msra.mxu1 %v8651_v44 }
 0x808   : > { %v7472_v33 = vunpack.c.l.b16 %v7385_v50  ;;  %v7471_v52 = vunpack.c.l.b16 %v7384_v2  ;;  %v7209_v62 = vadd.f32 %v7208_v37, %v7207_v29  ;;  %v7213_v61 = vadd.f32 %v7212_v26, %v7211_v34  ;;  %v13690_v2 = vld [vmem:[#allocation73_spill] sm:$0xff] }
 0x809   : > { %v7217_v30 = vadd.f32 %v7216_v17, %v7164_v20  ;;  %v7170_v53 = vmul.f32 %v7053_v3, %v13685_v27  ;;  %v7165_v25 = vmul.f32 %v7028_v43, %v13686_v9  ;;  %v7247_v45 = vadd.f32 %v7246_v7, %v7169_v24  ;;  %v8652_v24 = vld [vmem:[%s13677_s23 + $0x38] sm:$0xff]   ;;  %v13692_v27 = vld [vmem:[#allocation88_spill] sm:$0xff] }
 0x80a   : > { %v7503_v39 = vsel %vm6188_vm10, %v7472_v33, %v7471_v52  ;;  %v7386_v28 = vpack.c.bf16 %v7209_v62, %v7209_v62  ;;  %v7214_v51 = vrot.slane %v7213_v61, 1  ;;  %v13691_v7 = vld [vmem:[#allocation74_spill] sm:$0xff]  ;;  %8336 = vmatprep.subr.bf16.mxu1 %v8652_v24 }
 0x80b   : > { %v7218_v14 = vrot.slane %v7217_v30, 2  ;;  %v7252_v55 = vrot.slane %v7170_v53, 4  ;;  %v7222_v23 = vrot.slane %v7165_v25, 4  ;;  %v7058_v56 = vpop.permute.xlu0 %7057  ;;  %v7033_v63 = vpop.permute.xlu1 %7032  ;;  %v7248_v18 = vrot.slane %v7247_v45, 2  ;;  %8337 = vmatpush3.bf16.msra.mxu1 %v8652_v24 }
 0x80c   : > { %v7473_v40 = vunpack.c.l.b16 %v7386_v28  ;;  %v7215_v60 = vadd.f32 %v7214_v51, %v7213_v61  ;;  %v7171_v31 = vmul.f32 %v7058_v56, %v13687_v38  ;;  %v7166_v58 = vmul.f32 %v7033_v63, %v13688_v35 }
 0x80d   : > { %v7219_v32 = vadd.f32 %v7218_v14, %v7217_v30  ;;  %v7223_v54 = vadd.f32 %v7222_v23, %v7165_v25  ;;  %v7253_v36 = vadd.f32 %v7252_v55, %v7170_v53  ;;  %v7249_v17 = vadd.f32 %v7248_v18, %v7247_v45 }
 0x80e   : > { %v7504_v49 = vsel %vm6190_vm1, %v7473_v40, %v7503_v39  ;;  %v7387_v4 = vpack.c.bf16 %v7215_v60, %v7215_v60  ;;  %v7258_v6 = vrot.slane %v7171_v31, 4  ;;  %v7228_v48 = vrot.slane %v7166_v58, 4 }
 0x80f   : > { %v7220_v46 = vrot.slane %v7219_v32, 1  ;;  %v7224_v22 = vrot.slane %v7223_v54, 2  ;;  %v7063_v0 = vpop.permute.xlu0 %7062  ;;  %v7038_v12 = vpop.permute.xlu1 %7037  ;;  %v7254_v5 = vrot.slane %v7253_v36, 2  ;;  %v7250_v14 = vrot.slane %v7249_v17, 1 }
 0x810   : > { %v7474_v19 = vunpack.c.l.b16 %v7387_v4  ;;  %v7259_v1 = vadd.f32 %v7258_v6, %v7171_v31  ;;  %v7229_v11 = vadd.f32 %v7228_v48, %v7166_v58  ;;  %v7172_v59 = vmul.f32 %v7063_v0, %v13689_v16  ;;  %v13693_v31 = vld [vmem:[#allocation58_spill] sm:$0xff] }
 0x811   : > { %v7221_v13 = vadd.f32 %v7220_v46, %v7219_v32  ;;  %v7225_v42 = vadd.f32 %v7224_v22, %v7223_v54  ;;  %v7167_v37 = vmul.f32 %v7038_v12, %v13690_v2  ;;  %v7255_v25 = vadd.f32 %v7254_v5, %v7253_v36  ;;  %v13694_v36 = vld [vmem:[#allocation78_spill] sm:$0xff] }
 0x812   : > { %v7505_v10 = vsel %vm6192_vm14, %v7474_v19, %v7504_v49  ;;  %v7230_v47 = vrot.slane %v7229_v11, 2  ;;  %v7264_v41 = vrot.slane %v7172_v59, 4  ;;  %v7260_v15 = vrot.slane %v7259_v1, 2 }
 0x813   : > { %v7388_v57 = vpack.c.bf16 %v7221_v13, %v7221_v13  ;;  %v7226_v29 = vrot.slane %v7225_v42, 1  ;;  %v7068_v34 = vpop.permute.xlu0 %7067  ;;  %v7043_v26 = vpop.permute.xlu1 %7042  ;;  %v7234_v52 = vrot.slane %v7167_v37, 4  ;;  %v7256_v32 = vrot.slane %v7255_v25, 1 }
 0x814   : > { %v7231_v20 = vadd.f32 %v7230_v47, %v7229_v11  ;;  %v7265_v50 = vadd.f32 %v7264_v41, %v7172_v59  ;;  %v7173_v30 = vmul.f32 %v7068_v34, %v13691_v7  ;;  %v7168_v53 = vmul.f32 %v7043_v26, %v13692_v27 }
 0x815   : > { %v7227_v3 = vadd.f32 %v7226_v29, %v7225_v42  ;;  %v7475_v62 = vunpack.c.l.b16 %v7388_v57  ;;  %v7261_v39 = vadd.f32 %v7260_v15, %v7259_v1  ;;  %v7235_v51 = vadd.f32 %v7234_v52, %v7167_v37 }
 0x816   : > { %v7232_v43 = vrot.slane %v7231_v20, 1  ;;  %v7266_v33 = vrot.slane %v7265_v50, 2  ;;  %v7270_v55 = vrot.slane %v7173_v30, 4  ;;  %v7240_v23 = vrot.slane %v7168_v53, 4 }
 0x817   : > { %v7389_v61 = vpack.c.bf16 %v7227_v3, %v7227_v3  ;;  %v7073_v9 = vpop.permute.xlu0 %7072  ;;  %v7236_v40 = vrot.slane %v7235_v51, 2  ;;  %v7506_v45 = vsel %vm6194_vm12, %v7475_v62, %v7505_v10  ;;  %v7262_v54 = vrot.slane %v7261_v39, 1 }
 0x818   : > { %v7233_v28 = vadd.f32 %v7232_v43, %v7231_v20  ;;  %v7267_v21 = vadd.f32 %v7266_v33, %v7265_v50  ;;  %v7271_v60 = vadd.f32 %v7270_v55, %v7173_v30  ;;  %v7241_v38 = vadd.f32 %v7240_v23, %v7168_v53 }
 0x819   : > { %v7476_v56 = vunpack.c.l.b16 %v7389_v61  ;;  %v7174_v35 = vmul.f32 %v7073_v9, %v13693_v31  ;;  %v7237_v4 = vadd.f32 %v7236_v40, %v7235_v51  ;;  %v7251_v0 = vadd.f32 %v7250_v14, %v7249_v17 }
 0x81a   : > { %v7390_v63 = vpack.c.bf16 %v7233_v28, %v7233_v28  ;;  %v7272_v6 = vrot.slane %v7271_v60, 2  ;;  %v7242_v48 = vrot.slane %v7241_v38, 2  ;;  %v7268_v12 = vrot.slane %v7267_v21, 1 }
 0x81b   : > { %v7078_v58 = vpop.permute.xlu0 %7077  ;;  %v7276_v46 = vrot.slane %v7174_v35, 4  ;;  %v7238_v8 = vrot.slane %v7237_v4, 1  ;;  %v7507_v19 = vsel %vm6196_vm6, %v7476_v56, %v7506_v45  ;;  %v7257_v18 = vadd.f32 %v7256_v32, %v7255_v25  ;;  %v13695_v32 = vld [vmem:[#allocation90_spill] sm:$0xff] }
 0x81c   : > { %v7477_v49 = vunpack.c.l.b16 %v7390_v63  ;;  %v7175_v22 = vmul.f32 %v7078_v58, %v13694_v36  ;;  %v7273_v1 = vadd.f32 %v7272_v6, %v7271_v60  ;;  %v7243_v11 = vadd.f32 %v7242_v48, %v7241_v38 }
 0x81d   : > { %v7277_v16 = vadd.f32 %v7276_v46, %v7174_v35  ;;  %v7263_v13 = vadd.f32 %v7262_v54, %v7261_v39  ;;  %v7239_v42 = vadd.f32 %v7238_v8, %v7237_v4  ;;  %v7393_v29 = vpack.c.bf16 %v7251_v0, %v7251_v0  ;;  %v13697_v0 = vld [vmem:[#allocation91_spill] sm:$0xff] }
 0x81e   : > { %v7282_v59 = vrot.slane %v7175_v22, 4  ;;  %v7508_v10 = vsel %vm6198_vm5, %v7477_v49, %v7507_v19  ;;  %v7274_v47 = vrot.slane %v7273_v1, 1  ;;  %v7244_v41 = vrot.slane %v7243_v11, 1  ;;  %v13696_v49 = vld [vmem:[#allocation89_spill] sm:$0xff] }
 0x81f   : > { %v7278_v57 = vrot.slane %v7277_v16, 2  ;;  %v7269_v34 = vadd.f32 %v7268_v12, %v7267_v21  ;;  %v7391_v44 = vpack.c.bf16 %v7239_v42, %v7239_v42  ;;  %v7394_v2 = vpack.c.bf16 %v7257_v18, %v7257_v18 }
 0x820   : > { %v7283_v5 = vadd.f32 %v7282_v59, %v7175_v22  ;;  %v7275_v24 = vadd.f32 %v7274_v47, %v7273_v1  ;;  %v7245_v15 = vadd.f32 %v7244_v41, %v7243_v11  ;;  %v7395_v26 = vpack.c.bf16 %v7263_v13, %v7263_v13  ;;  %v13698_v13 = vld [vmem:[#allocation92_spill] sm:$0xff] }
 0x821   : > { %v7279_v20 = vadd.f32 %v7278_v57, %v7277_v16  ;;  %v7478_v37 = vunpack.c.l.b16 %v7391_v44  ;;  %v7480_v33 = vunpack.c.l.b16 %v7393_v29  ;;  %v7396_v52 = vpack.c.bf16 %v7269_v34, %v7269_v34 }
 0x822   : > { %v7284_v50 = vrot.slane %v7283_v5, 2  ;;  %v7392_v17 = vpack.c.bf16 %v7245_v15, %v7245_v15  ;;  %v7397_v61 = vpack.c.bf16 %v7275_v24, %v7275_v24  ;;  %v7481_v53 = vunpack.c.l.b16 %v7394_v2  ;;  %v13699_v15 = vld [vmem:[#allocation66_spill] sm:$0xff] }
 0x823   : > { %v7280_v3 = vrot.slane %v7279_v20, 1  ;;  %v7509_v62 = vsel %vm6200_vm11, %v7478_v37, %v7508_v10  ;;  %v7482_v9 = vunpack.c.l.b16 %v7395_v26  ;;  %v7483_v51 = vunpack.c.l.b16 %v7396_v52 }
 0x824   : > { %v7285_v43 = vadd.f32 %v7284_v50, %v7283_v5  ;;  %v7479_v7 = vunpack.c.l.b16 %v7392_v17  ;;  %v7484_v55 = vunpack.c.l.b16 %v7397_v61 }
 0x825   : > { %v7281_v30 = vadd.f32 %v7280_v3, %v7279_v20 }
 0x826   : > { %v7286_v27 = vrot.slane %v7285_v43, 1  ;;  %v7510_v25 = vsel %vm6188_vm10, %v7480_v33, %v7479_v7 }
 0x827   : > { %v7398_v39 = vpack.c.bf16 %v7281_v30, %v7281_v30  ;;  %v7511_v14 = vsel %vm6190_vm1, %v7481_v53, %v7510_v25  ;;  %v13700_v30 = vld [vmem:[#allocation61_spill] sm:$0xff]  ;;  %v13701_v53 = vld [vmem:[#allocation54_spill] sm:$0xff] }
 0x828   : > { %v7287_v28 = vadd.f32 %v7286_v27, %v7285_v43  ;;  %v7512_v56 = vsel %vm6192_vm14, %v7482_v9, %v7511_v14 }
 0x829   : > { %v7485_v63 = vunpack.c.l.b16 %v7398_v39  ;;  %v7513_v21 = vsel %vm6194_vm12, %v7483_v51, %v7512_v56 }
 0x82a   : > { %v7399_v23 = vpack.c.bf16 %v7287_v28, %v7287_v28  ;;  %v7514_v60 = vsel %vm6196_vm6, %v7484_v55, %v7513_v21  ;;  %v13702_v21 = vld [vmem:[#allocation85_spill] sm:$0xff] }
 0x82b   : > { %v7515_v38 = vsel %vm6198_vm5, %v7485_v63, %v7514_v60 }
 0x82c   : > { %v7486_v40 = vunpack.c.l.b16 %v7399_v23 }
 0x82e   : > { %v7516_v31 = vsel %vm6200_vm11, %v7486_v40, %v7515_v38 }
 0x82f   : > { %v7531_v35 = vpack.c.b16 %v7516_v31, %v7509_v62 }
 0x831   : > { %8338 = vmatprep.mubr.bf16.mxu1 %v7531_v35 }
 0x857   : > { %v7083_v58 = vpop.permute.xlu1 %7082  ;;  %v7088_v45 = vpop.permute.xlu0 %7087 }
 0x858   : > { %v7176_v54 = vmul.f32 %v7083_v58, %v13695_v32  ;;  %v7177_v4 = vmul.f32 %v7088_v45, %v13696_v49  ;;  %v13703_v58 = vld [vmem:[#allocation38_spill] sm:$0xff] }
 0x85a   : > { %v7288_v6 = vrot.slane %v7176_v54, 4  ;;  %v7294_v48 = vrot.slane %v7177_v4, 4 }
 0x85b   : > { %v7093_v46 = vpop.permute.xlu1 %7092 }
 0x85c   : > { %v7289_v36 = vadd.f32 %v7288_v6, %v7176_v54  ;;  %v7295_v22 = vadd.f32 %v7294_v48, %v7177_v4  ;;  %v7178_v12 = vmul.f32 %v7093_v46, %v13697_v0 }
 0x85e   : > { %v7290_v8 = vrot.slane %v7289_v36, 2  ;;  %v7296_v19 = vrot.slane %v7295_v22, 2  ;;  %v7300_v1 = vrot.slane %v7178_v12, 4 }
 0x85f   : > { %v7098_v11 = vpop.permute.xlu1 %7097 }
 0x860   : > { %v7291_v16 = vadd.f32 %v7290_v8, %v7289_v36  ;;  %v7297_v59 = vadd.f32 %v7296_v19, %v7295_v22  ;;  %v7301_v18 = vadd.f32 %v7300_v1, %v7178_v12  ;;  %v7179_v42 = vmul.f32 %v7098_v11, %v13698_v13  ;;  %v13704_v12 = vld [vmem:[#allocation67_spill] sm:$0xff] }
 0x862   : > { %v7292_v10 = vrot.slane %v7291_v16, 1  ;;  %v7298_v47 = vrot.slane %v7297_v59, 1  ;;  %v7302_v41 = vrot.slane %v7301_v18, 2  ;;  %v7306_v57 = vrot.slane %v7179_v42, 4 }
 0x863   : > { %v7103_v5 = vpop.permute.xlu1 %7102 }
 0x864   : > { %v7293_v29 = vadd.f32 %v7292_v10, %v7291_v16  ;;  %v7299_v34 = vadd.f32 %v7298_v47, %v7297_v59  ;;  %v7303_v44 = vadd.f32 %v7302_v41, %v7301_v18  ;;  %v7307_v24 = vadd.f32 %v7306_v57, %v7179_v42  ;;  %v13705_v10 = vld [vmem:[#allocation36_spill] sm:$0xff] }
 0x865   : > { %v7180_v20 = vmul.f32 %v7103_v5, %v13699_v15 }
 0x866   : > { %v7400_v50 = vpack.c.bf16 %v7293_v29, %v7293_v29  ;;  %v7401_v2 = vpack.c.bf16 %v7299_v34, %v7299_v34  ;;  %v7304_v37 = vrot.slane %v7303_v44, 1  ;;  %v7308_v26 = vrot.slane %v7307_v24, 2 }
 0x867   : > { %v7312_v17 = vrot.slane %v7180_v20, 4  ;;  %v7108_v3 = vpop.permute.xlu1 %7107 }
 0x868   : > { %v7487_v43 = vunpack.c.l.b16 %v7400_v50  ;;  %v7488_v33 = vunpack.c.l.b16 %v7401_v2  ;;  %v7305_v52 = vadd.f32 %v7304_v37, %v7303_v44  ;;  %v7309_v62 = vadd.f32 %v7308_v26, %v7307_v24  ;;  %v7128_v61 = vpop.permute.xlu0 %7127 }
 0x869   : > { %v7313_v7 = vadd.f32 %v7312_v17, %v7180_v20  ;;  %v7181_v27 = vmul.f32 %v7108_v3, %v13700_v30  ;;  %v7185_v9 = vmul.f32 %v7128_v61, %v13701_v53  ;;  %v13706_v20 = vld [vmem:[#allocation76_spill] sm:$0xff] }
 0x86a   : > { %v7517_v25 = vsel %vm6188_vm10, %v7488_v33, %v7487_v43  ;;  %v7402_v39 = vpack.c.bf16 %v7305_v52, %v7305_v52  ;;  %v7310_v28 = vrot.slane %v7309_v62, 1 }
 0x86b   : > { %v7314_v51 = vrot.slane %v7313_v7, 2  ;;  %v7318_v14 = vrot.slane %v7181_v27, 4  ;;  %v7342_v55 = vrot.slane %v7185_v9, 4  ;;  %v7123_v23 = vpop.permute.xlu1 %7122 }
 0x86c   : > { %v7489_v56 = vunpack.c.l.b16 %v7402_v39  ;;  %v7311_v63 = vadd.f32 %v7310_v28, %v7309_v62  ;;  %v7184_v40 = vmul.f32 %v7123_v23, %v13702_v21  ;;  %v7133_v60 = vpop.permute.xlu0 %7132  ;;  %v13707_v23 = vld [vmem:[#allocation51_spill] sm:$0xff] }
 0x86d   : > { %v7315_v38 = vadd.f32 %v7314_v51, %v7313_v7  ;;  %v7319_v31 = vadd.f32 %v7318_v14, %v7181_v27  ;;  %v7343_v35 = vadd.f32 %v7342_v55, %v7185_v9  ;;  %v7186_v45 = vmul.f32 %v7133_v60, %v13703_v58  ;;  %v13708_v58 = vld [vmem:[#allocation63_spill] sm:$0xff] }
 0x86e   : > { %v7518_v32 = vsel %vm6190_vm1, %v7489_v56, %v7517_v25  ;;  %v7403_v54 = vpack.c.bf16 %v7311_v63, %v7311_v63  ;;  %v7336_v49 = vrot.slane %v7184_v40, 4 }
 0x86f   : > { %v7316_v4 = vrot.slane %v7315_v38, 1  ;;  %v7320_v6 = vrot.slane %v7319_v31, 2  ;;  %v7344_v48 = vrot.slane %v7343_v35, 2  ;;  %v7348_v46 = vrot.slane %v7186_v45, 4  ;;  %v7113_v36 = vpop.permute.xlu1 %7112 }
 0x870   : > { %v7490_v22 = vunpack.c.l.b16 %v7403_v54  ;;  %v7337_v0 = vadd.f32 %v7336_v49, %v7184_v40  ;;  %v7182_v8 = vmul.f32 %v7113_v36, %v13704_v12  ;;  %v7138_v19 = vpop.permute.xlu0 %7137 }
 0x871   : > { %v7317_v1 = vadd.f32 %v7316_v4, %v7315_v38  ;;  %v7321_v11 = vadd.f32 %v7320_v6, %v7319_v31  ;;  %v7345_v16 = vadd.f32 %v7344_v48, %v7343_v35  ;;  %v7349_v59 = vadd.f32 %v7348_v46, %v7186_v45 }
 0x872   : > { %v7519_v18 = vsel %vm6192_vm14, %v7490_v22, %v7518_v32  ;;  %v7338_v13 = vrot.slane %v7337_v0, 2  ;;  %v7324_v42 = vrot.slane %v7182_v8, 4  ;;  %v7187_v47 = vmul.f32 %v7138_v19, %v13705_v10  ;;  %v13709_v22 = vld [vmem:[#allocation34_spill] sm:$0xff] }
 0x873   : > { %v7404_v41 = vpack.c.bf16 %v7317_v1, %v7317_v1  ;;  %v7322_v57 = vrot.slane %v7321_v11, 1  ;;  %v7346_v5 = vrot.slane %v7345_v16, 1  ;;  %v7350_v29 = vrot.slane %v7349_v59, 2  ;;  %v7118_v34 = vpop.permute.xlu1 %7117 }
 0x874   : > { %v7339_v44 = vadd.f32 %v7338_v13, %v7337_v0  ;;  %v7325_v24 = vadd.f32 %v7324_v42, %v7182_v8  ;;  %v7354_v15 = vrot.slane %v7187_v47, 4  ;;  %v7183_v50 = vmul.f32 %v7118_v34, %v13706_v20  ;;  %v7143_v2 = vpop.permute.xlu0 %7142 }
 0x875   : > { %v7491_v37 = vunpack.c.l.b16 %v7404_v41  ;;  %v7323_v26 = vadd.f32 %v7322_v57, %v7321_v11  ;;  %v7347_v17 = vadd.f32 %v7346_v5, %v7345_v16  ;;  %v7351_v3 = vadd.f32 %v7350_v29, %v7349_v59  ;;  %v13710_v29 = vld [vmem:[#allocation40_spill] sm:$0xff] }
 0x876   : > { %v7340_v43 = vrot.slane %v7339_v44, 1  ;;  %v7326_v33 = vrot.slane %v7325_v24, 2  ;;  %v7355_v52 = vadd.f32 %v7354_v15, %v7187_v47  ;;  %v7330_v62 = vrot.slane %v7183_v50, 4 }
 0x877   : > { %v7520_v61 = vsel %vm6194_vm12, %v7491_v37, %v7519_v18  ;;  %v7405_v7 = vpack.c.bf16 %v7323_v26, %v7323_v26  ;;  %v7409_v30 = vpack.c.bf16 %v7347_v17, %v7347_v17  ;;  %v7352_v27 = vrot.slane %v7351_v3, 1 }
 0x878   : > { %v7341_v53 = vadd.f32 %v7340_v43, %v7339_v44  ;;  %v7327_v9 = vadd.f32 %v7326_v33, %v7325_v24  ;;  %v7356_v25 = vrot.slane %v7355_v52, 2  ;;  %v7331_v39 = vadd.f32 %v7330_v62, %v7183_v50  ;;  %v7148_v28 = vpop.permute.xlu0 %7147 }
 0x879   : > { %v7492_v51 = vunpack.c.l.b16 %v7405_v7  ;;  %v7496_v14 = vunpack.c.l.b16 %v7409_v30  ;;  %v7353_v55 = vadd.f32 %v7352_v27, %v7351_v3  ;;  %v7188_v56 = vmul.f32 %v7143_v2, %v13707_v23 }
 0x87a   : > { %v7408_v63 = vpack.c.bf16 %v7341_v53, %v7341_v53  ;;  %v7328_v21 = vrot.slane %v7327_v9, 1  ;;  %v7357_v40 = vadd.f32 %v7356_v25, %v7355_v52  ;;  %v7332_v60 = vrot.slane %v7331_v39, 2 }
 0x87b   : > { %v7521_v38 = vsel %vm6196_vm6, %v7492_v51, %v7520_v61  ;;  %v7410_v31 = vpack.c.bf16 %v7353_v55, %v7353_v55  ;;  %v7360_v35 = vrot.slane %v7188_v56, 4  ;;  %v7189_v45 = vmul.f32 %v7148_v28, %v13708_v58 }
 0x87c   : > { %v7495_v32 = vunpack.c.l.b16 %v7408_v63  ;;  %v7329_v54 = vadd.f32 %v7328_v21, %v7327_v9  ;;  %v7358_v49 = vrot.slane %v7357_v40, 1  ;;  %v7333_v4 = vadd.f32 %v7332_v60, %v7331_v39  ;;  %v7153_v6 = vpop.permute.xlu0 %7152 }
 0x87d   : > { %v7497_v48 = vunpack.c.l.b16 %v7410_v31  ;;  %v7361_v46 = vadd.f32 %v7360_v35, %v7188_v56  ;;  %v7366_v36 = vrot.slane %v7189_v45, 4  ;;  %v7190_v0 = vmul.f32 %v7153_v6, %v13709_v22  ;;  %v7973_v35 = vld [vmem:[%s13712_s29] ss:$0 sm:$0xff] }
 0x87e   : > { %v7524_v12 = vsel %vm6188_vm10, %v7496_v14, %v7495_v32  ;;  %v7406_v8 = vpack.c.bf16 %v7329_v54, %v7329_v54  ;;  %v7359_v19 = vadd.f32 %v7358_v49, %v7357_v40  ;;  %v7334_v1 = vrot.slane %v7333_v4, 1 }
 0x87f   : > { %v7525_v11 = vsel %vm6190_vm1, %v7497_v48, %v7524_v12  ;;  %v7362_v16 = vrot.slane %v7361_v46, 2  ;;  %v7367_v59 = vadd.f32 %v7366_v36, %v7189_v45  ;;  %v7372_v18 = vrot.slane %v7190_v0, 4 }
 0x880   : > { %v7493_v13 = vunpack.c.l.b16 %v7406_v8  ;;  %v7411_v42 = vpack.c.bf16 %v7359_v19, %v7359_v19  ;;  %v7335_v10 = vadd.f32 %v7334_v1, %v7333_v4  ;;  %v7158_v47 = vpop.permute.xlu0 %7157 }
 0x881   : > { %v7363_v41 = vadd.f32 %v7362_v16, %v7361_v46  ;;  %v7368_v57 = vrot.slane %v7367_v59, 2  ;;  %v7373_v5 = vadd.f32 %v7372_v18, %v7190_v0  ;;  %v7191_v34 = vmul.f32 %v7158_v47, %v13710_v29 }
 0x882   : > { %v7522_v44 = vsel %vm6198_vm5, %v7493_v13, %v7521_v38  ;;  %v7498_v24 = vunpack.c.l.b16 %v7411_v42  ;;  %v7407_v15 = vpack.c.bf16 %v7335_v10, %v7335_v10 }
 0x883   : > { %v7364_v20 = vrot.slane %v7363_v41, 1  ;;  %v7369_v50 = vadd.f32 %v7368_v57, %v7367_v59  ;;  %v7374_v2 = vrot.slane %v7373_v5, 2  ;;  %v7378_v37 = vrot.slane %v7191_v34, 4 }
 0x884   : > { %v7526_v26 = vsel %vm6192_vm14, %v7498_v24, %v7525_v11  ;;  %v7494_v17 = vunpack.c.l.b16 %v7407_v15 }
 0x885   : > { %v7365_v3 = vadd.f32 %v7364_v20, %v7363_v41  ;;  %v7370_v43 = vrot.slane %v7369_v50, 1  ;;  %v7375_v33 = vadd.f32 %v7374_v2, %v7373_v5  ;;  %v7379_v52 = vadd.f32 %v7378_v37, %v7191_v34 }
 0x886   : > { %v7523_v62 = vsel %vm6200_vm11, %v7494_v17, %v7522_v44 }
 0x887   : > { %v7412_v61 = vpack.c.bf16 %v7365_v3, %v7365_v3  ;;  %v7371_v7 = vadd.f32 %v7370_v43, %v7369_v50  ;;  %v7376_v30 = vrot.slane %v7375_v33, 1  ;;  %v7380_v27 = vrot.slane %v7379_v52, 2 }
 0x889   : > { %v7499_v53 = vunpack.c.l.b16 %v7412_v61  ;;  %v7413_v9 = vpack.c.bf16 %v7371_v7, %v7371_v7  ;;  %v7377_v25 = vadd.f32 %v7376_v30, %v7375_v33  ;;  %v7381_v39 = vadd.f32 %v7380_v27, %v7379_v52 }
 0x88b   : > { %v7527_v28 = vsel %vm6194_vm12, %v7499_v53, %v7526_v26  ;;  %v7500_v51 = vunpack.c.l.b16 %v7413_v9  ;;  %v7414_v14 = vpack.c.bf16 %v7377_v25, %v7377_v25  ;;  %v7382_v55 = vrot.slane %v7381_v39, 1 }
 0x88d   : > { %v7528_v23 = vsel %vm6196_vm6, %v7500_v51, %v7527_v28  ;;  %v7501_v56 = vunpack.c.l.b16 %v7414_v14  ;;  %v7383_v63 = vadd.f32 %v7382_v55, %v7381_v39 }
 0x88f   : > { %v7529_v21 = vsel %vm6198_vm5, %v7501_v56, %v7528_v23  ;;  %v7415_v40 = vpack.c.bf16 %v7383_v63, %v7383_v63 }
 0x891   : > { %v7502_v60 = vunpack.c.l.b16 %v7415_v40 }
 0x893   : > { %v7530_v38 = vsel %vm6200_vm11, %v7502_v60, %v7529_v21 }
 0x894   : > { %v7532_v31 = vpack.c.b16 %v7530_v38, %v7523_v62 }
 0x896   : > { %8339 = vmatmul.mubr.bf16.vlgmr.msra.gmra.mrb[44].mxu1 %v7532_v31 }
 0x969   : > { %v8340_v58 = vpop.f32.mrb[44].mxu1 }
 0x96a   : > { %v7626_v45 = vadd.f32 %v8340_v58, %v7973_v35  ;;  %v7617_v32 = vpop.f32.mrb[45].mxu1 }
 0x96b   : > { %v7618_v54 = vadd.f32 %v7973_v35, %v7617_v32  ;;  %v8341_v49 = vpop.f32.mrb[46].mxu1 }
 0x96c   : > { %7634 = vst [vmem:[%s853_s6 + $0x10] sm:$0xff] %v7626_v45  ;;  %v7629_v4 = vadd.f32 %v8341_v49, %v7973_v35  ;;  %v7620_v6 = vpop.f32.mrb[47].mxu1 }
 0x96d   : > { %7632 = vst [vmem:[%s853_s6] sm:$0xff] %v7618_v54  ;;  %v7621_v48 = vadd.f32 %v7973_v35, %v7620_v6 }
 0x96e   : > { %7635 = vst [vmem:[%s853_s6 + $0x18] sm:$0xff] %v7629_v4 }
 0x96f   : > { %7633 = vst [vmem:[%s853_s6 + $0x8] sm:$0xff] %v7621_v48 }
 0x970   : > { %8996 = shalt.err (!%p8993_p9)
}
 0x971   : > { %s8997_s16 = scalar_lea.hbm %s12990_s25, 512  ;;  %s9001_s7 = scalar_lea.hbm %s13715_s22, 1024 }
 0x972   : > { %p8998_p12 = scmp.ne.s32.totalorder %s12990_s25, %s8997_s16  ;;  %p9002_p3 = scmp.lt.u32.totalorder %s12990_s25, %s13715_s22 }
 0x973   : > { %p9003_p4 = scmp.lt.u32.totalorder %s9001_s7, %s8997_s16  ;;  %p9005_p8 = scmp.lt.u32.totalorder %s8997_s16, %s12990_s25 }
 0x974   : > { %p8999_p10 = pnand %p8998_p12, %p13716_p11 }
 0x975   : > { %p9004_p7 = por %p9003_p4, %p9002_p3 }
 0x976   : > { %p9000_p2 = pneg %p8999_p10 }
 0x977   : > { %p9006_p13 = por %p9005_p8, %p9004_p7 }
 0x979   : > { %p9007_p1 = pnand %p9006_p13, %p9000_p2 }
 0x97b   : > { %9010 = shalt.err (!%p9007_p1)
}
 0x97c   : > { %s9084_s24 = smov 128   ;;  %s9085_s4 = smov 8  }
 0x97d   : > { %8450 = dma.vmem_to_hbm [thread:$0]  (%p13716_p11), %s12985_s1, 512, %s12990_s25, %s12992_s5, %s9084_s24, %s9084_s24, %s9085_s4  }
 0x97e PF: > { %s13717_s30 = sld [smem:[#allocation27_spill]]  ;;  %s13718_s12 = sld [smem:[#allocation24_spill]] }
 0x97f   : > { %s13719_s28 = sld [smem:[#allocation31_spill]] }
 0x984   : > { %p8502_p0 = scmp.ge.s32.totalorder %s13717_s30, 2  ;;  %s7665_s29 = sand.u32 1, %s13718_s12  }
 0x985   : > { %p13720_p6 = scmp.ne.s32.totalorder %s13719_s28, 0  ;;  %s7666_s16 = scalar_lea.sflag [#allocation4], %s7665_s29 }
 0x987   : > { %p8481_p5 = pnand %p8502_p0, %p13720_p6 }
 0x989   : > { %9048 = dma.done.wait (!%p8481_p5), %s7666_s16, 512  }
 0x98a   : > { %9050 = vsyncadd (!%p8481_p5), %s7666_s16, 4294966784  ;;  %s13721_s25 = sld [smem:[#allocation28_spill]]  ;;  %s13722_s4 = sld [smem:[#allocation25_spill]] }
 0x98b   : > { %s13723_s30 = sld [smem:[#allocation26_spill]]  ;;  %s13724_s24 = sld [smem:[#allocation29_spill]] }
 0x990   : > { %p38_p9 = scmp.ge.s32.totalorder %s13721_s25, 4  }
 0x992   :  { %40 = sbr.rel (!%p38_p9) target bundleno = 23 (0x17), region = 190 }
 0x999   :  { %7671 = vsyncpa [#allocation3], 1 }
 0x99a   :  { %7673 = vsyncpa [#allocation3 + $0x1], 1 }
 0x99b   :  { %7674 = vsyncpa [#allocation6], 1 }
 0x99c   :  { %7675 = vsyncpa [#allocation9], 1 }
 0x99d   :  { %7676 = vsyncpa [#allocation12], 1 }
 0x99e   :  { %7677 = vsyncpa [#allocation15], 1 }
 0x99f   :  { %7678 = vsyncpa [#allocation4], 1 }
 0x9a0   :  { %7680 = vsyncpa [#allocation4 + $0x1], 1 }

</bundles_post_ra>
